<compile_context>
chip_gen: v6e
topology: v6e:2x2x1
jax: 0.10.0
libtpu: 0.0.40
codegen_flags: <defaults>
</compile_context>

<pallas_src>
import jax
import jax.numpy as jnp
import numpy as np
from jax import lax
from jax.experimental import pallas as pl
from jax.experimental.pallas import tpu as pltpu

# Architecture constants implied by PSD_cnn_spatial(batch_norm=False, mlp defaults).
C_IN = 204        # MEG gradiometer channels
GROUPS = 12
C_SP = 96         # spatial conv output channels (== len(s_kernel)*32 with len==3)
K_SP = 10
C_T1, C_T2 = 128, 256
K_T12, K_T34 = 5, 4
MLP_HID = 256     # mlp_hidden default
BN_EPS = 1e-5


# --------------------------------------------------------------------------------------
# Kernel (one grid step == one block of B samples, flat time-major layout)
# --------------------------------------------------------------------------------------
def psd_cnn_spatial_kernel(x_ref, wsp_ref, bnsp_ref,
                           w1_ref, b1_ref, w2_ref, b2_ref,
                           w3_ref, b3_ref, w4_ref, b4_ref,
                           sel1_ref, sel2_ref, sel3_ref,
                           wm1_ref, bm1_ref, bn1_ref,
                           wm2_ref, bm2_ref, bn2_ref,
                           wm3_ref, bm3_ref, o_ref):
    x = x_ref[0]                                            # (B*T, 204) bf16, time-major

    def conv(h, w_ref, bias=None):
        """Valid Conv1d on the flat (rows, Cin) slab, bf16 operands, f32 accumulation.

        w_ref: (K, Cin, Cout).  Output row r = sum_k h[r+k] @ W[k]; valid rows of each
        sample never read another sample's valid rows (the garbage rows in-between are
        computed but dropped at the next pooling/compaction step).
        """
        k_taps = w_ref.shape[0]
        m = h.shape[0] - k_taps + 1
        acc = jnp.dot(h[0:m, :], w_ref[0], preferred_element_type=jnp.float32)
        for k in range(1, k_taps):
            acc = acc + jnp.dot(h[k:k + m, :], w_ref[k],
                                preferred_element_type=jnp.float32)
        if bias is not None:
            acc = acc + bias
        return acc                                          # (m, Cout) f32

    def pool(h, sel_ref):
        """MaxPool1d(2) fused with per-sample re-compaction.

        pairmax[r] = max(h[r], h[r+1]); the wrapper-built 0/1 selector picks the rows
        2t within each sample and packs them densely (dropping garbage rows), so the
        output is again a fully compact flat slab.
        """
        pm = jnp.maximum(h[:-1, :], h[1:, :]).astype(jnp.bfloat16)
        return jnp.dot(sel_ref[...], pm, preferred_element_type=jnp.float32)

    # ---- spatial: grouped conv (dense block-diag weight) -> maxpool -> dropout(id) -> BN
    h = conv(x, wsp_ref)
    h = pool(h, sel1_ref)
    h = (h * bnsp_ref[0:1, :] + bnsp_ref[1:2, :]).astype(jnp.bfloat16)

    # ---- temporal ----
    h = jnp.maximum(conv(h, w1_ref, b1_ref[...]), 0.0).astype(jnp.bfloat16)
    h = jnp.maximum(conv(h, w2_ref, b2_ref[...]), 0.0)
    h = pool(h, sel2_ref).astype(jnp.bfloat16)
    h = jnp.maximum(conv(h, w3_ref, b3_ref[...]), 0.0).astype(jnp.bfloat16)
    h = jnp.maximum(conv(h, w4_ref, b4_ref[...]), 0.0)
    # Last selector also regroups rows as [all t=0 rows ; all t=1 rows] -> no gathers.
    h = pool(h, sel3_ref).astype(jnp.bfloat16)              # (L5p*B, 256)

    # ---- flatten (PyTorch (C, L) row-major order) + MLP head ----
    # wm1_ref[t] holds the Linear(512,256) columns that multiply time step t, so summing
    # the per-time-step (B,256)@(256,256) matmuls equals flatten-then-matmul exactly.
    l5p = wm1_ref.shape[0]
    bsz = h.shape[0] // l5p
    z = bm1_ref[...]                                        # (1, 256) f32
    for t in range(l5p):
        z = z + jnp.dot(h[t * bsz:(t + 1) * bsz, :], wm1_ref[t],
                        preferred_element_type=jnp.float32)
    z = jnp.maximum(z, 0.0)
    z = z * bn1_ref[0:1, :] + bn1_ref[1:2, :]

    z = jnp.maximum(jnp.dot(z.astype(jnp.bfloat16), wm2_ref[...],
                            preferred_element_type=jnp.float32) + bm2_ref[...], 0.0)
    z = z * bn2_ref[0:1, :] + bn2_ref[1:2, :]

    out = jnp.sum(z * wm3_ref[...], axis=1, keepdims=True) + bm3_ref[...]   # (B, 1)
    o_ref[0] = out.astype(o_ref.dtype)


# --------------------------------------------------------------------------------------
# Wrapper: parameter folding / layout plumbing + pallas_call
# --------------------------------------------------------------------------------------
def _bn_fold(gamma, beta, mean, var):
    scale = gamma / jnp.sqrt(var + BN_EPS)
    return jnp.stack([scale, beta - mean * scale], axis=0).astype(jnp.float32)  # (2, C)


def psd_cnn_spatial_forward(x, p, block_b=16):
    """Forward pass of PSD_cnn_spatial (eval mode).

    x: (N, 1, 204, T) or (N, 204, T); p: dict of PyTorch-layout parameters.
    Returns (N,) — mirrors the module's final .squeeze() for N > 1.
    """
    if x.ndim == 4:                                # the module's x.squeeze()
        x = x.reshape(x.shape[0], x.shape[-2], x.shape[-1])
    N, c_in, T = x.shape
    assert c_in == C_IN
    in_dtype = x.dtype

    B = int(min(block_b, N))
    G = -(-N // B)                                  # ceil(N / B) grid blocks
    N_pad = G * B

    # ---- static per-stage geometry of the flat layout (must match kernel slicing) ----
    R0 = B * T
    M1 = R0 - (K_SP - 1)                            # spatial conv output rows
    L1 = T - (K_SP - 1); L1p = L1 // 2              # valid len / pooled len per sample
    R1 = B * L1p
    M2 = R1 - (K_T12 - 1); L2 = L1p - (K_T12 - 1)
    M3 = M2 - (K_T12 - 1); L3 = L2 - (K_T12 - 1); L3p = L3 // 2
    R2 = B * L3p
    M4 = R2 - (K_T34 - 1); L4 = L3p - (K_T34 - 1)
    M5 = M4 - (K_T34 - 1); L5 = L4 - (K_T34 - 1); L5p = L5 // 2
    assert L5p >= 1 and C_T2 * L5p == p["mlp_w1"].shape[1], \
        "sequence length T incompatible with the Linear(512, 256) head"

    # ---- maxpool + re-compaction selectors (exact 0/1, built once outside the kernel) --
    def pool_selector(l_out, stride_in, m_in, group_by_t):
        sel = np.zeros((B * l_out, m_in - 1), np.float32)
        for bb in range(B):
            for t in range(l_out):
                r = t * B + bb if group_by_t else bb * l_out + t
                sel[r, bb * stride_in + 2 * t] = 1.0
        return jnp.asarray(sel).astype(jnp.bfloat16)

    sel1 = pool_selector(L1p, T,   M1, False)       # (B*L1p, M1-1)
    sel2 = pool_selector(L3p, L1p, M3, False)       # (B*L3p, M3-1)
    sel3 = pool_selector(L5p, L3p, M5, True)        # (L5p*B, M5-1), grouped by time step

    # ---- weights: grouped conv -> dense block-diag, all MXU operands in bf16 ----------
    wg = p["spatial_w"].reshape(GROUPS, C_SP // GROUPS, C_IN // GROUPS, K_SP)
    eye = jnp.eye(GROUPS, dtype=jnp.float32)
    w_sp_dense = (wg[:, :, None, :, :] * eye[:, None, :, None, None]
                  ).reshape(C_SP, C_IN, K_SP)
    w_sp_t = jnp.transpose(w_sp_dense, (2, 1, 0)).astype(jnp.bfloat16)       # (10, 204, 96)

    def conv_taps(w):       # (Cout, Cin, K) -> (K, Cin, Cout) bf16
        return jnp.transpose(w, (2, 1, 0)).astype(jnp.bfloat16)

    def row(b):             # (C,) -> (1, C) f32
        return b.reshape(1, -1).astype(jnp.float32)

    # Linear(512,256): regroup columns by the time index of the PyTorch (C=256, L) flatten.
    w1m_r = jnp.transpose(p["mlp_w1"].reshape(MLP_HID, C_T2, L5p),
                          (2, 1, 0)).astype(jnp.bfloat16)                    # (L5p, 256, 256)

    consts = [
        w_sp_t,
        _bn_fold(p["bn_sp_gamma"], p["bn_sp_beta"], p["bn_sp_mean"], p["bn_sp_var"]),
        conv_taps(p["t1_w"]), row(p["t1_b"]),
        conv_taps(p["t2_w"]), row(p["t2_b"]),
        conv_taps(p["t3_w"]), row(p["t3_b"]),
        conv_taps(p["t4_w"]), row(p["t4_b"]),
        sel1, sel2, sel3,
        w1m_r, row(p["mlp_b1"]),
        _bn_fold(p["bn1_gamma"], p["bn1_beta"], p["bn1_mean"], p["bn1_var"]),
        jnp.transpose(p["mlp_w2"]).astype(jnp.bfloat16), row(p["mlp_b2"]),
        _bn_fold(p["bn2_gamma"], p["bn2_beta"], p["bn2_mean"], p["bn2_var"]),
        p["mlp_w3"].reshape(1, -1).astype(jnp.float32),
        p["mlp_b3"].reshape(1, 1).astype(jnp.float32),
    ]

    # ---- input: pad batch to G*B, time-major, flat (B*T, C) slabs, bf16 ---------------
    x_f = x.astype(jnp.float32)
    if N_pad > N:
        x_f = jnp.concatenate(
            [x_f, jnp.zeros((N_pad - N, C_IN, T), jnp.float32)], axis=0)
    x_flat = jnp.transpose(x_f, (0, 2, 1)).reshape(G, B * T, C_IN).astype(jnp.bfloat16)

    def const_spec(a):      # full-array block, constant index -> DMA'd once, VMEM-resident
        nd = a.ndim
        return pl.BlockSpec(a.shape, lambda n, _nd=nd: (0,) * _nd)

    out = pl.pallas_call(
        psd_cnn_spatial_kernel,
        out_shape=jax.ShapeDtypeStruct((G, B, 1), jnp.float32),
        grid_spec=pltpu.PrefetchScalarGridSpec(
            num_scalar_prefetch=0,
            grid=(G,),
            in_specs=[pl.BlockSpec((1, B * T, C_IN), lambda n: (n, 0, 0))]
                     + [const_spec(a) for a in consts],
            out_specs=pl.BlockSpec((1, B, 1), lambda n: (n, 0, 0)),
        ),
        compiler_params=pltpu.CompilerParams(
            dimension_semantics=("parallel",),
            vmem_limit_bytes=32 * 1024 * 1024),
    )(x_flat, *consts)
    return out.reshape(N_pad)[:N].astype(in_dtype)          # final x.squeeze()


# --------------------------------------------------------------------------------------
# Pure-JAX reference mirroring the PyTorch module exactly (eval mode, f32)
# --------------------------------------------------------------------------------------
def psd_cnn_spatial_reference(x, p):
    if x.ndim == 4:
        x = x.reshape(x.shape[0], x.shape[-2], x.shape[-1])
    hp = lax.Precision.HIGHEST
    dn = ("NCH", "OIH", "NCH")

    def conv1d(inp, w, b=None, groups=1):
        out = lax.conv_general_dilated(inp.astype(jnp.float32), w.astype(jnp.float32),
                                       window_strides=(1,), padding="VALID",
                                       dimension_numbers=dn, feature_group_count=groups,
                                       precision=hp)
        return out if b is None else out + b[None, :, None]

    def maxpool1d(inp):
        return lax.reduce_window(inp, -jnp.inf, lax.max, (1, 1, 2), (1, 1, 2), "VALID")

    def bn_c(inp, g, b, m, v):   # BatchNorm1d on (N, C, L), eval mode
        return (inp - m[None, :, None]) * (g[None, :, None]
                / jnp.sqrt(v[None, :, None] + BN_EPS)) + b[None, :, None]

    def bn_f(inp, g, b, m, v):   # BatchNorm1d on (N, C), eval mode
        return (inp - m[None, :]) * (g[None, :] / jnp.sqrt(v[None, :] + BN_EPS)) + b[None, :]

    h = conv1d(x, p["spatial_w"], groups=GROUPS)
    h = maxpool1d(h)
    h = bn_c(h, p["bn_sp_gamma"], p["bn_sp_beta"], p["bn_sp_mean"], p["bn_sp_var"])

    h = jax.nn.relu(conv1d(h, p["t1_w"], p["t1_b"]))
    h = jax.nn.relu(conv1d(h, p["t2_w"], p["t2_b"]))
    h = maxpool1d(h)
    h = jax.nn.relu(conv1d(h, p["t3_w"], p["t3_b"]))
    h = jax.nn.relu(conv1d(h, p["t4_w"], p["t4_b"]))
    h = maxpool1d(h)                                        # (N, 256, 2)

    f = h.reshape(h.shape[0], -1)                           # Flatten_MEG
    z = jax.nn.relu(jnp.dot(f, p["mlp_w1"].T, precision=hp) + p["mlp_b1"][None, :])
    z = bn_f(z, p["bn1_gamma"], p["bn1_beta"], p["bn1_mean"], p["bn1_var"])
    z = jax.nn.relu(jnp.dot(z, p["mlp_w2"].T, precision=hp) + p["mlp_b2"][None, :])
    z = bn_f(z, p["bn2_gamma"], p["bn2_beta"], p["bn2_mean"], p["bn2_var"])
    z = jnp.dot(z, p["mlp_w3"].T, precision=hp) + p["mlp_b3"][None, :]      # (N, 1)
    return z.reshape(-1)


if __name__ == "__main__":
    key = jax.random.PRNGKey(0)
    keys = iter(jax.random.split(key, 32))

    def uconv(shape, fan_in):
        bound = 1.0 / np.sqrt(fan_in)
        return jax.random.uniform(next(keys), shape, jnp.float32, -bound, bound)

    def bn_params(c):
        return (jax.random.uniform(next(keys), (c,), jnp.float32, 0.8, 1.2),    # gamma
                jax.random.uniform(next(keys), (c,), jnp.float32, -0.1, 0.1),   # beta
                jax.random.uniform(next(keys), (c,), jnp.float32, -0.2, 0.2),   # running mean
                jax.random.uniform(next(keys), (c,), jnp.float32, 0.5, 1.5))    # running var

    # T=68 -> spatial length 59 -> 29 -> 25,21 -> 10 -> 7,4 -> 2 -> flatten 256*2 = 512.
    # N=6 with block_b=4 exercises a multi-block "parallel" grid plus batch padding.
    N, T = 6, 68
    x = jax.random.normal(next(keys), (N, 1, C_IN, T), dtype=jnp.float32)

    p = {}
    p["spatial_w"] = uconv((C_SP, C_IN // GROUPS, K_SP), (C_IN // GROUPS) * K_SP)
    p["bn_sp_gamma"], p["bn_sp_beta"], p["bn_sp_mean"], p["bn_sp_var"] = bn_params(C_SP)
    p["t1_w"], p["t1_b"] = uconv((C_T1, C_SP, K_T12), C_SP * K_T12), uconv((C_T1,), C_SP * K_T12)
    p["t2_w"], p["t2_b"] = uconv((C_T1, C_T1, K_T12), C_T1 * K_T12), uconv((C_T1,), C_T1 * K_T12)
    p["t3_w"], p["t3_b"] = uconv((C_T2, C_T1, K_T34), C_T1 * K_T34), uconv((C_T2,), C_T1 * K_T34)
    p["t4_w"], p["t4_b"] = uconv((C_T2, C_T2, K_T34), C_T2 * K_T34), uconv((C_T2,), C_T2 * K_T34)
    p["mlp_w1"], p["mlp_b1"] = uconv((MLP_HID, 2 * C_T2), 2 * C_T2), uconv((MLP_HID,), 2 * C_T2)
    p["bn1_gamma"], p["bn1_beta"], p["bn1_mean"], p["bn1_var"] = bn_params(MLP_HID)
    p["mlp_w2"], p["mlp_b2"] = uconv((MLP_HID // 2, MLP_HID), MLP_HID), uconv((MLP_HID // 2,), MLP_HID)
    p["bn2_gamma"], p["bn2_beta"], p["bn2_mean"], p["bn2_var"] = bn_params(MLP_HID // 2)
    p["mlp_w3"], p["mlp_b3"] = uconv((1, MLP_HID // 2), MLP_HID // 2), uconv((1,), MLP_HID // 2)

    out = jax.block_until_ready(psd_cnn_spatial_forward(x, p, block_b=4))
    ref = jax.block_until_ready(psd_cnn_spatial_reference(x, p))

    assert out.shape == (N,)
    # bf16 MXU operands with f32 accumulation -> slightly relaxed tolerance vs f32 ref.
    np.testing.assert_allclose(np.asarray(out), np.asarray(ref), rtol=3e-2, atol=3e-2)
    print("KERNEL_OK")
</pallas_src>

<mosaic_0001>
module attributes {stable_mosaic.version = 11 : i64} {
  func.func @psd_cnn_spatial_kernel(%arg0: i32, %arg1: memref<1x272x204xbf16, #tpu.memory_space<vmem>>, %arg2: memref<10x204x96xbf16, #tpu.memory_space<vmem>>, %arg3: memref<2x96xf32, #tpu.memory_space<vmem>>, %arg4: memref<5x96x128xbf16, #tpu.memory_space<vmem>>, %arg5: memref<1x128xf32, #tpu.memory_space<vmem>>, %arg6: memref<5x128x128xbf16, #tpu.memory_space<vmem>>, %arg7: memref<1x128xf32, #tpu.memory_space<vmem>>, %arg8: memref<4x128x256xbf16, #tpu.memory_space<vmem>>, %arg9: memref<1x256xf32, #tpu.memory_space<vmem>>, %arg10: memref<4x256x256xbf16, #tpu.memory_space<vmem>>, %arg11: memref<1x256xf32, #tpu.memory_space<vmem>>, %arg12: memref<116x262xbf16, #tpu.memory_space<vmem>>, %arg13: memref<40x107xbf16, #tpu.memory_space<vmem>>, %arg14: memref<8x33xbf16, #tpu.memory_space<vmem>>, %arg15: memref<2x256x256xbf16, #tpu.memory_space<vmem>>, %arg16: memref<1x256xf32, #tpu.memory_space<vmem>>, %arg17: memref<2x256xf32, #tpu.memory_space<vmem>>, %arg18: memref<256x128xbf16, #tpu.memory_space<vmem>>, %arg19: memref<1x128xf32, #tpu.memory_space<vmem>>, %arg20: memref<2x128xf32, #tpu.memory_space<vmem>>, %arg21: memref<1x128xf32, #tpu.memory_space<vmem>>, %arg22: memref<1x1xf32, #tpu.memory_space<vmem>>, %arg23: memref<1x4x1xf32, #tpu.memory_space<vmem>>) attributes {dimension_semantics = [#tpu.dimension_semantics<parallel>], iteration_bounds = array<i64: 2>, scalar_prefetch = 0 : i64, scratch_operands = 0 : i64, tpu.core_type = #tpu.core_type<tc>, window_params = [{transform_indices = @transform_0, window_bounds = array<i64: 1, 272, 204>}, {pipeline_mode = #tpu.pipeline_mode<synchronous>, transform_indices = @transform_1, window_bounds = array<i64: 10, 204, 96>}, {pipeline_mode = #tpu.pipeline_mode<synchronous>, transform_indices = @transform_2, window_bounds = array<i64: 2, 96>}, {pipeline_mode = #tpu.pipeline_mode<synchronous>, transform_indices = @transform_3, window_bounds = array<i64: 5, 96, 128>}, {pipeline_mode = #tpu.pipeline_mode<synchronous>, transform_indices = @transform_4, window_bounds = array<i64: 1, 128>}, {pipeline_mode = #tpu.pipeline_mode<synchronous>, transform_indices = @transform_5, window_bounds = array<i64: 5, 128, 128>}, {pipeline_mode = #tpu.pipeline_mode<synchronous>, transform_indices = @transform_6, window_bounds = array<i64: 1, 128>}, {pipeline_mode = #tpu.pipeline_mode<synchronous>, transform_indices = @transform_7, window_bounds = array<i64: 4, 128, 256>}, {pipeline_mode = #tpu.pipeline_mode<synchronous>, transform_indices = @transform_8, window_bounds = array<i64: 1, 256>}, {pipeline_mode = #tpu.pipeline_mode<synchronous>, transform_indices = @transform_9, window_bounds = array<i64: 4, 256, 256>}, {pipeline_mode = #tpu.pipeline_mode<synchronous>, transform_indices = @transform_10, window_bounds = array<i64: 1, 256>}, {pipeline_mode = #tpu.pipeline_mode<synchronous>, transform_indices = @transform_11, window_bounds = array<i64: 116, 262>}, {pipeline_mode = #tpu.pipeline_mode<synchronous>, transform_indices = @transform_12, window_bounds = array<i64: 40, 107>}, {pipeline_mode = #tpu.pipeline_mode<synchronous>, transform_indices = @transform_13, window_bounds = array<i64: 8, 33>}, {pipeline_mode = #tpu.pipeline_mode<synchronous>, transform_indices = @transform_14, window_bounds = array<i64: 2, 256, 256>}, {pipeline_mode = #tpu.pipeline_mode<synchronous>, transform_indices = @transform_15, window_bounds = array<i64: 1, 256>}, {pipeline_mode = #tpu.pipeline_mode<synchronous>, transform_indices = @transform_16, window_bounds = array<i64: 2, 256>}, {pipeline_mode = #tpu.pipeline_mode<synchronous>, transform_indices = @transform_17, window_bounds = array<i64: 256, 128>}, {pipeline_mode = #tpu.pipeline_mode<synchronous>, transform_indices = @transform_18, window_bounds = array<i64: 1, 128>}, {pipeline_mode = #tpu.pipeline_mode<synchronous>, transform_indices = @transform_19, window_bounds = array<i64: 2, 128>}, {pipeline_mode = #tpu.pipeline_mode<synchronous>, transform_indices = @transform_20, window_bounds = array<i64: 1, 128>}, {pipeline_mode = #tpu.pipeline_mode<synchronous>, transform_indices = @transform_21, window_bounds = array<i64: 1, 1>}, {transform_indices = @transform_22, window_bounds = array<i64: 1, 4, 1>}]} {
    %c0 = arith.constant 0 : index
    %c0_0 = arith.constant 0 : index
    %c0_1 = arith.constant 0 : index
    %0 = vector.load %arg1[%c0, %c0_0, %c0_1] : memref<1x272x204xbf16, #tpu.memory_space<vmem>>, vector<1x272x204xbf16>
    %1 = vector.shape_cast %0 : vector<1x272x204xbf16> to vector<272x204xbf16>
    %2 = vector.extract_strided_slice %1 {offsets = [0, 0], sizes = [263, 204], strides = [1, 1]} : vector<272x204xbf16> to vector<263x204xbf16>
    %c0_2 = arith.constant 0 : index
    %c0_3 = arith.constant 0 : index
    %c0_4 = arith.constant 0 : index
    %3 = vector.load %arg2[%c0_2, %c0_3, %c0_4] : memref<10x204x96xbf16, #tpu.memory_space<vmem>>, vector<1x204x96xbf16>
    %4 = vector.shape_cast %3 : vector<1x204x96xbf16> to vector<204x96xbf16>
    %cst = arith.constant dense<0.000000e+00> : vector<263x96xf32>
    %5 = tpu.matmul %2, %4, %cst {dimension_numbers = #tpu.dot_dimension_numbers<[1], [0], [0], [1], [0, 0, 1, 1], [], []>} : vector<263x204xbf16>, vector<204x96xbf16>, vector<263x96xf32> -> vector<263x96xf32>
    %6 = vector.extract_strided_slice %1 {offsets = [1, 0], sizes = [263, 204], strides = [1, 1]} : vector<272x204xbf16> to vector<263x204xbf16>
    %c1 = arith.constant 1 : index
    %c0_5 = arith.constant 0 : index
    %c0_6 = arith.constant 0 : index
    %7 = vector.load %arg2[%c1, %c0_5, %c0_6] : memref<10x204x96xbf16, #tpu.memory_space<vmem>>, vector<1x204x96xbf16>
    %8 = vector.shape_cast %7 : vector<1x204x96xbf16> to vector<204x96xbf16>
    %cst_7 = arith.constant dense<0.000000e+00> : vector<263x96xf32>
    %9 = tpu.matmul %6, %8, %cst_7 {dimension_numbers = #tpu.dot_dimension_numbers<[1], [0], [0], [1], [0, 0, 1, 1], [], []>} : vector<263x204xbf16>, vector<204x96xbf16>, vector<263x96xf32> -> vector<263x96xf32>
    %10 = arith.addf %5, %9 : vector<263x96xf32>
    %11 = vector.extract_strided_slice %1 {offsets = [2, 0], sizes = [263, 204], strides = [1, 1]} : vector<272x204xbf16> to vector<263x204xbf16>
    %c2 = arith.constant 2 : index
    %c0_8 = arith.constant 0 : index
    %c0_9 = arith.constant 0 : index
    %12 = vector.load %arg2[%c2, %c0_8, %c0_9] : memref<10x204x96xbf16, #tpu.memory_space<vmem>>, vector<1x204x96xbf16>
    %13 = vector.shape_cast %12 : vector<1x204x96xbf16> to vector<204x96xbf16>
    %cst_10 = arith.constant dense<0.000000e+00> : vector<263x96xf32>
    %14 = tpu.matmul %11, %13, %cst_10 {dimension_numbers = #tpu.dot_dimension_numbers<[1], [0], [0], [1], [0, 0, 1, 1], [], []>} : vector<263x204xbf16>, vector<204x96xbf16>, vector<263x96xf32> -> vector<263x96xf32>
    %15 = arith.addf %10, %14 : vector<263x96xf32>
    %16 = vector.extract_strided_slice %1 {offsets = [3, 0], sizes = [263, 204], strides = [1, 1]} : vector<272x204xbf16> to vector<263x204xbf16>
    %c3 = arith.constant 3 : index
    %c0_11 = arith.constant 0 : index
    %c0_12 = arith.constant 0 : index
    %17 = vector.load %arg2[%c3, %c0_11, %c0_12] : memref<10x204x96xbf16, #tpu.memory_space<vmem>>, vector<1x204x96xbf16>
    %18 = vector.shape_cast %17 : vector<1x204x96xbf16> to vector<204x96xbf16>
    %cst_13 = arith.constant dense<0.000000e+00> : vector<263x96xf32>
    %19 = tpu.matmul %16, %18, %cst_13 {dimension_numbers = #tpu.dot_dimension_numbers<[1], [0], [0], [1], [0, 0, 1, 1], [], []>} : vector<263x204xbf16>, vector<204x96xbf16>, vector<263x96xf32> -> vector<263x96xf32>
    %20 = arith.addf %15, %19 : vector<263x96xf32>
    %21 = vector.extract_strided_slice %1 {offsets = [4, 0], sizes = [263, 204], strides = [1, 1]} : vector<272x204xbf16> to vector<263x204xbf16>
    %c4 = arith.constant 4 : index
    %c0_14 = arith.constant 0 : index
    %c0_15 = arith.constant 0 : index
    %22 = vector.load %arg2[%c4, %c0_14, %c0_15] : memref<10x204x96xbf16, #tpu.memory_space<vmem>>, vector<1x204x96xbf16>
    %23 = vector.shape_cast %22 : vector<1x204x96xbf16> to vector<204x96xbf16>
    %cst_16 = arith.constant dense<0.000000e+00> : vector<263x96xf32>
    %24 = tpu.matmul %21, %23, %cst_16 {dimension_numbers = #tpu.dot_dimension_numbers<[1], [0], [0], [1], [0, 0, 1, 1], [], []>} : vector<263x204xbf16>, vector<204x96xbf16>, vector<263x96xf32> -> vector<263x96xf32>
    %25 = arith.addf %20, %24 : vector<263x96xf32>
    %26 = vector.extract_strided_slice %1 {offsets = [5, 0], sizes = [263, 204], strides = [1, 1]} : vector<272x204xbf16> to vector<263x204xbf16>
    %c5 = arith.constant 5 : index
    %c0_17 = arith.constant 0 : index
    %c0_18 = arith.constant 0 : index
    %27 = vector.load %arg2[%c5, %c0_17, %c0_18] : memref<10x204x96xbf16, #tpu.memory_space<vmem>>, vector<1x204x96xbf16>
    %28 = vector.shape_cast %27 : vector<1x204x96xbf16> to vector<204x96xbf16>
    %cst_19 = arith.constant dense<0.000000e+00> : vector<263x96xf32>
    %29 = tpu.matmul %26, %28, %cst_19 {dimension_numbers = #tpu.dot_dimension_numbers<[1], [0], [0], [1], [0, 0, 1, 1], [], []>} : vector<263x204xbf16>, vector<204x96xbf16>, vector<263x96xf32> -> vector<263x96xf32>
    %30 = arith.addf %25, %29 : vector<263x96xf32>
    %31 = vector.extract_strided_slice %1 {offsets = [6, 0], sizes = [263, 204], strides = [1, 1]} : vector<272x204xbf16> to vector<263x204xbf16>
    %c6 = arith.constant 6 : index
    %c0_20 = arith.constant 0 : index
    %c0_21 = arith.constant 0 : index
    %32 = vector.load %arg2[%c6, %c0_20, %c0_21] : memref<10x204x96xbf16, #tpu.memory_space<vmem>>, vector<1x204x96xbf16>
    %33 = vector.shape_cast %32 : vector<1x204x96xbf16> to vector<204x96xbf16>
    %cst_22 = arith.constant dense<0.000000e+00> : vector<263x96xf32>
    %34 = tpu.matmul %31, %33, %cst_22 {dimension_numbers = #tpu.dot_dimension_numbers<[1], [0], [0], [1], [0, 0, 1, 1], [], []>} : vector<263x204xbf16>, vector<204x96xbf16>, vector<263x96xf32> -> vector<263x96xf32>
    %35 = arith.addf %30, %34 : vector<263x96xf32>
    %36 = vector.extract_strided_slice %1 {offsets = [7, 0], sizes = [263, 204], strides = [1, 1]} : vector<272x204xbf16> to vector<263x204xbf16>
    %c7 = arith.constant 7 : index
    %c0_23 = arith.constant 0 : index
    %c0_24 = arith.constant 0 : index
    %37 = vector.load %arg2[%c7, %c0_23, %c0_24] : memref<10x204x96xbf16, #tpu.memory_space<vmem>>, vector<1x204x96xbf16>
    %38 = vector.shape_cast %37 : vector<1x204x96xbf16> to vector<204x96xbf16>
    %cst_25 = arith.constant dense<0.000000e+00> : vector<263x96xf32>
    %39 = tpu.matmul %36, %38, %cst_25 {dimension_numbers = #tpu.dot_dimension_numbers<[1], [0], [0], [1], [0, 0, 1, 1], [], []>} : vector<263x204xbf16>, vector<204x96xbf16>, vector<263x96xf32> -> vector<263x96xf32>
    %40 = arith.addf %35, %39 : vector<263x96xf32>
    %41 = vector.extract_strided_slice %1 {offsets = [8, 0], sizes = [263, 204], strides = [1, 1]} : vector<272x204xbf16> to vector<263x204xbf16>
    %c8 = arith.constant 8 : index
    %c0_26 = arith.constant 0 : index
    %c0_27 = arith.constant 0 : index
    %42 = vector.load %arg2[%c8, %c0_26, %c0_27] : memref<10x204x96xbf16, #tpu.memory_space<vmem>>, vector<1x204x96xbf16>
    %43 = vector.shape_cast %42 : vector<1x204x96xbf16> to vector<204x96xbf16>
    %cst_28 = arith.constant dense<0.000000e+00> : vector<263x96xf32>
    %44 = tpu.matmul %41, %43, %cst_28 {dimension_numbers = #tpu.dot_dimension_numbers<[1], [0], [0], [1], [0, 0, 1, 1], [], []>} : vector<263x204xbf16>, vector<204x96xbf16>, vector<263x96xf32> -> vector<263x96xf32>
    %45 = arith.addf %40, %44 : vector<263x96xf32>
    %46 = vector.extract_strided_slice %1 {offsets = [9, 0], sizes = [263, 204], strides = [1, 1]} : vector<272x204xbf16> to vector<263x204xbf16>
    %c9 = arith.constant 9 : index
    %c0_29 = arith.constant 0 : index
    %c0_30 = arith.constant 0 : index
    %47 = vector.load %arg2[%c9, %c0_29, %c0_30] : memref<10x204x96xbf16, #tpu.memory_space<vmem>>, vector<1x204x96xbf16>
    %48 = vector.shape_cast %47 : vector<1x204x96xbf16> to vector<204x96xbf16>
    %cst_31 = arith.constant dense<0.000000e+00> : vector<263x96xf32>
    %49 = tpu.matmul %46, %48, %cst_31 {dimension_numbers = #tpu.dot_dimension_numbers<[1], [0], [0], [1], [0, 0, 1, 1], [], []>} : vector<263x204xbf16>, vector<204x96xbf16>, vector<263x96xf32> -> vector<263x96xf32>
    %50 = arith.addf %45, %49 : vector<263x96xf32>
    %51 = vector.extract_strided_slice %50 {offsets = [0, 0], sizes = [262, 96], strides = [1, 1]} : vector<263x96xf32> to vector<262x96xf32>
    %52 = vector.extract_strided_slice %50 {offsets = [1, 0], sizes = [262, 96], strides = [1, 1]} : vector<263x96xf32> to vector<262x96xf32>
    %53 = arith.maximumf %51, %52 : vector<262x96xf32>
    %54 = arith.truncf %53 : vector<262x96xf32> to vector<262x96xbf16>
    %c0_32 = arith.constant 0 : index
    %c0_33 = arith.constant 0 : index
    %55 = vector.load %arg12[%c0_32, %c0_33] : memref<116x262xbf16, #tpu.memory_space<vmem>>, vector<116x262xbf16>
    %cst_34 = arith.constant dense<0.000000e+00> : vector<116x96xf32>
    %56 = tpu.matmul %55, %54, %cst_34 {dimension_numbers = #tpu.dot_dimension_numbers<[1], [0], [0], [1], [0, 0, 1, 1], [], []>} : vector<116x262xbf16>, vector<262x96xbf16>, vector<116x96xf32> -> vector<116x96xf32>
    %c0_35 = arith.constant 0 : index
    %c0_36 = arith.constant 0 : index
    %57 = vector.load %arg3[%c0_35, %c0_36] : memref<2x96xf32, #tpu.memory_space<vmem>>, vector<1x96xf32>
    %58 = vector.broadcast %57 : vector<1x96xf32> to vector<116x96xf32>
    %59 = arith.mulf %56, %58 : vector<116x96xf32>
    %c1_37 = arith.constant 1 : index
    %c0_38 = arith.constant 0 : index
    %60 = vector.load %arg3[%c1_37, %c0_38] : memref<2x96xf32, #tpu.memory_space<vmem>>, vector<1x96xf32>
    %61 = vector.broadcast %60 : vector<1x96xf32> to vector<116x96xf32>
    %62 = arith.addf %59, %61 : vector<116x96xf32>
    %63 = arith.truncf %62 : vector<116x96xf32> to vector<116x96xbf16>
    %c0_39 = arith.constant 0 : index
    %c0_40 = arith.constant 0 : index
    %64 = vector.load %arg5[%c0_39, %c0_40] : memref<1x128xf32, #tpu.memory_space<vmem>>, vector<1x128xf32>
    %65 = vector.extract_strided_slice %63 {offsets = [0, 0], sizes = [112, 96], strides = [1, 1]} : vector<116x96xbf16> to vector<112x96xbf16>
    %c0_41 = arith.constant 0 : index
    %c0_42 = arith.constant 0 : index
    %c0_43 = arith.constant 0 : index
    %66 = vector.load %arg4[%c0_41, %c0_42, %c0_43] : memref<5x96x128xbf16, #tpu.memory_space<vmem>>, vector<1x96x128xbf16>
    %67 = vector.shape_cast %66 : vector<1x96x128xbf16> to vector<96x128xbf16>
    %cst_44 = arith.constant dense<0.000000e+00> : vector<112x128xf32>
    %68 = tpu.matmul %65, %67, %cst_44 {dimension_numbers = #tpu.dot_dimension_numbers<[1], [0], [0], [1], [0, 0, 1, 1], [], []>} : vector<112x96xbf16>, vector<96x128xbf16>, vector<112x128xf32> -> vector<112x128xf32>
    %69 = vector.extract_strided_slice %63 {offsets = [1, 0], sizes = [112, 96], strides = [1, 1]} : vector<116x96xbf16> to vector<112x96xbf16>
    %c1_45 = arith.constant 1 : index
    %c0_46 = arith.constant 0 : index
    %c0_47 = arith.constant 0 : index
    %70 = vector.load %arg4[%c1_45, %c0_46, %c0_47] : memref<5x96x128xbf16, #tpu.memory_space<vmem>>, vector<1x96x128xbf16>
    %71 = vector.shape_cast %70 : vector<1x96x128xbf16> to vector<96x128xbf16>
    %cst_48 = arith.constant dense<0.000000e+00> : vector<112x128xf32>
    %72 = tpu.matmul %69, %71, %cst_48 {dimension_numbers = #tpu.dot_dimension_numbers<[1], [0], [0], [1], [0, 0, 1, 1], [], []>} : vector<112x96xbf16>, vector<96x128xbf16>, vector<112x128xf32> -> vector<112x128xf32>
    %73 = arith.addf %68, %72 : vector<112x128xf32>
    %74 = vector.extract_strided_slice %63 {offsets = [2, 0], sizes = [112, 96], strides = [1, 1]} : vector<116x96xbf16> to vector<112x96xbf16>
    %c2_49 = arith.constant 2 : index
    %c0_50 = arith.constant 0 : index
    %c0_51 = arith.constant 0 : index
    %75 = vector.load %arg4[%c2_49, %c0_50, %c0_51] : memref<5x96x128xbf16, #tpu.memory_space<vmem>>, vector<1x96x128xbf16>
    %76 = vector.shape_cast %75 : vector<1x96x128xbf16> to vector<96x128xbf16>
    %cst_52 = arith.constant dense<0.000000e+00> : vector<112x128xf32>
    %77 = tpu.matmul %74, %76, %cst_52 {dimension_numbers = #tpu.dot_dimension_numbers<[1], [0], [0], [1], [0, 0, 1, 1], [], []>} : vector<112x96xbf16>, vector<96x128xbf16>, vector<112x128xf32> -> vector<112x128xf32>
    %78 = arith.addf %73, %77 : vector<112x128xf32>
    %79 = vector.extract_strided_slice %63 {offsets = [3, 0], sizes = [112, 96], strides = [1, 1]} : vector<116x96xbf16> to vector<112x96xbf16>
    %c3_53 = arith.constant 3 : index
    %c0_54 = arith.constant 0 : index
    %c0_55 = arith.constant 0 : index
    %80 = vector.load %arg4[%c3_53, %c0_54, %c0_55] : memref<5x96x128xbf16, #tpu.memory_space<vmem>>, vector<1x96x128xbf16>
    %81 = vector.shape_cast %80 : vector<1x96x128xbf16> to vector<96x128xbf16>
    %cst_56 = arith.constant dense<0.000000e+00> : vector<112x128xf32>
    %82 = tpu.matmul %79, %81, %cst_56 {dimension_numbers = #tpu.dot_dimension_numbers<[1], [0], [0], [1], [0, 0, 1, 1], [], []>} : vector<112x96xbf16>, vector<96x128xbf16>, vector<112x128xf32> -> vector<112x128xf32>
    %83 = arith.addf %78, %82 : vector<112x128xf32>
    %84 = vector.extract_strided_slice %63 {offsets = [4, 0], sizes = [112, 96], strides = [1, 1]} : vector<116x96xbf16> to vector<112x96xbf16>
    %c4_57 = arith.constant 4 : index
    %c0_58 = arith.constant 0 : index
    %c0_59 = arith.constant 0 : index
    %85 = vector.load %arg4[%c4_57, %c0_58, %c0_59] : memref<5x96x128xbf16, #tpu.memory_space<vmem>>, vector<1x96x128xbf16>
    %86 = vector.shape_cast %85 : vector<1x96x128xbf16> to vector<96x128xbf16>
    %cst_60 = arith.constant dense<0.000000e+00> : vector<112x128xf32>
    %87 = tpu.matmul %84, %86, %cst_60 {dimension_numbers = #tpu.dot_dimension_numbers<[1], [0], [0], [1], [0, 0, 1, 1], [], []>} : vector<112x96xbf16>, vector<96x128xbf16>, vector<112x128xf32> -> vector<112x128xf32>
    %88 = arith.addf %83, %87 : vector<112x128xf32>
    %89 = vector.broadcast %64 : vector<1x128xf32> to vector<112x128xf32>
    %90 = arith.addf %88, %89 : vector<112x128xf32>
    %cst_61 = arith.constant 0.000000e+00 : f32
    %91 = vector.broadcast %cst_61 : f32 to vector<112x128xf32>
    %92 = arith.maximumf %90, %91 : vector<112x128xf32>
    %93 = arith.truncf %92 : vector<112x128xf32> to vector<112x128xbf16>
    %c0_62 = arith.constant 0 : index
    %c0_63 = arith.constant 0 : index
    %94 = vector.load %arg7[%c0_62, %c0_63] : memref<1x128xf32, #tpu.memory_space<vmem>>, vector<1x128xf32>
    %95 = vector.extract_strided_slice %93 {offsets = [0, 0], sizes = [108, 128], strides = [1, 1]} : vector<112x128xbf16> to vector<108x128xbf16>
    %c0_64 = arith.constant 0 : index
    %c0_65 = arith.constant 0 : index
    %c0_66 = arith.constant 0 : index
    %96 = vector.load %arg6[%c0_64, %c0_65, %c0_66] : memref<5x128x128xbf16, #tpu.memory_space<vmem>>, vector<1x128x128xbf16>
    %97 = vector.shape_cast %96 : vector<1x128x128xbf16> to vector<128x128xbf16>
    %cst_67 = arith.constant dense<0.000000e+00> : vector<108x128xf32>
    %98 = tpu.matmul %95, %97, %cst_67 {dimension_numbers = #tpu.dot_dimension_numbers<[1], [0], [0], [1], [0, 0, 1, 1], [], []>} : vector<108x128xbf16>, vector<128x128xbf16>, vector<108x128xf32> -> vector<108x128xf32>
    %99 = vector.extract_strided_slice %93 {offsets = [1, 0], sizes = [108, 128], strides = [1, 1]} : vector<112x128xbf16> to vector<108x128xbf16>
    %c1_68 = arith.constant 1 : index
    %c0_69 = arith.constant 0 : index
    %c0_70 = arith.constant 0 : index
    %100 = vector.load %arg6[%c1_68, %c0_69, %c0_70] : memref<5x128x128xbf16, #tpu.memory_space<vmem>>, vector<1x128x128xbf16>
    %101 = vector.shape_cast %100 : vector<1x128x128xbf16> to vector<128x128xbf16>
    %cst_71 = arith.constant dense<0.000000e+00> : vector<108x128xf32>
    %102 = tpu.matmul %99, %101, %cst_71 {dimension_numbers = #tpu.dot_dimension_numbers<[1], [0], [0], [1], [0, 0, 1, 1], [], []>} : vector<108x128xbf16>, vector<128x128xbf16>, vector<108x128xf32> -> vector<108x128xf32>
    %103 = arith.addf %98, %102 : vector<108x128xf32>
    %104 = vector.extract_strided_slice %93 {offsets = [2, 0], sizes = [108, 128], strides = [1, 1]} : vector<112x128xbf16> to vector<108x128xbf16>
    %c2_72 = arith.constant 2 : index
    %c0_73 = arith.constant 0 : index
    %c0_74 = arith.constant 0 : index
    %105 = vector.load %arg6[%c2_72, %c0_73, %c0_74] : memref<5x128x128xbf16, #tpu.memory_space<vmem>>, vector<1x128x128xbf16>
    %106 = vector.shape_cast %105 : vector<1x128x128xbf16> to vector<128x128xbf16>
    %cst_75 = arith.constant dense<0.000000e+00> : vector<108x128xf32>
    %107 = tpu.matmul %104, %106, %cst_75 {dimension_numbers = #tpu.dot_dimension_numbers<[1], [0], [0], [1], [0, 0, 1, 1], [], []>} : vector<108x128xbf16>, vector<128x128xbf16>, vector<108x128xf32> -> vector<108x128xf32>
    %108 = arith.addf %103, %107 : vector<108x128xf32>
    %109 = vector.extract_strided_slice %93 {offsets = [3, 0], sizes = [108, 128], strides = [1, 1]} : vector<112x128xbf16> to vector<108x128xbf16>
    %c3_76 = arith.constant 3 : index
    %c0_77 = arith.constant 0 : index
    %c0_78 = arith.constant 0 : index
    %110 = vector.load %arg6[%c3_76, %c0_77, %c0_78] : memref<5x128x128xbf16, #tpu.memory_space<vmem>>, vector<1x128x128xbf16>
    %111 = vector.shape_cast %110 : vector<1x128x128xbf16> to vector<128x128xbf16>
    %cst_79 = arith.constant dense<0.000000e+00> : vector<108x128xf32>
    %112 = tpu.matmul %109, %111, %cst_79 {dimension_numbers = #tpu.dot_dimension_numbers<[1], [0], [0], [1], [0, 0, 1, 1], [], []>} : vector<108x128xbf16>, vector<128x128xbf16>, vector<108x128xf32> -> vector<108x128xf32>
    %113 = arith.addf %108, %112 : vector<108x128xf32>
    %114 = vector.extract_strided_slice %93 {offsets = [4, 0], sizes = [108, 128], strides = [1, 1]} : vector<112x128xbf16> to vector<108x128xbf16>
    %c4_80 = arith.constant 4 : index
    %c0_81 = arith.constant 0 : index
    %c0_82 = arith.constant 0 : index
    %115 = vector.load %arg6[%c4_80, %c0_81, %c0_82] : memref<5x128x128xbf16, #tpu.memory_space<vmem>>, vector<1x128x128xbf16>
    %116 = vector.shape_cast %115 : vector<1x128x128xbf16> to vector<128x128xbf16>
    %cst_83 = arith.constant dense<0.000000e+00> : vector<108x128xf32>
    %117 = tpu.matmul %114, %116, %cst_83 {dimension_numbers = #tpu.dot_dimension_numbers<[1], [0], [0], [1], [0, 0, 1, 1], [], []>} : vector<108x128xbf16>, vector<128x128xbf16>, vector<108x128xf32> -> vector<108x128xf32>
    %118 = arith.addf %113, %117 : vector<108x128xf32>
    %119 = vector.broadcast %94 : vector<1x128xf32> to vector<108x128xf32>
    %120 = arith.addf %118, %119 : vector<108x128xf32>
    %cst_84 = arith.constant 0.000000e+00 : f32
    %121 = vector.broadcast %cst_84 : f32 to vector<108x128xf32>
    %122 = arith.maximumf %120, %121 : vector<108x128xf32>
    %123 = vector.extract_strided_slice %122 {offsets = [0, 0], sizes = [107, 128], strides = [1, 1]} : vector<108x128xf32> to vector<107x128xf32>
    %124 = vector.extract_strided_slice %122 {offsets = [1, 0], sizes = [107, 128], strides = [1, 1]} : vector<108x128xf32> to vector<107x128xf32>
    %125 = arith.maximumf %123, %124 : vector<107x128xf32>
    %126 = arith.truncf %125 : vector<107x128xf32> to vector<107x128xbf16>
    %c0_85 = arith.constant 0 : index
    %c0_86 = arith.constant 0 : index
    %127 = vector.load %arg13[%c0_85, %c0_86] : memref<40x107xbf16, #tpu.memory_space<vmem>>, vector<40x107xbf16>
    %cst_87 = arith.constant dense<0.000000e+00> : vector<40x128xf32>
    %128 = tpu.matmul %127, %126, %cst_87 {dimension_numbers = #tpu.dot_dimension_numbers<[1], [0], [0], [1], [0, 0, 1, 1], [], []>} : vector<40x107xbf16>, vector<107x128xbf16>, vector<40x128xf32> -> vector<40x128xf32>
    %129 = arith.truncf %128 : vector<40x128xf32> to vector<40x128xbf16>
    %c0_88 = arith.constant 0 : index
    %c0_89 = arith.constant 0 : index
    %130 = vector.load %arg9[%c0_88, %c0_89] : memref<1x256xf32, #tpu.memory_space<vmem>>, vector<1x256xf32>
    %131 = vector.extract_strided_slice %129 {offsets = [0, 0], sizes = [37, 128], strides = [1, 1]} : vector<40x128xbf16> to vector<37x128xbf16>
    %c0_90 = arith.constant 0 : index
    %c0_91 = arith.constant 0 : index
    %c0_92 = arith.constant 0 : index
    %132 = vector.load %arg8[%c0_90, %c0_91, %c0_92] : memref<4x128x256xbf16, #tpu.memory_space<vmem>>, vector<1x128x256xbf16>
    %133 = vector.shape_cast %132 : vector<1x128x256xbf16> to vector<128x256xbf16>
    %cst_93 = arith.constant dense<0.000000e+00> : vector<37x256xf32>
    %134 = tpu.matmul %131, %133, %cst_93 {dimension_numbers = #tpu.dot_dimension_numbers<[1], [0], [0], [1], [0, 0, 1, 1], [], []>} : vector<37x128xbf16>, vector<128x256xbf16>, vector<37x256xf32> -> vector<37x256xf32>
    %135 = vector.extract_strided_slice %129 {offsets = [1, 0], sizes = [37, 128], strides = [1, 1]} : vector<40x128xbf16> to vector<37x128xbf16>
    %c1_94 = arith.constant 1 : index
    %c0_95 = arith.constant 0 : index
    %c0_96 = arith.constant 0 : index
    %136 = vector.load %arg8[%c1_94, %c0_95, %c0_96] : memref<4x128x256xbf16, #tpu.memory_space<vmem>>, vector<1x128x256xbf16>
    %137 = vector.shape_cast %136 : vector<1x128x256xbf16> to vector<128x256xbf16>
    %cst_97 = arith.constant dense<0.000000e+00> : vector<37x256xf32>
    %138 = tpu.matmul %135, %137, %cst_97 {dimension_numbers = #tpu.dot_dimension_numbers<[1], [0], [0], [1], [0, 0, 1, 1], [], []>} : vector<37x128xbf16>, vector<128x256xbf16>, vector<37x256xf32> -> vector<37x256xf32>
    %139 = arith.addf %134, %138 : vector<37x256xf32>
    %140 = vector.extract_strided_slice %129 {offsets = [2, 0], sizes = [37, 128], strides = [1, 1]} : vector<40x128xbf16> to vector<37x128xbf16>
    %c2_98 = arith.constant 2 : index
    %c0_99 = arith.constant 0 : index
    %c0_100 = arith.constant 0 : index
    %141 = vector.load %arg8[%c2_98, %c0_99, %c0_100] : memref<4x128x256xbf16, #tpu.memory_space<vmem>>, vector<1x128x256xbf16>
    %142 = vector.shape_cast %141 : vector<1x128x256xbf16> to vector<128x256xbf16>
    %cst_101 = arith.constant dense<0.000000e+00> : vector<37x256xf32>
    %143 = tpu.matmul %140, %142, %cst_101 {dimension_numbers = #tpu.dot_dimension_numbers<[1], [0], [0], [1], [0, 0, 1, 1], [], []>} : vector<37x128xbf16>, vector<128x256xbf16>, vector<37x256xf32> -> vector<37x256xf32>
    %144 = arith.addf %139, %143 : vector<37x256xf32>
    %145 = vector.extract_strided_slice %129 {offsets = [3, 0], sizes = [37, 128], strides = [1, 1]} : vector<40x128xbf16> to vector<37x128xbf16>
    %c3_102 = arith.constant 3 : index
    %c0_103 = arith.constant 0 : index
    %c0_104 = arith.constant 0 : index
    %146 = vector.load %arg8[%c3_102, %c0_103, %c0_104] : memref<4x128x256xbf16, #tpu.memory_space<vmem>>, vector<1x128x256xbf16>
    %147 = vector.shape_cast %146 : vector<1x128x256xbf16> to vector<128x256xbf16>
    %cst_105 = arith.constant dense<0.000000e+00> : vector<37x256xf32>
    %148 = tpu.matmul %145, %147, %cst_105 {dimension_numbers = #tpu.dot_dimension_numbers<[1], [0], [0], [1], [0, 0, 1, 1], [], []>} : vector<37x128xbf16>, vector<128x256xbf16>, vector<37x256xf32> -> vector<37x256xf32>
    %149 = arith.addf %144, %148 : vector<37x256xf32>
    %150 = vector.broadcast %130 : vector<1x256xf32> to vector<37x256xf32>
    %151 = arith.addf %149, %150 : vector<37x256xf32>
    %cst_106 = arith.constant 0.000000e+00 : f32
    %152 = vector.broadcast %cst_106 : f32 to vector<37x256xf32>
    %153 = arith.maximumf %151, %152 : vector<37x256xf32>
    %154 = arith.truncf %153 : vector<37x256xf32> to vector<37x256xbf16>
    %c0_107 = arith.constant 0 : index
    %c0_108 = arith.constant 0 : index
    %155 = vector.load %arg11[%c0_107, %c0_108] : memref<1x256xf32, #tpu.memory_space<vmem>>, vector<1x256xf32>
    %156 = vector.extract_strided_slice %154 {offsets = [0, 0], sizes = [34, 256], strides = [1, 1]} : vector<37x256xbf16> to vector<34x256xbf16>
    %c0_109 = arith.constant 0 : index
    %c0_110 = arith.constant 0 : index
    %c0_111 = arith.constant 0 : index
    %157 = vector.load %arg10[%c0_109, %c0_110, %c0_111] : memref<4x256x256xbf16, #tpu.memory_space<vmem>>, vector<1x256x256xbf16>
    %158 = vector.shape_cast %157 : vector<1x256x256xbf16> to vector<256x256xbf16>
    %cst_112 = arith.constant dense<0.000000e+00> : vector<34x256xf32>
    %159 = tpu.matmul %156, %158, %cst_112 {dimension_numbers = #tpu.dot_dimension_numbers<[1], [0], [0], [1], [0, 0, 1, 1], [], []>} : vector<34x256xbf16>, vector<256x256xbf16>, vector<34x256xf32> -> vector<34x256xf32>
    %160 = vector.extract_strided_slice %154 {offsets = [1, 0], sizes = [34, 256], strides = [1, 1]} : vector<37x256xbf16> to vector<34x256xbf16>
    %c1_113 = arith.constant 1 : index
    %c0_114 = arith.constant 0 : index
    %c0_115 = arith.constant 0 : index
    %161 = vector.load %arg10[%c1_113, %c0_114, %c0_115] : memref<4x256x256xbf16, #tpu.memory_space<vmem>>, vector<1x256x256xbf16>
    %162 = vector.shape_cast %161 : vector<1x256x256xbf16> to vector<256x256xbf16>
    %cst_116 = arith.constant dense<0.000000e+00> : vector<34x256xf32>
    %163 = tpu.matmul %160, %162, %cst_116 {dimension_numbers = #tpu.dot_dimension_numbers<[1], [0], [0], [1], [0, 0, 1, 1], [], []>} : vector<34x256xbf16>, vector<256x256xbf16>, vector<34x256xf32> -> vector<34x256xf32>
    %164 = arith.addf %159, %163 : vector<34x256xf32>
    %165 = vector.extract_strided_slice %154 {offsets = [2, 0], sizes = [34, 256], strides = [1, 1]} : vector<37x256xbf16> to vector<34x256xbf16>
    %c2_117 = arith.constant 2 : index
    %c0_118 = arith.constant 0 : index
    %c0_119 = arith.constant 0 : index
    %166 = vector.load %arg10[%c2_117, %c0_118, %c0_119] : memref<4x256x256xbf16, #tpu.memory_space<vmem>>, vector<1x256x256xbf16>
    %167 = vector.shape_cast %166 : vector<1x256x256xbf16> to vector<256x256xbf16>
    %cst_120 = arith.constant dense<0.000000e+00> : vector<34x256xf32>
    %168 = tpu.matmul %165, %167, %cst_120 {dimension_numbers = #tpu.dot_dimension_numbers<[1], [0], [0], [1], [0, 0, 1, 1], [], []>} : vector<34x256xbf16>, vector<256x256xbf16>, vector<34x256xf32> -> vector<34x256xf32>
    %169 = arith.addf %164, %168 : vector<34x256xf32>
    %170 = vector.extract_strided_slice %154 {offsets = [3, 0], sizes = [34, 256], strides = [1, 1]} : vector<37x256xbf16> to vector<34x256xbf16>
    %c3_121 = arith.constant 3 : index
    %c0_122 = arith.constant 0 : index
    %c0_123 = arith.constant 0 : index
    %171 = vector.load %arg10[%c3_121, %c0_122, %c0_123] : memref<4x256x256xbf16, #tpu.memory_space<vmem>>, vector<1x256x256xbf16>
    %172 = vector.shape_cast %171 : vector<1x256x256xbf16> to vector<256x256xbf16>
    %cst_124 = arith.constant dense<0.000000e+00> : vector<34x256xf32>
    %173 = tpu.matmul %170, %172, %cst_124 {dimension_numbers = #tpu.dot_dimension_numbers<[1], [0], [0], [1], [0, 0, 1, 1], [], []>} : vector<34x256xbf16>, vector<256x256xbf16>, vector<34x256xf32> -> vector<34x256xf32>
    %174 = arith.addf %169, %173 : vector<34x256xf32>
    %175 = vector.broadcast %155 : vector<1x256xf32> to vector<34x256xf32>
    %176 = arith.addf %174, %175 : vector<34x256xf32>
    %cst_125 = arith.constant 0.000000e+00 : f32
    %177 = vector.broadcast %cst_125 : f32 to vector<34x256xf32>
    %178 = arith.maximumf %176, %177 : vector<34x256xf32>
    %179 = vector.extract_strided_slice %178 {offsets = [0, 0], sizes = [33, 256], strides = [1, 1]} : vector<34x256xf32> to vector<33x256xf32>
    %180 = vector.extract_strided_slice %178 {offsets = [1, 0], sizes = [33, 256], strides = [1, 1]} : vector<34x256xf32> to vector<33x256xf32>
    %181 = arith.maximumf %179, %180 : vector<33x256xf32>
    %182 = arith.truncf %181 : vector<33x256xf32> to vector<33x256xbf16>
    %c0_126 = arith.constant 0 : index
    %c0_127 = arith.constant 0 : index
    %183 = vector.load %arg14[%c0_126, %c0_127] : memref<8x33xbf16, #tpu.memory_space<vmem>>, vector<8x33xbf16>
    %cst_128 = arith.constant dense<0.000000e+00> : vector<8x256xf32>
    %184 = tpu.matmul %183, %182, %cst_128 {dimension_numbers = #tpu.dot_dimension_numbers<[1], [0], [0], [1], [0, 0, 1, 1], [], []>} : vector<8x33xbf16>, vector<33x256xbf16>, vector<8x256xf32> -> vector<8x256xf32>
    %185 = arith.truncf %184 : vector<8x256xf32> to vector<8x256xbf16>
    %c0_129 = arith.constant 0 : index
    %c0_130 = arith.constant 0 : index
    %186 = vector.load %arg16[%c0_129, %c0_130] : memref<1x256xf32, #tpu.memory_space<vmem>>, vector<1x256xf32>
    %187 = vector.extract_strided_slice %185 {offsets = [0, 0], sizes = [4, 256], strides = [1, 1]} : vector<8x256xbf16> to vector<4x256xbf16>
    %c0_131 = arith.constant 0 : index
    %c0_132 = arith.constant 0 : index
    %c0_133 = arith.constant 0 : index
    %188 = vector.load %arg15[%c0_131, %c0_132, %c0_133] : memref<2x256x256xbf16, #tpu.memory_space<vmem>>, vector<1x256x256xbf16>
    %189 = vector.shape_cast %188 : vector<1x256x256xbf16> to vector<256x256xbf16>
    %cst_134 = arith.constant dense<0.000000e+00> : vector<4x256xf32>
    %190 = tpu.matmul %187, %189, %cst_134 {dimension_numbers = #tpu.dot_dimension_numbers<[1], [0], [0], [1], [0, 0, 1, 1], [], []>} : vector<4x256xbf16>, vector<256x256xbf16>, vector<4x256xf32> -> vector<4x256xf32>
    %191 = vector.broadcast %186 : vector<1x256xf32> to vector<4x256xf32>
    %192 = arith.addf %191, %190 : vector<4x256xf32>
    %193 = vector.extract_strided_slice %185 {offsets = [4, 0], sizes = [4, 256], strides = [1, 1]} : vector<8x256xbf16> to vector<4x256xbf16>
    %c1_135 = arith.constant 1 : index
    %c0_136 = arith.constant 0 : index
    %c0_137 = arith.constant 0 : index
    %194 = vector.load %arg15[%c1_135, %c0_136, %c0_137] : memref<2x256x256xbf16, #tpu.memory_space<vmem>>, vector<1x256x256xbf16>
    %195 = vector.shape_cast %194 : vector<1x256x256xbf16> to vector<256x256xbf16>
    %cst_138 = arith.constant dense<0.000000e+00> : vector<4x256xf32>
    %196 = tpu.matmul %193, %195, %cst_138 {dimension_numbers = #tpu.dot_dimension_numbers<[1], [0], [0], [1], [0, 0, 1, 1], [], []>} : vector<4x256xbf16>, vector<256x256xbf16>, vector<4x256xf32> -> vector<4x256xf32>
    %197 = arith.addf %192, %196 : vector<4x256xf32>
    %cst_139 = arith.constant 0.000000e+00 : f32
    %198 = vector.broadcast %cst_139 : f32 to vector<4x256xf32>
    %199 = arith.maximumf %197, %198 : vector<4x256xf32>
    %c0_140 = arith.constant 0 : index
    %c0_141 = arith.constant 0 : index
    %200 = vector.load %arg17[%c0_140, %c0_141] : memref<2x256xf32, #tpu.memory_space<vmem>>, vector<1x256xf32>
    %201 = vector.broadcast %200 : vector<1x256xf32> to vector<4x256xf32>
    %202 = arith.mulf %199, %201 : vector<4x256xf32>
    %c1_142 = arith.constant 1 : index
    %c0_143 = arith.constant 0 : index
    %203 = vector.load %arg17[%c1_142, %c0_143] : memref<2x256xf32, #tpu.memory_space<vmem>>, vector<1x256xf32>
    %204 = vector.broadcast %203 : vector<1x256xf32> to vector<4x256xf32>
    %205 = arith.addf %202, %204 : vector<4x256xf32>
    %206 = arith.truncf %205 : vector<4x256xf32> to vector<4x256xbf16>
    %c0_144 = arith.constant 0 : index
    %c0_145 = arith.constant 0 : index
    %207 = vector.load %arg18[%c0_144, %c0_145] : memref<256x128xbf16, #tpu.memory_space<vmem>>, vector<256x128xbf16>
    %cst_146 = arith.constant dense<0.000000e+00> : vector<4x128xf32>
    %208 = tpu.matmul %206, %207, %cst_146 {dimension_numbers = #tpu.dot_dimension_numbers<[1], [0], [0], [1], [0, 0, 1, 1], [], []>} : vector<4x256xbf16>, vector<256x128xbf16>, vector<4x128xf32> -> vector<4x128xf32>
    %c0_147 = arith.constant 0 : index
    %c0_148 = arith.constant 0 : index
    %209 = vector.load %arg19[%c0_147, %c0_148] : memref<1x128xf32, #tpu.memory_space<vmem>>, vector<1x128xf32>
    %210 = vector.broadcast %209 : vector<1x128xf32> to vector<4x128xf32>
    %211 = arith.addf %208, %210 : vector<4x128xf32>
    %cst_149 = arith.constant 0.000000e+00 : f32
    %212 = vector.broadcast %cst_149 : f32 to vector<4x128xf32>
    %213 = arith.maximumf %211, %212 : vector<4x128xf32>
    %c0_150 = arith.constant 0 : index
    %c0_151 = arith.constant 0 : index
    %214 = vector.load %arg20[%c0_150, %c0_151] : memref<2x128xf32, #tpu.memory_space<vmem>>, vector<1x128xf32>
    %215 = vector.broadcast %214 : vector<1x128xf32> to vector<4x128xf32>
    %216 = arith.mulf %213, %215 : vector<4x128xf32>
    %c1_152 = arith.constant 1 : index
    %c0_153 = arith.constant 0 : index
    %217 = vector.load %arg20[%c1_152, %c0_153] : memref<2x128xf32, #tpu.memory_space<vmem>>, vector<1x128xf32>
    %218 = vector.broadcast %217 : vector<1x128xf32> to vector<4x128xf32>
    %219 = arith.addf %216, %218 : vector<4x128xf32>
    %c0_154 = arith.constant 0 : index
    %c0_155 = arith.constant 0 : index
    %220 = vector.load %arg21[%c0_154, %c0_155] : memref<1x128xf32, #tpu.memory_space<vmem>>, vector<1x128xf32>
    %221 = vector.broadcast %220 : vector<1x128xf32> to vector<4x128xf32>
    %222 = arith.mulf %219, %221 : vector<4x128xf32>
    %cst_156 = arith.constant dense<0.000000e+00> : vector<4xf32>
    %223 = vector.multi_reduction <add>, %222, %cst_156 [1] : vector<4x128xf32> to vector<4xf32>
    %224 = vector.shape_cast %223 : vector<4xf32> to vector<4x1xf32>
    %c0_157 = arith.constant 0 : index
    %c0_158 = arith.constant 0 : index
    %225 = vector.load %arg22[%c0_157, %c0_158] : memref<1x1xf32, #tpu.memory_space<vmem>>, vector<1x1xf32>
    %226 = vector.broadcast %225 : vector<1x1xf32> to vector<4x1xf32>
    %227 = arith.addf %224, %226 : vector<4x1xf32>
    %c0_159 = arith.constant 0 : index
    %c0_160 = arith.constant 0 : index
    %c0_161 = arith.constant 0 : index
    %228 = vector.load %arg23[%c0_159, %c0_160, %c0_161] : memref<1x4x1xf32, #tpu.memory_space<vmem>>, vector<1x4x1xf32>
    %229 = vector.shape_cast %228 : vector<1x4x1xf32> to vector<4x1xf32>
    %230 = vector.shape_cast %227 : vector<4x1xf32> to vector<1x4x1xf32>
    tpu.vector_store %arg23[%c0_159, %c0_160, %c0_161], %230 {strides = array<i32>} : memref<1x4x1xf32, #tpu.memory_space<vmem>>, vector<1x4x1xf32>,
    return
  }
  func.func @transform_0(%arg0: i32) -> (i32, i32, i32) {
    %c0_i32 = arith.constant 0 : i32
    %c0_i32_0 = arith.constant 0 : i32
    %c0_i32_1 = arith.constant 0 : i32
    return %arg0, %c0_i32, %c0_i32_0 : i32, i32, i32
  }
  func.func @transform_1(%arg0: i32) -> (i32, i32, i32) {
    %c0_i32 = arith.constant 0 : i32
    %c0_i32_0 = arith.constant 0 : i32
    %c0_i32_1 = arith.constant 0 : i32
    %c0_i32_2 = arith.constant 0 : i32
    return %c0_i32, %c0_i32_0, %c0_i32_1 : i32, i32, i32
  }
  func.func @transform_2(%arg0: i32) -> (i32, i32) {
    %c0_i32 = arith.constant 0 : i32
    %c0_i32_0 = arith.constant 0 : i32
    %c0_i32_1 = arith.constant 0 : i32
    return %c0_i32, %c0_i32_0 : i32, i32
  }
  func.func @transform_3(%arg0: i32) -> (i32, i32, i32) {
    %c0_i32 = arith.constant 0 : i32
    %c0_i32_0 = arith.constant 0 : i32
    %c0_i32_1 = arith.constant 0 : i32
    %c0_i32_2 = arith.constant 0 : i32
    return %c0_i32, %c0_i32_0, %c0_i32_1 : i32, i32, i32
  }
  func.func @transform_4(%arg0: i32) -> (i32, i32) {
    %c0_i32 = arith.constant 0 : i32
    %c0_i32_0 = arith.constant 0 : i32
    %c0_i32_1 = arith.constant 0 : i32
    return %c0_i32, %c0_i32_0 : i32, i32
  }
  func.func @transform_5(%arg0: i32) -> (i32, i32, i32) {
    %c0_i32 = arith.constant 0 : i32
    %c0_i32_0 = arith.constant 0 : i32
    %c0_i32_1 = arith.constant 0 : i32
    %c0_i32_2 = arith.constant 0 : i32
    return %c0_i32, %c0_i32_0, %c0_i32_1 : i32, i32, i32
  }
  func.func @transform_6(%arg0: i32) -> (i32, i32) {
    %c0_i32 = arith.constant 0 : i32
    %c0_i32_0 = arith.constant 0 : i32
    %c0_i32_1 = arith.constant 0 : i32
    return %c0_i32, %c0_i32_0 : i32, i32
  }
  func.func @transform_7(%arg0: i32) -> (i32, i32, i32) {
    %c0_i32 = arith.constant 0 : i32
    %c0_i32_0 = arith.constant 0 : i32
    %c0_i32_1 = arith.constant 0 : i32
    %c0_i32_2 = arith.constant 0 : i32
    return %c0_i32, %c0_i32_0, %c0_i32_1 : i32, i32, i32
  }
  func.func @transform_8(%arg0: i32) -> (i32, i32) {
    %c0_i32 = arith.constant 0 : i32
    %c0_i32_0 = arith.constant 0 : i32
    %c0_i32_1 = arith.constant 0 : i32
    return %c0_i32, %c0_i32_0 : i32, i32
  }
  func.func @transform_9(%arg0: i32) -> (i32, i32, i32) {
    %c0_i32 = arith.constant 0 : i32
    %c0_i32_0 = arith.constant 0 : i32
    %c0_i32_1 = arith.constant 0 : i32
    %c0_i32_2 = arith.constant 0 : i32
    return %c0_i32, %c0_i32_0, %c0_i32_1 : i32, i32, i32
  }
  func.func @transform_10(%arg0: i32) -> (i32, i32) {
    %c0_i32 = arith.constant 0 : i32
    %c0_i32_0 = arith.constant 0 : i32
    %c0_i32_1 = arith.constant 0 : i32
    return %c0_i32, %c0_i32_0 : i32, i32
  }
  func.func @transform_11(%arg0: i32) -> (i32, i32) {
    %c0_i32 = arith.constant 0 : i32
    %c0_i32_0 = arith.constant 0 : i32
    %c0_i32_1 = arith.constant 0 : i32
    return %c0_i32, %c0_i32_0 : i32, i32
  }
  func.func @transform_12(%arg0: i32) -> (i32, i32) {
    %c0_i32 = arith.constant 0 : i32
    %c0_i32_0 = arith.constant 0 : i32
    %c0_i32_1 = arith.constant 0 : i32
    return %c0_i32, %c0_i32_0 : i32, i32
  }
  func.func @transform_13(%arg0: i32) -> (i32, i32) {
    %c0_i32 = arith.constant 0 : i32
    %c0_i32_0 = arith.constant 0 : i32
    %c0_i32_1 = arith.constant 0 : i32
    return %c0_i32, %c0_i32_0 : i32, i32
  }
  func.func @transform_14(%arg0: i32) -> (i32, i32, i32) {
    %c0_i32 = arith.constant 0 : i32
    %c0_i32_0 = arith.constant 0 : i32
    %c0_i32_1 = arith.constant 0 : i32
    %c0_i32_2 = arith.constant 0 : i32
    return %c0_i32, %c0_i32_0, %c0_i32_1 : i32, i32, i32
  }
  func.func @transform_15(%arg0: i32) -> (i32, i32) {
    %c0_i32 = arith.constant 0 : i32
    %c0_i32_0 = arith.constant 0 : i32
    %c0_i32_1 = arith.constant 0 : i32
    return %c0_i32, %c0_i32_0 : i32, i32
  }
  func.func @transform_16(%arg0: i32) -> (i32, i32) {
    %c0_i32 = arith.constant 0 : i32
    %c0_i32_0 = arith.constant 0 : i32
    %c0_i32_1 = arith.constant 0 : i32
    return %c0_i32, %c0_i32_0 : i32, i32
  }
  func.func @transform_17(%arg0: i32) -> (i32, i32) {
    %c0_i32 = arith.constant 0 : i32
    %c0_i32_0 = arith.constant 0 : i32
    %c0_i32_1 = arith.constant 0 : i32
    return %c0_i32, %c0_i32_0 : i32, i32
  }
  func.func @transform_18(%arg0: i32) -> (i32, i32) {
    %c0_i32 = arith.constant 0 : i32
    %c0_i32_0 = arith.constant 0 : i32
    %c0_i32_1 = arith.constant 0 : i32
    return %c0_i32, %c0_i32_0 : i32, i32
  }
  func.func @transform_19(%arg0: i32) -> (i32, i32) {
    %c0_i32 = arith.constant 0 : i32
    %c0_i32_0 = arith.constant 0 : i32
    %c0_i32_1 = arith.constant 0 : i32
    return %c0_i32, %c0_i32_0 : i32, i32
  }
  func.func @transform_20(%arg0: i32) -> (i32, i32) {
    %c0_i32 = arith.constant 0 : i32
    %c0_i32_0 = arith.constant 0 : i32
    %c0_i32_1 = arith.constant 0 : i32
    return %c0_i32, %c0_i32_0 : i32, i32
  }
  func.func @transform_21(%arg0: i32) -> (i32, i32) {
    %c0_i32 = arith.constant 0 : i32
    %c0_i32_0 = arith.constant 0 : i32
    %c0_i32_1 = arith.constant 0 : i32
    return %c0_i32, %c0_i32_0 : i32, i32
  }
  func.func @transform_22(%arg0: i32) -> (i32, i32, i32) {
    %c0_i32 = arith.constant 0 : i32
    %c0_i32_0 = arith.constant 0 : i32
    %c0_i32_1 = arith.constant 0 : i32
    return %arg0, %c0_i32, %c0_i32_0 : i32, i32, i32
  }
}

</mosaic_0001>

<bundles_post_ra>
// kernel: tpu_custom_call.1
= control target key start
LH: loop header
LB: loop body
LE: loop exit
PB: predicated region body
PF: predicated region fallthrough
CT: control target
= control target key end

     0   :  { %s18501_s0 = inlined_call_operand.vmem [shape: bf16[2,272,204], index: 0, kind: input, shape index: {}]   ;;  %s18502_s1 = inlined_call_operand.vmem [shape: bf16[10,204,96], index: 1, kind: input, shape index: {}]   ;;  %s18503_s2 = inlined_call_operand.vmem [shape: f32[2,96], index: 2, kind: input, shape index: {}]   ;;  %s18504_s3 = inlined_call_operand.hbm [shape: bf16[5,96,128], index: 3, kind: input, shape index: {}]   ;;  %s18505_s4 = inlined_call_operand.vmem [shape: f32[1,128], index: 4, kind: input, shape index: {}]   ;;  %s18506_s5 = inlined_call_operand.hbm [shape: bf16[5,128,128], index: 5, kind: input, shape index: {}]   ;;  %s18507_s6 = inlined_call_operand.vmem [shape: f32[1,128], index: 6, kind: input, shape index: {}]   ;;  %s18508_s7 = inlined_call_operand.vmem [shape: bf16[4,128,256], index: 7, kind: input, shape index: {}]   ;;  %s18509_s8 = inlined_call_operand.vmem [shape: f32[1,256], index: 8, kind: input, shape index: {}]   ;;  %s18510_s9 = inlined_call_operand.vmem [shape: bf16[4,256,256], index: 9, kind: input, shape index: {}]   ;;  %s18511_s10 = inlined_call_operand.vmem [shape: f32[1,256], index: 10, kind: input, shape index: {}]   ;;  %s18512_s11 = inlined_call_operand.vmem [shape: bf16[116,262], index: 11, kind: input, shape index: {}]   ;;  %s18513_s12 = inlined_call_operand.vmem [shape: bf16[40,107], index: 12, kind: input, shape index: {}]   ;;  %s18514_s13 = inlined_call_operand.vmem [shape: bf16[8,33], index: 13, kind: input, shape index: {}]   ;;  %s18515_s14 = inlined_call_operand.hbm [shape: bf16[2,256,256], index: 14, kind: input, shape index: {}]   ;;  %s18516_s15 = inlined_call_operand.vmem [shape: f32[1,256], index: 15, kind: input, shape index: {}]   ;;  %s18517_s16 = inlined_call_operand.vmem [shape: f32[2,256], index: 16, kind: input, shape index: {}]   ;;  %s18518_s17 = inlined_call_operand.vmem [shape: bf16[256,128], index: 17, kind: input, shape index: {}]   ;;  %s18519_s18 = inlined_call_operand.vmem [shape: f32[1,128], index: 18, kind: input, shape index: {}]   ;;  %s18520_s19 = inlined_call_operand.vmem [shape: f32[2,128], index: 19, kind: input, shape index: {}]   ;;  %s18521_s20 = inlined_call_operand.vmem [shape: f32[1,128], index: 20, kind: input, shape index: {}]   ;;  %s18522_s21 = inlined_call_operand.<no memory space> [shape: f32[1,1], index: 21, kind: input, shape index: {}]   ;;  %s18523_s22 = inlined_call_operand.vmem [shape: f32[2,4,1], index: 22, kind: output, shape index: {}]  }
   0x1   :  { %18695 = sst [smem:[#allocation114_spill]] %s18501_s0  ;;  %v27_v0 = vstv %s18522_s21 }
   0x2   :  { %18696 = sst [smem:[#allocation115_spill]] %s18502_s1  ;;  %28 = vst [vmem:[#allocation2] sm:$0x1] %v27_v0 }
   0x3   :  { %18697 = sst [smem:[#allocation116_spill]] %s18503_s2 }
   0x4   :  { %18698 = sst [smem:[#allocation117_spill]] %s18504_s3 }
   0x5   :  { %18699 = sst [smem:[#allocation118_spill]] %s18505_s4 }
   0x6   :  { %18700 = sst [smem:[#allocation119_spill]] %s18506_s5 }
   0x7   :  { %18701 = sst [smem:[#allocation120_spill]] %s18507_s6 }
   0x8   :  { %29 = vsyncpa [#allocation4], 0 }
   0x9   :  { %30 = vsyncpa [#allocation6], 0  ;;  %s14254_s29 = smov 0  }
   0xa LB: > { %s14260_s30 = sadd.s32 4294967295, %s14123_s29   ;;  %p11348_p0 = scmp.ge.s32.totalorder %s14123_s29, 1  ;;  %s14123_s29 = sphi %s14254_s29, %s36_s29  }
   0xb   : > { %p534_p1 = scmp.lt.s32.totalorder %s14123_s29, 3  ;;  %p13268_p2 = scmp.eq.s32.totalorder %s14260_s30, 0 }
   0xc   : > { %s14125_s4 = smov [#allocation5]   ;;  %s14126_s23 = smov [#allocation3]  }
   0xd   : > { %p14265_p3 = pnand %p11348_p0, %p534_p1  ;;  %s568_s0 = sshll.u32 %s14125_s4, 4  ;;  %s569_s0 = int_to_ptr.vmem [resolvable:$true] %s568_s0 }
   0xe   : > { %s552_s1 = sshll.u32 %s14126_s23, 4  ;;  %s14127_s24 = smov [#allocation7]   ;;  %s14271_s1 = int_to_ptr.vmem [resolvable:$true] %s552_s1 }
   0xf   : > { %p13258_p4 = pneg %p14265_p3  ;;  %s605_s6 = sshll.u32 %s14127_s24, 4  ;;  %s14279_s6 = int_to_ptr.vmem [resolvable:$true] %s605_s6 }
  0x10   : > { %s14042_s25 = scalar_lea.vmem %s569_s0, 5120  ;;  %p14050_p10 = scmp.lt.s32.totalorder %s569_s0, %s569_s0 }
  0x11   : > { %p14275_p5 = pnand %p13268_p2, %p13258_p4  ;;  %p14043_p7 = scmp.ne.s32.totalorder %s569_s0, %s14042_s25 }
  0x12   : > { %p14051_p11 = scmp.lt.s32.totalorder %s14042_s25, %s14042_s25 }
  0x13   : > { %p14033_p6 = pneg %p14275_p5 }
  0x14   : > { %p14052_p12 = por %p14051_p11, %p14050_p10 }
  0x15   : > { %p14045_p8 = pnand %p14043_p7, %p14033_p6 }
  0x17   : > { %p14046_p9 = pneg %p14045_p8 }
  0x19   : > { %p14053_p13 = pnand %p14052_p12, %p14046_p9 }
  0x1b   : > { %14056 = shalt.err (!%p14053_p13)
}
  0x1c   : > { %s14128_s26 = smov 64   ;;  %s14129_s2 = smov 4  }
  0x1d   : > { %s18704_s28 = sld [smem:[#allocation119_spill]]  ;;  %s14068_s4 = scalar_lea.vmem %s14271_s1, 3840 }
  0x1e   : > { %p14069_p0 = scmp.ne.s32.totalorder %s14271_s1, %s14068_s4  ;;  %p14076_p7 = scmp.lt.s32.totalorder %s14271_s1, %s14271_s1 }
  0x1f   : > { %p14077_p8 = scmp.lt.s32.totalorder %s14068_s4, %s14068_s4 }
  0x20   : > { %p14071_p1 = pnand %p14069_p0, %p14033_p6 }
  0x21   : > { %p14078_p9 = por %p14077_p8, %p14076_p7 }
  0x22   : > { %p14072_p4 = pneg %p14071_p1 }
  0x23   : > { %13264 = dma.hbm_to_vmem [thread:$0]  (!%p14275_p5), %s18704_s28, 5120, %s569_s0, [#allocation6], %s14128_s26, %s14128_s26, %s14129_s2  }
  0x24   : > { %p14079_p10 = pnand %p14078_p9, %p14072_p4 }
  0x26   : > { %14082 = shalt.err (!%p14079_p10)
}
  0x27   : > { %s18705_s25 = sld [smem:[#allocation117_spill]]  ;;  %s14094_s0 = scalar_lea.vmem %s14279_s6, 8192 }
  0x28   : > { %p14095_p11 = scmp.ne.s32.totalorder %s14279_s6, %s14094_s0  ;;  %p14102_p0 = scmp.lt.s32.totalorder %s14279_s6, %s14279_s6 }
  0x29   : > { %p14103_p1 = scmp.lt.s32.totalorder %s14094_s0, %s14094_s0 }
  0x2a   : > { %p14097_p12 = pnand %p14095_p11, %p14033_p6 }
  0x2b   : > { %p14104_p4 = por %p14103_p1, %p14102_p0 }
  0x2c   : > { %p14098_p13 = pneg %p14097_p12 }
  0x2d   : > { %13261 = dma.hbm_to_vmem [thread:$0]  (!%p14275_p5), %s18705_s25, 3840, %s14271_s1, [#allocation4], %s14128_s26, %s14128_s26, %s14129_s2  }
  0x2e   : > { %p14105_p7 = pnand %p14104_p4, %p14098_p13 }
  0x30   : > { %14108 = shalt.err (!%p14105_p7)
}
  0x31   : > { %s14130_s27 = smov 128   ;;  %s14131_s3 = smov 8  }
  0x32   : > { %13267 = dma.hbm_to_vmem [thread:$0]  (!%p14275_p5), %s18515_s14, 8192, %s14279_s6, [#allocation6], %s14130_s27, %s14130_s27, %s14131_s3  }
  0x33   : > { %650 = sbr.rel (%p14265_p3) target bundleno = 3502 (0xdae), region = 108 }
  0x38   : > { %14114 = dma.done.wait (%p13268_p2), [#allocation4], 3840  }
  0x39   : > { %14116 = vsyncadd (%p13268_p2), [#allocation4], 4294963456 }
  0x3a   : > { %14118 = dma.done.wait (%p13268_p2), [#allocation6], 13312  }
  0x3b   : > { %14120 = vsyncadd (%p13268_p2), [#allocation6], 4294953984  ;;  %v18534_v1 = vmov 0   ;;  %s18706_s5 = sld [smem:[#allocation115_spill]]  ;;  %p719_p2 = scmp.lt.s32.totalorder %s14260_s30, 1  ;;  %vm1314_vm0 = vcmask 621568  }
  0x3c   : > { %1370 = vmatprep.subr.bf16.mxu0 %v18534_v1  ;;  %1669 = vmatprep.subr.bf16.mxu1 %v18534_v1  ;;  %s18707_s23 = sld [smem:[#allocation114_spill]]  ;;  %vm1366_vm1 = vcmask 1045504   ;;  %vm949_vm2 = vsmask.f32 7424  ;;  %vm1869_vm3 = vcmask 1046528   ;;  %vm3787_vm6 = vcmask 1044480  }
  0x3d   : > { %s19053_s30 = smov (!%p719_p2, %s14260_s30), 1  ;;  %vm2312_vm4 = vsmask.f32 6400  ;;  %vm3276_vm5 = vsmask.f32 5376  ;;  %vm6080_vm8 = vcmask 48128  }
  0x3e   : > { %s13245_s28 = smul.u32 272, %s19053_s30  ;;  %vm4230_vm7 = vsmask.f32 4352  ;;  %vm6105_vm9 = vcmask 1042432   ;;  %vm14134_vm10 = vmmov 0   ;;  %s19049_s25 = sld [smem:[#allocation116_spill]] }
  0x3f   : > { %vm6471_vm11 = vcmask 785408   ;;  %vm8435_vm12 = vcmask 875520   ;;  %vm10478_vm13 = vcmask 1040384   ;;  %vm10474_vm14 = vcmask 269312   ;;  %s11358_s1 = sshll.u32 %s19053_s30, 2 }
  0x40   : > { %vm11248_vm15 = vcmask 1043456   ;;  %s727_s26 = scalar_lea.vmem %s18523_s22, %s11358_s1 }
  0x41   : > { %v13293_v2 = vld [vmem:[%s18706_s5 + $0xa0] sm:$0xff]   ;;  %v13294_v3 = vld [vmem:[%s18706_s5 + $0x38] sm:$0xff]   ;;  %v13296_v5 = vld [vmem:[%s18706_s5 + $0x30] sm:$0xff]  }
  0x42   : > { %1371 = vmatpush1.bf16.msra.mxu0 %v13293_v2  ;;  %v13295_v4 = vld [vmem:[%s18706_s5 + $0x98] sm:$0xff]   ;;  %1670 = vmatpush1.bf16.msra.mxu1 %v13294_v3  ;;  %v13297_v6 = vld [vmem:[%s18706_s5 + $0x90] sm:$0xff]   ;;  %v13298_v7 = vld [vmem:[%s18706_s5 + $0x28] sm:$0xff]   ;;  %s14390_s24 = scalar_lea.vmem %s18707_s23, %s13245_s28  ;;  %s19050_s28 = sld [smem:[#allocation118_spill]] }
  0x43   : > { %1372 = vmatprep.subr.bf16.mxu0 %v18534_v1  ;;  %1671 = vmatprep.subr.bf16.mxu1 %v18534_v1  ;;  %v13299_v8 = vld [vmem:[%s18706_s5 + $0x88] sm:$0xff]   ;;  %v13300_v9 = vld [vmem:[%s18706_s5 + $0x20] sm:$0xff]   ;;  %v13302_v11 = vld [vmem:[%s18706_s5 + $0x18] sm:$0xff]   ;;  %s19051_s23 = sld [smem:[#allocation120_spill]] }
  0x44   : > { %v13301_v10 = vld [vmem:[%s18706_s5 + $0x80] sm:$0xff]   ;;  %v13303_v12 = vld [vmem:[%s18706_s5 + $0x78] sm:$0xff]   ;;  %v13304_v13 = vld [vmem:[%s18706_s5 + $0x10] sm:$0xff]  }
  0x45   : > { %v13305_v14 = vld [vmem:[%s18706_s5 + $0x70] sm:$0xff]   ;;  %v13306_v15 = vld [vmem:[%s18706_s5 + $0x8] sm:$0xff]   ;;  %v729_v17 = vld [vmem:[%s14390_s24] sm:$0xff] }
  0x46   : > { %1373 = vmatpush1.bf16.msra.mxu0 %v13295_v4  ;;  %1672 = vmatpush1.bf16.msra.mxu1 %v13296_v5  ;;  %v13307_v16 = vld [vmem:[%s18706_s5 + $0x68] sm:$0xff]   ;;  %v731_v19 = vld [vmem:[%s14390_s24 + $0x10] sm:$0xff]  ;;  %v13308_v20 = vld [vmem:[%s18706_s5] sm:$0xff]  }
  0x47   : > { %1374 = vmatprep.subr.bf16.mxu0 %v18534_v1  ;;  %1673 = vmatprep.subr.bf16.mxu1 %v18534_v1  ;;  %v730_v18 = vld [vmem:[%s14390_s24 + $0x8] sm:$0xff]  ;;  %v732_v22 = vld [vmem:[%s14390_s24 + $0x18] sm:$0xff]  ;;  %v13310_v24 = vld [vmem:[%s18706_s5 + $0x60] sm:$0x3f]  }
  0x48   : > { %v13309_v21 = vld [vmem:[%s18706_s5 + $0xc8] sm:$0x3f]   ;;  %v14407_v23 = vcombine.high %v729_v17, %v730_v18  ;;  %v14413_v25 = vcombine.high %v731_v19, %v732_v22  ;;  %v1667_v31 = vsel %vm1366_vm1, %v13310_v24, 0  ;;  %v13311_v34 = vld [vmem:[%s18706_s5 + $0xc0] sm:$0xff]   ;;  %v13312_v35 = vld [vmem:[%s18706_s5 + $0x58] sm:$0xff]   ;;  %v14439_v36 = vcombine.low %v729_v17, %v730_v18 }
  0x49   : > { %v1368_v29 = vsel %vm1366_vm1, %v13309_v21, 0  ;;  %v733_v38 = vld [vmem:[%s14390_s24 + $0x20] sm:$0xff]  ;;  %v734_v39 = vld [vmem:[%s14390_s24 + $0x28] sm:$0xff]  ;;  %v13313_v40 = vld [vmem:[%s18706_s5 + $0xb8] sm:$0xff]   ;;  %v14450_v41 = vcombine.low %v731_v19, %v732_v22 }
  0x4a   : > { %1375 = vmatpush1.bf16.msra.mxu0 %v13297_v6  ;;  %1674 = vmatpush1.bf16.msra.mxu1 %v13298_v7  ;;  %18708 = vst [vmem:[#allocation10_spill] sm:$0xff] %v14407_v23  ;;  %18709 = vst [vmem:[#allocation11_spill] sm:$0xff] %v14413_v25  ;;  %v14416_v26 = vshrl.u32 %v14407_v23, 16  ;;  %v14419_v27 = vshll.u32 %v14407_v23, 16  ;;  %v14424_v28 = vshll.u32 %v14413_v25, 16  ;;  %v14453_v42 = vshll.u32 %v14439_v36, 16 }
  0x4b   : > { %1376 = vmatprep.subr.bf16.mxu0 %v18534_v1  ;;  %1675 = vmatprep.subr.bf16.mxu1 %v18534_v1  ;;  %18713 = vst [vmem:[#allocation15_spill] sm:$0xff] %v14439_v36  ;;  %18714 = vst [vmem:[#allocation16_spill] sm:$0xff] %v14450_v41  ;;  %v13314_v43 = vld [vmem:[%s18706_s5 + $0x50] sm:$0xff]   ;;  %v14459_v44 = vcombine.high %v733_v38, %v734_v39  ;;  %v14466_v46 = vshrl.u32 %v14439_v36, 16  ;;  %v14470_v48 = vshll.u32 %v14450_v41, 16  ;;  %v13316_v49 = vld [vmem:[%s18706_s5 + $0x48] sm:$0xff]  }
  0x4c   : > { %18710 = vst [vmem:[#allocation12_spill] sm:$0xff] %v14416_v26  ;;  %18711 = vst [vmem:[#allocation13_spill] sm:$0xff] %v14419_v27  ;;  %11462 = vmatprep.mubr.msk.bf16.mxu1 %vm1314_vm0, %v14407_v23  ;;  %v967_v30 = vrot.slane %v14419_v27, 1  ;;  %v972_v32 = vrot.slane %v14424_v28, 1  ;;  %v13315_v45 = vld [vmem:[%s18706_s5 + $0xb0] sm:$0xff]   ;;  %v955_v47 = vrot.slane %v14453_v42, 1  ;;  %v14490_v57 = vcombine.low %v733_v38, %v734_v39 }
  0x4d   : > { %18712 = vst [vmem:[#allocation14_spill] sm:$0xff] %v14424_v28  ;;  %18715 = vst [vmem:[#allocation17_spill] sm:$0xff] %v14453_v42  ;;  %v14477_v50 = vshrl.u32 %v14413_v25, 16  ;;  %v14480_v51 = vshll.u32 %v14459_v44, 16  ;;  %v735_v52 = vld [vmem:[%s14390_s24 + $0x30] sm:$0xff]  ;;  %v736_v53 = vld [vmem:[%s14390_s24 + $0x38] sm:$0xff] }
  0x4e   : > { %1377 = vmatpush1.bf16.msra.mxu0 %v13299_v8  ;;  %1676 = vmatpush1.bf16.msra.mxu1 %v13300_v9  ;;  %v968_v33 = vor.u32 %v967_v30, %v14416_v26  ;;  %18716 = vst [vmem:[#allocation18_spill] sm:$0xff] %v14459_v44  ;;  %18717 = vst [vmem:[#allocation19_spill] sm:$0xff] %v14466_v46  ;;  %v13317_v54 = vld [vmem:[%s18706_s5 + $0xa8] sm:$0xff]   ;;  %v956_v55 = vor.u32 %v955_v47, %v14466_v46  ;;  %v960_v56 = vrot.slane %v14470_v48, 1  ;;  %v13318_v58 = vld [vmem:[%s18706_s5 + $0x40] sm:$0xff]  }
  0x4f   : > { %1378 = vmatprep.subr.bf16.mxu0 %v18534_v1  ;;  %1677 = vmatprep.subr.bf16.mxu1 %v18534_v1  ;;  %18718 = vst [vmem:[#allocation20_spill] sm:$0xff] %v14470_v48  ;;  %18719 = vst [vmem:[#allocation21_spill] sm:$0xff] %v14477_v50  ;;  %v984_v59 = vor.u32 %v14477_v50, %v972_v32  ;;  %v988_v60 = vrot.slane %v14480_v51, 1  ;;  %v14498_v61 = vcombine.high %v735_v52, %v736_v53  ;;  %v737_v3 = vld [vmem:[%s14390_s24 + $0x40] sm:$0xff]  ;;  %v13343_v6 = vld [vmem:[%s18706_s5 + $0x108] sm:$0xff]  }
  0x50   : > { %v973_v37 = vsel %vm949_vm2, %v968_v33, %v972_v32  ;;  %18720 = vst [vmem:[#allocation22_spill] sm:$0xff] %v14480_v51  ;;  %v961_v62 = vsel %vm949_vm2, %v956_v55, %v960_v56  ;;  %v14503_v63 = vshrl.u32 %v14450_v41, 16  ;;  %v14506_v0 = vshll.u32 %v14490_v57, 16  ;;  %v738_v7 = vld [vmem:[%s14390_s24 + $0x48] sm:$0xff]  ;;  %v13344_v8 = vld [vmem:[%s18706_s5 + $0x170] sm:$0xff]   ;;  %v13349_v24 = vld [vmem:[%s18706_s5 + $0xf8] sm:$0xff]  }
  0x51   : > { %11432 = vmatprep.mubr.msk.bf16.mxu0 %vm1314_vm0, %v973_v37  ;;  %v14509_v2 = vshrl.u32 %v14459_v44, 16  ;;  %v989_v4 = vsel %vm949_vm2, %v984_v59, %v988_v60  ;;  %v14514_v5 = vshll.u32 %v14498_v61, 16  ;;  %v14545_v17 = vshrl.u32 %v14490_v57, 16  ;;  %v740_v30 = vld [vmem:[%s14390_s24 + $0x58] sm:$0xff]  ;;  %v13353_v39 = vld [vmem:[%s18706_s5 + $0xf0] sm:$0xff]  }
  0x52   : > { %1379 = vmatpush1.bf16.msra.mxu0 %v13301_v10  ;;  %1678 = vmatpush1.bf16.msra.mxu1 %v13302_v11  ;;  %18721 = vst [vmem:[#allocation23_spill] sm:$0xff] %v14503_v63  ;;  %v976_v9 = vor.u32 %v14503_v63, %v960_v56  ;;  %v980_v10 = vrot.slane %v14506_v0, 1  ;;  %v14529_v11 = vcombine.low %v735_v52, %v736_v53  ;;  %v741_v52 = vld [vmem:[%s14390_s24 + $0x60] sm:$0xff]  ;;  %v742_v53 = vld [vmem:[%s14390_s24 + $0x68] sm:$0xff] }
  0x53   : > { %1380 = vmatprep.subr.bf16.mxu0 %v18534_v1  ;;  %1679 = vmatprep.subr.bf16.mxu1 %v18534_v1  ;;  %18722 = vst [vmem:[#allocation24_spill] sm:$0xff] %v14509_v2  ;;  %18724 = vst [vmem:[#allocation26_spill] sm:$0xff] %v14545_v17  ;;  %v13355_v56 = vld [vmem:[%s18706_s5 + $0xe8] sm:$0xff]  }
  0x54   : > { %v981_v18 = vsel %vm949_vm2, %v976_v9, %v980_v10  ;;  %v14550_v19 = vshll.u32 %v14529_v11, 16  ;;  %v992_v32 = vor.u32 %v14545_v17, %v980_v10 }
  0x56   : > { %1381 = vmatpush1.bf16.msra.mxu0 %v13303_v12  ;;  %1680 = vmatpush1.bf16.msra.mxu1 %v13304_v13  ;;  %v1000_v12 = vor.u32 %v14509_v2, %v988_v60  ;;  %v1004_v13 = vrot.slane %v14514_v5, 1  ;;  %v996_v33 = vrot.slane %v14550_v19, 1 }
  0x57   : > { %1382 = vmatprep.subr.bf16.mxu0 %v18534_v1  ;;  %1681 = vmatprep.subr.bf16.mxu1 %v18534_v1 }
  0x58   : > { %v1005_v21 = vsel %vm949_vm2, %v1000_v12, %v1004_v13 }
  0x5a   : > { %1383 = vmatpush1.bf16.msra.mxu0 %v13305_v14  ;;  %1682 = vmatpush1.bf16.msra.mxu1 %v13306_v15  ;;  %v14535_v14 = vcombine.high %v737_v3, %v738_v7  ;;  %v13347_v15 = vld [vmem:[%s18706_s5 + $0x100] sm:$0xff]  }
  0x5b   : > { %1384 = vmatprep.subr.bf16.mxu0 %v18534_v1  ;;  %1683 = vmatprep.subr.bf16.mxu1 %v18534_v1 }
  0x5c   : > { %18723 = vst [vmem:[#allocation25_spill] sm:$0xff] %v14535_v14  ;;  %v14557_v22 = vshll.u32 %v14535_v14, 16 }
  0x5e   : > { %1385 = vmatpush1.bf16.msra.mxu0 %v13307_v16  ;;  %1684 = vmatpush1.bf16.msra.mxu1 %v13308_v20  ;;  %v13348_v16 = vld [vmem:[%s18706_s5 + $0x168] sm:$0xff]   ;;  %v14553_v20 = vshrl.u32 %v14498_v61, 16  ;;  %18725 = vst [vmem:[#allocation27_spill] sm:$0xff] %v14557_v22  ;;  %v1020_v37 = vrot.slane %v14557_v22, 1 }
  0x5f   : > { %1392 = vmatprep.subr.bf16.mxu0 %v18534_v1  ;;  %1691 = vmatprep.subr.bf16.mxu1 %v18534_v1 }
  0x62   : > { %1393 = vmatpush2.bf16.msra.mxu0 %v1368_v29  ;;  %1692 = vmatpush2.bf16.msra.mxu1 %v1667_v31  ;;  %v739_v29 = vld [vmem:[%s14390_s24 + $0x50] sm:$0xff]  ;;  %v13350_v31 = vld [vmem:[%s18706_s5 + $0x160] sm:$0xff]  }
  0x63   : > { %1394 = vmatprep.subr.bf16.mxu0 %v18534_v1  ;;  %1693 = vmatprep.subr.bf16.mxu1 %v18534_v1  ;;  %v14579_v38 = vcombine.high %v739_v29, %v740_v30 }
  0x65   : > { %18727 = vst [vmem:[#allocation29_spill] sm:$0xff] %v14579_v38  ;;  %v14603_v55 = vshll.u32 %v14579_v38, 16 }
  0x66   : > { %1395 = vmatpush2.bf16.msra.mxu0 %v13311_v34  ;;  %1694 = vmatpush2.bf16.msra.mxu1 %v13312_v35  ;;  %v14573_v34 = vcombine.low %v737_v3, %v738_v7  ;;  %v1016_v35 = vor.u32 %v14553_v20, %v1004_v13  ;;  %v13359_v7 = vld [vmem:[%s18706_s5 + $0xe0] sm:$0xff]   ;;  %v743_v13 = vld [vmem:[%s14390_s24 + $0x70] sm:$0xff] }
  0x67   : > { %1396 = vmatprep.subr.bf16.mxu0 %v18534_v1  ;;  %1695 = vmatprep.subr.bf16.mxu1 %v18534_v1  ;;  %18730 = vst [vmem:[#allocation32_spill] sm:$0xff] %v14603_v55 }
  0x68   : > { %18726 = vst [vmem:[#allocation28_spill] sm:$0xff] %v14573_v34  ;;  %v14594_v47 = vshll.u32 %v14573_v34, 16  ;;  %v14635_v10 = vshrl.u32 %v14573_v34, 16 }
  0x6a   : > { %1397 = vmatpush2.bf16.msra.mxu0 %v13313_v40  ;;  %1696 = vmatpush2.bf16.msra.mxu1 %v13314_v43  ;;  %v13354_v40 = vld [vmem:[%s18706_s5 + $0x158] sm:$0xff]   ;;  %v997_v43 = vsel %vm949_vm2, %v992_v32, %v996_v33  ;;  %18729 = vst [vmem:[#allocation31_spill] sm:$0xff] %v14594_v47  ;;  %v1012_v60 = vrot.slane %v14594_v47, 1  ;;  %18733 = vst [vmem:[#allocation35_spill] sm:$0xff] %v14635_v10 }
  0x6b   : > { %1398 = vmatprep.subr.bf16.mxu0 %v18534_v1  ;;  %1697 = vmatprep.subr.bf16.mxu1 %v18534_v1 }
  0x6c   : > { %v1024_v32 = vor.u32 %v14635_v10, %v1012_v60 }
  0x6e   : > { %1399 = vmatpush2.bf16.msra.mxu0 %v13315_v45  ;;  %1698 = vmatpush2.bf16.msra.mxu1 %v13316_v49  ;;  %v14591_v45 = vshrl.u32 %v14529_v11, 16  ;;  %v14597_v49 = vshrl.u32 %v14535_v14, 16 }
  0x6f   : > { %1400 = vmatprep.subr.bf16.mxu0 %v18534_v1  ;;  %1699 = vmatprep.subr.bf16.mxu1 %v18534_v1 }
  0x70   : > { %18728 = vst [vmem:[#allocation30_spill] sm:$0xff] %v14591_v45  ;;  %v1008_v59 = vor.u32 %v14591_v45, %v996_v33  ;;  %v1032_v3 = vor.u32 %v14597_v49, %v1020_v37 }
  0x72   : > { %1401 = vmatpush2.bf16.msra.mxu0 %v13317_v54  ;;  %1700 = vmatpush2.bf16.msra.mxu1 %v13318_v58  ;;  %v1021_v54 = vsel %vm949_vm2, %v1016_v35, %v1020_v37  ;;  %v13356_v58 = vld [vmem:[%s18706_s5 + $0x150] sm:$0xff]   ;;  %v1013_v9 = vsel %vm949_vm2, %v1008_v59, %v1012_v60  ;;  %v13366_v35 = vld [vmem:[%s18706_s5 + $0x138] sm:$0xff]   ;;  %v746_v60 = vld [vmem:[%s14390_s24 + $0x88] sm:$0xff] }
  0x73   : > { %2084 = vmatprep.subr.bf16.mxu0 %v18534_v1  ;;  %2605 = vmatprep.subr.bf16.mxu1 %v18534_v1  ;;  %v13367_v37 = vld [vmem:[%s18706_s5 + $0x130] sm:$0x3f]  }
  0x75   : > { %1403 = vmatmul.mubr.bf16.vlgmr.msra.gmra.mxu0 %v961_v62  ;;  %1702 = vmatmul.mubr.bf16.vlgmr.msra.gmra.mxu1 %v14439_v36  ;;  %v14617_v62 = vcombine.low %v739_v29, %v740_v30  ;;  %v13362_v29 = vld [vmem:[%s18706_s5 + $0x140] sm:$0xff]   ;;  %v14656_v30 = vcombine.low %v741_v52, %v742_v53 }
  0x76   : > { %11433 = vmatprep.mubr.msk.bf16.mxu0 %vm1314_vm0, %v989_v4  ;;  %11463 = vmatprep.mubr.msk.bf16.mxu1 %vm1314_vm0, %v14413_v25  ;;  %v1036_v4 = vrot.slane %v14603_v55, 1 }
  0x77   : > { %2085 = vmatpush1.bf16.msra.mxu0 %v13343_v6  ;;  %2606 = vmatpush1.bf16.msra.mxu1 %v13344_v8  ;;  %18731 = vst [vmem:[#allocation33_spill] sm:$0xff] %v14617_v62  ;;  %v14623_v6 = vcombine.high %v741_v52, %v742_v53  ;;  %v13360_v8 = vld [vmem:[%s18706_s5 + $0x148] sm:$0xff]   ;;  %v14638_v12 = vshll.u32 %v14617_v62, 16  ;;  %18737 = vst [vmem:[#allocation39_spill] sm:$0xff] %v14656_v30  ;;  %v14680_v52 = vshll.u32 %v14656_v30, 16  ;;  %v745_v53 = vld [vmem:[%s14390_s24 + $0x80] sm:$0xff] }
  0x78   : > { %2086 = vmatprep.subr.bf16.mxu0 %v18534_v1  ;;  %2607 = vmatprep.subr.bf16.mxu1 %v18534_v1 }
  0x79   : > { %18732 = vst [vmem:[#allocation34_spill] sm:$0xff] %v14623_v6  ;;  %18734 = vst [vmem:[#allocation36_spill] sm:$0xff] %v14638_v12  ;;  %v1028_v33 = vrot.slane %v14638_v12, 1  ;;  %v18755_v12 = vmov 0  }
  0x7a   : > { %18739 = vst [vmem:[#allocation41_spill] sm:$0xff] %v14680_v52 }
  0x7b   : > { %2087 = vmatpush1.bf16.msra.mxu0 %v13347_v15  ;;  %2608 = vmatpush1.bf16.msra.mxu1 %v13348_v16  ;;  %v744_v15 = vld [vmem:[%s14390_s24 + $0x78] sm:$0xff] }
  0x7c   : > { %2088 = vmatprep.subr.bf16.mxu0 %v18534_v1  ;;  %2609 = vmatprep.subr.bf16.mxu1 %v18534_v1  ;;  %v13361_v16 = vld [vmem:[%s18706_s5 + $0xd8] sm:$0xff]   ;;  %v14691_v59 = vcombine.low %v743_v13, %v744_v15 }
  0x7d   : > { %1411 = vmatmul.mubr.bf16.gmra.mxu0 %v981_v18  ;;  %1710 = vmatmul.mubr.bf16.gmra.mxu1 %v14450_v41  ;;  %v1037_v18 = vsel %vm949_vm2, %v1032_v3, %v1036_v4 }
  0x7e   : > { %11434 = vmatprep.mubr.msk.bf16.mxu0 %vm1314_vm0, %v1005_v21  ;;  %11464 = vmatprep.mubr.msk.bf16.mxu1 %vm1314_vm0, %v14459_v44  ;;  %v14647_v21 = vshrl.u32 %v14579_v38, 16  ;;  %18741 = vst [vmem:[#allocation43_spill] sm:$0xff] %v14691_v59 }
  0x7f   : > { %2089 = vmatpush1.bf16.msra.mxu0 %v13349_v24  ;;  %2610 = vmatpush1.bf16.msra.mxu1 %v13350_v31  ;;  %v14650_v24 = vshll.u32 %v14623_v6, 16  ;;  %v13365_v31 = vld [vmem:[%s18706_s5 + $0xd0] sm:$0xff]  }
  0x80   : > { %2090 = vmatprep.subr.bf16.mxu0 %v18534_v1  ;;  %2611 = vmatprep.subr.bf16.mxu1 %v18534_v1  ;;  %18735 = vst [vmem:[#allocation37_spill] sm:$0xff] %v14647_v21 }
  0x81   : > { %18736 = vst [vmem:[#allocation38_spill] sm:$0xff] %v14650_v24 }
  0x83   : > { %2091 = vmatpush1.bf16.msra.mxu0 %v13353_v39  ;;  %2612 = vmatpush1.bf16.msra.mxu1 %v13354_v40  ;;  %v1048_v39 = vor.u32 %v14647_v21, %v1036_v4  ;;  %v1052_v40 = vrot.slane %v14650_v24, 1  ;;  %v14696_v4 = vshrl.u32 %v14623_v6, 16  ;;  %v14750_v24 = vshrl.u32 %v14691_v59, 16 }
  0x84   : > { %2092 = vmatprep.subr.bf16.mxu0 %v18534_v1  ;;  %2613 = vmatprep.subr.bf16.mxu1 %v18534_v1 }
  0x85   : > { %1419 = vmatmul.mubr.bf16.gmra.mxu0 %v997_v43  ;;  %1718 = vmatmul.mubr.bf16.gmra.mxu1 %v14490_v57  ;;  %v14676_v43 = vcombine.high %v743_v13, %v744_v15  ;;  %v1053_v3 = vsel %vm949_vm2, %v1048_v39, %v1052_v40  ;;  %18742 = vst [vmem:[#allocation44_spill] sm:$0xff] %v14696_v4  ;;  %v747_v15 = vld [vmem:[%s14390_s24 + $0x90] sm:$0xff]  ;;  %18752 = vst [vmem:[#allocation54_spill] sm:$0xff] %v14750_v24 }
  0x86   : > { %11435 = vmatprep.mubr.msk.bf16.mxu0 %vm1314_vm0, %v1021_v54  ;;  %11465 = vmatprep.mubr.msk.bf16.mxu1 %vm1314_vm0, %v14498_v61  ;;  %v13368_v54 = vld [vmem:[%s18706_s5 + $0x198] sm:$0x3f]   ;;  %v14704_v13 = vcombine.high %v745_v53, %v746_v60 }
  0x87   : > { %2093 = vmatpush1.bf16.msra.mxu0 %v13355_v56  ;;  %2614 = vmatpush1.bf16.msra.mxu1 %v13356_v58  ;;  %18738 = vst [vmem:[#allocation40_spill] sm:$0xff] %v14676_v43  ;;  %v1029_v56 = vsel %vm949_vm2, %v1024_v32, %v1028_v33  ;;  %v14689_v58 = vshrl.u32 %v14617_v62, 16  ;;  %v14716_v32 = vcombine.low %v745_v53, %v746_v60  ;;  %v13372_v53 = vld [vmem:[%s18706_s5 + $0x190] sm:$0xff]   ;;  %v14735_v60 = vshrl.u32 %v14676_v43, 16 }
  0x88   : > { %2094 = vmatprep.subr.bf16.mxu0 %v18534_v1  ;;  %2615 = vmatprep.subr.bf16.mxu1 %v18534_v1  ;;  %18744 = vst [vmem:[#allocation46_spill] sm:$0xff] %v14704_v13 }
  0x89   : > { %18740 = vst [vmem:[#allocation42_spill] sm:$0xff] %v14689_v58  ;;  %18746 = vst [vmem:[#allocation48_spill] sm:$0xff] %v14716_v32 }
  0x8a   : > { %18748 = vst [vmem:[#allocation50_spill] sm:$0xff] %v14735_v60 }
  0x8b   : > { %2095 = vmatpush1.bf16.msra.mxu0 %v13359_v7  ;;  %2616 = vmatpush1.bf16.msra.mxu1 %v13360_v8  ;;  %v14699_v7 = vshll.u32 %v14676_v43, 16  ;;  %v2082_v8 = vsel %vm1366_vm1, %v13367_v37, 0  ;;  %v1064_v37 = vor.u32 %v14696_v4, %v1052_v40  ;;  %v14738_v40 = vshll.u32 %v14704_v13, 16  ;;  %v13373_v4 = vld [vmem:[%s18706_s5 + $0x120] sm:$0xff]  }
  0x8c   : > { %2096 = vmatprep.subr.bf16.mxu0 %v18534_v1  ;;  %2617 = vmatprep.subr.bf16.mxu1 %v18534_v1 }
  0x8d   : > { %1427 = vmatmul.mubr.bf16.gmra.mxu0 %v1013_v9  ;;  %1726 = vmatmul.mubr.bf16.gmra.mxu1 %v14529_v11  ;;  %18743 = vst [vmem:[#allocation45_spill] sm:$0xff] %v14699_v7  ;;  %v1044_v9 = vrot.slane %v14680_v52, 1  ;;  %v1068_v39 = vrot.slane %v14699_v7, 1  ;;  %18749 = vst [vmem:[#allocation51_spill] sm:$0xff] %v14738_v40 }
  0x8e   : > { %11436 = vmatprep.mubr.msk.bf16.mxu0 %vm1314_vm0, %v1037_v18  ;;  %11466 = vmatprep.mubr.msk.bf16.mxu1 %vm1314_vm0, %v14535_v14  ;;  %v2603_v18 = vsel %vm1366_vm1, %v13368_v54, 0  ;;  %v14726_v54 = vshrl.u32 %v14656_v30, 16 }
  0x8f   : > { %2097 = vmatpush1.bf16.msra.mxu0 %v13361_v16  ;;  %2618 = vmatpush1.bf16.msra.mxu1 %v13362_v29  ;;  %v748_v16 = vld [vmem:[%s14390_s24 + $0x98] sm:$0xff]  ;;  %v1040_v29 = vor.u32 %v14689_v58, %v1028_v33  ;;  %v749_v33 = vld [vmem:[%s14390_s24 + $0xa0] sm:$0xff]  ;;  %v1069_v7 = vsel %vm949_vm2, %v1064_v37, %v1068_v39  ;;  %v13374_v37 = vld [vmem:[%s18706_s5 + $0x188] sm:$0xff]   ;;  %v14782_v58 = vshrl.u32 %v14716_v32, 16 }
  0x90   : > { %2098 = vmatprep.subr.bf16.mxu0 %v18534_v1  ;;  %2619 = vmatprep.subr.bf16.mxu1 %v18534_v1  ;;  %18747 = vst [vmem:[#allocation49_spill] sm:$0xff] %v14726_v54 }
  0x91   : > { %18758 = vst [vmem:[#allocation59_spill] sm:$0xff] %v14782_v58 }
  0x93   : > { %2099 = vmatpush1.bf16.msra.mxu0 %v13365_v31  ;;  %2620 = vmatpush1.bf16.msra.mxu1 %v13366_v35  ;;  %v14714_v31 = vshll.u32 %v14691_v59, 16  ;;  %v13371_v35 = vld [vmem:[%s18706_s5 + $0x128] sm:$0xff]  }
  0x94   : > { %2106 = vmatprep.subr.bf16.mxu0 %v18534_v1  ;;  %2627 = vmatprep.subr.bf16.mxu1 %v18534_v1 }
  0x95   : > { %1435 = vmatmul.mubr.bf16.gmra.mxu0 %v1029_v56  ;;  %1734 = vmatmul.mubr.bf16.gmra.mxu1 %v14573_v34  ;;  %18745 = vst [vmem:[#allocation47_spill] sm:$0xff] %v14714_v31  ;;  %v750_v56 = vld [vmem:[%s14390_s24 + $0xa8] sm:$0xff]  ;;  %v1060_v52 = vrot.slane %v14714_v31, 1  ;;  %v1084_v31 = vrot.slane %v14738_v40, 1  ;;  %v1080_v40 = vor.u32 %v14735_v60, %v1068_v39  ;;  %v13378_v60 = vld [vmem:[%s18706_s5 + $0x178] sm:$0xff]  }
  0x96   : > { %11437 = vmatprep.mubr.msk.bf16.mxu0 %vm1314_vm0, %v1053_v3  ;;  %11467 = vmatprep.mubr.msk.bf16.mxu1 %vm1314_vm0, %v14579_v38  ;;  %v1045_v3 = vsel %vm949_vm2, %v1040_v29, %v1044_v9  ;;  %v14758_v29 = vcombine.low %v747_v15, %v748_v16 }
  0x97   : > { %2107 = vmatpush2.bf16.msra.mxu0 %v2082_v8  ;;  %2628 = vmatpush2.bf16.msra.mxu1 %v2603_v18  ;;  %v14743_v8 = vshll.u32 %v14716_v32, 16  ;;  %v14745_v18 = vcombine.high %v747_v15, %v748_v16  ;;  %v1056_v15 = vor.u32 %v14726_v54, %v1044_v9  ;;  %v1085_v54 = vsel %vm949_vm2, %v1080_v40, %v1084_v31 }
  0x98   : > { %2108 = vmatprep.subr.bf16.mxu0 %v18534_v1  ;;  %2629 = vmatprep.subr.bf16.mxu1 %v18534_v1  ;;  %v14756_v1 = vshrl.u32 %v14704_v13, 16  ;;  %18754 = vst [vmem:[#allocation56_spill] sm:$0xff] %v14758_v29  ;;  %v14788_v9 = vshll.u32 %v14758_v29, 16 }
  0x99   : > { %18750 = vst [vmem:[#allocation52_spill] sm:$0xff] %v14743_v8  ;;  %18751 = vst [vmem:[#allocation53_spill] sm:$0xff] %v14745_v18  ;;  %v1076_v16 = vrot.slane %v14743_v8, 1  ;;  %v1061_v39 = vsel %vm949_vm2, %v1056_v15, %v1060_v52  ;;  %v1072_v15 = vor.u32 %v14750_v24, %v1060_v52 }
  0x9a   : > { %18753 = vst [vmem:[#allocation55_spill] sm:$0xff] %v14756_v1  ;;  %18759 = vst [vmem:[#allocation60_spill] sm:$0xff] %v14788_v9 }
  0x9b   : > { %2109 = vmatpush2.bf16.msra.mxu0 %v13371_v35  ;;  %2630 = vmatpush2.bf16.msra.mxu1 %v13372_v53  ;;  %v14765_v35 = vcombine.high %v749_v33, %v750_v56  ;;  %v14773_v53 = vshll.u32 %v14745_v18, 16  ;;  %v1077_v24 = vsel %vm949_vm2, %v1072_v15, %v1076_v16 }
  0x9c   : > { %2110 = vmatprep.subr.bf16.mxu0 %v18755_v12  ;;  %2631 = vmatprep.subr.bf16.mxu1 %v18755_v12 }
  0x9d   : > { %1443 = vmatmul.mubr.bf16.gmra.mxu0 %v1045_v3  ;;  %18756 = vst [vmem:[#allocation57_spill] sm:$0xff] %v14765_v35  ;;  %1742 = vmatmul.mubr.bf16.gmra.mxu1 %v14617_v62  ;;  %18757 = vst [vmem:[#allocation58_spill] sm:$0xff] %v14773_v53  ;;  %v13375_v3 = vld [vmem:[%s18706_s5 + $0x118] sm:$0xff]   ;;  %v14792_v8 = vshll.u32 %v14765_v35, 16  ;;  %v1100_v40 = vrot.slane %v14773_v53, 1  ;;  %v14844_v15 = vshrl.u32 %v14765_v35, 16 }
  0x9e   : > { %11438 = vmatprep.mubr.msk.bf16.mxu0 %vm1314_vm0, %v1069_v7  ;;  %11468 = vmatprep.mubr.msk.bf16.mxu1 %vm1314_vm0, %v14623_v6  ;;  %v13376_v7 = vld [vmem:[%s18706_s5 + $0x180] sm:$0xff]   ;;  %v751_v6 = vld [vmem:[%s14390_s24 + $0xb0] sm:$0xff]  ;;  %v752_v62 = vld [vmem:[%s14390_s24 + $0xb8] sm:$0xff] }
  0x9f   : > { %2111 = vmatpush2.bf16.msra.mxu0 %v13373_v4  ;;  %2632 = vmatpush2.bf16.msra.mxu1 %v13374_v37  ;;  %18760 = vst [vmem:[#allocation61_spill] sm:$0xff] %v14792_v8  ;;  %v13377_v4 = vld [vmem:[%s18706_s5 + $0x110] sm:$0xff]   ;;  %v14804_v37 = vcombine.low %v749_v33, %v750_v56  ;;  %v1096_v33 = vor.u32 %v14756_v1, %v1084_v31  ;;  %v1092_v56 = vrot.slane %v14788_v9, 1  ;;  %v1116_v52 = vrot.slane %v14792_v8, 1 }
  0xa0   : > { %2112 = vmatprep.subr.bf16.mxu0 %v18755_v12  ;;  %2633 = vmatprep.subr.bf16.mxu1 %v18755_v12  ;;  %v1088_v8 = vor.u32 %v14782_v58, %v1076_v16  ;;  %18768 = vst [vmem:[#allocation69_spill] sm:$0xff] %v14844_v15 }
  0xa1   : > { %18761 = vst [vmem:[#allocation62_spill] sm:$0xff] %v14804_v37  ;;  %v14828_v53 = vshll.u32 %v14804_v37, 16  ;;  %v1101_v31 = vsel %vm949_vm2, %v1096_v33, %v1100_v40  ;;  %v755_v33 = vld [vmem:[%s14390_s24 + $0xd0] sm:$0xff] }
  0xa2   : > { %v1093_v16 = vsel %vm949_vm2, %v1088_v8, %v1092_v56  ;;  %v1128_v8 = vor.u32 %v14844_v15, %v1116_v52 }
  0xa3   : > { %2113 = vmatpush2.bf16.msra.mxu0 %v13375_v3  ;;  %2634 = vmatpush2.bf16.msra.mxu1 %v13376_v7  ;;  %v14814_v3 = vshrl.u32 %v14745_v18, 16  ;;  %v14817_v7 = vshrl.u32 %v14758_v29, 16  ;;  %18764 = vst [vmem:[#allocation65_spill] sm:$0xff] %v14828_v53  ;;  %v1108_v9 = vrot.slane %v14828_v53, 1 }
  0xa4   : > { %2114 = vmatprep.subr.bf16.mxu0 %v18755_v12  ;;  %2635 = vmatprep.subr.bf16.mxu1 %v18755_v12 }
  0xa5   : > { %1451 = vmatmul.mubr.bf16.gmra.mxu0 %v1061_v39  ;;  %1750 = vmatmul.mubr.bf16.gmra.mxu1 %v14656_v30  ;;  %18762 = vst [vmem:[#allocation63_spill] sm:$0xff] %v14814_v3  ;;  %18763 = vst [vmem:[#allocation64_spill] sm:$0xff] %v14817_v7  ;;  %v753_v39 = vld [vmem:[%s14390_s24 + $0xc0] sm:$0xff] }
  0xa6   : > { %11439 = vmatprep.mubr.msk.bf16.mxu0 %vm1314_vm0, %v1085_v54  ;;  %11469 = vmatprep.mubr.msk.bf16.mxu1 %vm1314_vm0, %v14676_v43  ;;  %v754_v54 = vld [vmem:[%s14390_s24 + $0xc8] sm:$0xff]  ;;  %v14832_v43 = vcombine.high %v751_v6, %v752_v62 }
  0xa7   : > { %2115 = vmatpush2.bf16.msra.mxu0 %v13377_v4  ;;  %2636 = vmatpush2.bf16.msra.mxu1 %v13378_v60  ;;  %v14835_v4 = vcombine.low %v751_v6, %v752_v62  ;;  %v14837_v60 = vcombine.high %v753_v39, %v754_v54  ;;  %v1112_v62 = vor.u32 %v14814_v3, %v1100_v40 }
  0xa8   : > { %3048 = vmatprep.subr.bf16.mxu0 %v18755_v12  ;;  %3559 = vmatprep.subr.bf16.mxu1 %v18755_v12  ;;  %18765 = vst [vmem:[#allocation66_spill] sm:$0xff] %v14832_v43  ;;  %v14847_v1 = vshll.u32 %v14832_v43, 16  ;;  %v1104_v40 = vor.u32 %v14817_v7, %v1092_v56  ;;  %v14866_v3 = vcombine.low %v753_v39, %v754_v54  ;;  %v757_v54 = vld [vmem:[%s14390_s24 + $0xe0] sm:$0xff]  ;;  %v758_v7 = vld [vmem:[%s14390_s24 + $0xe8] sm:$0xff] }
  0xa9   : > { %18766 = vst [vmem:[#allocation67_spill] sm:$0xff] %v14835_v4  ;;  %18767 = vst [vmem:[#allocation68_spill] sm:$0xff] %v14837_v60  ;;  %v14853_v6 = vshll.u32 %v14835_v4, 16  ;;  %v1117_v53 = vsel %vm949_vm2, %v1112_v62, %v1116_v52  ;;  %v14874_v62 = vshrl.u32 %v14804_v37, 16 }
  0xaa   : > { %18769 = vst [vmem:[#allocation70_spill] sm:$0xff] %v14847_v1  ;;  %v1132_v58 = vrot.slane %v14847_v1, 1  ;;  %18772 = vst [vmem:[#allocation73_spill] sm:$0xff] %v14866_v3  ;;  %v1109_v56 = vsel %vm949_vm2, %v1104_v40, %v1108_v9  ;;  %v14883_v39 = vshll.u32 %v14866_v3, 16 }
  0xab   : > { %18770 = vst [vmem:[#allocation71_spill] sm:$0xff] %v14853_v6  ;;  %18774 = vst [vmem:[#allocation75_spill] sm:$0xff] %v14874_v62  ;;  %v1124_v1 = vrot.slane %v14853_v6, 1  ;;  %v1120_v6 = vor.u32 %v14874_v62, %v1108_v9 }
  0xac   : > { %18776 = vst [vmem:[#allocation77_spill] sm:$0xff] %v14883_v39  ;;  %v1133_v52 = vsel %vm949_vm2, %v1128_v8, %v1132_v58  ;;  %v14902_v8 = vshrl.u32 %v14835_v4, 16 }
  0xad   : > { %1459 = vmatmul.mubr.bf16.gmra.mxu0 %v1077_v24  ;;  %1758 = vmatmul.mubr.bf16.gmra.mxu1 %v14691_v59  ;;  %v14856_v24 = vshll.u32 %v14837_v60, 16 }
  0xae   : > { %11440 = vmatprep.mubr.msk.bf16.mxu0 %vm1314_vm0, %v1101_v31  ;;  %11470 = vmatprep.mubr.msk.bf16.mxu1 %vm1314_vm0, %v14704_v13  ;;  %v756_v31 = vld [vmem:[%s14390_s24 + $0xd8] sm:$0xff]  ;;  %18780 = vst [vmem:[#allocation81_spill] sm:$0xff] %v14902_v8  ;;  %v1136_v62 = vor.u32 %v14902_v8, %v1124_v1 }
  0xaf   : > { %18771 = vst [vmem:[#allocation72_spill] sm:$0xff] %v14856_v24  ;;  %v14871_v13 = vcombine.high %v755_v33, %v756_v31 }
  0xb1   : > { %18773 = vst [vmem:[#allocation74_spill] sm:$0xff] %v14871_v13  ;;  %v14889_v15 = vshll.u32 %v14871_v13, 16 }
  0xb3   : > { %18777 = vst [vmem:[#allocation78_spill] sm:$0xff] %v14889_v15  ;;  %v1164_v9 = vrot.slane %v14889_v15, 1  ;;  %v759_v15 = vld [vmem:[%s14390_s24 + $0xf0] sm:$0xff] }
  0xb5   : > { %1467 = vmatmul.mubr.bf16.gmra.mxu0 %v1093_v16  ;;  %1766 = vmatmul.mubr.bf16.gmra.mxu1 %v14716_v32  ;;  %v14877_v16 = vshrl.u32 %v14832_v43, 16 }
  0xb6   : > { %11441 = vmatprep.mubr.msk.bf16.mxu0 %vm1314_vm0, %v1117_v53  ;;  %11471 = vmatprep.mubr.msk.bf16.mxu1 %vm1314_vm0, %v14745_v18  ;;  %v1148_v53 = vrot.slane %v14856_v24, 1  ;;  %v14894_v24 = vcombine.low %v755_v33, %v756_v31  ;;  %v14899_v18 = vcombine.high %v757_v54, %v758_v7  ;;  %v1125_v33 = vsel %vm949_vm2, %v1120_v6, %v1124_v1 }
  0xb7   : > { %18775 = vst [vmem:[#allocation76_spill] sm:$0xff] %v14877_v16  ;;  %v1144_v40 = vor.u32 %v14877_v16, %v1132_v58 }
  0xb8   : > { %18778 = vst [vmem:[#allocation79_spill] sm:$0xff] %v14894_v24  ;;  %18779 = vst [vmem:[#allocation80_spill] sm:$0xff] %v14899_v18  ;;  %v14911_v31 = vshll.u32 %v14894_v24, 16  ;;  %v14915_v16 = vshll.u32 %v14899_v18, 16 }
  0xb9   : > { %v1149_v58 = vsel %vm949_vm2, %v1144_v40, %v1148_v53  ;;  %v14929_v40 = vshrl.u32 %v14871_v13, 16 }
  0xba   : > { %18782 = vst [vmem:[#allocation83_spill] sm:$0xff] %v14911_v31  ;;  %18783 = vst [vmem:[#allocation84_spill] sm:$0xff] %v14915_v16  ;;  %v1180_v8 = vrot.slane %v14915_v16, 1  ;;  %v14954_v16 = vshrl.u32 %v14894_v24, 16 }
  0xbb   : > { %18785 = vst [vmem:[#allocation86_spill] sm:$0xff] %v14929_v40 }
  0xbc   : > { %18790 = vst [vmem:[#allocation91_spill] sm:$0xff] %v14954_v16 }
  0xbd   : > { %1475 = vmatmul.mubr.bf16.gmra.mxu0 %v1109_v56  ;;  %1774 = vmatmul.mubr.bf16.gmra.mxu1 %v14758_v29  ;;  %v14905_v56 = vshrl.u32 %v14837_v60, 16 }
  0xbe   : > { %11442 = vmatprep.mubr.msk.bf16.mxu0 %vm1314_vm0, %v1133_v52  ;;  %11472 = vmatprep.mubr.msk.bf16.mxu1 %vm1314_vm0, %v14765_v35  ;;  %v1140_v52 = vrot.slane %v14883_v39, 1  ;;  %v760_v39 = vld [vmem:[%s14390_s24 + $0xf8] sm:$0xff]  ;;  %v14926_v35 = vshrl.u32 %v14866_v3, 16 }
  0xbf   : > { %18781 = vst [vmem:[#allocation82_spill] sm:$0xff] %v14905_v56  ;;  %v1160_v6 = vor.u32 %v14905_v56, %v1148_v53  ;;  %v14937_v53 = vcombine.high %v759_v15, %v760_v39 }
  0xc0   : > { %18784 = vst [vmem:[#allocation85_spill] sm:$0xff] %v14926_v35  ;;  %v1152_v56 = vor.u32 %v14926_v35, %v1140_v52 }
  0xc1   : > { %v1165_v1 = vsel %vm949_vm2, %v1160_v6, %v1164_v9  ;;  %18787 = vst [vmem:[#allocation88_spill] sm:$0xff] %v14937_v53 }
  0xc5   : > { %1483 = vmatmul.mubr.bf16.gmra.mxu0 %v1125_v33  ;;  %1782 = vmatmul.mubr.bf16.gmra.mxu1 %v14804_v37  ;;  %v1141_v33 = vsel %vm949_vm2, %v1136_v62, %v1140_v52  ;;  %v1176_v62 = vor.u32 %v14929_v40, %v1164_v9  ;;  %v14958_v52 = vshrl.u32 %v14899_v18, 16  ;;  %v14962_v40 = vcombine.low %v759_v15, %v760_v39 }
  0xc6   : > { %11443 = vmatprep.mubr.msk.bf16.mxu0 %vm1314_vm0, %v1149_v58  ;;  %11473 = vmatprep.mubr.msk.bf16.mxu1 %vm1314_vm0, %v14832_v43  ;;  %v1156_v58 = vrot.slane %v14911_v31, 1  ;;  %v14935_v43 = vcombine.low %v757_v54, %v758_v7  ;;  %v761_v7 = vld [vmem:[%s14390_s24 + $0x100] sm:$0xff] }
  0xc7   : > { %18791 = vst [vmem:[#allocation92_spill] sm:$0xff] %v14958_v52  ;;  %18792 = vst [vmem:[#allocation93_spill] sm:$0xff] %v14962_v40  ;;  %v11418_v35 = vcombine.high %v761_v7, %v761_v7 }
  0xc8   : > { %18786 = vst [vmem:[#allocation87_spill] sm:$0xff] %v14935_v43  ;;  %v14946_v6 = vshll.u32 %v14935_v43, 16  ;;  %v1157_v54 = vsel %vm949_vm2, %v1152_v56, %v1156_v58  ;;  %v1168_v56 = vor.u32 %v14954_v16, %v1156_v58  ;;  %v14975_v15 = vshrl.u32 %v14935_v43, 16 }
  0xca   : > { %18788 = vst [vmem:[#allocation89_spill] sm:$0xff] %v14946_v6  ;;  %v1172_v9 = vrot.slane %v14946_v6, 1  ;;  %v1210_v6 = vshll.u32 %v11418_v35, 16  ;;  %18794 = vst [vmem:[#allocation95_spill] sm:$0xff] %v14975_v15 }
  0xcc   : > { %v1212_v16 = vrot.slane %v1210_v6, 1 }
  0xcd   : > { %1491 = vmatmul.mubr.bf16.gmra.mxu0 %v1141_v33  ;;  %1790 = vmatmul.mubr.bf16.gmra.mxu1 %v14835_v4  ;;  %v14949_v33 = vshll.u32 %v14937_v53, 16 }
  0xce   : > { %11444 = vmatprep.mubr.msk.bf16.mxu0 %vm1314_vm0, %v1165_v1  ;;  %11474 = vmatprep.mubr.msk.bf16.mxu1 %vm1314_vm0, %v14837_v60  ;;  %v1181_v1 = vsel %vm949_vm2, %v1176_v62, %v1180_v8  ;;  %v1192_v62 = vor.u32 %v14958_v52, %v1180_v8  ;;  %v1184_v8 = vor.u32 %v14975_v15, %v1172_v9 }
  0xcf   : > { %18789 = vst [vmem:[#allocation90_spill] sm:$0xff] %v14949_v33  ;;  %v1196_v31 = vrot.slane %v14949_v33, 1  ;;  %v1173_v33 = vsel %vm949_vm2, %v1168_v56, %v1172_v9 }
  0xd1   : > { %v1197_v39 = vsel %vm949_vm2, %v1192_v62, %v1196_v31 }
  0xd5   : > { %1499 = vmatmul.mubr.bf16.gmra.mxu0 %v1157_v54  ;;  %1798 = vmatmul.mubr.bf16.gmra.mxu1 %v14866_v3  ;;  %v14971_v54 = vshll.u32 %v14962_v40, 16 }
  0xd6   : > { %11445 = vmatprep.mubr.msk.bf16.mxu0 %vm1314_vm0, %v1181_v1  ;;  %11475 = vmatprep.mubr.msk.bf16.mxu1 %vm1314_vm0, %v14871_v13  ;;  %v14979_v1 = vshrl.u32 %v14937_v53, 16  ;;  %v11417_v13 = vcombine.low %v761_v7, %v761_v7 }
  0xd7   : > { %18793 = vst [vmem:[#allocation94_spill] sm:$0xff] %v14971_v54  ;;  %v1188_v58 = vrot.slane %v14971_v54, 1  ;;  %v1217_v54 = vshrl.u32 %v11418_v35, 16 }
  0xd8   : > { %18795 = vst [vmem:[#allocation96_spill] sm:$0xff] %v14979_v1  ;;  %v1208_v56 = vor.u32 %v14979_v1, %v1196_v31  ;;  %v1202_v62 = vshll.u32 %v11417_v13, 16  ;;  %v2320_v31 = vrot.slane %v14416_v26, 1  ;;  %v2321_v1 = vrot.slane %v14419_v27, 2 }
  0xd9   : > { %v1189_v52 = vsel %vm949_vm2, %v1184_v8, %v1188_v58  ;;  %v1219_v8 = vor.u32 %v1217_v54, %v1212_v16  ;;  %v2317_v27 = vrot.slane %v14470_v48, 2 }
  0xda   : > { %v1213_v6 = vsel %vm949_vm2, %v1208_v56, %v1212_v16  ;;  %v1204_v7 = vrot.slane %v1202_v62, 1  ;;  %v2324_v56 = vrot.slane %v14424_v28, 2  ;;  %v1214_v62 = vshrl.u32 %v11417_v13, 16 }
  0xdb   : > { %v2322_v16 = vor.u32 %v2321_v1, %v2320_v31  ;;  %v2316_v28 = vrot.slane %v14503_v63, 1  ;;  %v1870_v1 = vrot.slane %v14439_v36, 1  ;;  %v1878_v31 = vrot.slane %v14459_v44, 1  ;;  %v13379_v44 = vld [vmem:[%s18706_s5 + $0x1d8] sm:$0xff]  }
  0xdd   : > { %1507 = vmatmul.mubr.bf16.gmra.mxu0 %v1173_v33  ;;  %1806 = vmatmul.mubr.bf16.gmra.mxu1 %v14894_v24  ;;  %v14990_v33 = vshrl.u32 %v14962_v40, 16 }
  0xde   : > { %11446 = vmatprep.mubr.msk.bf16.mxu0 %vm1314_vm0, %v1197_v39  ;;  %11476 = vmatprep.mubr.msk.bf16.mxu1 %vm1314_vm0, %v14899_v18 }
  0xdf   : > { %v1200_v9 = vor.u32 %v14990_v33, %v1188_v58  ;;  %v1873_v58 = vrot.slane %v14407_v23, 1  ;;  %v2332_v23 = vrot.slane %v14480_v51, 2  ;;  %v2328_v51 = vrot.slane %v14506_v0, 2 }
  0xe1   : > { %v1205_v39 = vsel %vm949_vm2, %v1200_v9, %v1204_v7  ;;  %v1216_v9 = vor.u32 %v1214_v62, %v1204_v7  ;;  %v1871_v7 = vrot.slane %v14450_v41, 1  ;;  %v2318_v62 = vor.u32 %v2317_v27, %v2316_v28 }
  0xe2   : > { %v1876_v28 = vrot.slane %v14490_v57, 1 }
  0xe5   : > { %1515 = vmatmul.mubr.bf16.gmra.mxu0 %v1189_v52  ;;  %1814 = vmatmul.mubr.bf16.gmra.mxu1 %v14935_v43  ;;  %v2323_v52 = vrot.slane %v14477_v50, 1  ;;  %v2313_v50 = vrot.slane %v14466_v46, 1 }
  0xe6   : > { %11447 = vmatprep.mubr.msk.bf16.mxu0 %vm1314_vm0, %v1213_v6  ;;  %11477 = vmatprep.mubr.msk.bf16.mxu1 %vm1314_vm0, %v14937_v53  ;;  %v1874_v6 = vrot.slane %v14413_v25, 1 }
  0xe7   : > { %v2325_v54 = vor.u32 %v2324_v56, %v2323_v52  ;;  %v2327_v52 = vrot.slane %v14545_v17, 1  ;;  %v1872_v17 = vsel %vm1869_vm3, %v1870_v1, %v1871_v7  ;;  %v2336_v1 = vrot.slane %v14550_v19, 2 }
  0xe9   : > { %v2326_v25 = vsel %vm2312_vm4, %v2322_v16, %v2325_v54  ;;  %v2339_v16 = vrot.slane %v14553_v20, 1 }
  0xed   : > { %1523 = vmatmul.mubr.bf16.gmra.mxu0 %v1205_v39  ;;  %1822 = vmatmul.mubr.bf16.gmra.mxu1 %v14962_v40  ;;  %v2314_v39 = vrot.slane %v14453_v42, 2 }
  0xee   : > { %11448 = vmatprep.mubr.msk.bf16.mxu0 %vm1314_vm0, %v1219_v8  ;;  %11478 = vmatprep.mubr.msk.bf16.mxu1 %vm1314_vm0, %v11418_v35  ;;  %v2331_v8 = vrot.slane %v14509_v2, 1  ;;  %v1875_v35 = vsel %vm1869_vm3, %v1873_v58, %v1874_v6 }
  0xef   : > { %v2315_v56 = vor.u32 %v2314_v39, %v2313_v50  ;;  %v1882_v50 = vrot.slane %v14498_v61, 1  ;;  %v13381_v39 = vld [vmem:[%s18706_s5 + $0x1d0] sm:$0xff]  }
  0xf0   : > { %v2333_v58 = vor.u32 %v2332_v23, %v2331_v8  ;;  %v1879_v23 = vsel %vm1869_vm3, %v1874_v6, %v1878_v31  ;;  %v2329_v8 = vor.u32 %v2328_v51, %v2327_v52  ;;  %v1880_v6 = vrot.slane %v14529_v11, 1 }
  0xf1   : > { %v2348_v51 = vrot.slane %v14557_v22, 2 }
  0xf2   : > { %v2334_v27 = vsel %vm2312_vm4, %v2325_v54, %v2333_v58  ;;  %v2335_v54 = vrot.slane %v14591_v45, 1 }
  0xf5   : > { %1531 = vmatmul.mubr.bf16.gmra.mxu0 %v1216_v9  ;;  %1830 = vmatmul.mubr.bf16.gmra.mxu1 %v11417_v13  ;;  %v2340_v9 = vrot.slane %v14514_v5, 2  ;;  %v13380_v13 = vld [vmem:[%s18706_s5 + $0x240] sm:$0xff]  }
  0xf6   : > { %11520 = vmatprep.mubr.msk.bf16.mxu0 %vm1314_vm0, %v1875_v35  ;;  %11576 = vmatprep.mubr.msk.bf16.mxu1 %vm1314_vm0, %v2326_v25  ;;  %v2319_v25 = vsel %vm2312_vm4, %v2315_v56, %v2318_v62 }
  0xf7   : > { %v2341_v35 = vor.u32 %v2340_v9, %v2339_v16  ;;  %v2330_v16 = vsel %vm2312_vm4, %v2318_v62, %v2329_v8  ;;  %v1883_v9 = vsel %vm1869_vm3, %v1878_v31, %v1882_v50  ;;  %v13385_v31 = vld [vmem:[%s18706_s5 + $0x1c0] sm:$0xff]   ;;  %v2337_v62 = vor.u32 %v2336_v1, %v2335_v54 }
  0xf8   : > { %v1881_v54 = vsel %vm1869_vm3, %v1876_v28, %v1880_v6  ;;  %v2356_v1 = vrot.slane %v14603_v55, 2 }
  0xf9   : > { %v2342_v56 = vsel %vm2312_vm4, %v2333_v58, %v2341_v35  ;;  %v1890_v58 = vrot.slane %v14579_v38, 1  ;;  %v18810_v38 = vld [vmem:[#allocation45_spill] sm:$0xff] }
  0xfa   : > { %v2372_v55 = vrot.slane %v18810_v38, 2 }
  0xfd   : > { %2117 = vmatmul.mubr.bf16.vlgmr.msra.gmra.mxu0 %v1872_v17  ;;  %2638 = vmatmul.mubr.bf16.vlgmr.msra.gmra.mxu1 %v2319_v25  ;;  %v13382_v17 = vld [vmem:[%s18706_s5 + $0x238] sm:$0xff]   ;;  %v2347_v25 = vrot.slane %v14597_v49, 1 }
  0xfe   : > { %11521 = vmatprep.mubr.msk.bf16.mxu0 %vm1314_vm0, %v1879_v23  ;;  %11577 = vmatprep.mubr.msk.bf16.mxu1 %vm1314_vm0, %v2334_v27  ;;  %v2344_v23 = vrot.slane %v14594_v47, 2  ;;  %v13383_v27 = vld [vmem:[%s18706_s5 + $0x1c8] sm:$0xff]  }
  0xff   : > { %3049 = vmatpush1.bf16.msra.mxu0 %v13379_v44  ;;  %3560 = vmatpush1.bf16.msra.mxu1 %v13380_v13  ;;  %v1877_v44 = vsel %vm1869_vm3, %v1871_v7, %v1876_v28  ;;  %v2343_v13 = vrot.slane %v14635_v10, 1  ;;  %v13384_v7 = vld [vmem:[%s18706_s5 + $0x230] sm:$0xff]  }
 0x100   : > { %3050 = vmatprep.subr.bf16.mxu0 %v18755_v12  ;;  %3561 = vmatprep.subr.bf16.mxu1 %v18755_v12  ;;  %v13389_v28 = vld [vmem:[%s18706_s5 + $0x1b0] sm:$0xff]  }
 0x103   : > { %3051 = vmatpush1.bf16.msra.mxu0 %v13381_v39  ;;  %3562 = vmatpush1.bf16.msra.mxu1 %v13382_v17  ;;  %v2349_v39 = vor.u32 %v2348_v51, %v2347_v25  ;;  %v13386_v17 = vld [vmem:[%s18706_s5 + $0x228] sm:$0xff]   ;;  %v13388_v25 = vld [vmem:[%s18706_s5 + $0x220] sm:$0xff]   ;;  %v2338_v51 = vsel %vm2312_vm4, %v2329_v8, %v2337_v62 }
 0x104   : > { %3052 = vmatprep.subr.bf16.mxu0 %v18755_v12  ;;  %3563 = vmatprep.subr.bf16.mxu1 %v18755_v12 }
 0x105   : > { %2125 = vmatmul.mubr.bf16.gmra.mxu0 %v1877_v44  ;;  %2646 = vmatmul.mubr.bf16.gmra.mxu1 %v2330_v16  ;;  %v2355_v44 = vrot.slane %v14647_v21, 1  ;;  %v18796_v16 = vrot.slane %v14535_v14, 1  ;;  %v2350_v52 = vsel %vm2312_vm4, %v2341_v35, %v2349_v39 }
 0x106   : > { %11522 = vmatprep.mubr.msk.bf16.mxu0 %vm1314_vm0, %v1883_v9  ;;  %11578 = vmatprep.mubr.msk.bf16.mxu1 %vm1314_vm0, %v2342_v56  ;;  %v13387_v56 = vld [vmem:[%s18706_s5 + $0x1b8] sm:$0xff]  }
 0x107   : > { %3053 = vmatpush1.bf16.msra.mxu0 %v13383_v27  ;;  %3564 = vmatpush1.bf16.msra.mxu1 %v13384_v7  ;;  %v1887_v9 = vsel %vm1869_vm3, %v1882_v50, %v18796_v16  ;;  %v18797_v27 = vld [vmem:[#allocation33_spill] sm:$0xff]  ;;  %v2345_v50 = vor.u32 %v2344_v23, %v2343_v13  ;;  %v2357_v8 = vor.u32 %v2356_v1, %v2355_v44  ;;  %v18800_v13 = vrot.slane %v14573_v34, 1  ;;  %v18801_v44 = vld [vmem:[#allocation44_spill] sm:$0xff]  ;;  %v18803_v7 = vld [vmem:[#allocation38_spill] sm:$0xff] }
 0x108   : > { %3054 = vmatprep.subr.bf16.mxu0 %v18755_v12  ;;  %3565 = vmatprep.subr.bf16.mxu1 %v18755_v12  ;;  %v13392_v1 = vld [vmem:[%s18706_s5 + $0x210] sm:$0xff]  }
 0x109   : > { %v1885_v23 = vsel %vm1869_vm3, %v1880_v6, %v18800_v13  ;;  %v13393_v6 = vld [vmem:[%s18706_s5 + $0x1a0] sm:$0xff]  }
 0x10b   : > { %3055 = vmatpush1.bf16.msra.mxu0 %v13385_v31  ;;  %3566 = vmatpush1.bf16.msra.mxu1 %v13386_v17  ;;  %v18798_v31 = vld [vmem:[#allocation42_spill] sm:$0xff] }
 0x10c   : > { %3056 = vmatprep.subr.bf16.mxu0 %v18755_v12  ;;  %3567 = vmatprep.subr.bf16.mxu1 %v18755_v12  ;;  %v2351_v35 = vrot.slane %v18798_v31, 1  ;;  %v13390_v17 = vld [vmem:[%s18706_s5 + $0x218] sm:$0xff]   ;;  %v2358_v31 = vsel %vm2312_vm4, %v2349_v39, %v2357_v8  ;;  %v13395_v39 = vld [vmem:[%s18706_s5 + $0x200] sm:$0x3f]  }
 0x10d   : > { %2133 = vmatmul.mubr.bf16.gmra.mxu0 %v1881_v54  ;;  %2654 = vmatmul.mubr.bf16.gmra.mxu1 %v2338_v51  ;;  %v18799_v54 = vld [vmem:[#allocation36_spill] sm:$0xff]  ;;  %v18802_v51 = vrot.slane %v14535_v14, 1 }
 0x10e   : > { %11523 = vmatprep.mubr.msk.bf16.mxu0 %vm1314_vm0, %v1887_v9  ;;  %11579 = vmatprep.mubr.msk.bf16.mxu1 %vm1314_vm0, %v2350_v52  ;;  %v2352_v16 = vrot.slane %v18799_v54, 2  ;;  %v13391_v52 = vld [vmem:[%s18706_s5 + $0x1a8] sm:$0xff]   ;;  %v2364_v54 = vrot.slane %v18803_v7, 2 }
 0x10f   : > { %3057 = vmatpush1.bf16.msra.mxu0 %v13387_v56  ;;  %3568 = vmatpush1.bf16.msra.mxu1 %v13388_v25  ;;  %v2363_v56 = vrot.slane %v18801_v44, 1  ;;  %v2346_v25 = vsel %vm2312_vm4, %v2337_v62, %v2345_v50  ;;  %v1891_v9 = vsel %vm1869_vm3, %v18802_v51, %v1890_v58  ;;  %v13394_v62 = vld [vmem:[%s18706_s5 + $0x208] sm:$0xff]   ;;  %v18805_v51 = vrot.slane %v18797_v27, 1 }
 0x110   : > { %3058 = vmatprep.subr.bf16.mxu0 %v18755_v12  ;;  %3569 = vmatprep.subr.bf16.mxu1 %v18755_v12  ;;  %v18808_v7 = vld [vmem:[#allocation41_spill] sm:$0xff] }
 0x111   : > { %v2360_v44 = vrot.slane %v18808_v7, 2 }
 0x113   : > { %3059 = vmatpush1.bf16.msra.mxu0 %v13389_v28  ;;  %3570 = vmatpush1.bf16.msra.mxu1 %v13390_v17  ;;  %v2353_v28 = vor.u32 %v2352_v16, %v2351_v35  ;;  %v18804_v17 = vld [vmem:[#allocation34_spill] sm:$0xff] }
 0x114   : > { %3060 = vmatprep.subr.bf16.mxu0 %v18755_v12  ;;  %3571 = vmatprep.subr.bf16.mxu1 %v18755_v12  ;;  %v1894_v13 = vrot.slane %v18804_v17, 1 }
 0x115   : > { %2141 = vmatmul.mubr.bf16.gmra.mxu0 %v1885_v23  ;;  %2662 = vmatmul.mubr.bf16.gmra.mxu1 %v2346_v25  ;;  %v13396_v23 = vld [vmem:[%s18706_s5 + $0x268] sm:$0x3f]   ;;  %v2365_v25 = vor.u32 %v2364_v54, %v2363_v56  ;;  %v2354_v35 = vsel %vm2312_vm4, %v2345_v50, %v2353_v28  ;;  %v18809_v56 = vld [vmem:[#allocation50_spill] sm:$0xff] }
 0x116   : > { %11524 = vmatprep.mubr.msk.bf16.mxu0 %vm1314_vm0, %v1891_v9  ;;  %11580 = vmatprep.mubr.msk.bf16.mxu1 %vm1314_vm0, %v2358_v31  ;;  %v18806_v9 = vrot.slane %v14573_v34, 1  ;;  %v1895_v16 = vsel %vm1869_vm3, %v1890_v58, %v1894_v13  ;;  %v3557_v58 = vsel %vm1366_vm1, %v13396_v23, 0  ;;  %v13399_v50 = vld [vmem:[%s18706_s5 + $0x1f8] sm:$0xff]  }
 0x117   : > { %3061 = vmatpush1.bf16.msra.mxu0 %v13391_v52  ;;  %3572 = vmatpush1.bf16.msra.mxu1 %v13392_v1  ;;  %v18807_v52 = vld [vmem:[#allocation49_spill] sm:$0xff]  ;;  %v2366_v54 = vsel %vm2312_vm4, %v2357_v8, %v2365_v25  ;;  %v2371_v1 = vrot.slane %v18809_v56, 1  ;;  %v1892_v8 = vrot.slane %v14656_v30, 1  ;;  %v18815_v30 = vld [vmem:[#allocation55_spill] sm:$0xff] }
 0x118   : > { %3062 = vmatprep.subr.bf16.mxu0 %v18755_v12  ;;  %3573 = vmatprep.subr.bf16.mxu1 %v18755_v12  ;;  %v1889_v31 = vsel %vm1869_vm3, %v18806_v9, %v18805_v51  ;;  %v2359_v17 = vrot.slane %v18807_v52, 1  ;;  %v3046_v51 = vsel %vm1366_vm1, %v13395_v39, 0  ;;  %v18811_v39 = vld [vmem:[#allocation40_spill] sm:$0xff]  ;;  %v2379_v38 = vrot.slane %v18815_v30, 1  ;;  %v18816_v56 = vld [vmem:[#allocation51_spill] sm:$0xff]  ;;  %v18821_v30 = vld [vmem:[#allocation58_spill] sm:$0xff] }
 0x119   : > { %v1898_v9 = vrot.slane %v18811_v39, 1  ;;  %v2373_v23 = vor.u32 %v2372_v55, %v2371_v1  ;;  %v2380_v7 = vrot.slane %v18816_v56, 2 }
 0x11b   : > { %3063 = vmatpush1.bf16.msra.mxu0 %v13393_v6  ;;  %3574 = vmatpush1.bf16.msra.mxu1 %v13394_v62  ;;  %v13400_v6 = vld [vmem:[%s18706_s5 + $0x260] sm:$0xff]   ;;  %v2361_v62 = vor.u32 %v2360_v44, %v2359_v17  ;;  %v13402_v44 = vld [vmem:[%s18706_s5 + $0x258] sm:$0xff]   ;;  %v1899_v55 = vsel %vm1869_vm3, %v1894_v13, %v1898_v9  ;;  %v2374_v39 = vsel %vm2312_vm4, %v2365_v25, %v2373_v23  ;;  %v1896_v13 = vrot.slane %v14691_v59, 1  ;;  %v13404_v25 = vld [vmem:[%s18706_s5 + $0x250] sm:$0xff]  }
 0x11c   : > { %3070 = vmatprep.subr.bf16.mxu0 %v18755_v12  ;;  %3581 = vmatprep.subr.bf16.mxu1 %v18755_v12  ;;  %v18820_v59 = vld [vmem:[#allocation63_spill] sm:$0xff] }
 0x11d   : > { %2149 = vmatmul.mubr.bf16.gmra.mxu0 %v1889_v31  ;;  %2670 = vmatmul.mubr.bf16.gmra.mxu1 %v2354_v35  ;;  %v13401_v31 = vld [vmem:[%s18706_s5 + $0x1f0] sm:$0xff]   ;;  %v18812_v35 = vrot.slane %v18797_v27, 1  ;;  %v2362_v17 = vsel %vm2312_vm4, %v2353_v28, %v2361_v62  ;;  %v13403_v28 = vld [vmem:[%s18706_s5 + $0x1e8] sm:$0xff]   ;;  %v2387_v56 = vrot.slane %v18820_v59, 1 }
 0x11e   : > { %11525 = vmatprep.mubr.msk.bf16.mxu0 %vm1314_vm0, %v1895_v16  ;;  %11581 = vmatprep.mubr.msk.bf16.mxu1 %vm1314_vm0, %v2366_v54  ;;  %v18813_v54 = vld [vmem:[#allocation54_spill] sm:$0xff] }
 0x11f   : > { %3071 = vmatpush2.bf16.msra.mxu0 %v3046_v51  ;;  %3582 = vmatpush2.bf16.msra.mxu1 %v3557_v58  ;;  %v1893_v16 = vsel %vm1869_vm3, %v18812_v35, %v1892_v8  ;;  %v2367_v1 = vrot.slane %v18813_v54, 1  ;;  %v18814_v51 = vld [vmem:[#allocation47_spill] sm:$0xff] }
 0x120   : > { %3072 = vmatprep.subr.bf16.mxu0 %v18755_v12  ;;  %3583 = vmatprep.subr.bf16.mxu1 %v18755_v12  ;;  %v2368_v58 = vrot.slane %v18814_v51, 2  ;;  %v2388_v51 = vrot.slane %v18821_v30, 2  ;;  %v18824_v30 = vld [vmem:[#allocation60_spill] sm:$0xff] }
 0x123   : > { %3073 = vmatpush2.bf16.msra.mxu0 %v13399_v50  ;;  %3584 = vmatpush2.bf16.msra.mxu1 %v13400_v6  ;;  %v2369_v50 = vor.u32 %v2368_v58, %v2367_v1  ;;  %v18817_v6 = vld [vmem:[#allocation46_spill] sm:$0xff] }
 0x124   : > { %3074 = vmatprep.subr.bf16.mxu0 %v18755_v12  ;;  %3585 = vmatprep.subr.bf16.mxu1 %v18755_v12  ;;  %v1902_v35 = vrot.slane %v18817_v6, 1 }
 0x125   : > { %2157 = vmatmul.mubr.bf16.gmra.mxu0 %v1893_v16  ;;  %2678 = vmatmul.mubr.bf16.gmra.mxu1 %v2362_v17  ;;  %v2381_v16 = vor.u32 %v2380_v7, %v2379_v38  ;;  %v13405_v17 = vld [vmem:[%s18706_s5 + $0x1e0] sm:$0xff]   ;;  %v2370_v1 = vsel %vm2312_vm4, %v2361_v62, %v2369_v50 }
 0x126   : > { %11526 = vmatprep.mubr.msk.bf16.mxu0 %vm1314_vm0, %v1899_v55  ;;  %11582 = vmatprep.mubr.msk.bf16.mxu1 %vm1314_vm0, %v2374_v39  ;;  %v1897_v55 = vsel %vm1869_vm3, %v1892_v8, %v1896_v13  ;;  %v13406_v39 = vld [vmem:[%s18706_s5 + $0x248] sm:$0xff]   ;;  %v18818_v38 = vld [vmem:[#allocation59_spill] sm:$0xff]  ;;  %v1900_v8 = vrot.slane %v14716_v32, 1 }
 0x127   : > { %3075 = vmatpush2.bf16.msra.mxu0 %v13401_v31  ;;  %3586 = vmatpush2.bf16.msra.mxu1 %v13402_v44  ;;  %v1903_v31 = vsel %vm1869_vm3, %v1898_v9, %v1902_v35  ;;  %v2375_v7 = vrot.slane %v18818_v38, 1  ;;  %v18819_v44 = vld [vmem:[#allocation52_spill] sm:$0xff]  ;;  %v2382_v6 = vsel %vm2312_vm4, %v2373_v23, %v2381_v16  ;;  %v18822_v9 = vld [vmem:[#allocation53_spill] sm:$0xff] }
 0x128   : > { %3076 = vmatprep.subr.bf16.mxu0 %v18755_v12  ;;  %3587 = vmatprep.subr.bf16.mxu1 %v18755_v12  ;;  %v2376_v58 = vrot.slane %v18819_v44, 2  ;;  %v1906_v23 = vrot.slane %v18822_v9, 1 }
 0x12a   : > { %v2377_v62 = vor.u32 %v2376_v58, %v2375_v7  ;;  %v18825_v58 = vld [vmem:[#allocation69_spill] sm:$0xff] }
 0x12b   : > { %3077 = vmatpush2.bf16.msra.mxu0 %v13403_v28  ;;  %3588 = vmatpush2.bf16.msra.mxu1 %v13404_v25  ;;  %v2389_v28 = vor.u32 %v2388_v51, %v2387_v56  ;;  %v1901_v25 = vsel %vm1869_vm3, %v1896_v13, %v1900_v8  ;;  %v18826_v56 = vld [vmem:[#allocation61_spill] sm:$0xff]  ;;  %v1904_v13 = vrot.slane %v14758_v29, 1 }
 0x12c   : > { %3078 = vmatprep.subr.bf16.mxu0 %v18755_v12  ;;  %3589 = vmatprep.subr.bf16.mxu1 %v18755_v12  ;;  %v2378_v32 = vsel %vm2312_vm4, %v2369_v50, %v2377_v62  ;;  %v2396_v51 = vrot.slane %v18826_v56, 2 }
 0x12d   : > { %2165 = vmatmul.mubr.bf16.gmra.mxu0 %v1897_v55  ;;  %2686 = vmatmul.mubr.bf16.gmra.mxu1 %v2370_v1  ;;  %v18823_v55 = vld [vmem:[#allocation64_spill] sm:$0xff]  ;;  %v2390_v7 = vsel %vm2312_vm4, %v2381_v16, %v2389_v28 }
 0x12e   : > { %11527 = vmatprep.mubr.msk.bf16.mxu0 %vm1314_vm0, %v1903_v31  ;;  %11583 = vmatprep.mubr.msk.bf16.mxu1 %vm1314_vm0, %v2382_v6  ;;  %v2383_v1 = vrot.slane %v18823_v55, 1  ;;  %v2384_v31 = vrot.slane %v18824_v30, 2  ;;  %v1907_v6 = vsel %vm1869_vm3, %v1902_v35, %v1906_v23  ;;  %v18828_v35 = vld [vmem:[#allocation57_spill] sm:$0xff] }
 0x12f   : > { %3079 = vmatpush2.bf16.msra.mxu0 %v13405_v17  ;;  %3590 = vmatpush2.bf16.msra.mxu1 %v13406_v39  ;;  %v2395_v17 = vrot.slane %v18825_v58, 1  ;;  %v1910_v16 = vrot.slane %v18828_v35, 1 }
 0x130   : > { %4002 = vmatprep.subr.bf16.mxu0 %v18755_v12  ;;  %4513 = vmatprep.subr.bf16.mxu1 %v18755_v12  ;;  %v2385_v55 = vor.u32 %v2384_v31, %v2383_v1 }
 0x131   : > { %v2397_v58 = vor.u32 %v2396_v51, %v2395_v17  ;;  %v1911_v1 = vsel %vm1869_vm3, %v1906_v23, %v1910_v16  ;;  %v18833_v51 = vld [vmem:[#allocation70_spill] sm:$0xff] }
 0x132   : > { %v2404_v29 = vrot.slane %v18833_v51, 2 }
 0x133   : > { %v2398_v35 = vsel %vm2312_vm4, %v2389_v28, %v2397_v58 }
 0x135   : > { %v1404_v39 = vpop.f32.mrf.mxu0  ;;  %2173 = vmatmul.mubr.bf16.gmra.mxu0 %v1901_v25  ;;  %v1703_v9 = vpop.f32.mrf.mxu1  ;;  %2694 = vmatmul.mubr.bf16.gmra.mxu1 %v2378_v32  ;;  %v1905_v25 = vsel %vm1869_vm3, %v1900_v8, %v1904_v13  ;;  %v2386_v32 = vsel %vm2312_vm4, %v2377_v62, %v2385_v55 }
 0x136   : > { %11528 = vmatprep.mubr.msk.bf16.mxu0 %vm1314_vm0, %v1907_v6  ;;  %v15237_v30 = vadd.f32 %v1703_v9, %v1404_v39  ;;  %11584 = vmatprep.mubr.msk.bf16.mxu1 %vm1314_vm0, %v2390_v7  ;;  %v18830_v9 = vld [vmem:[#allocation75_spill] sm:$0xff]  ;;  %v18831_v39 = vld [vmem:[#allocation65_spill] sm:$0xff] }
 0x137   : > { %v1406_v50 = vpop.f32.mrf.mxu0  ;;  %v1705_v59 = vpop.f32.mrf.mxu1  ;;  %v2391_v31 = vrot.slane %v18830_v9, 1  ;;  %v18835_v9 = vld [vmem:[#allocation81_spill] sm:$0xff] }
 0x138   : > { %18827 = vst [vmem:[#allocation49_spill] sm:$0xff] %v15237_v30  ;;  %v2392_v50 = vrot.slane %v18831_v39, 2  ;;  %v18832_v59 = vld [vmem:[#allocation76_spill] sm:$0xff] }
 0x139   : > { %v1407_v44 = vpop.f32.mrf.mxu0  ;;  %v1706_v56 = vpop.f32.mrf.mxu1  ;;  %v2403_v17 = vrot.slane %v18832_v59, 1 }
 0x13a   : > { %v15243_v38 = vadd.f32 %v1706_v56, %v1407_v44  ;;  %v1908_v44 = vrot.slane %v14804_v37, 1  ;;  %v2393_v56 = vor.u32 %v2392_v50, %v2391_v31 }
 0x13b   : > { %v1409_v6 = vpop.f32.mrf.mxu0  ;;  %v1708_v7 = vpop.f32.mrf.mxu1  ;;  %v2405_v59 = vor.u32 %v2404_v29, %v2403_v17  ;;  %v18838_v17 = vld [vmem:[#allocation72_spill] sm:$0xff] }
 0x13c   : > { %18829 = vst [vmem:[#allocation97_spill] sm:$0xff] %v15243_v38  ;;  %v18834_v6 = vld [vmem:[#allocation66_spill] sm:$0xff]  ;;  %v18836_v38 = vld [vmem:[#allocation71_spill] sm:$0xff] }
 0x13d   : > { %v1412_v30 = vpop.f32.mrf.mxu0  ;;  %2181 = vmatmul.mubr.bf16.gmra.mxu0 %v1905_v25  ;;  %v1711_v8 = vpop.f32.mrf.mxu1  ;;  %2702 = vmatmul.mubr.bf16.gmra.mxu1 %v2386_v32  ;;  %v1914_v28 = vrot.slane %v18834_v6, 1  ;;  %v1909_v25 = vsel %vm1869_vm3, %v1904_v13, %v1908_v44  ;;  %v2399_v32 = vrot.slane %v18835_v9, 1  ;;  %v2406_v50 = vsel %vm2312_vm4, %v2397_v58, %v2405_v59 }
 0x13e   : > { %11529 = vmatprep.mubr.msk.bf16.mxu0 %vm1314_vm0, %v1911_v1  ;;  %v15253_v62 = vadd.f32 %v1711_v8, %v1412_v30  ;;  %11585 = vmatprep.mubr.msk.bf16.mxu1 %vm1314_vm0, %v2398_v35  ;;  %v2400_v1 = vrot.slane %v18836_v38, 2  ;;  %v2394_v8 = vsel %vm2312_vm4, %v2385_v55, %v2393_v56  ;;  %v1918_v58 = vrot.slane %v14837_v60, 1 }
 0x13f   : > { %v1414_v23 = vpop.f32.mrf.mxu0  ;;  %v1713_v7 = vpop.f32.mrf.mxu1  ;;  %v1915_v35 = vsel %vm1869_vm3, %v1910_v16, %v1914_v28 }
 0x140   : > { %v18837_v23 = vld [vmem:[#allocation82_spill] sm:$0xff]  ;;  %v2412_v7 = vrot.slane %v18838_v17, 2 }
 0x141   : > { %v1415_v39 = vpop.f32.mrf.mxu0  ;;  %v1714_v51 = vpop.f32.mrf.mxu1  ;;  %v2411_v29 = vrot.slane %v18837_v23, 1 }
 0x142   : > { %v15260_v54 = vadd.f32 %v1714_v51, %v1415_v39  ;;  %v1912_v39 = vrot.slane %v14835_v4, 1  ;;  %v2401_v51 = vor.u32 %v2400_v1, %v2399_v32  ;;  %v1919_v32 = vsel %vm1869_vm3, %v1914_v28, %v1918_v58 }
 0x143   : > { %v1417_v30 = vpop.f32.mrf.mxu0  ;;  %v1716_v31 = vpop.f32.mrf.mxu1 }
 0x144   : > { %v2413_v31 = vor.u32 %v2412_v7, %v2411_v29  ;;  %v18844_v7 = vld [vmem:[#allocation78_spill] sm:$0xff] }
 0x145   : > { %v1420_v6 = vpop.f32.mrf.mxu0  ;;  %2189 = vmatmul.mubr.bf16.gmra.mxu0 %v1909_v25  ;;  %v1719_v13 = vpop.f32.mrf.mxu1  ;;  %2710 = vmatmul.mubr.bf16.gmra.mxu1 %v2394_v8  ;;  %v1913_v25 = vsel %vm1869_vm3, %v1908_v44, %v1912_v39  ;;  %v2402_v8 = vsel %vm2312_vm4, %v2393_v56, %v2401_v51  ;;  %v2420_v4 = vrot.slane %v18844_v7, 2  ;;  %v1916_v56 = vrot.slane %v14866_v3, 1 }
 0x146   : > { %11530 = vmatprep.mubr.msk.bf16.mxu0 %vm1314_vm0, %v1915_v35  ;;  %v15269_v30 = vadd.f32 %v1719_v13, %v1420_v6  ;;  %11586 = vmatprep.mubr.msk.bf16.mxu1 %vm1314_vm0, %v2406_v50  ;;  %v18841_v6 = vld [vmem:[#allocation85_spill] sm:$0xff]  ;;  %v2414_v60 = vsel %vm2312_vm4, %v2405_v59, %v2413_v31 }
 0x147   : > { %v1422_v55 = vpop.f32.mrf.mxu0  ;;  %v1721_v16 = vpop.f32.mrf.mxu1  ;;  %v2407_v1 = vrot.slane %v18841_v6, 1  ;;  %v18842_v13 = vld [vmem:[#allocation77_spill] sm:$0xff]  ;;  %v18846_v6 = vld [vmem:[#allocation91_spill] sm:$0xff] }
 0x148   : > { %18839 = vst [vmem:[#allocation98_spill] sm:$0xff] %v15269_v30  ;;  %v2408_v55 = vrot.slane %v18842_v13, 2  ;;  %v18843_v16 = vld [vmem:[#allocation86_spill] sm:$0xff] }
 0x149   : > { %v1423_v23 = vpop.f32.mrf.mxu0  ;;  %v1722_v17 = vpop.f32.mrf.mxu1  ;;  %v2419_v29 = vrot.slane %v18843_v16, 1 }
 0x14a   : > { %v15275_v38 = vadd.f32 %v1722_v17, %v1423_v23  ;;  %v2409_v17 = vor.u32 %v2408_v55, %v2407_v1 }
 0x14b   : > { %v1425_v35 = vpop.f32.mrf.mxu0  ;;  %v1724_v50 = vpop.f32.mrf.mxu1  ;;  %v2421_v16 = vor.u32 %v2420_v4, %v2419_v29  ;;  %v18849_v29 = vld [vmem:[#allocation84_spill] sm:$0xff] }
 0x14c   : > { %18840 = vst [vmem:[#allocation99_spill] sm:$0xff] %v15275_v38  ;;  %v18845_v35 = vld [vmem:[#allocation74_spill] sm:$0xff]  ;;  %v18847_v38 = vld [vmem:[#allocation83_spill] sm:$0xff] }
 0x14d   : > { %v1428_v30 = vpop.f32.mrf.mxu0  ;;  %2197 = vmatmul.mubr.bf16.gmra.mxu0 %v1913_v25  ;;  %v1727_v44 = vpop.f32.mrf.mxu1  ;;  %2718 = vmatmul.mubr.bf16.gmra.mxu1 %v2402_v8  ;;  %v1922_v59 = vrot.slane %v18845_v35, 1  ;;  %v1917_v25 = vsel %vm1869_vm3, %v1912_v39, %v1916_v56  ;;  %v2415_v8 = vrot.slane %v18846_v6, 1  ;;  %v2422_v55 = vsel %vm2312_vm4, %v2413_v31, %v2421_v16 }
 0x14e   : > { %11531 = vmatprep.mubr.msk.bf16.mxu0 %vm1314_vm0, %v1919_v32  ;;  %v15285_v28 = vadd.f32 %v1727_v44, %v1428_v30  ;;  %11587 = vmatprep.mubr.msk.bf16.mxu1 %vm1314_vm0, %v2414_v60  ;;  %v2416_v32 = vrot.slane %v18847_v38, 2  ;;  %v2410_v44 = vsel %vm2312_vm4, %v2401_v51, %v2409_v17  ;;  %v1926_v31 = vrot.slane %v14899_v18, 1  ;;  %v18853_v18 = vld [vmem:[#allocation90_spill] sm:$0xff] }
 0x14f   : > { %v1430_v23 = vpop.f32.mrf.mxu0  ;;  %v1729_v50 = vpop.f32.mrf.mxu1  ;;  %v1923_v60 = vsel %vm1869_vm3, %v1918_v58, %v1922_v59 }
 0x150   : > { %v18848_v23 = vld [vmem:[#allocation92_spill] sm:$0xff]  ;;  %v2428_v50 = vrot.slane %v18849_v29, 2 }
 0x151   : > { %v1431_v13 = vpop.f32.mrf.mxu0  ;;  %v1730_v7 = vpop.f32.mrf.mxu1  ;;  %v2427_v4 = vrot.slane %v18848_v23, 1  ;;  %v762_v23 = vld [vmem:[%s14390_s24 + $0x108] sm:$0xff] }
 0x152   : > { %v15292_v9 = vadd.f32 %v1730_v7, %v1431_v13  ;;  %v1920_v13 = vrot.slane %v14894_v24, 1  ;;  %v2417_v7 = vor.u32 %v2416_v32, %v2415_v8  ;;  %v2423_v32 = vrot.slane %v14975_v15, 1 }
 0x153   : > { %v1433_v30 = vpop.f32.mrf.mxu0  ;;  %v1732_v1 = vpop.f32.mrf.mxu1  ;;  %v2436_v24 = vrot.slane %v18853_v18, 2 }
 0x154   : > { %v2429_v1 = vor.u32 %v2428_v50, %v2427_v4  ;;  %v18852_v4 = vld [vmem:[#allocation96_spill] sm:$0xff] }
 0x155   : > { %v1436_v39 = vpop.f32.mrf.mxu0  ;;  %2205 = vmatmul.mubr.bf16.gmra.mxu0 %v1917_v25  ;;  %v1735_v6 = vpop.f32.mrf.mxu1  ;;  %2726 = vmatmul.mubr.bf16.gmra.mxu1 %v2410_v44  ;;  %v1921_v44 = vsel %vm1869_vm3, %v1916_v56, %v1920_v13  ;;  %v2435_v50 = vrot.slane %v18852_v4, 1 }
 0x156   : > { %11532 = vmatprep.mubr.msk.bf16.mxu0 %vm1314_vm0, %v1923_v60  ;;  %v15301_v51 = vadd.f32 %v1735_v6, %v1436_v39  ;;  %11588 = vmatprep.mubr.msk.bf16.mxu1 %vm1314_vm0, %v2422_v55  ;;  %v2418_v60 = vsel %vm2312_vm4, %v2409_v17, %v2417_v7  ;;  %v1927_v6 = vsel %vm1869_vm3, %v1922_v59, %v1926_v31  ;;  %v18851_v55 = vld [vmem:[#allocation89_spill] sm:$0xff]  ;;  %v1924_v59 = vrot.slane %v14935_v43, 1 }
 0x157   : > { %v1438_v58 = vpop.f32.mrf.mxu0  ;;  %v1737_v30 = vpop.f32.mrf.mxu1  ;;  %v2424_v39 = vrot.slane %v18851_v55, 2  ;;  %v2437_v4 = vor.u32 %v2436_v24, %v2435_v50 }
 0x158   : > { %18850 = vst [vmem:[#allocation100_spill] sm:$0xff] %v15301_v51  ;;  %v2430_v30 = vsel %vm2312_vm4, %v2421_v16, %v2429_v1  ;;  %v13997_v51 = vld [vmem:[%s14390_s24 + $0x100] sm:$0xff]  ;;  %v1925_v43 = vsel %vm1869_vm3, %v1920_v13, %v1924_v59 }
 0x159   : > { %v1439_v29 = vpop.f32.mrf.mxu0  ;;  %v1738_v25 = vpop.f32.mrf.mxu1  ;;  %v15317_v56 = vcombine.high %v13997_v51, %v762_v23  ;;  %v2425_v16 = vor.u32 %v2424_v39, %v2423_v32 }
 0x15a   : > { %v15308_v38 = vadd.f32 %v1738_v25, %v1439_v29 }
 0x15b   : > { %v1441_v8 = vpop.f32.mrf.mxu0  ;;  %v1740_v58 = vpop.f32.mrf.mxu1  ;;  %18854 = vst [vmem:[#allocation101_spill] sm:$0xff] %v15317_v56  ;;  %v15326_v55 = vshrl.u32 %v15317_v56, 16  ;;  %v2426_v24 = vsel %vm2312_vm4, %v2417_v7, %v2425_v16  ;;  %v1934_v7 = vrot.slane %v15317_v56, 1 }
 0x15c   : > { %v1930_v58 = vrot.slane %v14937_v53, 1  ;;  %v2438_v53 = vsel %vm2312_vm4, %v2429_v1, %v2437_v4 }
 0x15d   : > { %v1444_v17 = vpop.f32.mrf.mxu0  ;;  %2213 = vmatmul.mubr.bf16.gmra.mxu0 %v1921_v44  ;;  %v1743_v29 = vpop.f32.mrf.mxu1  ;;  %2734 = vmatmul.mubr.bf16.gmra.mxu1 %v2418_v60  ;;  %18856 = vst [vmem:[#allocation103_spill] sm:$0xff] %v15326_v55  ;;  %v15329_v44 = vshll.u32 %v15317_v56, 16 }
 0x15e   : > { %11533 = vmatprep.mubr.msk.bf16.mxu0 %vm1314_vm0, %v1927_v6  ;;  %v15321_v25 = vadd.f32 %v1743_v29, %v1444_v17  ;;  %11589 = vmatprep.mubr.msk.bf16.mxu1 %vm1314_vm0, %v2430_v30  ;;  %v2431_v17 = vrot.slane %v14990_v33, 1  ;;  %v18858_v29 = vld [vmem:[#allocation94_spill] sm:$0xff]  ;;  %v15334_v30 = vcombine.low %v13997_v51, %v762_v23  ;;  %v1931_v39 = vsel %vm1869_vm3, %v1926_v31, %v1930_v58 }
 0x15f   : > { %v1446_v8 = vpop.f32.mrf.mxu0  ;;  %v1745_v18 = vpop.f32.mrf.mxu1  ;;  %18857 = vst [vmem:[#allocation104_spill] sm:$0xff] %v15329_v44  ;;  %v2454_v13 = vrot.slane %v15329_v44, 2 }
 0x160   : > { %18855 = vst [vmem:[#allocation102_spill] sm:$0xff] %v15321_v25  ;;  %v2432_v8 = vrot.slane %v18858_v29, 2  ;;  %18859 = vst [vmem:[#allocation105_spill] sm:$0xff] %v15334_v30  ;;  %v2451_v25 = vrot.slane %v15326_v55, 1  ;;  %v1928_v29 = vrot.slane %v14962_v40, 1  ;;  %v15347_v31 = vshrl.u32 %v15334_v30, 16 }
 0x161   : > { %v1447_v60 = vpop.f32.mrf.mxu0  ;;  %v1746_v6 = vpop.f32.mrf.mxu1  ;;  %v15350_v1 = vshll.u32 %v15334_v30, 16  ;;  %v1935_v40 = vsel %vm1869_vm3, %v1930_v58, %v1934_v7 }
 0x162   : > { %v15336_v32 = vadd.f32 %v1746_v6, %v1447_v60  ;;  %v2433_v51 = vor.u32 %v2432_v8, %v2431_v17  ;;  %v2442_v44 = vrot.slane %v15347_v31, 1 }
 0x163   : > { %v1449_v18 = vpop.f32.mrf.mxu0  ;;  %v1748_v50 = vpop.f32.mrf.mxu1  ;;  %18860 = vst [vmem:[#allocation106_spill] sm:$0xff] %v15350_v1 }
 0x164   : > { %v2455_v18 = vor.u32 %v2454_v13, %v2451_v25  ;;  %v2434_v17 = vsel %vm2312_vm4, %v2425_v16, %v2433_v51  ;;  %v1932_v25 = vrot.slane %v15334_v30, 1 }
 0x165   : > { %v1452_v15 = vpop.f32.mrf.mxu0  ;;  %2221 = vmatmul.mubr.bf16.gmra.mxu0 %v1925_v43  ;;  %v1751_v23 = vpop.f32.mrf.mxu1  ;;  %2742 = vmatmul.mubr.bf16.gmra.mxu1 %v2426_v24 }
 0x166   : > { %11534 = vmatprep.mubr.msk.bf16.mxu0 %vm1314_vm0, %v1931_v39  ;;  %v15352_v60 = vadd.f32 %v1751_v23, %v1452_v15  ;;  %11590 = vmatprep.mubr.msk.bf16.mxu1 %vm1314_vm0, %v2438_v53  ;;  %v1929_v39 = vsel %vm1869_vm3, %v1924_v59, %v1928_v29  ;;  %v2445_v15 = vrot.slane %v15350_v1, 2  ;;  %v2456_v53 = vsel %vm2312_vm4, %v2437_v4, %v2455_v18 }
 0x167   : > { %v1454_v6 = vpop.f32.mrf.mxu0  ;;  %v1753_v43 = vpop.f32.mrf.mxu1  ;;  %v3284_v4 = vrot.slane %v14416_v26, 2 }
 0x168   : > { %v2446_v16 = vor.u32 %v2445_v15, %v2442_v44 }
 0x169   : > { %v1455_v50 = vpop.f32.mrf.mxu0  ;;  %v1754_v24 = vpop.f32.mrf.mxu1 }
 0x16a   : > { %v15357_v8 = vadd.f32 %v1754_v24, %v1455_v50  ;;  %v1933_v24 = vsel %vm1869_vm3, %v1928_v29, %v1932_v25 }
 0x16b   : > { %v1457_v56 = vpop.f32.mrf.mxu0  ;;  %v1756_v23 = vpop.f32.mrf.mxu1 }
 0x16d   : > { %v1460_v6 = vpop.f32.mrf.mxu0  ;;  %2229 = vmatmul.mubr.bf16.gmra.mxu0 %v1929_v39  ;;  %v1759_v13 = vpop.f32.mrf.mxu1  ;;  %2750 = vmatmul.mubr.bf16.gmra.mxu1 %v2434_v17  ;;  %v18862_v39 = vld [vmem:[#allocation13_spill] sm:$0xff] }
 0x16e   : > { %11535 = vmatprep.mubr.msk.bf16.mxu0 %vm1314_vm0, %v1935_v40  ;;  %v15365_v59 = vadd.f32 %v1759_v13, %v1460_v6  ;;  %11591 = vmatprep.mubr.msk.bf16.mxu1 %vm1314_vm0, %v2456_v53  ;;  %v3285_v23 = vrot.slane %v18862_v39, 3  ;;  %v2447_v40 = vsel %vm2312_vm4, %v2433_v51, %v2446_v16  ;;  %v18863_v6 = vld [vmem:[#allocation21_spill] sm:$0xff] }
 0x16f   : > { %v1462_v56 = vpop.f32.mrf.mxu0  ;;  %v1761_v58 = vpop.f32.mrf.mxu1  ;;  %v3287_v13 = vrot.slane %v18863_v6, 2 }
 0x170   : > { %18861 = vst [vmem:[#allocation107_spill] sm:$0xff] %v15365_v59  ;;  %v18864_v56 = vld [vmem:[#allocation14_spill] sm:$0xff]  ;;  %v3286_v6 = vor.u32 %v3285_v23, %v3284_v4 }
 0x171   : > { %v1463_v43 = vpop.f32.mrf.mxu0  ;;  %v1762_v50 = vpop.f32.mrf.mxu1  ;;  %v3288_v59 = vrot.slane %v18864_v56, 3 }
 0x172   : > { %v15371_v30 = vadd.f32 %v1762_v50, %v1463_v43  ;;  %v18865_v43 = vld [vmem:[#allocation10_spill] sm:$0xff] }
 0x173   : > { %v1465_v17 = vpop.f32.mrf.mxu0  ;;  %v1764_v53 = vpop.f32.mrf.mxu1  ;;  %v2837_v50 = vrot.slane %v18865_v43, 2  ;;  %v3289_v26 = vor.u32 %v3288_v59, %v3287_v13  ;;  %v3295_v59 = vrot.slane %v14509_v2, 2 }
 0x174   : > { %v18866_v17 = vld [vmem:[#allocation11_spill] sm:$0xff] }
 0x175   : > { %v1468_v44 = vpop.f32.mrf.mxu0  ;;  %2237 = vmatmul.mubr.bf16.gmra.mxu0 %v1933_v24  ;;  %v1767_v15 = vpop.f32.mrf.mxu1  ;;  %2758 = vmatmul.mubr.bf16.gmra.mxu1 %v2447_v40  ;;  %v2838_v51 = vrot.slane %v18866_v17, 2  ;;  %v3277_v24 = vrot.slane %v14466_v46, 2  ;;  %v3278_v40 = vrot.slane %v14453_v42, 3  ;;  %v3290_v4 = vsel %vm3276_vm5, %v3286_v6, %v3289_v26  ;;  %v18868_v6 = vld [vmem:[#allocation18_spill] sm:$0xff] }
 0x176   : > { %11536 = vmatprep.mubr.msk.bf16.mxu0 %vm1314_vm0, %v1934_v7  ;;  %v15377_v29 = vadd.f32 %v1767_v15, %v1468_v44  ;;  %11592 = vmatprep.mubr.msk.bf16.mxu1 %vm1314_vm0, %v2455_v18  ;;  %v3280_v7 = vrot.slane %v14503_v63, 2  ;;  %v3281_v44 = vrot.slane %v14470_v48, 3  ;;  %v2834_v48 = vrot.slane %v14439_v36, 2 }
 0x177   : > { %v1470_v58 = vpop.f32.mrf.mxu0  ;;  %v1769_v39 = vpop.f32.mrf.mxu1  ;;  %v2842_v2 = vrot.slane %v18868_v6, 2 }
 0x178   : > { %v2839_v58 = vsel %vm1366_vm1, %v2837_v50, %v2838_v51  ;;  %v18867_v39 = vld [vmem:[#allocation22_spill] sm:$0xff] }
 0x179   : > { %v1471_v56 = vpop.f32.mrf.mxu0  ;;  %v1770_v53 = vpop.f32.mrf.mxu1  ;;  %v3296_v23 = vrot.slane %v18867_v39, 3 }
 0x17a   : > { %v15386_v15 = vadd.f32 %v1770_v53, %v1471_v56  ;;  %v2835_v56 = vrot.slane %v14450_v41, 2  ;;  %v3279_v53 = vor.u32 %v3278_v40, %v3277_v24  ;;  %v2843_v24 = vsel %vm1366_vm1, %v2838_v51, %v2842_v2 }
 0x17b   : > { %v1473_v18 = vpop.f32.mrf.mxu0  ;;  %v1772_v17 = vpop.f32.mrf.mxu1  ;;  %v3297_v63 = vor.u32 %v3296_v23, %v3295_v59  ;;  %v2840_v23 = vrot.slane %v14490_v57, 2 }
 0x17c   : > { %v3282_v18 = vor.u32 %v3281_v44, %v3280_v7  ;;  %v3292_v7 = vrot.slane %v14506_v0, 3  ;;  %v13407_v44 = vld [vmem:[%s18706_s5 + $0x2a8] sm:$0xff]  }
 0x17d   : > { %v1476_v13 = vpop.f32.mrf.mxu0  ;;  %2245 = vmatmul.mubr.bf16.gmra.mxu0 %v1932_v25  ;;  %v1775_v46 = vpop.f32.mrf.mxu1  ;;  %2766 = vmatmul.mubr.bf16.gmra.mxu1 %v2446_v16  ;;  %v2836_v16 = vsel %vm1366_vm1, %v2834_v48, %v2835_v56  ;;  %v3298_v59 = vsel %vm3276_vm5, %v3289_v26, %v3297_v63  ;;  %v3303_v48 = vrot.slane %v14553_v20, 2 }
 0x17e   : > { %11632 = vmatprep.mubr.msk.bf16.mxu0 %vm1314_vm0, %v2839_v58  ;;  %v15395_v50 = vadd.f32 %v1775_v46, %v1476_v13  ;;  %11688 = vmatprep.mubr.msk.bf16.mxu1 %vm1314_vm0, %v3290_v4  ;;  %v3283_v58 = vsel %vm3276_vm5, %v3279_v53, %v3282_v18  ;;  %v18869_v46 = vld [vmem:[#allocation26_spill] sm:$0xff] }
 0x17f   : > { %v1478_v17 = vpop.f32.mrf.mxu0  ;;  %v1777_v39 = vpop.f32.mrf.mxu1  ;;  %v3291_v40 = vrot.slane %v18869_v46, 2 }
 0x180   : > { %v3304_v39 = vrot.slane %v14514_v5, 3  ;;  %v2846_v17 = vrot.slane %v14498_v61, 2 }
 0x181   : > { %v1479_v25 = vpop.f32.mrf.mxu0  ;;  %v1778_v42 = vpop.f32.mrf.mxu1  ;;  %v3293_v26 = vor.u32 %v3292_v7, %v3291_v40  ;;  %v2841_v7 = vsel %vm1366_vm1, %v2835_v56, %v2840_v23  ;;  %v3311_v56 = vrot.slane %v14597_v49, 2 }
 0x182   : > { %v15401_v36 = vadd.f32 %v1778_v42, %v1479_v25  ;;  %v13409_v25 = vld [vmem:[%s18706_s5 + $0x2a0] sm:$0xff]  }
 0x183   : > { %v1481_v41 = vpop.f32.mrf.mxu0  ;;  %v1780_v4 = vpop.f32.mrf.mxu1 }
 0x184   : > { %v13408_v41 = vld [vmem:[%s18706_s5 + $0x310] sm:$0xff]   ;;  %v3305_v4 = vor.u32 %v3304_v39, %v3303_v48  ;;  %v3294_v39 = vsel %vm3276_vm5, %v3282_v18, %v3293_v26  ;;  %v13412_v18 = vld [vmem:[%s18706_s5 + $0x300] sm:$0xff]  }
 0x185   : > { %v1484_v42 = vpop.f32.mrf.mxu0  ;;  %3081 = vmatmul.mubr.bf16.vlgmr.msra.gmra.mxu0 %v2836_v16  ;;  %v1783_v51 = vpop.f32.mrf.mxu1  ;;  %3592 = vmatmul.mubr.bf16.vlgmr.msra.gmra.mxu1 %v3283_v58  ;;  %v13410_v58 = vld [vmem:[%s18706_s5 + $0x308] sm:$0xff]  }
 0x186   : > { %11633 = vmatprep.mubr.msk.bf16.mxu0 %vm1314_vm0, %v2843_v24  ;;  %v15417_v13 = vadd.f32 %v1783_v51, %v1484_v42  ;;  %11689 = vmatprep.mubr.msk.bf16.mxu1 %vm1314_vm0, %v3298_v59  ;;  %v3300_v59 = vrot.slane %v14550_v19, 3  ;;  %v13411_v51 = vld [vmem:[%s18706_s5 + $0x298] sm:$0xff]  }
 0x187   : > { %v1486_v53 = vpop.f32.mrf.mxu0  ;;  %4003 = vmatpush1.bf16.msra.mxu0 %v13407_v44  ;;  %v1785_v16 = vpop.f32.mrf.mxu1  ;;  %4514 = vmatpush1.bf16.msra.mxu1 %v13408_v41  ;;  %v3299_v44 = vrot.slane %v14591_v45, 2  ;;  %v2847_v41 = vsel %vm1366_vm1, %v2842_v2, %v2846_v17  ;;  %v3312_v45 = vrot.slane %v14557_v22, 3 }
 0x188   : > { %4004 = vmatprep.subr.bf16.mxu0 %v18755_v12  ;;  %4515 = vmatprep.subr.bf16.mxu1 %v18755_v12  ;;  %v3306_v16 = vsel %vm3276_vm5, %v3297_v63, %v3305_v4  ;;  %v2844_v63 = vrot.slane %v14529_v11, 2 }
 0x189   : > { %v1487_v24 = vpop.f32.mrf.mxu0  ;;  %v1786_v40 = vpop.f32.mrf.mxu1  ;;  %v3313_v22 = vor.u32 %v3312_v45, %v3311_v56  ;;  %v3307_v56 = vrot.slane %v14635_v10, 2 }
 0x18a   : > { %v15432_v42 = vadd.f32 %v1786_v40, %v1487_v24  ;;  %v3301_v24 = vor.u32 %v3300_v59, %v3299_v44  ;;  %v13414_v44 = vld [vmem:[%s18706_s5 + $0x2f8] sm:$0xff]  }
 0x18b   : > { %v1489_v48 = vpop.f32.mrf.mxu0  ;;  %4005 = vmatpush1.bf16.msra.mxu0 %v13409_v25  ;;  %v1788_v53 = vpop.f32.mrf.mxu1  ;;  %4516 = vmatpush1.bf16.msra.mxu1 %v13410_v58 }
 0x18c   : > { %4006 = vmatprep.subr.bf16.mxu0 %v18755_v12  ;;  %4517 = vmatprep.subr.bf16.mxu1 %v18755_v12  ;;  %v2850_v48 = vrot.slane %v14535_v14, 2 }
 0x18d   : > { %v1492_v2 = vpop.f32.mrf.mxu0  ;;  %3089 = vmatmul.mubr.bf16.gmra.mxu0 %v2841_v7  ;;  %v1791_v25 = vpop.f32.mrf.mxu1  ;;  %3600 = vmatmul.mubr.bf16.gmra.mxu1 %v3294_v39  ;;  %v13413_v7 = vld [vmem:[%s18706_s5 + $0x290] sm:$0xff]  }
 0x18e   : > { %11634 = vmatprep.mubr.msk.bf16.mxu0 %vm1314_vm0, %v2847_v41  ;;  %v15449_v40 = vadd.f32 %v1791_v25, %v1492_v2  ;;  %11690 = vmatprep.mubr.msk.bf16.mxu1 %vm1314_vm0, %v3306_v16  ;;  %v2845_v41 = vsel %vm1366_vm1, %v2840_v23, %v2844_v63  ;;  %v2851_v45 = vsel %vm1366_vm1, %v2846_v17, %v2850_v48  ;;  %v13415_v25 = vld [vmem:[%s18706_s5 + $0x288] sm:$0xff]   ;;  %v3319_v23 = vrot.slane %v14647_v21, 2  ;;  %v13416_v17 = vld [vmem:[%s18706_s5 + $0x2f0] sm:$0xff]  }
 0x18f   : > { %v1494_v58 = vpop.f32.mrf.mxu0  ;;  %4007 = vmatpush1.bf16.msra.mxu0 %v13411_v51  ;;  %v1793_v53 = vpop.f32.mrf.mxu1  ;;  %4518 = vmatpush1.bf16.msra.mxu1 %v13412_v18  ;;  %v3302_v51 = vsel %vm3276_vm5, %v3293_v26, %v3301_v24  ;;  %v3308_v18 = vrot.slane %v14594_v47, 3  ;;  %v18871_v26 = vld [vmem:[#allocation32_spill] sm:$0xff] }
 0x190   : > { %4008 = vmatprep.subr.bf16.mxu0 %v18755_v12  ;;  %4519 = vmatprep.subr.bf16.mxu1 %v18755_v12  ;;  %v3314_v53 = vsel %vm3276_vm5, %v3305_v4, %v3313_v22  ;;  %v2848_v4 = vrot.slane %v14573_v34, 2 }
 0x191   : > { %v1495_v59 = vpop.f32.mrf.mxu0  ;;  %v1794_v39 = vpop.f32.mrf.mxu1 }
 0x192   : > { %v15463_v16 = vadd.f32 %v1794_v39, %v1495_v59  ;;  %v3320_v59 = vrot.slane %v18871_v26, 3  ;;  %v18873_v26 = vld [vmem:[#allocation29_spill] sm:$0xff] }
 0x193   : > { %v1497_v2 = vpop.f32.mrf.mxu0  ;;  %4009 = vmatpush1.bf16.msra.mxu0 %v13413_v7  ;;  %v1796_v58 = vpop.f32.mrf.mxu1  ;;  %4520 = vmatpush1.bf16.msra.mxu1 %v13414_v44  ;;  %v3309_v44 = vor.u32 %v3308_v18, %v3307_v56  ;;  %v2854_v21 = vrot.slane %v18873_v26, 2  ;;  %v2849_v18 = vsel %vm1366_vm1, %v2844_v63, %v2848_v4  ;;  %v18877_v63 = vld [vmem:[#allocation44_spill] sm:$0xff] }
 0x194   : > { %18870 = vst [vmem:[#allocation10_spill] sm:$0xff] %v15463_v16  ;;  %4010 = vmatprep.subr.bf16.mxu0 %v18755_v12  ;;  %4521 = vmatprep.subr.bf16.mxu1 %v18755_v12  ;;  %v3321_v10 = vor.u32 %v3320_v59, %v3319_v23 }
 0x195   : > { %v1500_v39 = vpop.f32.mrf.mxu0  ;;  %3097 = vmatmul.mubr.bf16.gmra.mxu0 %v2845_v41  ;;  %v1799_v7 = vpop.f32.mrf.mxu1  ;;  %3608 = vmatmul.mubr.bf16.gmra.mxu1 %v3302_v51  ;;  %v13417_v41 = vld [vmem:[%s18706_s5 + $0x280] sm:$0xff]   ;;  %v13418_v51 = vld [vmem:[%s18706_s5 + $0x2e8] sm:$0xff]   ;;  %v3310_v23 = vsel %vm3276_vm5, %v3301_v24, %v3309_v44  ;;  %v2855_v59 = vsel %vm1366_vm1, %v2850_v48, %v2854_v21 }
 0x196   : > { %11635 = vmatprep.mubr.msk.bf16.mxu0 %vm1314_vm0, %v2851_v45  ;;  %v15481_v2 = vadd.f32 %v1799_v7, %v1500_v39  ;;  %11691 = vmatprep.mubr.msk.bf16.mxu1 %vm1314_vm0, %v3314_v53  ;;  %v18875_v39 = vld [vmem:[#allocation36_spill] sm:$0xff]  ;;  %v3322_v34 = vsel %vm3276_vm5, %v3313_v22, %v3321_v10  ;;  %v2852_v22 = vrot.slane %v18797_v27, 2 }
 0x197   : > { %v1502_v58 = vpop.f32.mrf.mxu0  ;;  %4011 = vmatpush1.bf16.msra.mxu0 %v13415_v25  ;;  %v1801_v47 = vpop.f32.mrf.mxu1  ;;  %4522 = vmatpush1.bf16.msra.mxu1 %v13416_v17  ;;  %v18874_v25 = vld [vmem:[#allocation42_spill] sm:$0xff]  ;;  %v3316_v7 = vrot.slane %v18875_v39, 3  ;;  %v13420_v24 = vld [vmem:[%s18706_s5 + $0x2e0] sm:$0xff]  }
 0x198   : > { %18872 = vst [vmem:[#allocation18_spill] sm:$0xff] %v15481_v2  ;;  %4012 = vmatprep.subr.bf16.mxu0 %v18755_v12  ;;  %4523 = vmatprep.subr.bf16.mxu1 %v18755_v12  ;;  %v3315_v53 = vrot.slane %v18874_v25, 2  ;;  %v13419_v17 = vld [vmem:[%s18706_s5 + $0x278] sm:$0xff]   ;;  %v3327_v2 = vrot.slane %v18877_v63, 2 }
 0x199   : > { %v1503_v45 = vpop.f32.mrf.mxu0  ;;  %v1802_v56 = vpop.f32.mrf.mxu1  ;;  %v18878_v25 = vld [vmem:[#allocation38_spill] sm:$0xff] }
 0x19a   : > { %v15496_v58 = vadd.f32 %v1802_v56, %v1503_v45  ;;  %v3328_v16 = vrot.slane %v18878_v25, 3  ;;  %v18880_v56 = vld [vmem:[#allocation34_spill] sm:$0xff] }
 0x19b   : > { %v1505_v47 = vpop.f32.mrf.mxu0  ;;  %4013 = vmatpush1.bf16.msra.mxu0 %v13417_v41  ;;  %v1804_v26 = vpop.f32.mrf.mxu1  ;;  %4524 = vmatpush1.bf16.msra.mxu1 %v13418_v51 }
 0x19c   : > { %18876 = vst [vmem:[#allocation26_spill] sm:$0xff] %v15496_v58  ;;  %4014 = vmatprep.subr.bf16.mxu0 %v18755_v12  ;;  %4525 = vmatprep.subr.bf16.mxu1 %v18755_v12  ;;  %v3317_v26 = vor.u32 %v3316_v7, %v3315_v53  ;;  %v2858_v47 = vrot.slane %v18880_v56, 2  ;;  %v3329_v63 = vor.u32 %v3328_v16, %v3327_v2  ;;  %v13422_v53 = vld [vmem:[%s18706_s5 + $0x2d8] sm:$0xff]   ;;  %v18883_v58 = vld [vmem:[#allocation45_spill] sm:$0xff] }
 0x19d   : > { %v1508_v48 = vpop.f32.mrf.mxu0  ;;  %3105 = vmatmul.mubr.bf16.gmra.mxu0 %v2849_v18  ;;  %v1807_v41 = vpop.f32.mrf.mxu1  ;;  %3616 = vmatmul.mubr.bf16.gmra.mxu1 %v3310_v23  ;;  %v13421_v18 = vld [vmem:[%s18706_s5 + $0x270] sm:$0xff]   ;;  %v13424_v23 = vld [vmem:[%s18706_s5 + $0x338] sm:$0x3f]   ;;  %v2853_v16 = vsel %vm1366_vm1, %v2848_v4, %v2852_v22  ;;  %v3336_v14 = vrot.slane %v18883_v58, 3 }
 0x19e   : > { %11636 = vmatprep.mubr.msk.bf16.mxu0 %vm1314_vm0, %v2855_v59  ;;  %v15513_v45 = vadd.f32 %v1807_v41, %v1508_v48  ;;  %11692 = vmatprep.mubr.msk.bf16.mxu1 %vm1314_vm0, %v3322_v34  ;;  %v13423_v34 = vld [vmem:[%s18706_s5 + $0x2d0] sm:$0x3f]   ;;  %v3318_v2 = vsel %vm3276_vm5, %v3309_v44, %v3317_v26  ;;  %v3323_v48 = vrot.slane %v18807_v52, 2  ;;  %v3330_v27 = vsel %vm3276_vm5, %v3321_v10, %v3329_v63  ;;  %v18884_v10 = vld [vmem:[#allocation39_spill] sm:$0xff] }
 0x19f   : > { %v1510_v51 = vpop.f32.mrf.mxu0  ;;  %4015 = vmatpush1.bf16.msra.mxu0 %v13419_v17  ;;  %v1809_v25 = vpop.f32.mrf.mxu1  ;;  %4526 = vmatpush1.bf16.msra.mxu1 %v13420_v24  ;;  %v2859_v24 = vsel %vm1366_vm1, %v2854_v21, %v2858_v47  ;;  %v18881_v41 = vld [vmem:[#allocation41_spill] sm:$0xff]  ;;  %v4000_v4 = vsel %vm1366_vm1, %v13423_v34, 0  ;;  %v4511_v21 = vsel %vm1366_vm1, %v13424_v23, 0 }
 0x1a0   : > { %18879 = vst [vmem:[#allocation108_spill] sm:$0xff] %v15513_v45  ;;  %4016 = vmatprep.subr.bf16.mxu0 %v18755_v12  ;;  %4527 = vmatprep.subr.bf16.mxu1 %v18755_v12  ;;  %v3324_v51 = vrot.slane %v18881_v41, 3  ;;  %v18882_v45 = vld [vmem:[#allocation50_spill] sm:$0xff] }
 0x1a1   : > { %v1511_v7 = vpop.f32.mrf.mxu0  ;;  %v1810_v25 = vpop.f32.mrf.mxu1  ;;  %v3335_v39 = vrot.slane %v18882_v45, 2 }
 0x1a2   : > { %v15533_v59 = vadd.f32 %v1810_v25, %v1511_v7 }
 0x1a3   : > { %v1513_v17 = vpop.f32.mrf.mxu0  ;;  %4017 = vmatpush1.bf16.msra.mxu0 %v13421_v18  ;;  %v1812_v56 = vpop.f32.mrf.mxu1  ;;  %4528 = vmatpush1.bf16.msra.mxu1 %v13422_v53  ;;  %v3325_v53 = vor.u32 %v3324_v51, %v3323_v48  ;;  %v3337_v58 = vor.u32 %v3336_v14, %v3335_v39  ;;  %v18887_v51 = vld [vmem:[#allocation54_spill] sm:$0xff] }
 0x1a4   : > { %4024 = vmatprep.subr.bf16.mxu0 %v18755_v12  ;;  %4535 = vmatprep.subr.bf16.mxu1 %v18755_v12  ;;  %v2856_v56 = vrot.slane %v18884_v10, 2  ;;  %v18886_v17 = vld [vmem:[#allocation40_spill] sm:$0xff] }
 0x1a5   : > { %v1516_v44 = vpop.f32.mrf.mxu0  ;;  %3113 = vmatmul.mubr.bf16.gmra.mxu0 %v2853_v16  ;;  %v1815_v7 = vpop.f32.mrf.mxu1  ;;  %3624 = vmatmul.mubr.bf16.gmra.mxu1 %v3318_v2  ;;  %v2862_v34 = vrot.slane %v18886_v17, 2  ;;  %v13425_v16 = vld [vmem:[%s18706_s5 + $0x2c8] sm:$0xff]   ;;  %v13426_v2 = vld [vmem:[%s18706_s5 + $0x330] sm:$0xff]   ;;  %v3326_v39 = vsel %vm3276_vm5, %v3317_v26, %v3325_v53  ;;  %v3338_v10 = vsel %vm3276_vm5, %v3329_v63, %v3337_v58  ;;  %v18892_v63 = vld [vmem:[#allocation43_spill] sm:$0xff] }
 0x1a6   : > { %11637 = vmatprep.mubr.msk.bf16.mxu0 %vm1314_vm0, %v2859_v24  ;;  %v15547_v18 = vadd.f32 %v1815_v7, %v1516_v44  ;;  %11693 = vmatprep.mubr.msk.bf16.mxu1 %vm1314_vm0, %v3330_v27  ;;  %v2857_v48 = vsel %vm1366_vm1, %v2852_v22, %v2856_v56  ;;  %v18888_v44 = vld [vmem:[#allocation47_spill] sm:$0xff]  ;;  %v13428_v26 = vld [vmem:[%s18706_s5 + $0x328] sm:$0xff]  }
 0x1a7   : > { %v1518_v25 = vpop.f32.mrf.mxu0  ;;  %4025 = vmatpush2.bf16.msra.mxu0 %v4000_v4  ;;  %v1817_v23 = vpop.f32.mrf.mxu1  ;;  %4536 = vmatpush2.bf16.msra.mxu1 %v4511_v21  ;;  %v3331_v4 = vrot.slane %v18887_v51, 2  ;;  %v3332_v7 = vrot.slane %v18888_v44, 3  ;;  %v2863_v21 = vsel %vm1366_vm1, %v2858_v47, %v2862_v34  ;;  %v18890_v22 = vld [vmem:[#allocation55_spill] sm:$0xff] }
 0x1a8   : > { %18885 = vst [vmem:[#allocation109_spill] sm:$0xff] %v15547_v18  ;;  %4026 = vmatprep.subr.bf16.mxu0 %v18755_v12  ;;  %4537 = vmatprep.subr.bf16.mxu1 %v18755_v12  ;;  %v13427_v23 = vld [vmem:[%s18706_s5 + $0x2c0] sm:$0xff]   ;;  %v3343_v18 = vrot.slane %v18890_v22, 2 }
 0x1a9   : > { %v1519_v24 = vpop.f32.mrf.mxu0  ;;  %v1818_v27 = vpop.f32.mrf.mxu1  ;;  %v18891_v51 = vld [vmem:[#allocation51_spill] sm:$0xff] }
 0x1aa   : > { %v15562_v25 = vadd.f32 %v1818_v27, %v1519_v24  ;;  %v3344_v45 = vrot.slane %v18891_v51, 3  ;;  %v3333_v24 = vor.u32 %v3332_v7, %v3331_v4  ;;  %v13430_v4 = vld [vmem:[%s18706_s5 + $0x320] sm:$0xff]  }
 0x1ab   : > { %v1521_v14 = vpop.f32.mrf.mxu0  ;;  %4027 = vmatpush2.bf16.msra.mxu0 %v13425_v16  ;;  %v1820_v17 = vpop.f32.mrf.mxu1  ;;  %4538 = vmatpush2.bf16.msra.mxu1 %v13426_v2 }
 0x1ac   : > { %18889 = vst [vmem:[#allocation110_spill] sm:$0xff] %v15562_v25  ;;  %4028 = vmatprep.subr.bf16.mxu0 %v18755_v12  ;;  %4539 = vmatprep.subr.bf16.mxu1 %v18755_v12  ;;  %v2860_v17 = vrot.slane %v18892_v63, 2  ;;  %v18894_v14 = vld [vmem:[#allocation46_spill] sm:$0xff]  ;;  %v3345_v44 = vor.u32 %v3344_v45, %v3343_v18  ;;  %v18896_v18 = vld [vmem:[#allocation59_spill] sm:$0xff] }
 0x1ad   : > { %v1524_v47 = vpop.f32.mrf.mxu0  ;;  %3121 = vmatmul.mubr.bf16.gmra.mxu0 %v2857_v48  ;;  %v1823_v16 = vpop.f32.mrf.mxu1  ;;  %3632 = vmatmul.mubr.bf16.gmra.mxu1 %v3326_v39  ;;  %v2866_v51 = vrot.slane %v18894_v14, 2  ;;  %v13429_v48 = vld [vmem:[%s18706_s5 + $0x2b8] sm:$0xff]  }
 0x1ae   : > { %11638 = vmatprep.mubr.msk.bf16.mxu0 %vm1314_vm0, %v2863_v21  ;;  %v15579_v27 = vadd.f32 %v1823_v16, %v1524_v47  ;;  %11694 = vmatprep.mubr.msk.bf16.mxu1 %vm1314_vm0, %v3338_v10  ;;  %v2861_v39 = vsel %vm1366_vm1, %v2856_v56, %v2860_v17  ;;  %v3334_v21 = vsel %vm3276_vm5, %v3325_v53, %v3333_v24  ;;  %v18898_v56 = vld [vmem:[#allocation63_spill] sm:$0xff]  ;;  %v18899_v53 = vld [vmem:[#allocation58_spill] sm:$0xff] }
 0x1af   : > { %v1526_v2 = vpop.f32.mrf.mxu0  ;;  %4029 = vmatpush2.bf16.msra.mxu0 %v13427_v23  ;;  %v1825_v22 = vpop.f32.mrf.mxu1  ;;  %4540 = vmatpush2.bf16.msra.mxu1 %v13428_v26  ;;  %v2867_v45 = vsel %vm1366_vm1, %v2862_v34, %v2866_v51  ;;  %v18897_v26 = vld [vmem:[#allocation52_spill] sm:$0xff]  ;;  %v3346_v63 = vsel %vm3276_vm5, %v3337_v58, %v3345_v44  ;;  %v13432_v34 = vld [vmem:[%s18706_s5 + $0x318] sm:$0xff]  }
 0x1b0   : > { %18893 = vst [vmem:[#allocation111_spill] sm:$0xff] %v15579_v27  ;;  %4030 = vmatprep.subr.bf16.mxu0 %v18755_v12  ;;  %4541 = vmatprep.subr.bf16.mxu1 %v18755_v12  ;;  %v3339_v22 = vrot.slane %v18896_v18, 2  ;;  %v3340_v16 = vrot.slane %v18897_v26, 3  ;;  %v13431_v2 = vld [vmem:[%s18706_s5 + $0x2b0] sm:$0xff]   ;;  %v3351_v27 = vrot.slane %v18898_v56, 2  ;;  %v18900_v58 = vld [vmem:[#allocation48_spill] sm:$0xff] }
 0x1b1   : > { %v1527_v7 = vpop.f32.mrf.mxu0  ;;  %v1826_v10 = vpop.f32.mrf.mxu1  ;;  %v18902_v56 = vld [vmem:[#allocation53_spill] sm:$0xff] }
 0x1b2   : > { %v15593_v23 = vadd.f32 %v1826_v10, %v1527_v7  ;;  %v3352_v7 = vrot.slane %v18899_v53, 3  ;;  %v2870_v26 = vrot.slane %v18902_v56, 2 }
 0x1b3   : > { %v1529_v47 = vpop.f32.mrf.mxu0  ;;  %4031 = vmatpush2.bf16.msra.mxu0 %v13429_v48  ;;  %v1828_v14 = vpop.f32.mrf.mxu1  ;;  %4542 = vmatpush2.bf16.msra.mxu1 %v13430_v4  ;;  %v3341_v4 = vor.u32 %v3340_v16, %v3339_v22  ;;  %v18903_v22 = vld [vmem:[#allocation64_spill] sm:$0xff] }
 0x1b4   : > { %18895 = vst [vmem:[#allocation112_spill] sm:$0xff] %v15593_v23  ;;  %4032 = vmatprep.subr.bf16.mxu0 %v18755_v12  ;;  %4543 = vmatprep.subr.bf16.mxu1 %v18755_v12  ;;  %v2864_v14 = vrot.slane %v18900_v58, 2  ;;  %v3353_v23 = vor.u32 %v3352_v7, %v3351_v27  ;;  %v3347_v16 = vrot.slane %v18903_v22, 2  ;;  %v18905_v7 = vld [vmem:[#allocation69_spill] sm:$0xff] }
 0x1b5   : > { %v1532_v10 = vpop.f32.mrf.mxu0  ;;  %3129 = vmatmul.mubr.bf16.gmra.mxu0 %v2861_v39  ;;  %v1831_v48 = vpop.f32.mrf.mxu1  ;;  %3640 = vmatmul.mubr.bf16.gmra.mxu1 %v3334_v21 }
 0x1b6   : > { %11639 = vmatprep.mubr.msk.bf16.mxu0 %vm1314_vm0, %v2867_v45  ;;  %v15611_v47 = vadd.f32 %v1831_v48, %v1532_v10  ;;  %11695 = vmatprep.mubr.msk.bf16.mxu1 %vm1314_vm0, %v3346_v63  ;;  %v2865_v45 = vsel %vm1366_vm1, %v2860_v17, %v2864_v14  ;;  %v2871_v63 = vsel %vm1366_vm1, %v2866_v51, %v2870_v26  ;;  %v18904_v48 = vld [vmem:[#allocation60_spill] sm:$0xff] }
 0x1b7   : > { %v1534_v53 = vpop.f32.mrf.mxu0  ;;  %4033 = vmatpush2.bf16.msra.mxu0 %v13431_v2  ;;  %v1833_v18 = vpop.f32.mrf.mxu1  ;;  %4544 = vmatpush2.bf16.msra.mxu1 %v13432_v34  ;;  %v3348_v2 = vrot.slane %v18904_v48, 3  ;;  %v3354_v27 = vsel %vm3276_vm5, %v3345_v44, %v3353_v23  ;;  %v3359_v34 = vrot.slane %v18905_v7, 2  ;;  %v18908_v51 = vld [vmem:[#allocation56_spill] sm:$0xff]  ;;  %v18909_v48 = vld [vmem:[#allocation57_spill] sm:$0xff] }
 0x1b8   : > { %18901 = vst [vmem:[#allocation113_spill] sm:$0xff] %v15611_v47  ;;  %4923 = vmatprep.subr.bf16.mxu0 %v18755_v12  ;;  %5552 = vmatprep.subr.bf16.mxu1 %v18755_v12  ;;  %v3342_v53 = vsel %vm3276_vm5, %v3333_v24, %v3341_v4  ;;  %v2868_v24 = vrot.slane %v18908_v51, 2  ;;  %v2874_v44 = vrot.slane %v18909_v48, 2  ;;  %v18911_v51 = vld [vmem:[#allocation75_spill] sm:$0xff] }
 0x1b9   : > { %v1535_v39 = vpop.f32.mrf.mxu0  ;;  %v1834_v21 = vpop.f32.mrf.mxu1 }
 0x1ba   : > { %v18906_v39 = vld [vmem:[#allocation61_spill] sm:$0xff] }
 0x1bb   : > { %v1536_v10 = vpop.f32.mrf.mxu0  ;;  %v1835_v18 = vpop.f32.mrf.mxu1  ;;  %v3360_v56 = vrot.slane %v18906_v39, 3  ;;  %v18907_v21 = vld [vmem:[#allocation49_spill] sm:$0xff] }
 0x1bc   : > { %v3349_v18 = vor.u32 %v3348_v2, %v3347_v16  ;;  %v18912_v16 = vld [vmem:[#allocation65_spill] sm:$0xff] }
 0x1bd   : > { %v2118_v58 = vpop.f32.mrf.mxu0  ;;  %3137 = vmatmul.mubr.bf16.gmra.mxu0 %v2865_v45  ;;  %v2639_v10 = vpop.f32.mrf.mxu1  ;;  %3648 = vmatmul.mubr.bf16.gmra.mxu1 %v3342_v53  ;;  %v3361_v39 = vor.u32 %v3360_v56, %v3359_v34  ;;  %v18910_v45 = vld [vmem:[#allocation97_spill] sm:$0xff]  ;;  %v2869_v53 = vsel %vm1366_vm1, %v2864_v14, %v2868_v24  ;;  %v3356_v2 = vrot.slane %v18912_v16, 3 }
 0x1be   : > { %v2252_v17 = vadd.f32 %v2118_v58, %v18907_v21  ;;  %11640 = vmatprep.mubr.msk.bf16.mxu0 %vm1314_vm0, %v2871_v63  ;;  %11696 = vmatprep.mubr.msk.bf16.mxu1 %vm1314_vm0, %v3354_v27  ;;  %v3350_v63 = vsel %vm3276_vm5, %v3341_v4, %v3349_v18  ;;  %v3355_v27 = vrot.slane %v18911_v51, 2 }
 0x1bf   : > { %v2120_v22 = vpop.f32.mrf.mxu0  ;;  %v2641_v7 = vpop.f32.mrf.mxu1  ;;  %v3362_v56 = vsel %vm3276_vm5, %v3353_v23, %v3361_v39 }
 0x1c0   : > { %v15630_v47 = vadd.f32 %v2639_v10, %v2252_v17  ;;  %v2875_v22 = vsel %vm1366_vm1, %v2870_v26, %v2874_v44  ;;  %v18913_v7 = vld [vmem:[#allocation76_spill] sm:$0xff]  ;;  %v2872_v26 = vrot.slane %v14804_v37, 2  ;;  %v18917_v37 = vld [vmem:[#allocation81_spill] sm:$0xff] }
 0x1c1   : > { %v2121_v25 = vpop.f32.mrf.mxu0  ;;  %v2642_v58 = vpop.f32.mrf.mxu1  ;;  %v3367_v34 = vrot.slane %v18913_v7, 2 }
 0x1c2   : > { %v2253_v41 = vadd.f32 %v2121_v25, %v18910_v45  ;;  %v18914_v25 = vld [vmem:[#allocation70_spill] sm:$0xff] }
 0x1c3   : > { %v2123_v21 = vpop.f32.mrf.mxu0  ;;  %v2644_v17 = vpop.f32.mrf.mxu1  ;;  %v3368_v10 = vrot.slane %v18914_v25, 3 }
 0x1c4   : > { %v15638_v48 = vadd.f32 %v2642_v58, %v2253_v41  ;;  %v3357_v41 = vor.u32 %v3356_v2, %v3355_v27  ;;  %v18915_v58 = vld [vmem:[#allocation66_spill] sm:$0xff]  ;;  %v18918_v27 = vld [vmem:[#allocation71_spill] sm:$0xff] }
 0x1c5   : > { %v2126_v45 = vpop.f32.mrf.mxu0  ;;  %3145 = vmatmul.mubr.bf16.gmra.mxu0 %v2869_v53  ;;  %v2647_v4 = vpop.f32.mrf.mxu1  ;;  %3656 = vmatmul.mubr.bf16.gmra.mxu1 %v3350_v63  ;;  %v2878_v23 = vrot.slane %v18915_v58, 2  ;;  %v3369_v25 = vor.u32 %v3368_v10, %v3367_v34  ;;  %v2873_v63 = vsel %vm1366_vm1, %v2868_v24, %v2872_v26  ;;  %v3364_v2 = vrot.slane %v18918_v27, 3  ;;  %v18920_v34 = vld [vmem:[#allocation82_spill] sm:$0xff] }
 0x1c6   : > { %v2254_v14 = vadd.f32 %v2126_v45, %v15253_v62  ;;  %11641 = vmatprep.mubr.msk.bf16.mxu0 %vm1314_vm0, %v2875_v22  ;;  %11697 = vmatprep.mubr.msk.bf16.mxu1 %vm1314_vm0, %v3362_v56  ;;  %v3358_v22 = vsel %vm3276_vm5, %v3349_v18, %v3357_v41  ;;  %v3363_v56 = vrot.slane %v18917_v37, 2  ;;  %v3375_v10 = vrot.slane %v18920_v34, 2  ;;  %v18922_v24 = vld [vmem:[#allocation98_spill] sm:$0xff] }
 0x1c7   : > { %v2128_v21 = vpop.f32.mrf.mxu0  ;;  %v2649_v7 = vpop.f32.mrf.mxu1 }
 0x1c8   : > { %v15648_v17 = vadd.f32 %v2647_v4, %v2254_v14  ;;  %v2879_v21 = vsel %vm1366_vm1, %v2874_v44, %v2878_v23  ;;  %v3370_v7 = vsel %vm3276_vm5, %v3361_v39, %v3369_v25  ;;  %v18923_v44 = vld [vmem:[#allocation67_spill] sm:$0xff] }
 0x1c9   : > { %v2129_v16 = vpop.f32.mrf.mxu0  ;;  %v2650_v62 = vpop.f32.mrf.mxu1  ;;  %v2876_v37 = vrot.slane %v18923_v44, 2  ;;  %v18926_v44 = vld [vmem:[#allocation85_spill] sm:$0xff] }
 0x1ca   : > { %18916 = vst [vmem:[#allocation49_spill] sm:$0xff] %v15648_v17  ;;  %v2255_v53 = vadd.f32 %v2129_v16, %v15260_v54  ;;  %v18921_v54 = vld [vmem:[#allocation72_spill] sm:$0xff] }
 0x1cb   : > { %v2131_v45 = vpop.f32.mrf.mxu0  ;;  %v2652_v14 = vpop.f32.mrf.mxu1  ;;  %v3376_v16 = vrot.slane %v18921_v54, 3 }
 0x1cc   : > { %v15656_v58 = vadd.f32 %v2650_v62, %v2255_v53  ;;  %v3365_v53 = vor.u32 %v3364_v2, %v3363_v56  ;;  %v18924_v62 = vld [vmem:[#allocation68_spill] sm:$0xff]  ;;  %v18927_v56 = vld [vmem:[#allocation77_spill] sm:$0xff] }
 0x1cd   : > { %v2134_v4 = vpop.f32.mrf.mxu0  ;;  %3153 = vmatmul.mubr.bf16.gmra.mxu0 %v2873_v63  ;;  %v2655_v18 = vpop.f32.mrf.mxu1  ;;  %3664 = vmatmul.mubr.bf16.gmra.mxu1 %v3358_v22  ;;  %v2882_v39 = vrot.slane %v18924_v62, 2  ;;  %v3377_v54 = vor.u32 %v3376_v16, %v3375_v10  ;;  %v18925_v63 = vld [vmem:[#allocation99_spill] sm:$0xff]  ;;  %v2877_v22 = vsel %vm1366_vm1, %v2872_v26, %v2876_v37  ;;  %v3372_v2 = vrot.slane %v18927_v56, 3  ;;  %v18928_v10 = vld [vmem:[#allocation86_spill] sm:$0xff] }
 0x1ce   : > { %18919 = vst [vmem:[#allocation97_spill] sm:$0xff] %v15656_v58  ;;  %v2256_v45 = vadd.f32 %v2134_v4, %v18922_v24  ;;  %11642 = vmatprep.mubr.msk.bf16.mxu0 %vm1314_vm0, %v2879_v21  ;;  %11698 = vmatprep.mubr.msk.bf16.mxu1 %vm1314_vm0, %v3370_v7  ;;  %v3366_v21 = vsel %vm3276_vm5, %v3357_v41, %v3365_v53  ;;  %v3371_v7 = vrot.slane %v18926_v44, 2  ;;  %v3383_v16 = vrot.slane %v18928_v10, 2 }
 0x1cf   : > { %v2136_v27 = vpop.f32.mrf.mxu0  ;;  %v2657_v34 = vpop.f32.mrf.mxu1 }
 0x1d0   : > { %v15666_v14 = vadd.f32 %v2655_v18, %v2256_v45  ;;  %v2883_v27 = vsel %vm1366_vm1, %v2878_v23, %v2882_v39  ;;  %v3378_v34 = vsel %vm3276_vm5, %v3369_v25, %v3377_v54  ;;  %v2880_v23 = vrot.slane %v14866_v3, 2  ;;  %v18930_v3 = vld [vmem:[#allocation91_spill] sm:$0xff] }
 0x1d1   : > { %v2137_v58 = vpop.f32.mrf.mxu0  ;;  %v2658_v4 = vpop.f32.mrf.mxu1  ;;  %v2886_v25 = vrot.slane %v18845_v35, 2 }
 0x1d2   : > { %v2257_v17 = vadd.f32 %v2137_v58, %v18925_v63  ;;  %v18929_v58 = vld [vmem:[#allocation78_spill] sm:$0xff] }
 0x1d3   : > { %v2139_v24 = vpop.f32.mrf.mxu0  ;;  %v2660_v45 = vpop.f32.mrf.mxu1  ;;  %v3384_v18 = vrot.slane %v18929_v58, 3 }
 0x1d4   : > { %v15674_v62 = vadd.f32 %v2658_v4, %v2257_v17  ;;  %v3373_v17 = vor.u32 %v3372_v2, %v3371_v7  ;;  %v18931_v7 = vld [vmem:[#allocation83_spill] sm:$0xff] }
 0x1d5   : > { %v2142_v63 = vpop.f32.mrf.mxu0  ;;  %3161 = vmatmul.mubr.bf16.gmra.mxu0 %v2877_v22  ;;  %v2663_v41 = vpop.f32.mrf.mxu1  ;;  %3672 = vmatmul.mubr.bf16.gmra.mxu1 %v3366_v21  ;;  %v3385_v58 = vor.u32 %v3384_v18, %v3383_v16  ;;  %v2881_v21 = vsel %vm1366_vm1, %v2876_v37, %v2880_v23  ;;  %v3380_v2 = vrot.slane %v18931_v7, 3  ;;  %v18933_v18 = vld [vmem:[#allocation92_spill] sm:$0xff] }
 0x1d6   : > { %v2258_v26 = vadd.f32 %v2142_v63, %v15285_v28  ;;  %11643 = vmatprep.mubr.msk.bf16.mxu0 %vm1314_vm0, %v2883_v27  ;;  %11699 = vmatprep.mubr.msk.bf16.mxu1 %vm1314_vm0, %v3378_v34  ;;  %v3374_v27 = vsel %vm3276_vm5, %v3365_v53, %v3373_v17  ;;  %v3379_v34 = vrot.slane %v18930_v3, 2  ;;  %v18935_v37 = vld [vmem:[#allocation100_spill] sm:$0xff] }
 0x1d7   : > { %v2144_v24 = vpop.f32.mrf.mxu0  ;;  %v2665_v45 = vpop.f32.mrf.mxu1  ;;  %v3386_v16 = vsel %vm3276_vm5, %v3377_v54, %v3385_v58 }
 0x1d8   : > { %v15684_v4 = vadd.f32 %v2663_v41, %v2258_v26  ;;  %v2887_v24 = vsel %vm1366_vm1, %v2882_v39, %v2886_v25  ;;  %v3391_v41 = vrot.slane %v18933_v18, 2  ;;  %v18936_v39 = vld [vmem:[#allocation79_spill] sm:$0xff] }
 0x1d9   : > { %v2145_v10 = vpop.f32.mrf.mxu0  ;;  %v2666_v28 = vpop.f32.mrf.mxu1  ;;  %v2884_v3 = vrot.slane %v18936_v39, 2  ;;  %v18938_v39 = vld [vmem:[#allocation95_spill] sm:$0xff] }
 0x1da   : > { %v2259_v22 = vadd.f32 %v2145_v10, %v15292_v9  ;;  %v18934_v9 = vld [vmem:[#allocation84_spill] sm:$0xff] }
 0x1db   : > { %v2147_v63 = vpop.f32.mrf.mxu0  ;;  %v2668_v26 = vpop.f32.mrf.mxu1  ;;  %v3392_v10 = vrot.slane %v18934_v9, 3 }
 0x1dc   : > { %v15692_v35 = vadd.f32 %v2666_v28, %v2259_v22  ;;  %v3381_v22 = vor.u32 %v3380_v2, %v3379_v34  ;;  %v18937_v28 = vld [vmem:[#allocation80_spill] sm:$0xff]  ;;  %v18939_v34 = vld [vmem:[#allocation89_spill] sm:$0xff] }
 0x1dd   : > { %v2150_v45 = vpop.f32.mrf.mxu0  ;;  %3169 = vmatmul.mubr.bf16.gmra.mxu0 %v2881_v21  ;;  %v2671_v53 = vpop.f32.mrf.mxu1  ;;  %3680 = vmatmul.mubr.bf16.gmra.mxu1 %v3374_v27  ;;  %v2890_v54 = vrot.slane %v18937_v28, 2  ;;  %v3393_v9 = vor.u32 %v3392_v10, %v3391_v41  ;;  %v2885_v27 = vsel %vm1366_vm1, %v2880_v23, %v2884_v3  ;;  %v3388_v2 = vrot.slane %v18939_v34, 3  ;;  %v18941_v41 = vld [vmem:[#allocation96_spill] sm:$0xff]  ;;  %v18943_v23 = vld [vmem:[#allocation102_spill] sm:$0xff] }
 0x1de   : > { %18932 = vst [vmem:[#allocation75_spill] sm:$0xff] %v15692_v35  ;;  %v2260_v63 = vadd.f32 %v2150_v45, %v18935_v37  ;;  %11644 = vmatprep.mubr.msk.bf16.mxu0 %vm1314_vm0, %v2887_v24  ;;  %11700 = vmatprep.mubr.msk.bf16.mxu1 %vm1314_vm0, %v3386_v16  ;;  %v3382_v24 = vsel %vm3276_vm5, %v3373_v17, %v3381_v22  ;;  %v3387_v16 = vrot.slane %v18938_v39, 2  ;;  %v3399_v10 = vrot.slane %v18941_v41, 2 }
 0x1df   : > { %v2152_v7 = vpop.f32.mrf.mxu0  ;;  %v2673_v18 = vpop.f32.mrf.mxu1 }
 0x1e0   : > { %v15702_v26 = vadd.f32 %v2671_v53, %v2260_v63  ;;  %v2891_v7 = vsel %vm1366_vm1, %v2886_v25, %v2890_v54  ;;  %v3394_v18 = vsel %vm3276_vm5, %v3385_v58, %v3393_v9  ;;  %v18944_v25 = vld [vmem:[#allocation87_spill] sm:$0xff] }
 0x1e1   : > { %v2153_v35 = vpop.f32.mrf.mxu0  ;;  %v2674_v45 = vpop.f32.mrf.mxu1  ;;  %v2888_v39 = vrot.slane %v18944_v25, 2 }
 0x1e2   : > { %v2261_v21 = vadd.f32 %v2153_v35, %v15308_v38  ;;  %v18942_v38 = vld [vmem:[#allocation90_spill] sm:$0xff] }
 0x1e3   : > { %v2155_v37 = vpop.f32.mrf.mxu0  ;;  %v2676_v63 = vpop.f32.mrf.mxu1  ;;  %v3400_v35 = vrot.slane %v18942_v38, 3 }
 0x1e4   : > { %v15710_v28 = vadd.f32 %v2674_v45, %v2261_v21  ;;  %v3389_v21 = vor.u32 %v3388_v2, %v3387_v16  ;;  %v18945_v45 = vld [vmem:[#allocation88_spill] sm:$0xff]  ;;  %v18946_v16 = vld [vmem:[#allocation94_spill] sm:$0xff] }
 0x1e5   : > { %v2158_v53 = vpop.f32.mrf.mxu0  ;;  %3177 = vmatmul.mubr.bf16.gmra.mxu0 %v2885_v27  ;;  %v2679_v17 = vpop.f32.mrf.mxu1  ;;  %3688 = vmatmul.mubr.bf16.gmra.mxu1 %v3382_v24  ;;  %v2894_v58 = vrot.slane %v18945_v45, 2  ;;  %v3401_v38 = vor.u32 %v3400_v35, %v3399_v10  ;;  %v2889_v24 = vsel %vm1366_vm1, %v2884_v3, %v2888_v39  ;;  %v3396_v2 = vrot.slane %v18946_v16, 3 }
 0x1e6   : > { %18940 = vst [vmem:[#allocation98_spill] sm:$0xff] %v15710_v28  ;;  %v2262_v37 = vadd.f32 %v2158_v53, %v18943_v23  ;;  %11645 = vmatprep.mubr.msk.bf16.mxu0 %vm1314_vm0, %v2891_v7  ;;  %11701 = vmatprep.mubr.msk.bf16.mxu1 %vm1314_vm0, %v3394_v18  ;;  %v3390_v7 = vsel %vm3276_vm5, %v3381_v22, %v3389_v21  ;;  %v3395_v18 = vrot.slane %v14990_v33, 2  ;;  %v3407_v10 = vrot.slane %v15326_v55, 2 }
 0x1e7   : > { %v2160_v34 = vpop.f32.mrf.mxu0  ;;  %v2681_v41 = vpop.f32.mrf.mxu1 }
 0x1e8   : > { %v15720_v63 = vadd.f32 %v2679_v17, %v2262_v37  ;;  %v2895_v34 = vsel %vm1366_vm1, %v2890_v54, %v2894_v58  ;;  %v3402_v41 = vsel %vm3276_vm5, %v3393_v9, %v3401_v38  ;;  %v18948_v54 = vld [vmem:[#allocation93_spill] sm:$0xff] }
 0x1e9   : > { %v2161_v28 = vpop.f32.mrf.mxu0  ;;  %v2682_v53 = vpop.f32.mrf.mxu1  ;;  %v2892_v17 = vrot.slane %v18948_v54, 2 }
 0x1ea   : > { %v2263_v27 = vadd.f32 %v2161_v28, %v15336_v32  ;;  %v18947_v32 = vld [vmem:[#allocation104_spill] sm:$0xff] }
 0x1eb   : > { %v2163_v23 = vpop.f32.mrf.mxu0  ;;  %v2684_v37 = vpop.f32.mrf.mxu1  ;;  %v3408_v28 = vrot.slane %v18947_v32, 3 }
 0x1ec   : > { %v15728_v45 = vadd.f32 %v2682_v53, %v2263_v27  ;;  %v3397_v27 = vor.u32 %v3396_v2, %v3395_v18  ;;  %v18949_v53 = vld [vmem:[#allocation101_spill] sm:$0xff]  ;;  %v3404_v18 = vrot.slane %v15350_v1, 3 }
 0x1ed   : > { %v2166_v35 = vpop.f32.mrf.mxu0  ;;  %3185 = vmatmul.mubr.bf16.gmra.mxu0 %v2889_v24  ;;  %v2687_v22 = vpop.f32.mrf.mxu1  ;;  %3696 = vmatmul.mubr.bf16.gmra.mxu1 %v3390_v7  ;;  %v2898_v9 = vrot.slane %v18949_v53, 2  ;;  %v3409_v32 = vor.u32 %v3408_v28, %v3407_v10  ;;  %v2893_v7 = vsel %vm1366_vm1, %v2888_v39, %v2892_v17  ;;  %v18951_v39 = vld [vmem:[#allocation105_spill] sm:$0xff] }
 0x1ee   : > { %v2264_v3 = vadd.f32 %v2166_v35, %v15352_v60  ;;  %11646 = vmatprep.mubr.msk.bf16.mxu0 %vm1314_vm0, %v2895_v34  ;;  %11702 = vmatprep.mubr.msk.bf16.mxu1 %vm1314_vm0, %v3402_v41  ;;  %v3398_v34 = vsel %vm3276_vm5, %v3389_v21, %v3397_v27  ;;  %v3403_v41 = vrot.slane %v15347_v31, 2  ;;  %v2896_v21 = vrot.slane %v18951_v39, 2  ;;  %v18953_v39 = vld [vmem:[#allocation13_spill] sm:$0xff] }
 0x1ef   : > { %v2168_v23 = vpop.f32.mrf.mxu0  ;;  %v2689_v55 = vpop.f32.mrf.mxu1 }
 0x1f0   : > { %v15738_v37 = vadd.f32 %v2687_v22, %v2264_v3  ;;  %v2899_v23 = vsel %vm1366_vm1, %v2894_v58, %v2898_v9  ;;  %v3410_v55 = vsel %vm3276_vm5, %v3401_v38, %v3409_v32  ;;  %v3405_v22 = vor.u32 %v3404_v18, %v3403_v41  ;;  %v18954_v41 = vld [vmem:[#allocation21_spill] sm:$0xff] }
 0x1f1   : > { %v2169_v16 = vpop.f32.mrf.mxu0  ;;  %v2690_v60 = vpop.f32.mrf.mxu1  ;;  %v4241_v18 = vrot.slane %v18954_v41, 3  ;;  %v18958_v41 = vld [vmem:[#allocation19_spill] sm:$0xff] }
 0x1f2   : > { %v2265_v24 = vadd.f32 %v2169_v16, %v15357_v8  ;;  %v18950_v8 = vld [vmem:[#allocation107_spill] sm:$0xff] }
 0x1f3   : > { %v2171_v35 = vpop.f32.mrf.mxu0  ;;  %v2692_v3 = vpop.f32.mrf.mxu1 }
 0x1f4   : > { %v15746_v2 = vadd.f32 %v2690_v60, %v2265_v24 }
 0x1f5   : > { %v2174_v10 = vpop.f32.mrf.mxu0  ;;  %3193 = vmatmul.mubr.bf16.gmra.mxu0 %v2893_v7  ;;  %v2695_v28 = vpop.f32.mrf.mxu1  ;;  %3704 = vmatmul.mubr.bf16.gmra.mxu1 %v3398_v34  ;;  %v2897_v7 = vsel %vm1366_vm1, %v2892_v17, %v2896_v21  ;;  %v3406_v34 = vsel %vm3276_vm5, %v3397_v27, %v3405_v22  ;;  %v3791_v27 = vrot.slane %v18865_v43, 3 }
 0x1f6   : > { %v2266_v16 = vadd.f32 %v2174_v10, %v18950_v8  ;;  %11647 = vmatprep.mubr.msk.bf16.mxu0 %vm1314_vm0, %v2899_v23  ;;  %11703 = vmatprep.mubr.msk.bf16.mxu1 %vm1314_vm0, %v3410_v55  ;;  %v18952_v8 = vld [vmem:[#allocation12_spill] sm:$0xff]  ;;  %v4239_v55 = vrot.slane %v18953_v39, 4 }
 0x1f7   : > { %v2176_v58 = vpop.f32.mrf.mxu0  ;;  %v2697_v24 = vpop.f32.mrf.mxu1  ;;  %v4238_v23 = vrot.slane %v18952_v8, 3 }
 0x1f8   : > { %v15753_v35 = vadd.f32 %v2695_v28, %v2266_v16  ;;  %v18955_v16 = vld [vmem:[#allocation14_spill] sm:$0xff] }
 0x1f9   : > { %v2177_v60 = vpop.f32.mrf.mxu0  ;;  %v2698_v3 = vpop.f32.mrf.mxu1  ;;  %v4242_v28 = vrot.slane %v18955_v16, 4  ;;  %v4240_v8 = vor.u32 %v4239_v55, %v4238_v23 }
 0x1fa   : > { %v2267_v38 = vadd.f32 %v2177_v60, %v15371_v30 }
 0x1fb   : > { %v2179_v10 = vpop.f32.mrf.mxu0  ;;  %v2700_v58 = vpop.f32.mrf.mxu1 }
 0x1fc   : > { %v15759_v1 = vadd.f32 %v2698_v3, %v2267_v38  ;;  %v18956_v38 = vld [vmem:[#allocation11_spill] sm:$0xff]  ;;  %v4243_v58 = vor.u32 %v4242_v28, %v4241_v18  ;;  %v18962_v18 = vld [vmem:[#allocation24_spill] sm:$0xff] }
 0x1fd   : > { %v2182_v24 = vpop.f32.mrf.mxu0  ;;  %3201 = vmatmul.mubr.bf16.gmra.mxu0 %v2897_v7  ;;  %v2703_v60 = vpop.f32.mrf.mxu1  ;;  %3712 = vmatmul.mubr.bf16.gmra.mxu1 %v3406_v34  ;;  %v3792_v3 = vrot.slane %v18956_v38, 3  ;;  %v4249_v28 = vrot.slane %v18962_v18, 3 }
 0x1fe   : > { %v2268_v30 = vadd.f32 %v2182_v24, %v15377_v29  ;;  %11648 = vmatprep.mubr.msk.bf16.mxu0 %vm1314_vm0, %v2898_v9  ;;  %11704 = vmatprep.mubr.msk.bf16.mxu1 %vm1314_vm0, %v3409_v32  ;;  %v4231_v9 = vrot.slane %v18958_v41, 3  ;;  %v18959_v24 = vld [vmem:[#allocation17_spill] sm:$0xff]  ;;  %v4244_v55 = vsel %vm4230_vm7, %v4240_v8, %v4243_v58 }
 0x1ff   : > { %v2184_v17 = vpop.f32.mrf.mxu0  ;;  %v2705_v10 = vpop.f32.mrf.mxu1  ;;  %v3793_v32 = vsel %vm3787_vm6, %v3791_v27, %v3792_v3  ;;  %v4232_v43 = vrot.slane %v18959_v24, 4 }
 0x200   : > { %v15769_v39 = vadd.f32 %v2703_v60, %v2268_v30  ;;  %v18960_v17 = vld [vmem:[#allocation23_spill] sm:$0xff]  ;;  %v18961_v30 = vld [vmem:[#allocation20_spill] sm:$0xff] }
 0x201   : > { %v2185_v7 = vpop.f32.mrf.mxu0  ;;  %v2706_v34 = vpop.f32.mrf.mxu1  ;;  %v4234_v38 = vrot.slane %v18960_v17, 3  ;;  %v4235_v60 = vrot.slane %v18961_v30, 4  ;;  %v18965_v17 = vld [vmem:[#allocation16_spill] sm:$0xff]  ;;  %v4233_v8 = vor.u32 %v4232_v43, %v4231_v9  ;;  %v4245_v9 = vrot.slane %v18869_v46, 3 }
 0x202   : > { %18957 = vst [vmem:[#allocation99_spill] sm:$0xff] %v15769_v39  ;;  %v2269_v29 = vadd.f32 %v2185_v7, %v15386_v15  ;;  %v18963_v15 = vld [vmem:[#allocation22_spill] sm:$0xff]  ;;  %v4246_v43 = vrot.slane %v14506_v0, 4 }
 0x203   : > { %v2187_v16 = vpop.f32.mrf.mxu0  ;;  %v2708_v23 = vpop.f32.mrf.mxu1  ;;  %v4250_v7 = vrot.slane %v18963_v15, 4  ;;  %v4236_v30 = vor.u32 %v4235_v60, %v4234_v38 }
 0x204   : > { %v15777_v10 = vadd.f32 %v2706_v34, %v2269_v29  ;;  %v18964_v16 = vld [vmem:[#allocation15_spill] sm:$0xff]  ;;  %v3789_v29 = vrot.slane %v18965_v17, 3  ;;  %v3796_v23 = vrot.slane %v18868_v6, 3 }
 0x205   : > { %v2190_v39 = vpop.f32.mrf.mxu0  ;;  %3209 = vmatmul.mubr.bf16.gmra.mxu0 %v2896_v21  ;;  %v2711_v27 = vpop.f32.mrf.mxu1  ;;  %3720 = vmatmul.mubr.bf16.gmra.mxu1 %v3405_v22  ;;  %v3788_v24 = vrot.slane %v18964_v16, 3  ;;  %v4251_v15 = vor.u32 %v4250_v7, %v4249_v28  ;;  %v4237_v17 = vsel %vm4230_vm7, %v4233_v8, %v4236_v30  ;;  %v13433_v6 = vld [vmem:[%s18706_s5 + $0x378] sm:$0xff]   ;;  %v4258_v28 = vrot.slane %v14514_v5, 4 }
 0x206   : > { %v2270_v41 = vadd.f32 %v2190_v39, %v15395_v50  ;;  %11744 = vmatprep.mubr.msk.bf16.mxu0 %vm1314_vm0, %v3793_v32  ;;  %11800 = vmatprep.mubr.msk.bf16.mxu1 %vm1314_vm0, %v4244_v55  ;;  %v4257_v55 = vrot.slane %v14553_v20, 3  ;;  %v4247_v20 = vor.u32 %v4246_v43, %v4245_v9  ;;  %v3800_v5 = vrot.slane %v14498_v61, 3  ;;  %v13437_v43 = vld [vmem:[%s18706_s5 + $0x368] sm:$0xff]  }
 0x207   : > { %v2192_v34 = vpop.f32.mrf.mxu0  ;;  %v2713_v21 = vpop.f32.mrf.mxu1  ;;  %v3790_v32 = vsel %vm3787_vm6, %v3788_v24, %v3789_v29  ;;  %v4254_v9 = vrot.slane %v14550_v19, 4  ;;  %v13438_v19 = vld [vmem:[%s18706_s5 + $0x3d0] sm:$0xff]  }
 0x208   : > { %v15788_v18 = vadd.f32 %v2711_v27, %v2270_v41  ;;  %v3797_v34 = vsel %vm3787_vm6, %v3792_v3, %v3796_v23  ;;  %v13434_v3 = vld [vmem:[%s18706_s5 + $0x3e0] sm:$0xff]   ;;  %v3794_v41 = vrot.slane %v14490_v57, 3  ;;  %v4259_v8 = vor.u32 %v4258_v28, %v4257_v55  ;;  %v13436_v57 = vld [vmem:[%s18706_s5 + $0x3d8] sm:$0xff]  }
 0x209   : > { %v2193_v50 = vpop.f32.mrf.mxu0  ;;  %v2714_v39 = vpop.f32.mrf.mxu1 }
 0x20a   : > { %v2271_v22 = vadd.f32 %v2193_v50, %v15401_v36  ;;  %v4252_v36 = vsel %vm4230_vm7, %v4243_v58, %v4251_v15  ;;  %v13435_v58 = vld [vmem:[%s18706_s5 + $0x370] sm:$0xff]  }
 0x20b   : > { %v2195_v16 = vpop.f32.mrf.mxu0  ;;  %v2716_v60 = vpop.f32.mrf.mxu1 }
 0x20c   : > { %v15799_v38 = vadd.f32 %v2714_v39, %v2271_v22  ;;  %v3795_v22 = vsel %vm3787_vm6, %v3789_v29, %v3794_v41  ;;  %v3801_v16 = vsel %vm3787_vm6, %v3796_v23, %v3800_v5  ;;  %v4260_v60 = vsel %vm4230_vm7, %v4251_v15, %v4259_v8 }
 0x20d   : > { %v2198_v46 = vpop.f32.mrf.mxu0  ;;  %4035 = vmatmul.mubr.bf16.vlgmr.msra.gmra.mxu0 %v3790_v32  ;;  %v2719_v7 = vpop.f32.mrf.mxu1  ;;  %4546 = vmatmul.mubr.bf16.vlgmr.msra.gmra.mxu1 %v4237_v17  ;;  %v4248_v32 = vsel %vm4230_vm7, %v4236_v30, %v4247_v20  ;;  %v18966_v17 = vld [vmem:[#allocation30_spill] sm:$0xff]  ;;  %v4265_v29 = vrot.slane %v14597_v49, 3  ;;  %v3798_v49 = vrot.slane %v14529_v11, 3  ;;  %v13440_v11 = vld [vmem:[%s18706_s5 + $0x3c8] sm:$0xff]  }
 0x20e   : > { %v2272_v0 = vadd.f32 %v2198_v46, %v15417_v13  ;;  %11745 = vmatprep.mubr.msk.bf16.mxu0 %vm1314_vm0, %v3797_v34  ;;  %11801 = vmatprep.mubr.msk.bf16.mxu1 %vm1314_vm0, %v4252_v36  ;;  %v4253_v34 = vrot.slane %v18966_v17, 3  ;;  %v18967_v36 = vld [vmem:[#allocation27_spill] sm:$0xff]  ;;  %v18968_v46 = vld [vmem:[#allocation25_spill] sm:$0xff] }
 0x20f   : > { %v2200_v27 = vpop.f32.mrf.mxu0  ;;  %4924 = vmatpush1.bf16.msra.mxu0 %v13433_v6  ;;  %v2721_v13 = vpop.f32.mrf.mxu1  ;;  %5553 = vmatpush1.bf16.msra.mxu1 %v13434_v3  ;;  %v4266_v30 = vrot.slane %v18967_v36, 4 }
 0x210   : > { %v15815_v24 = vadd.f32 %v2719_v7, %v2272_v0  ;;  %4925 = vmatprep.subr.bf16.mxu0 %v18755_v12  ;;  %5554 = vmatprep.subr.bf16.mxu1 %v18755_v12  ;;  %v4255_v3 = vor.u32 %v4254_v9, %v4253_v34  ;;  %v3804_v0 = vrot.slane %v18968_v46, 3  ;;  %v13439_v7 = vld [vmem:[%s18706_s5 + $0x360] sm:$0xff]  }
 0x211   : > { %v2201_v21 = vpop.f32.mrf.mxu0  ;;  %v2722_v50 = vpop.f32.mrf.mxu1  ;;  %v18971_v34 = vld [vmem:[#allocation31_spill] sm:$0xff] }
 0x212   : > { %v2273_v61 = vadd.f32 %v2201_v21, %v15432_v42  ;;  %v4262_v9 = vrot.slane %v18971_v34, 4  ;;  %v18978_v34 = vld [vmem:[#allocation42_spill] sm:$0xff] }
 0x213   : > { %v2203_v39 = vpop.f32.mrf.mxu0  ;;  %4926 = vmatpush1.bf16.msra.mxu0 %v13435_v58  ;;  %v2724_v42 = vpop.f32.mrf.mxu1  ;;  %5555 = vmatpush1.bf16.msra.mxu1 %v13436_v57  ;;  %v4267_v58 = vor.u32 %v4266_v30, %v4265_v29  ;;  %v18969_v57 = vld [vmem:[#allocation10_spill] sm:$0xff]  ;;  %v18973_v30 = vld [vmem:[#allocation32_spill] sm:$0xff] }
 0x214   : > { %v15831_v6 = vadd.f32 %v2722_v50, %v2273_v61  ;;  %4927 = vmatprep.subr.bf16.mxu0 %v18755_v12  ;;  %5556 = vmatprep.subr.bf16.mxu1 %v18755_v12  ;;  %v3799_v50 = vsel %vm3787_vm6, %v3794_v41, %v3798_v49  ;;  %v4256_v39 = vsel %vm4230_vm7, %v4247_v20, %v4255_v3  ;;  %v18972_v41 = vld [vmem:[#allocation37_spill] sm:$0xff]  ;;  %v4274_v20 = vrot.slane %v18973_v30, 4  ;;  %v18980_v30 = vld [vmem:[#allocation44_spill] sm:$0xff] }
 0x215   : > { %v2206_v23 = vpop.f32.mrf.mxu0  ;;  %4043 = vmatmul.mubr.bf16.gmra.mxu0 %v3795_v22  ;;  %v2727_v28 = vpop.f32.mrf.mxu1  ;;  %4554 = vmatmul.mubr.bf16.gmra.mxu1 %v4248_v32  ;;  %v3805_v32 = vsel %vm3787_vm6, %v3800_v5, %v3804_v0  ;;  %v4268_v29 = vsel %vm4230_vm7, %v4259_v8, %v4267_v58  ;;  %v4273_v36 = vrot.slane %v18972_v41, 3  ;;  %v13442_v5 = vld [vmem:[%s18706_s5 + $0x3c0] sm:$0xff]  }
 0x216   : > { %v2274_v55 = vadd.f32 %v2206_v23, %v15449_v40  ;;  %11746 = vmatprep.mubr.msk.bf16.mxu0 %vm1314_vm0, %v3801_v16  ;;  %11802 = vmatprep.mubr.msk.bf16.mxu1 %vm1314_vm0, %v4260_v60  ;;  %v18970_v16 = vld [vmem:[#allocation35_spill] sm:$0xff]  ;;  %v18974_v23 = vld [vmem:[#allocation18_spill] sm:$0xff]  ;;  %v18975_v8 = vld [vmem:[#allocation28_spill] sm:$0xff] }
 0x217   : > { %v2208_v15 = vpop.f32.mrf.mxu0  ;;  %4928 = vmatpush1.bf16.msra.mxu0 %v13437_v43  ;;  %v2729_v40 = vpop.f32.mrf.mxu1  ;;  %5557 = vmatpush1.bf16.msra.mxu1 %v13438_v19  ;;  %v4261_v17 = vrot.slane %v18970_v16, 3  ;;  %v13441_v43 = vld [vmem:[%s18706_s5 + $0x358] sm:$0xff]  }
 0x218   : > { %v15849_v27 = vadd.f32 %v2727_v28, %v2274_v55  ;;  %4929 = vmatprep.subr.bf16.mxu0 %v18755_v12  ;;  %5558 = vmatprep.subr.bf16.mxu1 %v18755_v12  ;;  %v3802_v15 = vrot.slane %v18975_v8, 3  ;;  %v18976_v40 = vld [vmem:[#allocation29_spill] sm:$0xff]  ;;  %v18982_v8 = vld [vmem:[#allocation108_spill] sm:$0xff] }
 0x219   : > { %v2209_v13 = vpop.f32.mrf.mxu0  ;;  %v2730_v61 = vpop.f32.mrf.mxu1 }
 0x21a   : > { %v2275_v21 = vadd.f32 %v2209_v13, %v18969_v57  ;;  %v13443_v13 = vld [vmem:[%s18706_s5 + $0x350] sm:$0xff]  }
 0x21b   : > { %v2211_v22 = vpop.f32.mrf.mxu0  ;;  %4930 = vmatpush1.bf16.msra.mxu0 %v13439_v7  ;;  %v2732_v60 = vpop.f32.mrf.mxu1  ;;  %5559 = vmatpush1.bf16.msra.mxu1 %v13440_v11  ;;  %v4263_v7 = vor.u32 %v4262_v9, %v4261_v17  ;;  %v3808_v11 = vrot.slane %v18976_v40, 3  ;;  %v3803_v17 = vsel %vm3787_vm6, %v3798_v49, %v3802_v15  ;;  %v4269_v9 = vrot.slane %v18978_v34, 3 }
 0x21c   : > { %v15865_v42 = vadd.f32 %v2730_v61, %v2275_v21  ;;  %4931 = vmatprep.subr.bf16.mxu0 %v18755_v12  ;;  %5560 = vmatprep.subr.bf16.mxu1 %v18755_v12  ;;  %v4275_v61 = vor.u32 %v4274_v20, %v4273_v36  ;;  %v4281_v20 = vrot.slane %v18980_v30, 3 }
 0x21d   : > { %v2214_v19 = vpop.f32.mrf.mxu0  ;;  %4051 = vmatmul.mubr.bf16.gmra.mxu0 %v3799_v50  ;;  %v2735_v28 = vpop.f32.mrf.mxu1  ;;  %4562 = vmatmul.mubr.bf16.gmra.mxu1 %v4256_v39  ;;  %v13444_v50 = vld [vmem:[%s18706_s5 + $0x3b8] sm:$0xff]   ;;  %v4264_v41 = vsel %vm4230_vm7, %v4255_v3, %v4263_v7  ;;  %v3809_v36 = vsel %vm3787_vm6, %v3804_v0, %v3808_v11  ;;  %v13446_v3 = vld [vmem:[%s18706_s5 + $0x3b0] sm:$0xff]  }
 0x21e   : > { %v2276_v55 = vadd.f32 %v2214_v19, %v18974_v23  ;;  %11747 = vmatprep.mubr.msk.bf16.mxu0 %vm1314_vm0, %v3805_v32  ;;  %11803 = vmatprep.mubr.msk.bf16.mxu1 %vm1314_vm0, %v4268_v29  ;;  %v18977_v39 = vld [vmem:[#allocation26_spill] sm:$0xff]  ;;  %v13445_v23 = vld [vmem:[%s18706_s5 + $0x348] sm:$0xff]  }
 0x21f   : > { %v2216_v46 = vpop.f32.mrf.mxu0  ;;  %4932 = vmatpush1.bf16.msra.mxu0 %v13441_v43  ;;  %v2737_v21 = vpop.f32.mrf.mxu1  ;;  %5561 = vmatpush1.bf16.msra.mxu1 %v13442_v5  ;;  %v18979_v43 = vld [vmem:[#allocation36_spill] sm:$0xff]  ;;  %v18981_v5 = vld [vmem:[#allocation38_spill] sm:$0xff] }
 0x220   : > { %v15883_v57 = vadd.f32 %v2735_v28, %v2276_v55  ;;  %4933 = vmatprep.subr.bf16.mxu0 %v18755_v12  ;;  %5562 = vmatprep.subr.bf16.mxu1 %v18755_v12  ;;  %v4270_v60 = vrot.slane %v18979_v43, 4  ;;  %v4282_v19 = vrot.slane %v18981_v5, 4  ;;  %v4276_v28 = vsel %vm4230_vm7, %v4267_v58, %v4275_v61  ;;  %v13449_v43 = vld [vmem:[%s18706_s5 + $0x3a0] sm:$0x3f]  }
 0x221   : > { %v2217_v22 = vpop.f32.mrf.mxu0  ;;  %v2738_v16 = vpop.f32.mrf.mxu1 }
 0x222   : > { %v2277_v32 = vadd.f32 %v2217_v22, %v18977_v39  ;;  %v4271_v58 = vor.u32 %v4270_v60, %v4269_v9  ;;  %v18984_v22 = vld [vmem:[#allocation34_spill] sm:$0xff]  ;;  %v13448_v9 = vld [vmem:[%s18706_s5 + $0x3a8] sm:$0xff]  }
 0x223   : > { %v2219_v29 = vpop.f32.mrf.mxu0  ;;  %4934 = vmatpush1.bf16.msra.mxu0 %v13443_v13  ;;  %v2740_v49 = vpop.f32.mrf.mxu1  ;;  %5563 = vmatpush1.bf16.msra.mxu1 %v13444_v50  ;;  %v18983_v13 = vld [vmem:[#allocation33_spill] sm:$0xff]  ;;  %v3812_v39 = vrot.slane %v18984_v22, 3  ;;  %v18989_v22 = vld [vmem:[#allocation39_spill] sm:$0xff] }
 0x224   : > { %v15901_v55 = vadd.f32 %v2738_v16, %v2277_v32  ;;  %4935 = vmatprep.subr.bf16.mxu0 %v18755_v12  ;;  %5564 = vmatprep.subr.bf16.mxu1 %v18755_v12  ;;  %v3806_v21 = vrot.slane %v18983_v13, 3  ;;  %v15914_v32 = vor.u32 %v4282_v19, %v4281_v20  ;;  %v13447_v16 = vld [vmem:[%s18706_s5 + $0x340] sm:$0xff]   ;;  %v13450_v29 = vld [vmem:[%s18706_s5 + $0x408] sm:$0x3f]   ;;  %v4272_v20 = vsel %vm4230_vm7, %v4263_v7, %v4271_v58 }
 0x225   : > { %v2222_v0 = vpop.f32.mrf.mxu0  ;;  %4059 = vmatmul.mubr.bf16.gmra.mxu0 %v3803_v17  ;;  %v2743_v40 = vpop.f32.mrf.mxu1  ;;  %4570 = vmatmul.mubr.bf16.gmra.mxu1 %v4264_v41  ;;  %v3813_v19 = vsel %vm3787_vm6, %v3808_v11, %v3812_v39  ;;  %v4277_v49 = vrot.slane %v18807_v52, 3  ;;  %v4921_v7 = vsel %vm1366_vm1, %v13449_v43, 0  ;;  %v5550_v52 = vsel %vm1366_vm1, %v13450_v29, 0 }
 0x226   : > { %v2278_v46 = vadd.f32 %v2222_v0, %v18982_v8  ;;  %11748 = vmatprep.mubr.msk.bf16.mxu0 %vm1314_vm0, %v3809_v36  ;;  %11804 = vmatprep.mubr.msk.bf16.mxu1 %vm1314_vm0, %v4276_v28  ;;  %v3807_v30 = vsel %vm3787_vm6, %v3802_v15, %v3806_v21  ;;  %v18985_v28 = vld [vmem:[#allocation41_spill] sm:$0xff] }
 0x227   : > { %v2224_v50 = vpop.f32.mrf.mxu0  ;;  %4936 = vmatpush1.bf16.msra.mxu0 %v13445_v23  ;;  %v2745_v34 = vpop.f32.mrf.mxu1  ;;  %5565 = vmatpush1.bf16.msra.mxu1 %v13446_v3  ;;  %v4284_v23 = vsel %vm4230_vm7, %v4275_v61, %v15914_v32  ;;  %v4278_v3 = vrot.slane %v18985_v28, 4  ;;  %v18988_v61 = vld [vmem:[#allocation109_spill] sm:$0xff] }
 0x228   : > { %v15919_v17 = vadd.f32 %v2743_v40, %v2278_v46  ;;  %4937 = vmatprep.subr.bf16.mxu0 %v18755_v12  ;;  %5566 = vmatprep.subr.bf16.mxu1 %v18755_v12  ;;  %v18987_v40 = vld [vmem:[#allocation45_spill] sm:$0xff] }
 0x229   : > { %v2225_v60 = vpop.f32.mrf.mxu0  ;;  %v2746_v36 = vpop.f32.mrf.mxu1  ;;  %v4290_v15 = vrot.slane %v18987_v40, 4 }
 0x22a   : > { %v2279_v41 = vadd.f32 %v2225_v60, %v15533_v59  ;;  %v18986_v59 = vld [vmem:[#allocation50_spill] sm:$0xff]  ;;  %v18990_v60 = vld [vmem:[#allocation40_spill] sm:$0xff] }
 0x22b   : > { %v2227_v5 = vpop.f32.mrf.mxu0  ;;  %4938 = vmatpush1.bf16.msra.mxu0 %v13447_v16  ;;  %v2748_v8 = vpop.f32.mrf.mxu1  ;;  %v4289_v46 = vrot.slane %v18986_v59, 3  ;;  %5567 = vmatpush1.bf16.msra.mxu1 %v13448_v9  ;;  %v3810_v16 = vrot.slane %v18989_v22, 3  ;;  %v4279_v9 = vor.u32 %v4278_v3, %v4277_v49  ;;  %v3816_v43 = vrot.slane %v18990_v60, 3  ;;  %v18996_v60 = vld [vmem:[#allocation111_spill] sm:$0xff] }
 0x22c   : > { %v15940_v0 = vadd.f32 %v2746_v36, %v2279_v41  ;;  %4945 = vmatprep.subr.bf16.mxu0 %v18755_v12  ;;  %5574 = vmatprep.subr.bf16.mxu1 %v18755_v12  ;;  %v13451_v41 = vld [vmem:[%s18706_s5 + $0x398] sm:$0xff]  }
 0x22d   : > { %v2230_v11 = vpop.f32.mrf.mxu0  ;;  %4067 = vmatmul.mubr.bf16.gmra.mxu0 %v3807_v30  ;;  %v2751_v50 = vpop.f32.mrf.mxu1  ;;  %4578 = vmatmul.mubr.bf16.gmra.mxu1 %v4272_v20  ;;  %v4291_v30 = vor.u32 %v4290_v15, %v4289_v46  ;;  %v13452_v20 = vld [vmem:[%s18706_s5 + $0x400] sm:$0xff]   ;;  %v3811_v28 = vsel %vm3787_vm6, %v3806_v21, %v3810_v16  ;;  %v4280_v8 = vsel %vm4230_vm7, %v4271_v58, %v4279_v9  ;;  %v18992_v46 = vld [vmem:[#allocation54_spill] sm:$0xff] }
 0x22e   : > { %v2280_v13 = vadd.f32 %v2230_v11, %v18988_v61  ;;  %11749 = vmatprep.mubr.msk.bf16.mxu0 %vm1314_vm0, %v3813_v19  ;;  %11805 = vmatprep.mubr.msk.bf16.mxu1 %vm1314_vm0, %v4284_v23  ;;  %v18991_v19 = vld [vmem:[#allocation110_spill] sm:$0xff]  ;;  %v3817_v59 = vsel %vm3787_vm6, %v3812_v39, %v3816_v43  ;;  %v4285_v40 = vrot.slane %v18992_v46, 3  ;;  %v18993_v15 = vld [vmem:[#allocation47_spill] sm:$0xff] }
 0x22f   : > { %v2232_v34 = vpop.f32.mrf.mxu0  ;;  %4946 = vmatpush2.bf16.msra.mxu0 %v4921_v7  ;;  %v2753_v36 = vpop.f32.mrf.mxu1  ;;  %5575 = vmatpush2.bf16.msra.mxu1 %v5550_v52  ;;  %v4286_v7 = vrot.slane %v18993_v15, 4  ;;  %v13453_v11 = vld [vmem:[%s18706_s5 + $0x390] sm:$0xff]   ;;  %v4292_v21 = vsel %vm4230_vm7, %v15914_v32, %v4291_v30  ;;  %v18995_v58 = vld [vmem:[#allocation51_spill] sm:$0xff] }
 0x230   : > { %v15956_v29 = vadd.f32 %v2751_v50, %v2280_v13  ;;  %4947 = vmatprep.subr.bf16.mxu0 %v18755_v12  ;;  %5576 = vmatprep.subr.bf16.mxu1 %v18755_v12  ;;  %v18994_v13 = vld [vmem:[#allocation55_spill] sm:$0xff]  ;;  %v4298_v22 = vrot.slane %v18995_v58, 4 }
 0x231   : > { %v2233_v5 = vpop.f32.mrf.mxu0  ;;  %v2754_v49 = vpop.f32.mrf.mxu1  ;;  %v4297_v50 = vrot.slane %v18994_v13, 3  ;;  %v13454_v39 = vld [vmem:[%s18706_s5 + $0x3f8] sm:$0xff]  }
 0x232   : > { %v2281_v23 = vadd.f32 %v2233_v5, %v18991_v19  ;;  %v18997_v32 = vld [vmem:[#allocation43_spill] sm:$0xff] }
 0x233   : > { %v2235_v3 = vpop.f32.mrf.mxu0  ;;  %4948 = vmatpush2.bf16.msra.mxu0 %v13451_v41  ;;  %v2756_v61 = vpop.f32.mrf.mxu1  ;;  %5577 = vmatpush2.bf16.msra.mxu1 %v13452_v20  ;;  %v3814_v5 = vrot.slane %v18997_v32, 3  ;;  %v4287_v20 = vor.u32 %v4286_v7, %v4285_v40  ;;  %v4299_v15 = vor.u32 %v4298_v22, %v4297_v50  ;;  %v18999_v40 = vld [vmem:[#allocation112_spill] sm:$0xff]  ;;  %v19000_v58 = vld [vmem:[#allocation59_spill] sm:$0xff] }
 0x234   : > { %v15972_v52 = vadd.f32 %v2754_v49, %v2281_v23  ;;  %4949 = vmatprep.subr.bf16.mxu0 %v18755_v12  ;;  %5578 = vmatprep.subr.bf16.mxu1 %v18755_v12  ;;  %v18998_v23 = vld [vmem:[#allocation46_spill] sm:$0xff]  ;;  %v4293_v22 = vrot.slane %v19000_v58, 3 }
 0x235   : > { %v2238_v34 = vpop.f32.mrf.mxu0  ;;  %4075 = vmatmul.mubr.bf16.gmra.mxu0 %v3811_v28  ;;  %v2759_v36 = vpop.f32.mrf.mxu1  ;;  %4586 = vmatmul.mubr.bf16.gmra.mxu1 %v4280_v8  ;;  %v3820_v49 = vrot.slane %v18998_v23, 3  ;;  %v13455_v28 = vld [vmem:[%s18706_s5 + $0x388] sm:$0xff]   ;;  %v13456_v8 = vld [vmem:[%s18706_s5 + $0x3f0] sm:$0xff]   ;;  %v3815_v61 = vsel %vm3787_vm6, %v3810_v16, %v3814_v5  ;;  %v4288_v13 = vsel %vm4230_vm7, %v4279_v9, %v4287_v20  ;;  %v4300_v32 = vsel %vm4230_vm7, %v4291_v30, %v4299_v15  ;;  %v19002_v16 = vld [vmem:[#allocation63_spill] sm:$0xff] }
 0x236   : > { %v2282_v41 = vadd.f32 %v2238_v34, %v18996_v60  ;;  %11750 = vmatprep.mubr.msk.bf16.mxu0 %vm1314_vm0, %v3817_v59  ;;  %11806 = vmatprep.mubr.msk.bf16.mxu1 %vm1314_vm0, %v4292_v21  ;;  %v13457_v60 = vld [vmem:[%s18706_s5 + $0x380] sm:$0xff]   ;;  %v19003_v23 = vld [vmem:[#allocation58_spill] sm:$0xff] }
 0x237   : > { %v2240_v19 = vpop.f32.mrf.mxu0  ;;  %4950 = vmatpush2.bf16.msra.mxu0 %v13453_v11  ;;  %v2761_v46 = vpop.f32.mrf.mxu1  ;;  %5579 = vmatpush2.bf16.msra.mxu1 %v13454_v39  ;;  %v3821_v50 = vsel %vm3787_vm6, %v3816_v43, %v3820_v49  ;;  %v19001_v39 = vld [vmem:[#allocation52_spill] sm:$0xff]  ;;  %v4306_v9 = vrot.slane %v19003_v23, 4 }
 0x238   : > { %v15991_v3 = vadd.f32 %v2759_v36, %v2282_v41  ;;  %4951 = vmatprep.subr.bf16.mxu0 %v18755_v12  ;;  %5580 = vmatprep.subr.bf16.mxu1 %v18755_v12  ;;  %v4294_v34 = vrot.slane %v19001_v39, 4  ;;  %v4305_v19 = vrot.slane %v19002_v16, 3  ;;  %v13458_v43 = vld [vmem:[%s18706_s5 + $0x3e8] sm:$0xff]  }
 0x239   : > { %v2241_v59 = vpop.f32.mrf.mxu0  ;;  %v2762_v11 = vpop.f32.mrf.mxu1  ;;  %v19004_v46 = vld [vmem:[#allocation113_spill] sm:$0xff]  ;;  %v19005_v30 = vld [vmem:[#allocation48_spill] sm:$0xff] }
 0x23a   : > { %v2283_v7 = vadd.f32 %v2241_v59, %v18999_v40 }
 0x23b   : > { %v2243_v21 = vpop.f32.mrf.mxu0  ;;  %4952 = vmatpush2.bf16.msra.mxu0 %v13455_v28  ;;  %v2764_v36 = vpop.f32.mrf.mxu1  ;;  %5581 = vmatpush2.bf16.msra.mxu1 %v13456_v8  ;;  %v4295_v8 = vor.u32 %v4294_v34, %v4293_v22  ;;  %v19008_v22 = vld [vmem:[#allocation60_spill] sm:$0xff] }
 0x23c   : > { %v16007_v41 = vadd.f32 %v2762_v11, %v2283_v7  ;;  %4953 = vmatprep.subr.bf16.mxu0 %v18755_v12  ;;  %5582 = vmatprep.subr.bf16.mxu1 %v18755_v12  ;;  %v3818_v7 = vrot.slane %v19005_v30, 3  ;;  %v19006_v21 = vld [vmem:[#allocation53_spill] sm:$0xff]  ;;  %v4307_v36 = vor.u32 %v4306_v9, %v4305_v19  ;;  %v19007_v30 = vld [vmem:[#allocation64_spill] sm:$0xff]  ;;  %v4302_v34 = vrot.slane %v19008_v22, 4 }
 0x23d   : > { %v2246_v28 = vpop.f32.mrf.mxu0  ;;  %4083 = vmatmul.mubr.bf16.gmra.mxu0 %v3815_v61  ;;  %v2767_v40 = vpop.f32.mrf.mxu1  ;;  %4594 = vmatmul.mubr.bf16.gmra.mxu1 %v4288_v13  ;;  %v3824_v58 = vrot.slane %v19006_v21, 3  ;;  %v19010_v19 = vld [vmem:[#allocation61_spill] sm:$0xff] }
 0x23e   : > { %v2284_v59 = vadd.f32 %v2246_v28, %v19004_v46  ;;  %11751 = vmatprep.mubr.msk.bf16.mxu0 %vm1314_vm0, %v3821_v50  ;;  %11807 = vmatprep.mubr.msk.bf16.mxu1 %vm1314_vm0, %v4300_v32  ;;  %v3819_v13 = vsel %vm3787_vm6, %v3814_v5, %v3818_v7  ;;  %v4296_v50 = vsel %vm4230_vm7, %v4287_v20, %v4295_v8  ;;  %v4301_v32 = vrot.slane %v19007_v30, 3  ;;  %v19011_v20 = vld [vmem:[#allocation56_spill] sm:$0xff] }
 0x23f   : > { %v2248_v11 = vpop.f32.mrf.mxu0  ;;  %4954 = vmatpush2.bf16.msra.mxu0 %v13457_v60  ;;  %v2769_v61 = vpop.f32.mrf.mxu1  ;;  %5583 = vmatpush2.bf16.msra.mxu1 %v13458_v43  ;;  %v3825_v46 = vsel %vm3787_vm6, %v3820_v49, %v3824_v58  ;;  %v4308_v60 = vsel %vm4230_vm7, %v4299_v15, %v4307_v36  ;;  %v4314_v9 = vrot.slane %v19010_v19, 4  ;;  %v3822_v49 = vrot.slane %v19011_v20, 3 }
 0x240   : > { %v16022_v39 = vadd.f32 %v2767_v40, %v2284_v59  ;;  %v19009_v59 = vld [vmem:[#allocation69_spill] sm:$0xff] }
 0x241   : > { %v2249_v16 = vpop.f32.mrf.mxu0  ;;  %v2770_v23 = vpop.f32.mrf.mxu1  ;;  %v4313_v40 = vrot.slane %v19009_v59, 3 }
 0x242   : > { %v4303_v16 = vor.u32 %v4302_v34, %v4301_v32  ;;  %v19012_v23 = vld [vmem:[#allocation57_spill] sm:$0xff] }
 0x243   : > { %v2250_v28 = vpop.f32.mrf.mxu0  ;;  %v2771_v11 = vpop.f32.mrf.mxu1  ;;  %v3828_v15 = vrot.slane %v19012_v23, 3  ;;  %v4315_v22 = vor.u32 %v4314_v9, %v4313_v40  ;;  %v19013_v32 = vld [vmem:[#allocation65_spill] sm:$0xff]  ;;  %v19014_v9 = vld [vmem:[#allocation76_spill] sm:$0xff] }
 0x244   : > { %v4310_v34 = vrot.slane %v19013_v32, 4 }
 0x245   : > { %v3082_v43 = vpop.f32.mrf.mxu0  ;;  %4091 = vmatmul.mubr.bf16.gmra.mxu0 %v3819_v13  ;;  %v3593_v21 = vpop.f32.mrf.mxu1  ;;  %4602 = vmatmul.mubr.bf16.gmra.mxu1 %v4296_v50  ;;  %v3823_v50 = vsel %vm3787_vm6, %v3818_v7, %v3822_v49  ;;  %v3829_v19 = vsel %vm3787_vm6, %v3824_v58, %v3828_v15  ;;  %v4316_v40 = vsel %vm4230_vm7, %v4307_v36, %v4315_v22  ;;  %v19016_v7 = vld [vmem:[#allocation49_spill] sm:$0xff] }
 0x246   : > { %v3216_v5 = vadd.f32 %v3082_v43, %v15630_v47  ;;  %11752 = vmatprep.mubr.msk.bf16.mxu0 %vm1314_vm0, %v3825_v46  ;;  %11808 = vmatprep.mubr.msk.bf16.mxu1 %vm1314_vm0, %v4308_v60  ;;  %v4304_v46 = vsel %vm4230_vm7, %v4295_v8, %v4303_v16  ;;  %v4309_v60 = vrot.slane %v18911_v51, 3  ;;  %v19017_v51 = vld [vmem:[#allocation62_spill] sm:$0xff] }
 0x247   : > { %v3084_v61 = vpop.f32.mrf.mxu0  ;;  %v3595_v30 = vpop.f32.mrf.mxu1  ;;  %v3826_v58 = vrot.slane %v19017_v51, 3  ;;  %v19020_v51 = vld [vmem:[#allocation81_spill] sm:$0xff] }
 0x248   : > { %v16037_v28 = vadd.f32 %v3593_v21, %v3216_v5  ;;  %v4321_v21 = vrot.slane %v19014_v9, 3 }
 0x249   : > { %v3085_v11 = vpop.f32.mrf.mxu0  ;;  %v3596_v47 = vpop.f32.mrf.mxu1 }
 0x24a   : > { %v3217_v13 = vadd.f32 %v3085_v11, %v15638_v48  ;;  %v19015_v48 = vld [vmem:[#allocation70_spill] sm:$0xff]  ;;  %v4311_v11 = vor.u32 %v4310_v34, %v4309_v60  ;;  %v19021_v60 = vld [vmem:[#allocation71_spill] sm:$0xff] }
 0x24b   : > { %v3087_v59 = vpop.f32.mrf.mxu0  ;;  %v3598_v5 = vpop.f32.mrf.mxu1  ;;  %v4322_v20 = vrot.slane %v19015_v48, 4  ;;  %v4318_v34 = vrot.slane %v19021_v60, 4 }
 0x24c   : > { %v16045_v43 = vadd.f32 %v3596_v47, %v3217_v13  ;;  %v19018_v13 = vld [vmem:[#allocation66_spill] sm:$0xff] }
 0x24d   : > { %v3090_v61 = vpop.f32.mrf.mxu0  ;;  %4099 = vmatmul.mubr.bf16.gmra.mxu0 %v3823_v50  ;;  %v3601_v8 = vpop.f32.mrf.mxu1  ;;  %4610 = vmatmul.mubr.bf16.gmra.mxu1 %v4304_v46  ;;  %v3832_v36 = vrot.slane %v19018_v13, 3  ;;  %v4323_v32 = vor.u32 %v4322_v20, %v4321_v21  ;;  %v19019_v50 = vld [vmem:[#allocation97_spill] sm:$0xff]  ;;  %v3827_v46 = vsel %vm3787_vm6, %v3822_v49, %v3826_v58  ;;  %v19022_v20 = vld [vmem:[#allocation82_spill] sm:$0xff]  ;;  %v19023_v13 = vld [vmem:[#allocation72_spill] sm:$0xff] }
 0x24e   : > { %v3218_v23 = vadd.f32 %v3090_v61, %v19016_v7  ;;  %11753 = vmatprep.mubr.msk.bf16.mxu0 %vm1314_vm0, %v3829_v19  ;;  %11809 = vmatprep.mubr.msk.bf16.mxu1 %vm1314_vm0, %v4316_v40  ;;  %v4312_v19 = vsel %vm4230_vm7, %v4303_v16, %v4311_v11  ;;  %v4317_v40 = vrot.slane %v19020_v51, 3 }
 0x24f   : > { %v3092_v30 = vpop.f32.mrf.mxu0  ;;  %v3603_v59 = vpop.f32.mrf.mxu1  ;;  %v3833_v7 = vsel %vm3787_vm6, %v3828_v15, %v3832_v36  ;;  %v4324_v21 = vsel %vm4230_vm7, %v4315_v22, %v4323_v32  ;;  %v19024_v15 = vld [vmem:[#allocation67_spill] sm:$0xff] }
 0x250   : > { %v16055_v47 = vadd.f32 %v3601_v8, %v3218_v23  ;;  %v4329_v8 = vrot.slane %v19022_v20, 3  ;;  %v4330_v59 = vrot.slane %v19023_v13, 4 }
 0x251   : > { %v3093_v5 = vpop.f32.mrf.mxu0  ;;  %v3604_v48 = vpop.f32.mrf.mxu1 }
 0x252   : > { %v3219_v9 = vadd.f32 %v3093_v5, %v19019_v50  ;;  %v3830_v50 = vrot.slane %v19024_v15, 3 }
 0x253   : > { %v3095_v61 = vpop.f32.mrf.mxu0  ;;  %v3606_v23 = vpop.f32.mrf.mxu1 }
 0x254   : > { %v16063_v30 = vadd.f32 %v3604_v48, %v3219_v9  ;;  %v4319_v9 = vor.u32 %v4318_v34, %v4317_v40  ;;  %v19025_v48 = vld [vmem:[#allocation68_spill] sm:$0xff]  ;;  %v4331_v23 = vor.u32 %v4330_v59, %v4329_v8  ;;  %v4326_v40 = vrot.slane %v18927_v56, 4  ;;  %v19026_v59 = vld [vmem:[#allocation86_spill] sm:$0xff] }
 0x255   : > { %v3098_v5 = vpop.f32.mrf.mxu0  ;;  %4107 = vmatmul.mubr.bf16.gmra.mxu0 %v3827_v46  ;;  %v3609_v16 = vpop.f32.mrf.mxu1  ;;  %4618 = vmatmul.mubr.bf16.gmra.mxu1 %v4312_v19  ;;  %v3836_v22 = vrot.slane %v19025_v48, 3  ;;  %v3831_v19 = vsel %vm3787_vm6, %v3826_v58, %v3830_v50 }
 0x256   : > { %v3220_v49 = vadd.f32 %v3098_v5, %v15666_v14  ;;  %11754 = vmatprep.mubr.msk.bf16.mxu0 %vm1314_vm0, %v3833_v7  ;;  %11810 = vmatprep.mubr.msk.bf16.mxu1 %vm1314_vm0, %v4324_v21  ;;  %v4320_v7 = vsel %vm4230_vm7, %v4311_v11, %v4319_v9  ;;  %v4325_v21 = vrot.slane %v18926_v44, 3  ;;  %v4332_v8 = vsel %vm4230_vm7, %v4323_v32, %v4331_v23  ;;  %v19028_v44 = vld [vmem:[#allocation73_spill] sm:$0xff] }
 0x257   : > { %v3100_v61 = vpop.f32.mrf.mxu0  ;;  %v3611_v60 = vpop.f32.mrf.mxu1  ;;  %v3837_v5 = vsel %vm3787_vm6, %v3832_v36, %v3836_v22  ;;  %v3834_v36 = vrot.slane %v19028_v44, 3 }
 0x258   : > { %v16073_v51 = vadd.f32 %v3609_v16, %v3220_v49  ;;  %v4337_v16 = vrot.slane %v19026_v59, 3  ;;  %v4327_v48 = vor.u32 %v4326_v40, %v4325_v21  ;;  %v19029_v60 = vld [vmem:[#allocation74_spill] sm:$0xff]  ;;  %v19032_v21 = vld [vmem:[#allocation83_spill] sm:$0xff] }
 0x259   : > { %v3101_v20 = vpop.f32.mrf.mxu0  ;;  %v3612_v14 = vpop.f32.mrf.mxu1  ;;  %v3840_v32 = vrot.slane %v19029_v60, 3  ;;  %v4334_v40 = vrot.slane %v19032_v21, 4 }
 0x25a   : > { %v3221_v46 = vadd.f32 %v3101_v20, %v15674_v62  ;;  %v19027_v62 = vld [vmem:[#allocation78_spill] sm:$0xff] }
 0x25b   : > { %v3103_v13 = vpop.f32.mrf.mxu0  ;;  %v3614_v49 = vpop.f32.mrf.mxu1  ;;  %v4338_v15 = vrot.slane %v19027_v62, 4  ;;  %v3841_v62 = vsel %vm3787_vm6, %v3836_v22, %v3840_v32  ;;  %v19035_v22 = vld [vmem:[#allocation79_spill] sm:$0xff] }
 0x25c   : > { %v16081_v34 = vadd.f32 %v3612_v14, %v3221_v46 }
 0x25d   : > { %v3106_v61 = vpop.f32.mrf.mxu0  ;;  %4115 = vmatmul.mubr.bf16.gmra.mxu0 %v3831_v19  ;;  %v3617_v11 = vpop.f32.mrf.mxu1  ;;  %4626 = vmatmul.mubr.bf16.gmra.mxu1 %v4320_v7  ;;  %v4339_v14 = vor.u32 %v4338_v15, %v4337_v16  ;;  %v19030_v19 = vld [vmem:[#allocation75_spill] sm:$0xff]  ;;  %v3835_v7 = vsel %vm3787_vm6, %v3830_v50, %v3834_v36  ;;  %v19033_v15 = vld [vmem:[#allocation92_spill] sm:$0xff] }
 0x25e   : > { %v3222_v58 = vadd.f32 %v3106_v61, %v15684_v4  ;;  %11755 = vmatprep.mubr.msk.bf16.mxu0 %vm1314_vm0, %v3837_v5  ;;  %11811 = vmatprep.mubr.msk.bf16.mxu1 %vm1314_vm0, %v4332_v8  ;;  %v4328_v5 = vsel %vm4230_vm7, %v4319_v9, %v4327_v48  ;;  %v19031_v61 = vld [vmem:[#allocation91_spill] sm:$0xff] }
 0x25f   : > { %v3108_v56 = vpop.f32.mrf.mxu0  ;;  %v3619_v46 = vpop.f32.mrf.mxu1  ;;  %v4333_v8 = vrot.slane %v19031_v61, 3  ;;  %v4340_v16 = vsel %vm4230_vm7, %v4331_v23, %v4339_v14 }
 0x260   : > { %v16091_v20 = vadd.f32 %v3617_v11, %v3222_v58  ;;  %v4345_v11 = vrot.slane %v19033_v15, 3  ;;  %v19034_v56 = vld [vmem:[#allocation84_spill] sm:$0xff] }
 0x261   : > { %v3109_v13 = vpop.f32.mrf.mxu0  ;;  %v3620_v4 = vpop.f32.mrf.mxu1  ;;  %v4346_v60 = vrot.slane %v19034_v56, 4 }
 0x262   : > { %v3223_v49 = vadd.f32 %v3109_v13, %v19030_v19  ;;  %v3838_v13 = vrot.slane %v19035_v22, 3  ;;  %v19038_v22 = vld [vmem:[#allocation95_spill] sm:$0xff] }
 0x263   : > { %v3111_v59 = vpop.f32.mrf.mxu0  ;;  %v3622_v58 = vpop.f32.mrf.mxu1  ;;  %v4347_v21 = vor.u32 %v4346_v60, %v4345_v11  ;;  %v19040_v60 = vld [vmem:[#allocation96_spill] sm:$0xff] }
 0x264   : > { %v16099_v44 = vadd.f32 %v3620_v4, %v3223_v49  ;;  %v4335_v49 = vor.u32 %v4334_v40, %v4333_v8  ;;  %v19036_v4 = vld [vmem:[#allocation80_spill] sm:$0xff]  ;;  %v19039_v8 = vld [vmem:[#allocation89_spill] sm:$0xff] }
 0x265   : > { %v3114_v46 = vpop.f32.mrf.mxu0  ;;  %4123 = vmatmul.mubr.bf16.gmra.mxu0 %v3835_v7  ;;  %v3625_v9 = vpop.f32.mrf.mxu1  ;;  %4634 = vmatmul.mubr.bf16.gmra.mxu1 %v4328_v5  ;;  %v3844_v23 = vrot.slane %v19036_v4, 3  ;;  %v19037_v7 = vld [vmem:[#allocation98_spill] sm:$0xff]  ;;  %v3839_v5 = vsel %vm3787_vm6, %v3834_v36, %v3838_v13  ;;  %v4342_v40 = vrot.slane %v19039_v8, 4  ;;  %v4348_v11 = vsel %vm4230_vm7, %v4339_v14, %v4347_v21 }
 0x266   : > { %v3224_v50 = vadd.f32 %v3114_v46, %v15702_v26  ;;  %11756 = vmatprep.mubr.msk.bf16.mxu0 %vm1314_vm0, %v3841_v62  ;;  %11812 = vmatprep.mubr.msk.bf16.mxu1 %vm1314_vm0, %v4340_v16  ;;  %v4336_v62 = vsel %vm4230_vm7, %v4327_v48, %v4335_v49  ;;  %v4341_v16 = vrot.slane %v19038_v22, 3  ;;  %v19041_v4 = vld [vmem:[#allocation90_spill] sm:$0xff] }
 0x267   : > { %v3116_v19 = vpop.f32.mrf.mxu0  ;;  %v3627_v61 = vpop.f32.mrf.mxu1  ;;  %v3845_v46 = vsel %vm3787_vm6, %v3840_v32, %v3844_v23  ;;  %v3842_v32 = vrot.slane %v18944_v25, 3 }
 0x268   : > { %v16109_v59 = vadd.f32 %v3625_v9, %v3224_v50  ;;  %v4353_v9 = vrot.slane %v19040_v60, 3  ;;  %v4354_v61 = vrot.slane %v19041_v4, 4 }
 0x269   : > { %v3117_v58 = vpop.f32.mrf.mxu0  ;;  %v3628_v26 = vpop.f32.mrf.mxu1 }
 0x26a   : > { %v3225_v15 = vadd.f32 %v3117_v58, %v19037_v7  ;;  %v4355_v8 = vor.u32 %v4354_v61, %v4353_v9  ;;  %v19044_v61 = vld [vmem:[#allocation103_spill] sm:$0xff] }
 0x26b   : > { %v3119_v56 = vpop.f32.mrf.mxu0  ;;  %v3630_v50 = vpop.f32.mrf.mxu1 }
 0x26c   : > { %v16117_v19 = vadd.f32 %v3628_v26, %v3225_v15  ;;  %v4343_v15 = vor.u32 %v4342_v40, %v4341_v16  ;;  %v19042_v26 = vld [vmem:[#allocation88_spill] sm:$0xff]  ;;  %v19043_v16 = vld [vmem:[#allocation94_spill] sm:$0xff]  ;;  %v4356_v9 = vsel %vm4230_vm7, %v4347_v21, %v4355_v8  ;;  %v3852_v21 = vrot.slane %v18949_v53, 3 }
 0x26d   : > { %v3122_v58 = vpop.f32.mrf.mxu0  ;;  %4131 = vmatmul.mubr.bf16.gmra.mxu0 %v3839_v5  ;;  %v3633_v48 = vpop.f32.mrf.mxu1  ;;  %4642 = vmatmul.mubr.bf16.gmra.mxu1 %v4336_v62  ;;  %v3848_v14 = vrot.slane %v19042_v26, 3  ;;  %v3843_v62 = vsel %vm3787_vm6, %v3838_v13, %v3842_v32  ;;  %v4350_v40 = vrot.slane %v19043_v16, 4  ;;  %v19046_v53 = vld [vmem:[#allocation106_spill] sm:$0xff] }
 0x26e   : > { %v3226_v36 = vadd.f32 %v3122_v58, %v15720_v63  ;;  %11757 = vmatprep.mubr.msk.bf16.mxu0 %vm1314_vm0, %v3845_v46  ;;  %11813 = vmatprep.mubr.msk.bf16.mxu1 %vm1314_vm0, %v4348_v11  ;;  %v4344_v46 = vsel %vm4230_vm7, %v4335_v49, %v4343_v15  ;;  %v4349_v11 = vrot.slane %v14990_v33, 3  ;;  %v3846_v33 = vrot.slane %v18948_v54, 3 }
 0x26f   : > { %v3124_v7 = vpop.f32.mrf.mxu0  ;;  %v3635_v22 = vpop.f32.mrf.mxu1  ;;  %v3849_v25 = vsel %vm3787_vm6, %v3844_v23, %v3848_v14  ;;  %v4358_v16 = vrot.slane %v19046_v53, 4 }
 0x270   : > { %v16127_v56 = vadd.f32 %v3633_v48, %v3226_v36  ;;  %v4361_v36 = vrot.slane %v19044_v61, 3  ;;  %v4351_v26 = vor.u32 %v4350_v40, %v4349_v11  ;;  %v4357_v11 = vrot.slane %v15347_v31, 3  ;;  %v13998_v61 = vld [vmem:[%s14390_s24 + $0x8] sm:$0xff] }
 0x271   : > { %v3125_v50 = vpop.f32.mrf.mxu0  ;;  %v3636_v63 = vpop.f32.mrf.mxu1  ;;  %v19047_v31 = vld [vmem:[#allocation105_spill] sm:$0xff] }
 0x272   : > { %v3227_v5 = vadd.f32 %v3125_v50, %v15728_v45  ;;  %v19045_v45 = vld [vmem:[#allocation104_spill] sm:$0xff]  ;;  %v4352_v54 = vsel %vm4230_vm7, %v4343_v15, %v4351_v26 }
 0x273   : > { %v3127_v60 = vpop.f32.mrf.mxu0  ;;  %v3638_v58 = vpop.f32.mrf.mxu1  ;;  %v4362_v48 = vrot.slane %v19045_v45, 4  ;;  %v3850_v45 = vrot.slane %v19047_v31, 3 }
 0x274   : > { %v16135_v4 = vadd.f32 %v3636_v63, %v3227_v5  ;;  %v3847_v60 = vsel %vm3787_vm6, %v3842_v32, %v3846_v33 }
 0x275   : > { %v3130_v7 = vpop.f32.mrf.mxu0  ;;  %4139 = vmatmul.mubr.bf16.gmra.mxu0 %v3843_v62  ;;  %v3641_v49 = vpop.f32.mrf.mxu1  ;;  %4650 = vmatmul.mubr.bf16.gmra.mxu1 %v4344_v46  ;;  %v4363_v5 = vor.u32 %v4362_v48, %v4361_v36 }
 0x276   : > { %v3228_v13 = vadd.f32 %v3130_v7, %v15738_v37  ;;  %11758 = vmatprep.mubr.msk.bf16.mxu0 %vm1314_vm0, %v3849_v25  ;;  %11814 = vmatprep.mubr.msk.bf16.mxu1 %vm1314_vm0, %v4356_v9  ;;  %v3853_v25 = vsel %vm3787_vm6, %v3848_v14, %v3852_v21 }
 0x277   : > { %v3132_v23 = vpop.f32.mrf.mxu0  ;;  %v3643_v50 = vpop.f32.mrf.mxu1  ;;  %v4364_v9 = vsel %vm4230_vm7, %v4355_v8, %v4363_v5  ;;  %v4359_v8 = vor.u32 %v4358_v16, %v4357_v11 }
 0x278   : > { %v16145_v22 = vadd.f32 %v3641_v49, %v3228_v13  ;;  %v14000_v49 = vld [vmem:[%s14390_s24 + $0x18] sm:$0xff]  ;;  %v14001_v23 = vld [vmem:[%s14390_s24 + $0x20] sm:$0xff] }
 0x279   : > { %v3133_v63 = vpop.f32.mrf.mxu0  ;;  %v3644_v62 = vpop.f32.mrf.mxu1  ;;  %v16168_v50 = vcombine.high %v14000_v49, %v14001_v23 }
 0x27a   : > { %v3229_v37 = vadd.f32 %v3133_v63, %v15746_v2  ;;  %v13999_v2 = vld [vmem:[%s14390_s24 + $0x10] sm:$0xff] }
 0x27b   : > { %v3135_v46 = vpop.f32.mrf.mxu0  ;;  %v3646_v58 = vpop.f32.mrf.mxu1  ;;  %v16158_v36 = vcombine.high %v13998_v61, %v13999_v2 }
 0x27c   : > { %v16153_v40 = vadd.f32 %v3644_v62, %v3229_v37 }
 0x27d   : > { %v3138_v32 = vpop.f32.mrf.mxu0  ;;  %4147 = vmatmul.mubr.bf16.gmra.mxu0 %v3847_v60  ;;  %v3649_v14 = vpop.f32.mrf.mxu1  ;;  %4658 = vmatmul.mubr.bf16.gmra.mxu1 %v4352_v54  ;;  %v5165_v63 = vshll.u32 %v16158_v36, 16  ;;  %v3851_v60 = vsel %vm3787_vm6, %v3846_v33, %v3850_v45  ;;  %v4360_v54 = vsel %vm4230_vm7, %v4351_v26, %v4359_v8  ;;  %v5163_v16 = vshrl.u32 %v16158_v36, 16 }
 0x27e   : > { %v3230_v15 = vadd.f32 %v3138_v32, %v15753_v35  ;;  %11759 = vmatprep.mubr.msk.bf16.mxu0 %vm1314_vm0, %v3853_v25  ;;  %11815 = vmatprep.mubr.msk.bf16.mxu1 %vm1314_vm0, %v4364_v9  ;;  %v16174_v25 = vcombine.low %v13998_v61, %v13999_v2  ;;  %v5169_v9 = vshll.u32 %v16168_v50, 16  ;;  %v16183_v61 = vcombine.low %v14000_v49, %v14001_v23 }
 0x27f   : > { %v3140_v48 = vpop.f32.mrf.mxu0  ;;  %v3651_v13 = vpop.f32.mrf.mxu1  ;;  %v5167_v58 = vrot.slane %v5165_v63, 1  ;;  %v14002_v63 = vld [vmem:[%s14390_s24 + $0x28] sm:$0xff] }
 0x280   : > { %v16164_v7 = vadd.f32 %v3649_v14, %v3230_v15  ;;  %v5154_v2 = vshll.u32 %v16174_v25, 16  ;;  %v5171_v13 = vrot.slane %v5169_v9, 1  ;;  %v5159_v23 = vshll.u32 %v16183_v61, 16 }
 0x281   : > { %v3141_v35 = vpop.f32.mrf.mxu0  ;;  %v3652_v62 = vpop.f32.mrf.mxu1  ;;  %v5168_v48 = vor.u32 %v5167_v58, %v5163_v16  ;;  %v5181_v58 = vshrl.u32 %v16168_v50, 16 }
 0x282   : > { %v3231_v37 = vadd.f32 %v3141_v35, %v15759_v1  ;;  %v19048_v1 = vld [vmem:[#allocation99_spill] sm:$0xff]  ;;  %v14003_v35 = vld [vmem:[%s14390_s24 + $0x30] sm:$0xff]  ;;  %v5156_v49 = vrot.slane %v5154_v2, 1 }
 0x283   : > { %v3143_v46 = vpop.f32.mrf.mxu0  ;;  %v3654_v53 = vpop.f32.mrf.mxu1  ;;  %v5172_v16 = vsel %vm949_vm2, %v5168_v48, %v5171_v13  ;;  %v16204_v2 = vcombine.low %v14002_v63, %v14003_v35 }
 0x284   : > { %v16176_v11 = vadd.f32 %v3652_v62, %v3231_v37  ;;  %v16190_v37 = vcombine.high %v14002_v63, %v14003_v35 }
 0x285   : > { %v3146_v32 = vpop.f32.mrf.mxu0  ;;  %4155 = vmatmul.mubr.bf16.gmra.mxu0 %v3851_v60  ;;  %v3657_v33 = vpop.f32.mrf.mxu1  ;;  %4666 = vmatmul.mubr.bf16.gmra.mxu1 %v4360_v54  ;;  %v5177_v63 = vshll.u32 %v16204_v2, 16 }
 0x286   : > { %v3232_v15 = vadd.f32 %v3146_v32, %v19048_v1  ;;  %11760 = vmatprep.mubr.msk.bf16.mxu0 %vm1314_vm0, %v3852_v21  ;;  %11816 = vmatprep.mubr.msk.bf16.mxu1 %vm1314_vm0, %v4363_v5  ;;  %v5152_v5 = vshrl.u32 %v16174_v25, 16  ;;  %v5184_v9 = vshll.u32 %v16190_v37, 16 }
 0x287   : > { %v3148_v26 = vpop.f32.mrf.mxu0  ;;  %v3659_v31 = vpop.f32.mrf.mxu1 }
 0x288   : > { %v16186_v14 = vadd.f32 %v3657_v33, %v3232_v15  ;;  %v5157_v33 = vor.u32 %v5156_v49, %v5152_v5  ;;  %v5161_v26 = vrot.slane %v5159_v23, 1  ;;  %v5173_v5 = vshrl.u32 %v16183_v61, 16 }
 0x289   : > { %v3149_v62 = vpop.f32.mrf.mxu0  ;;  %v3660_v21 = vpop.f32.mrf.mxu1  ;;  %v5196_v23 = vshrl.u32 %v16190_v37, 16 }
 0x28a   : > { %v3233_v60 = vadd.f32 %v3149_v62, %v15777_v10  ;;  %v5183_v62 = vor.u32 %v5181_v58, %v5171_v13 }
 0x28b   : > { %v3151_v46 = vpop.f32.mrf.mxu0  ;;  %v3662_v53 = vpop.f32.mrf.mxu1 }
 0x28c   : > { %v16195_v54 = vadd.f32 %v3660_v21, %v3233_v60  ;;  %v5186_v60 = vrot.slane %v5184_v9, 1  ;;  %v14005_v21 = vld [vmem:[%s14390_s24 + $0x40] sm:$0xff] }
 0x28d   : > { %v3154_v32 = vpop.f32.mrf.mxu0  ;;  %4163 = vmatmul.mubr.bf16.gmra.mxu0 %v3850_v45  ;;  %v3665_v1 = vpop.f32.mrf.mxu1  ;;  %4674 = vmatmul.mubr.bf16.gmra.mxu1 %v4359_v8  ;;  %v14004_v45 = vld [vmem:[%s14390_s24 + $0x38] sm:$0xff] }
 0x28e   : > { %v3234_v10 = vadd.f32 %v3154_v32, %v15788_v18  ;;  %11890 = vmatprep.mubr.msk.bf16.mxu0 %vm1314_vm0, %v16158_v36  ;;  %11946 = vmatprep.mubr.msk.bf16.mxu1 %vm1314_vm0, %v5172_v16  ;;  %v16210_v18 = vcombine.high %v14004_v45, %v14005_v21  ;;  %v5162_v16 = vsel %vm949_vm2, %v5157_v33, %v5161_v26 }
 0x28f   : > { %v3156_v15 = vpop.f32.mrf.mxu0  ;;  %v3667_v48 = vpop.f32.mrf.mxu1  ;;  %v5187_v13 = vsel %vm949_vm2, %v5183_v62, %v5186_v60  ;;  %v16226_v33 = vcombine.low %v14004_v45, %v14005_v21 }
 0x290   : > { %v16206_v31 = vadd.f32 %v3665_v1, %v3234_v10  ;;  %v5199_v58 = vshll.u32 %v16210_v18, 16  ;;  %v5175_v1 = vor.u32 %v5173_v5, %v5161_v26  ;;  %v5179_v15 = vrot.slane %v5177_v63, 1 }
 0x291   : > { %v3157_v8 = vpop.f32.mrf.mxu0  ;;  %v3668_v36 = vpop.f32.mrf.mxu1  ;;  %v5188_v26 = vshrl.u32 %v16204_v2, 16  ;;  %v5192_v45 = vshll.u32 %v16226_v33, 16  ;;  %v5211_v63 = vshrl.u32 %v16210_v18, 16 }
 0x292   : > { %v3235_v46 = vadd.f32 %v3157_v8, %v15799_v38  ;;  %v5198_v8 = vor.u32 %v5196_v23, %v5186_v60 }
 0x293   : > { %v3159_v53 = vpop.f32.mrf.mxu0  ;;  %v3670_v49 = vpop.f32.mrf.mxu1 }
 0x294   : > { %v16216_v35 = vadd.f32 %v3668_v36, %v3235_v46  ;;  %v5201_v46 = vrot.slane %v5199_v58, 1  ;;  %v14007_v36 = vld [vmem:[%s14390_s24 + $0x50] sm:$0xff] }
 0x295   : > { %v3162_v9 = vpop.f32.mrf.mxu0  ;;  %4956 = vmatmul.mubr.bf16.vlgmr.msra.gmra.mxu0 %v16174_v25  ;;  %v3673_v32 = vpop.f32.mrf.mxu1  ;;  %5585 = vmatmul.mubr.bf16.vlgmr.msra.gmra.mxu1 %v5162_v16  ;;  %v14006_v25 = vld [vmem:[%s14390_s24 + $0x48] sm:$0xff] }
 0x296   : > { %v3236_v38 = vadd.f32 %v3162_v9, %v15815_v24  ;;  %11891 = vmatprep.mubr.msk.bf16.mxu0 %vm1314_vm0, %v16168_v50  ;;  %11947 = vmatprep.mubr.msk.bf16.mxu1 %vm1314_vm0, %v5187_v13  ;;  %v16232_v24 = vcombine.high %v14006_v25, %v14007_v36  ;;  %v5180_v13 = vsel %vm949_vm2, %v5175_v1, %v5179_v15 }
 0x297   : > { %v3164_v10 = vpop.f32.mrf.mxu0  ;;  %v3675_v62 = vpop.f32.mrf.mxu1  ;;  %v5202_v60 = vsel %vm949_vm2, %v5198_v8, %v5201_v46  ;;  %v16248_v1 = vcombine.low %v14006_v25, %v14007_v36 }
 0x298   : > { %v16228_v48 = vadd.f32 %v3673_v32, %v3236_v38  ;;  %v5214_v23 = vshll.u32 %v16232_v24, 16  ;;  %v5190_v32 = vor.u32 %v5188_v26, %v5179_v15  ;;  %v5194_v10 = vrot.slane %v5192_v45, 1 }
 0x299   : > { %v3165_v53 = vpop.f32.mrf.mxu0  ;;  %v3676_v50 = vpop.f32.mrf.mxu1  ;;  %v5203_v15 = vshrl.u32 %v16226_v33, 16  ;;  %v5207_v25 = vshll.u32 %v16248_v1, 16  ;;  %v5226_v45 = vshrl.u32 %v16232_v24, 16 }
 0x29a   : > { %v3237_v16 = vadd.f32 %v3165_v53, %v15831_v6  ;;  %v5213_v53 = vor.u32 %v5211_v63, %v5201_v46 }
 0x29b   : > { %v3167_v49 = vpop.f32.mrf.mxu0  ;;  %v3678_v5 = vpop.f32.mrf.mxu1 }
 0x29c   : > { %v16238_v21 = vadd.f32 %v3676_v50, %v3237_v16  ;;  %v5216_v16 = vrot.slane %v5214_v23, 1  ;;  %v14009_v50 = vld [vmem:[%s14390_s24 + $0x60] sm:$0xff] }
 0x29d   : > { %v3170_v58 = vpop.f32.mrf.mxu0  ;;  %4964 = vmatmul.mubr.bf16.gmra.mxu0 %v16183_v61  ;;  %v3681_v9 = vpop.f32.mrf.mxu1  ;;  %5593 = vmatmul.mubr.bf16.gmra.mxu1 %v5180_v13  ;;  %v14008_v61 = vld [vmem:[%s14390_s24 + $0x58] sm:$0xff] }
 0x29e   : > { %v3238_v6 = vadd.f32 %v3170_v58, %v15849_v27  ;;  %11892 = vmatprep.mubr.msk.bf16.mxu0 %vm1314_vm0, %v16190_v37  ;;  %11948 = vmatprep.mubr.msk.bf16.mxu1 %vm1314_vm0, %v5202_v60  ;;  %v16254_v27 = vcombine.high %v14008_v61, %v14009_v50  ;;  %v5195_v60 = vsel %vm949_vm2, %v5190_v32, %v5194_v10 }
 0x29f   : > { %v3172_v38 = vpop.f32.mrf.mxu0  ;;  %v3683_v8 = vpop.f32.mrf.mxu1  ;;  %v5217_v46 = vsel %vm949_vm2, %v5213_v53, %v5216_v16  ;;  %v16270_v32 = vcombine.low %v14008_v61, %v14009_v50 }
 0x2a0   : > { %v16250_v62 = vadd.f32 %v3681_v9, %v3238_v6  ;;  %v5229_v63 = vshll.u32 %v16254_v27, 16  ;;  %v5205_v9 = vor.u32 %v5203_v15, %v5194_v10  ;;  %v5209_v38 = vrot.slane %v5207_v25, 1 }
 0x2a1   : > { %v3173_v49 = vpop.f32.mrf.mxu0  ;;  %v3684_v37 = vpop.f32.mrf.mxu1  ;;  %v5218_v10 = vshrl.u32 %v16248_v1, 16  ;;  %v5222_v61 = vshll.u32 %v16270_v32, 16  ;;  %v5241_v25 = vshrl.u32 %v16254_v27, 16 }
 0x2a2   : > { %v3239_v13 = vadd.f32 %v3173_v49, %v15865_v42  ;;  %v5228_v49 = vor.u32 %v5226_v45, %v5216_v16 }
 0x2a3   : > { %v3175_v5 = vpop.f32.mrf.mxu0  ;;  %v3686_v26 = vpop.f32.mrf.mxu1 }
 0x2a4   : > { %v16260_v36 = vadd.f32 %v3684_v37, %v3239_v13  ;;  %v5231_v13 = vrot.slane %v5229_v63, 1  ;;  %v14011_v37 = vld [vmem:[%s14390_s24 + $0x70] sm:$0xff] }
 0x2a5   : > { %v3178_v23 = vpop.f32.mrf.mxu0  ;;  %4972 = vmatmul.mubr.bf16.gmra.mxu0 %v16204_v2  ;;  %v3689_v58 = vpop.f32.mrf.mxu1  ;;  %5601 = vmatmul.mubr.bf16.gmra.mxu1 %v5195_v60  ;;  %v14010_v2 = vld [vmem:[%s14390_s24 + $0x68] sm:$0xff] }
 0x2a6   : > { %v3240_v42 = vadd.f32 %v3178_v23, %v15883_v57  ;;  %11893 = vmatprep.mubr.msk.bf16.mxu0 %vm1314_vm0, %v16210_v18  ;;  %11949 = vmatprep.mubr.msk.bf16.mxu1 %vm1314_vm0, %v5217_v46  ;;  %v16276_v57 = vcombine.high %v14010_v2, %v14011_v37  ;;  %v5210_v46 = vsel %vm949_vm2, %v5205_v9, %v5209_v38 }
 0x2a7   : > { %v3180_v6 = vpop.f32.mrf.mxu0  ;;  %v3691_v53 = vpop.f32.mrf.mxu1  ;;  %v5232_v16 = vsel %vm949_vm2, %v5228_v49, %v5231_v13  ;;  %v16292_v9 = vcombine.low %v14010_v2, %v14011_v37 }
 0x2a8   : > { %v16272_v8 = vadd.f32 %v3689_v58, %v3240_v42  ;;  %v5244_v45 = vshll.u32 %v16276_v57, 16  ;;  %v5220_v58 = vor.u32 %v5218_v10, %v5209_v38  ;;  %v5224_v6 = vrot.slane %v5222_v61, 1 }
 0x2a9   : > { %v3181_v5 = vpop.f32.mrf.mxu0  ;;  %v3692_v18 = vpop.f32.mrf.mxu1  ;;  %v5233_v38 = vshrl.u32 %v16270_v32, 16  ;;  %v5237_v2 = vshll.u32 %v16292_v9, 16  ;;  %v5256_v61 = vshrl.u32 %v16276_v57, 16 }
 0x2aa   : > { %v3241_v60 = vadd.f32 %v3181_v5, %v15901_v55  ;;  %v5243_v5 = vor.u32 %v5241_v25, %v5231_v13 }
 0x2ab   : > { %v3183_v26 = vpop.f32.mrf.mxu0  ;;  %v3694_v15 = vpop.f32.mrf.mxu1 }
 0x2ac   : > { %v16282_v50 = vadd.f32 %v3692_v18, %v3241_v60  ;;  %v5246_v60 = vrot.slane %v5244_v45, 1  ;;  %v14013_v18 = vld [vmem:[%s14390_s24 + $0x80] sm:$0xff] }
 0x2ad   : > { %v3186_v63 = vpop.f32.mrf.mxu0  ;;  %4980 = vmatmul.mubr.bf16.gmra.mxu0 %v16226_v33  ;;  %v3697_v23 = vpop.f32.mrf.mxu1  ;;  %5609 = vmatmul.mubr.bf16.gmra.mxu1 %v5210_v46  ;;  %v14012_v33 = vld [vmem:[%s14390_s24 + $0x78] sm:$0xff] }
 0x2ae   : > { %v3242_v55 = vadd.f32 %v3186_v63, %v15919_v17  ;;  %11894 = vmatprep.mubr.msk.bf16.mxu0 %vm1314_vm0, %v16232_v24  ;;  %11950 = vmatprep.mubr.msk.bf16.mxu1 %vm1314_vm0, %v5232_v16  ;;  %v16298_v17 = vcombine.high %v14012_v33, %v14013_v18  ;;  %v5225_v16 = vsel %vm949_vm2, %v5220_v58, %v5224_v6 }
 0x2af   : > { %v3188_v42 = vpop.f32.mrf.mxu0  ;;  %v3699_v49 = vpop.f32.mrf.mxu1  ;;  %v5247_v13 = vsel %vm949_vm2, %v5243_v5, %v5246_v60  ;;  %v16314_v58 = vcombine.low %v14012_v33, %v14013_v18 }
 0x2b0   : > { %v16294_v53 = vadd.f32 %v3697_v23, %v3242_v55  ;;  %v5259_v25 = vshll.u32 %v16298_v17, 16  ;;  %v5235_v23 = vor.u32 %v5233_v38, %v5224_v6  ;;  %v5239_v42 = vrot.slane %v5237_v2, 1 }
 0x2b1   : > { %v3189_v26 = vpop.f32.mrf.mxu0  ;;  %v3700_v24 = vpop.f32.mrf.mxu1  ;;  %v5248_v6 = vshrl.u32 %v16292_v9, 16  ;;  %v5252_v33 = vshll.u32 %v16314_v58, 16  ;;  %v5271_v2 = vshrl.u32 %v16298_v17, 16 }
 0x2b2   : > { %v3243_v46 = vadd.f32 %v3189_v26, %v15940_v0  ;;  %v5258_v26 = vor.u32 %v5256_v61, %v5246_v60 }
 0x2b3   : > { %v3191_v15 = vpop.f32.mrf.mxu0  ;;  %v3702_v10 = vpop.f32.mrf.mxu1 }
 0x2b4   : > { %v16304_v37 = vadd.f32 %v3700_v24, %v3243_v46  ;;  %v5261_v46 = vrot.slane %v5259_v25, 1  ;;  %v14015_v24 = vld [vmem:[%s14390_s24 + $0x90] sm:$0xff] }
 0x2b5   : > { %v3194_v45 = vpop.f32.mrf.mxu0  ;;  %4988 = vmatmul.mubr.bf16.gmra.mxu0 %v16248_v1  ;;  %v3705_v63 = vpop.f32.mrf.mxu1  ;;  %5617 = vmatmul.mubr.bf16.gmra.mxu1 %v5225_v16  ;;  %v14014_v1 = vld [vmem:[%s14390_s24 + $0x88] sm:$0xff] }
 0x2b6   : > { %v3244_v0 = vadd.f32 %v3194_v45, %v15956_v29  ;;  %11895 = vmatprep.mubr.msk.bf16.mxu0 %vm1314_vm0, %v16254_v27  ;;  %11951 = vmatprep.mubr.msk.bf16.mxu1 %vm1314_vm0, %v5247_v13  ;;  %v16320_v29 = vcombine.high %v14014_v1, %v14015_v24  ;;  %v5240_v13 = vsel %vm949_vm2, %v5235_v23, %v5239_v42 }
 0x2b7   : > { %v3196_v55 = vpop.f32.mrf.mxu0  ;;  %v3707_v5 = vpop.f32.mrf.mxu1  ;;  %v5262_v60 = vsel %vm949_vm2, %v5258_v26, %v5261_v46  ;;  %v16336_v23 = vcombine.low %v14014_v1, %v14015_v24 }
 0x2b8   : > { %v16316_v49 = vadd.f32 %v3705_v63, %v3244_v0  ;;  %v5274_v61 = vshll.u32 %v16320_v29, 16  ;;  %v5250_v63 = vor.u32 %v5248_v6, %v5239_v42  ;;  %v5254_v55 = vrot.slane %v5252_v33, 1 }
 0x2b9   : > { %v3197_v15 = vpop.f32.mrf.mxu0  ;;  %v3708_v27 = vpop.f32.mrf.mxu1  ;;  %v5263_v42 = vshrl.u32 %v16314_v58, 16  ;;  %v5267_v1 = vshll.u32 %v16336_v23, 16  ;;  %v5286_v33 = vshrl.u32 %v16320_v29, 16 }
 0x2ba   : > { %v3245_v16 = vadd.f32 %v3197_v15, %v15972_v52  ;;  %v5273_v15 = vor.u32 %v5271_v2, %v5261_v46 }
 0x2bb   : > { %v3199_v10 = vpop.f32.mrf.mxu0  ;;  %v3710_v38 = vpop.f32.mrf.mxu1 }
 0x2bc   : > { %v16326_v18 = vadd.f32 %v3708_v27, %v3245_v16  ;;  %v5276_v16 = vrot.slane %v5274_v61, 1  ;;  %v14017_v27 = vld [vmem:[%s14390_s24 + $0xa0] sm:$0xff] }
 0x2bd   : > { %v3202_v25 = vpop.f32.mrf.mxu0  ;;  %4996 = vmatmul.mubr.bf16.gmra.mxu0 %v16270_v32  ;;  %v3713_v45 = vpop.f32.mrf.mxu1  ;;  %5625 = vmatmul.mubr.bf16.gmra.mxu1 %v5240_v13  ;;  %v14016_v32 = vld [vmem:[%s14390_s24 + $0x98] sm:$0xff] }
 0x2be   : > { %v3246_v52 = vadd.f32 %v3202_v25, %v15991_v3  ;;  %11896 = vmatprep.mubr.msk.bf16.mxu0 %vm1314_vm0, %v16276_v57  ;;  %11952 = vmatprep.mubr.msk.bf16.mxu1 %vm1314_vm0, %v5262_v60  ;;  %v16342_v3 = vcombine.high %v14016_v32, %v14017_v27  ;;  %v5255_v60 = vsel %vm949_vm2, %v5250_v63, %v5254_v55 }
 0x2bf   : > { %v3204_v0 = vpop.f32.mrf.mxu0  ;;  %v3715_v26 = vpop.f32.mrf.mxu1  ;;  %v5277_v46 = vsel %vm949_vm2, %v5273_v15, %v5276_v16  ;;  %v16358_v63 = vcombine.low %v14016_v32, %v14017_v27 }
 0x2c0   : > { %v16338_v5 = vadd.f32 %v3713_v45, %v3246_v52  ;;  %v5289_v2 = vshll.u32 %v16342_v3, 16  ;;  %v5265_v45 = vor.u32 %v5263_v42, %v5254_v55  ;;  %v5269_v0 = vrot.slane %v5267_v1, 1 }
 0x2c1   : > { %v3205_v10 = vpop.f32.mrf.mxu0  ;;  %v3716_v57 = vpop.f32.mrf.mxu1  ;;  %v5282_v55 = vshll.u32 %v16358_v63, 16  ;;  %v5301_v42 = vshrl.u32 %v16342_v3, 16 }
 0x2c2   : > { %v3247_v13 = vadd.f32 %v3205_v10, %v16007_v41  ;;  %v5288_v10 = vor.u32 %v5286_v33, %v5276_v16 }
 0x2c3   : > { %v3207_v38 = vpop.f32.mrf.mxu0  ;;  %v3718_v6 = vpop.f32.mrf.mxu1 }
 0x2c4   : > { %v16348_v24 = vadd.f32 %v3716_v57, %v3247_v13  ;;  %v5291_v13 = vrot.slane %v5289_v2, 1  ;;  %v14019_v57 = vld [vmem:[%s14390_s24 + $0xb0] sm:$0xff] }
 0x2c5   : > { %v3210_v61 = vpop.f32.mrf.mxu0  ;;  %5004 = vmatmul.mubr.bf16.gmra.mxu0 %v16292_v9  ;;  %v3721_v25 = vpop.f32.mrf.mxu1  ;;  %5633 = vmatmul.mubr.bf16.gmra.mxu1 %v5255_v60  ;;  %v14018_v9 = vld [vmem:[%s14390_s24 + $0xa8] sm:$0xff] }
 0x2c6   : > { %v3248_v41 = vadd.f32 %v3210_v61, %v16022_v39  ;;  %11897 = vmatprep.mubr.msk.bf16.mxu0 %vm1314_vm0, %v16298_v17  ;;  %11953 = vmatprep.mubr.msk.bf16.mxu1 %vm1314_vm0, %v5277_v46  ;;  %v16364_v39 = vcombine.high %v14018_v9, %v14019_v57  ;;  %v5270_v17 = vsel %vm949_vm2, %v5265_v45, %v5269_v0  ;;  %v5278_v46 = vshrl.u32 %v16336_v23, 16 }
 0x2c7   : > { %v3212_v52 = vpop.f32.mrf.mxu0  ;;  %v3723_v15 = vpop.f32.mrf.mxu1  ;;  %v5292_v27 = vsel %vm949_vm2, %v5288_v10, %v5291_v13  ;;  %v5303_v10 = vor.u32 %v5301_v42, %v5291_v13 }
 0x2c8   : > { %v16360_v26 = vadd.f32 %v3721_v25, %v3248_v41  ;;  %v5304_v16 = vshll.u32 %v16364_v39, 16  ;;  %v5280_v41 = vor.u32 %v5278_v46, %v5269_v0  ;;  %v5284_v25 = vrot.slane %v5282_v55, 1 }
 0x2c9   : > { %v3213_v38 = vpop.f32.mrf.mxu0  ;;  %v3724_v60 = vpop.f32.mrf.mxu1  ;;  %v16377_v52 = vcombine.low %v14018_v9, %v14019_v57  ;;  %v5293_v0 = vshrl.u32 %v16358_v63, 16  ;;  %v5316_v55 = vshrl.u32 %v16364_v39, 16 }
 0x2ca   : > { %v5306_v38 = vrot.slane %v5304_v16, 1  ;;  %v14021_v60 = vld [vmem:[%s14390_s24 + $0xc0] sm:$0xff] }
 0x2cb   : > { %v3214_v6 = vpop.f32.mrf.mxu0  ;;  %v3725_v32 = vpop.f32.mrf.mxu1  ;;  %v5297_v9 = vshll.u32 %v16377_v52, 16 }
 0x2cc   : > { %v5307_v13 = vsel %vm949_vm2, %v5303_v10, %v5306_v38 }
 0x2cd   : > { %v4036_v1 = vpop.f32.mrf.mxu0  ;;  %5012 = vmatmul.mubr.bf16.gmra.mxu0 %v16314_v58  ;;  %v4547_v2 = vpop.f32.mrf.mxu1  ;;  %5641 = vmatmul.mubr.bf16.gmra.mxu1 %v5270_v17  ;;  %v14020_v58 = vld [vmem:[%s14390_s24 + $0xb8] sm:$0xff] }
 0x2ce   : > { %v4170_v33 = vadd.f32 %v4036_v1, %v16037_v28  ;;  %11898 = vmatprep.mubr.msk.bf16.mxu0 %vm1314_vm0, %v16320_v29  ;;  %11954 = vmatprep.mubr.msk.bf16.mxu1 %vm1314_vm0, %v5292_v27  ;;  %v16383_v28 = vcombine.high %v14020_v58, %v14021_v60  ;;  %v5285_v27 = vsel %vm949_vm2, %v5280_v41, %v5284_v25 }
 0x2cf   : > { %v4038_v61 = vpop.f32.mrf.mxu0  ;;  %v4549_v15 = vpop.f32.mrf.mxu1  ;;  %v16399_v41 = vcombine.low %v14020_v58, %v14021_v60 }
 0x2d0   : > { %v16379_v45 = vadd.f32 %v4547_v2, %v4170_v33  ;;  %v5319_v42 = vshll.u32 %v16383_v28, 16  ;;  %v5295_v2 = vor.u32 %v5293_v0, %v5284_v25  ;;  %v5299_v61 = vrot.slane %v5297_v9, 1 }
 0x2d1   : > { %v4039_v6 = vpop.f32.mrf.mxu0  ;;  %v4550_v29 = vpop.f32.mrf.mxu1  ;;  %v5308_v25 = vshrl.u32 %v16377_v52, 16  ;;  %v5312_v58 = vshll.u32 %v16399_v41, 16  ;;  %v5331_v9 = vshrl.u32 %v16383_v28, 16 }
 0x2d2   : > { %v4171_v17 = vadd.f32 %v4039_v6, %v16045_v43  ;;  %v5318_v6 = vor.u32 %v5316_v55, %v5306_v38 }
 0x2d3   : > { %v4041_v32 = vpop.f32.mrf.mxu0  ;;  %v4552_v46 = vpop.f32.mrf.mxu1 }
 0x2d4   : > { %v16389_v57 = vadd.f32 %v4550_v29, %v4171_v17  ;;  %v5321_v17 = vrot.slane %v5319_v42, 1  ;;  %v14023_v29 = vld [vmem:[%s14390_s24 + $0xd0] sm:$0xff] }
 0x2d5   : > { %v4044_v16 = vpop.f32.mrf.mxu0  ;;  %5020 = vmatmul.mubr.bf16.gmra.mxu0 %v16336_v23  ;;  %v4555_v1 = vpop.f32.mrf.mxu1  ;;  %5649 = vmatmul.mubr.bf16.gmra.mxu1 %v5285_v27  ;;  %v14022_v23 = vld [vmem:[%s14390_s24 + $0xc8] sm:$0xff] }
 0x2d6   : > { %v4172_v43 = vadd.f32 %v4044_v16, %v16055_v47  ;;  %11899 = vmatprep.mubr.msk.bf16.mxu0 %vm1314_vm0, %v16342_v3  ;;  %11955 = vmatprep.mubr.msk.bf16.mxu1 %vm1314_vm0, %v5307_v13  ;;  %v16405_v47 = vcombine.high %v14022_v23, %v14023_v29  ;;  %v5300_v13 = vsel %vm949_vm2, %v5295_v2, %v5299_v61 }
 0x2d7   : > { %v4046_v33 = vpop.f32.mrf.mxu0  ;;  %v4557_v10 = vpop.f32.mrf.mxu1  ;;  %v5322_v38 = vsel %vm949_vm2, %v5318_v6, %v5321_v17  ;;  %v16421_v2 = vcombine.low %v14022_v23, %v14023_v29 }
 0x2d8   : > { %v16401_v15 = vadd.f32 %v4555_v1, %v4172_v43  ;;  %v5334_v55 = vshll.u32 %v16405_v47, 16  ;;  %v5310_v1 = vor.u32 %v5308_v25, %v5299_v61  ;;  %v5314_v33 = vrot.slane %v5312_v58, 1 }
 0x2d9   : > { %v4047_v32 = vpop.f32.mrf.mxu0  ;;  %v4558_v3 = vpop.f32.mrf.mxu1  ;;  %v5323_v61 = vshrl.u32 %v16399_v41, 16  ;;  %v5327_v23 = vshll.u32 %v16421_v2, 16  ;;  %v5346_v58 = vshrl.u32 %v16405_v47, 16 }
 0x2da   : > { %v4173_v27 = vadd.f32 %v4047_v32, %v16063_v30  ;;  %v5333_v32 = vor.u32 %v5331_v9, %v5321_v17 }
 0x2db   : > { %v4049_v46 = vpop.f32.mrf.mxu0  ;;  %v4560_v0 = vpop.f32.mrf.mxu1 }
 0x2dc   : > { %v16411_v60 = vadd.f32 %v4558_v3, %v4173_v27  ;;  %v5336_v27 = vrot.slane %v5334_v55, 1  ;;  %v14025_v3 = vld [vmem:[%s14390_s24 + $0xe0] sm:$0xff] }
 0x2dd   : > { %v4052_v42 = vpop.f32.mrf.mxu0  ;;  %5028 = vmatmul.mubr.bf16.gmra.mxu0 %v16358_v63  ;;  %v4563_v16 = vpop.f32.mrf.mxu1  ;;  %5657 = vmatmul.mubr.bf16.gmra.mxu1 %v5300_v13  ;;  %v14024_v63 = vld [vmem:[%s14390_s24 + $0xd8] sm:$0xff] }
 0x2de   : > { %v4174_v30 = vadd.f32 %v4052_v42, %v16073_v51  ;;  %11900 = vmatprep.mubr.msk.bf16.mxu0 %vm1314_vm0, %v16364_v39  ;;  %11956 = vmatprep.mubr.msk.bf16.mxu1 %vm1314_vm0, %v5322_v38  ;;  %v16427_v51 = vcombine.high %v14024_v63, %v14025_v3  ;;  %v5315_v38 = vsel %vm949_vm2, %v5310_v1, %v5314_v33 }
 0x2df   : > { %v4054_v43 = vpop.f32.mrf.mxu0  ;;  %v4565_v6 = vpop.f32.mrf.mxu1  ;;  %v5337_v17 = vsel %vm949_vm2, %v5333_v32, %v5336_v27  ;;  %v16443_v1 = vcombine.low %v14024_v63, %v14025_v3 }
 0x2e0   : > { %v16423_v10 = vadd.f32 %v4563_v16, %v4174_v30  ;;  %v5349_v9 = vshll.u32 %v16427_v51, 16  ;;  %v5325_v16 = vor.u32 %v5323_v61, %v5314_v33  ;;  %v5329_v43 = vrot.slane %v5327_v23, 1 }
 0x2e1   : > { %v4055_v46 = vpop.f32.mrf.mxu0  ;;  %v4566_v39 = vpop.f32.mrf.mxu1  ;;  %v5338_v33 = vshrl.u32 %v16421_v2, 16  ;;  %v5342_v63 = vshll.u32 %v16443_v1, 16  ;;  %v5361_v23 = vshrl.u32 %v16427_v51, 16 }
 0x2e2   : > { %v4175_v13 = vadd.f32 %v4055_v46, %v16081_v34  ;;  %v5348_v46 = vor.u32 %v5346_v58, %v5336_v27 }
 0x2e3   : > { %v4057_v0 = vpop.f32.mrf.mxu0  ;;  %v4568_v25 = vpop.f32.mrf.mxu1 }
 0x2e4   : > { %v16433_v29 = vadd.f32 %v4566_v39, %v4175_v13  ;;  %v5351_v13 = vrot.slane %v5349_v9, 1  ;;  %v14027_v39 = vld [vmem:[%s14390_s24 + $0xf0] sm:$0xff] }
 0x2e5   : > { %v4060_v55 = vpop.f32.mrf.mxu0  ;;  %5036 = vmatmul.mubr.bf16.gmra.mxu0 %v16377_v52  ;;  %v4571_v42 = vpop.f32.mrf.mxu1  ;;  %5665 = vmatmul.mubr.bf16.gmra.mxu1 %v5315_v38  ;;  %v14026_v52 = vld [vmem:[%s14390_s24 + $0xe8] sm:$0xff] }
 0x2e6   : > { %v4176_v34 = vadd.f32 %v4060_v55, %v16091_v20  ;;  %11901 = vmatprep.mubr.msk.bf16.mxu0 %vm1314_vm0, %v16383_v28  ;;  %11957 = vmatprep.mubr.msk.bf16.mxu1 %vm1314_vm0, %v5337_v17  ;;  %v16449_v20 = vcombine.high %v14026_v52, %v14027_v39  ;;  %v5330_v17 = vsel %vm949_vm2, %v5325_v16, %v5329_v43 }
 0x2e7   : > { %v4062_v30 = vpop.f32.mrf.mxu0  ;;  %v4573_v32 = vpop.f32.mrf.mxu1  ;;  %v5352_v27 = vsel %vm949_vm2, %v5348_v46, %v5351_v13  ;;  %v16465_v16 = vcombine.low %v14026_v52, %v14027_v39 }
 0x2e8   : > { %v16445_v6 = vadd.f32 %v4571_v42, %v4176_v34  ;;  %v5364_v58 = vshll.u32 %v16449_v20, 16  ;;  %v5340_v42 = vor.u32 %v5338_v33, %v5329_v43  ;;  %v5344_v30 = vrot.slane %v5342_v63, 1 }
 0x2e9   : > { %v4063_v0 = vpop.f32.mrf.mxu0  ;;  %v4574_v28 = vpop.f32.mrf.mxu1  ;;  %v5353_v43 = vshrl.u32 %v16443_v1, 16  ;;  %v5357_v52 = vshll.u32 %v16465_v16, 16  ;;  %v5376_v63 = vshrl.u32 %v16449_v20, 16 }
 0x2ea   : > { %v4177_v38 = vadd.f32 %v4063_v0, %v16099_v44  ;;  %v5363_v0 = vor.u32 %v5361_v23, %v5351_v13 }
 0x2eb   : > { %v4065_v25 = vpop.f32.mrf.mxu0  ;;  %v4576_v61 = vpop.f32.mrf.mxu1 }
 0x2ec   : > { %v16455_v3 = vadd.f32 %v4574_v28, %v4177_v38  ;;  %v5366_v38 = vrot.slane %v5364_v58, 1  ;;  %v14029_v28 = vld [vmem:[%s14390_s24 + $0x100] sm:$0xff] }
 0x2ed   : > { %v4068_v9 = vpop.f32.mrf.mxu0  ;;  %5044 = vmatmul.mubr.bf16.gmra.mxu0 %v16399_v41  ;;  %v4579_v55 = vpop.f32.mrf.mxu1  ;;  %5673 = vmatmul.mubr.bf16.gmra.mxu1 %v5330_v17  ;;  %v14028_v41 = vld [vmem:[%s14390_s24 + $0xf8] sm:$0xff] }
 0x2ee   : > { %v4178_v44 = vadd.f32 %v4068_v9, %v16109_v59  ;;  %11902 = vmatprep.mubr.msk.bf16.mxu0 %vm1314_vm0, %v16405_v47  ;;  %11958 = vmatprep.mubr.msk.bf16.mxu1 %vm1314_vm0, %v5352_v27  ;;  %v16471_v59 = vcombine.high %v14028_v41, %v14029_v28  ;;  %v5345_v27 = vsel %vm949_vm2, %v5340_v42, %v5344_v30 }
 0x2ef   : > { %v4070_v34 = vpop.f32.mrf.mxu0  ;;  %v4581_v46 = vpop.f32.mrf.mxu1  ;;  %v5367_v13 = vsel %vm949_vm2, %v5363_v0, %v5366_v38  ;;  %v16487_v42 = vcombine.low %v14028_v41, %v14029_v28 }
 0x2f0   : > { %v16467_v32 = vadd.f32 %v4579_v55, %v4178_v44  ;;  %v5379_v23 = vshll.u32 %v16471_v59, 16  ;;  %v5355_v55 = vor.u32 %v5353_v43, %v5344_v30  ;;  %v5359_v34 = vrot.slane %v5357_v52, 1 }
 0x2f1   : > { %v4071_v25 = vpop.f32.mrf.mxu0  ;;  %v4582_v47 = vpop.f32.mrf.mxu1  ;;  %v5368_v30 = vshrl.u32 %v16465_v16, 16  ;;  %v5372_v41 = vshll.u32 %v16487_v42, 16  ;;  %v5391_v52 = vshrl.u32 %v16471_v59, 16 }
 0x2f2   : > { %v4179_v17 = vadd.f32 %v4071_v25, %v16117_v19  ;;  %v5378_v25 = vor.u32 %v5376_v63, %v5366_v38 }
 0x2f3   : > { %v4073_v61 = vpop.f32.mrf.mxu0  ;;  %v4584_v33 = vpop.f32.mrf.mxu1 }
 0x2f4   : > { %v16477_v39 = vadd.f32 %v4582_v47, %v4179_v17  ;;  %v5381_v17 = vrot.slane %v5379_v23, 1  ;;  %v5360_v33 = vsel %vm949_vm2, %v5355_v55, %v5359_v34 }
 0x2f5   : > { %v4076_v58 = vpop.f32.mrf.mxu0  ;;  %5052 = vmatmul.mubr.bf16.gmra.mxu0 %v16421_v2  ;;  %v4587_v9 = vpop.f32.mrf.mxu1  ;;  %5681 = vmatmul.mubr.bf16.gmra.mxu1 %v5345_v27  ;;  %v14030_v2 = vld [vmem:[%s14390_s24 + $0x108] sm:$0xff] }
 0x2f6   : > { %v4180_v19 = vadd.f32 %v4076_v58, %v16127_v56  ;;  %11903 = vmatprep.mubr.msk.bf16.mxu0 %vm1314_vm0, %v16427_v51  ;;  %11959 = vmatprep.mubr.msk.bf16.mxu1 %vm1314_vm0, %v5367_v13  ;;  %v16492_v47 = vcombine.high %v14030_v2, %v14030_v2  ;;  %v5382_v38 = vsel %vm949_vm2, %v5378_v25, %v5381_v17 }
 0x2f7   : > { %v4078_v44 = vpop.f32.mrf.mxu0  ;;  %v4589_v0 = vpop.f32.mrf.mxu1  ;;  %v5393_v25 = vor.u32 %v5391_v52, %v5381_v17 }
 0x2f8   : > { %v16489_v46 = vadd.f32 %v4587_v9, %v4180_v19  ;;  %v5394_v13 = vshll.u32 %v16492_v47, 16  ;;  %v5370_v19 = vor.u32 %v5368_v30, %v5359_v34  ;;  %v5374_v9 = vrot.slane %v5372_v41, 1 }
 0x2f9   : > { %v4079_v56 = vpop.f32.mrf.mxu0  ;;  %v4590_v27 = vpop.f32.mrf.mxu1  ;;  %v11875_v44 = vcombine.low %v14030_v2, %v14030_v2 }
 0x2fa   : > { %v4181_v61 = vadd.f32 %v4079_v56, %v16135_v4  ;;  %v5396_v56 = vrot.slane %v5394_v13, 1  ;;  %v5401_v13 = vshrl.u32 %v16492_v47, 16 }
 0x2fb   : > { %v4081_v51 = vpop.f32.mrf.mxu0  ;;  %v4592_v43 = vpop.f32.mrf.mxu1 }
 0x2fc   : > { %v16498_v28 = vadd.f32 %v4590_v27, %v4181_v61  ;;  %v5375_v51 = vsel %vm949_vm2, %v5370_v19, %v5374_v9  ;;  %v5397_v2 = vsel %vm949_vm2, %v5393_v25, %v5396_v56 }
 0x2fd   : > { %v4084_v63 = vpop.f32.mrf.mxu0  ;;  %5060 = vmatmul.mubr.bf16.gmra.mxu0 %v16443_v1  ;;  %v4595_v23 = vpop.f32.mrf.mxu1  ;;  %5689 = vmatmul.mubr.bf16.gmra.mxu1 %v5360_v33  ;;  %v5387_v33 = vshll.u32 %v11875_v44, 16 }
 0x2fe   : > { %v4182_v4 = vadd.f32 %v4084_v63, %v16145_v22  ;;  %11904 = vmatprep.mubr.msk.bf16.mxu0 %vm1314_vm0, %v16449_v20  ;;  %11960 = vmatprep.mubr.msk.bf16.mxu1 %vm1314_vm0, %v5382_v38  ;;  %v5383_v20 = vshrl.u32 %v16487_v42, 16 }
 0x2ff   : > { %v4086_v58 = vpop.f32.mrf.mxu0  ;;  %v4597_v0 = vpop.f32.mrf.mxu1  ;;  %v5389_v52 = vrot.slane %v5387_v33, 1 }
 0x300   : > { %v16508_v55 = vadd.f32 %v4595_v23, %v4182_v4  ;;  %v5385_v38 = vor.u32 %v5383_v20, %v5374_v9  ;;  %v5403_v0 = vor.u32 %v5401_v13, %v5396_v56 }
 0x301   : > { %v4087_v61 = vpop.f32.mrf.mxu0  ;;  %v4598_v22 = vpop.f32.mrf.mxu1 }
 0x302   : > { %v4183_v1 = vadd.f32 %v4087_v61, %v16153_v40  ;;  %v5390_v19 = vsel %vm949_vm2, %v5385_v38, %v5389_v52 }
 0x303   : > { %v4089_v27 = vpop.f32.mrf.mxu0  ;;  %v4600_v34 = vpop.f32.mrf.mxu1 }
 0x304   : > { %v16513_v43 = vadd.f32 %v4598_v22, %v4183_v1  ;;  %v5398_v22 = vshrl.u32 %v11875_v44, 16 }
 0x305   : > { %v4092_v30 = vpop.f32.mrf.mxu0  ;;  %5068 = vmatmul.mubr.bf16.gmra.mxu0 %v16465_v16  ;;  %v4603_v41 = vpop.f32.mrf.mxu1  ;;  %5697 = vmatmul.mubr.bf16.gmra.mxu1 %v5375_v51 }
 0x306   : > { %v4184_v17 = vadd.f32 %v4092_v30, %v16164_v7  ;;  %11905 = vmatprep.mubr.msk.bf16.mxu0 %vm1314_vm0, %v16471_v59  ;;  %11961 = vmatprep.mubr.msk.bf16.mxu1 %vm1314_vm0, %v5397_v2  ;;  %v5400_v34 = vor.u32 %v5398_v22, %v5389_v52 }
 0x307   : > { %v4094_v40 = vpop.f32.mrf.mxu0  ;;  %v4605_v4 = vpop.f32.mrf.mxu1 }
 0x308   : > { %v16522_v63 = vadd.f32 %v4603_v41, %v4184_v17 }
 0x309   : > { %v4095_v23 = vpop.f32.mrf.mxu0  ;;  %v4606_v58 = vpop.f32.mrf.mxu1 }
 0x30a   : > { %v4185_v16 = vadd.f32 %v4095_v23, %v16176_v11 }
 0x30b   : > { %v4097_v7 = vpop.f32.mrf.mxu0  ;;  %v4608_v59 = vpop.f32.mrf.mxu1 }
 0x30c   : > { %v16526_v25 = vadd.f32 %v4606_v58, %v4185_v16 }
 0x30d   : > { %v4100_v61 = vpop.f32.mrf.mxu0  ;;  %5076 = vmatmul.mubr.bf16.gmra.mxu0 %v16487_v42  ;;  %v4611_v1 = vpop.f32.mrf.mxu1  ;;  %5705 = vmatmul.mubr.bf16.gmra.mxu1 %v5390_v19 }
 0x30e   : > { %v4186_v9 = vadd.f32 %v4100_v61, %v16186_v14  ;;  %11906 = vmatprep.mubr.msk.bf16.mxu0 %vm1314_vm0, %v16492_v47  ;;  %11962 = vmatprep.mubr.msk.bf16.mxu1 %vm1314_vm0, %v5403_v0  ;;  %vm11260_vm0 = vcmask 3072  }
 0x30f   : > { %v4102_v11 = vpop.f32.mrf.mxu0  ;;  %v4613_v56 = vpop.f32.mrf.mxu1 }
 0x310   : > { %v16533_v27 = vadd.f32 %v4611_v1, %v4186_v9 }
 0x311   : > { %v4103_v51 = vpop.f32.mrf.mxu0  ;;  %v4614_v33 = vpop.f32.mrf.mxu1 }
 0x312   : > { %v4187_v20 = vadd.f32 %v4103_v51, %v16195_v54 }
 0x313   : > { %v4105_v42 = vpop.f32.mrf.mxu0  ;;  %v4616_v14 = vpop.f32.mrf.mxu1 }
 0x314   : > { %v16536_v2 = vadd.f32 %v4614_v33, %v4187_v20 }
 0x315   : > { %v4108_v30 = vpop.f32.mrf.mxu0  ;;  %5084 = vmatmul.mubr.bf16.gmra.mxu0 %v11875_v44  ;;  %v4619_v17 = vpop.f32.mrf.mxu1  ;;  %5713 = vmatmul.mubr.bf16.gmra.mxu1 %v5400_v34 }
 0x316   : > { %v4188_v47 = vadd.f32 %v4108_v30, %v16206_v31 }
 0x317   : > { %v4110_v41 = vpop.f32.mrf.mxu0  ;;  %v4621_v38 = vpop.f32.mrf.mxu1 }
 0x318   : > { %v16539_v40 = vadd.f32 %v4619_v17, %v4188_v47 }
 0x319   : > { %v4111_v13 = vpop.f32.mrf.mxu0  ;;  %v4622_v54 = vpop.f32.mrf.mxu1 }
 0x31a   : > { %v4189_v4 = vadd.f32 %v4111_v13, %v16216_v35 }
 0x31b   : > { %v4113_v23 = vpop.f32.mrf.mxu0  ;;  %v4624_v16 = vpop.f32.mrf.mxu1 }
 0x31c   : > { %v16542_v52 = vadd.f32 %v4622_v54, %v4189_v4 }
 0x31d   : > { %v4116_v58 = vpop.f32.mrf.mxu0  ;;  %v4627_v44 = vpop.f32.mrf.mxu1 }
 0x31e   : > { %v4190_v7 = vadd.f32 %v4116_v58, %v16228_v48 }
 0x31f   : > { %v4118_v19 = vpop.f32.mrf.mxu0  ;;  %v4629_v0 = vpop.f32.mrf.mxu1 }
 0x320   : > { %v16545_v31 = vadd.f32 %v4627_v44, %v4190_v7 }
 0x321   : > { %v4119_v59 = vpop.f32.mrf.mxu0  ;;  %v4630_v9 = vpop.f32.mrf.mxu1 }
 0x322   : > { %v4191_v61 = vadd.f32 %v4119_v59, %v16238_v21 }
 0x323   : > { %v4121_v1 = vpop.f32.mrf.mxu0  ;;  %v4632_v35 = vpop.f32.mrf.mxu1 }
 0x324   : > { %v16548_v22 = vadd.f32 %v4630_v9, %v4191_v61 }
 0x325   : > { %v4124_v11 = vpop.f32.mrf.mxu0  ;;  %v4635_v51 = vpop.f32.mrf.mxu1 }
 0x326   : > { %v4192_v56 = vadd.f32 %v4124_v11, %v16250_v62 }
 0x327   : > { %v4126_v20 = vpop.f32.mrf.mxu0  ;;  %v4637_v48 = vpop.f32.mrf.mxu1 }
 0x328   : > { %v16551_v33 = vadd.f32 %v4635_v51, %v4192_v56 }
 0x329   : > { %v4127_v34 = vpop.f32.mrf.mxu0  ;;  %v4638_v14 = vpop.f32.mrf.mxu1 }
 0x32a   : > { %v4193_v42 = vadd.f32 %v4127_v34, %v16260_v36 }
 0x32b   : > { %v4129_v30 = vpop.f32.mrf.mxu0  ;;  %v4640_v21 = vpop.f32.mrf.mxu1 }
 0x32c   : > { %v16554_v47 = vadd.f32 %v4638_v14, %v4193_v42 }
 0x32d   : > { %v4132_v17 = vpop.f32.mrf.mxu0  ;;  %v4643_v38 = vpop.f32.mrf.mxu1 }
 0x32e   : > { %v4194_v41 = vadd.f32 %v4132_v17, %v16272_v8 }
 0x32f   : > { %v4134_v13 = vpop.f32.mrf.mxu0  ;;  %v4645_v62 = vpop.f32.mrf.mxu1 }
 0x330   : > { %v16557_v4 = vadd.f32 %v4643_v38, %v4194_v41 }
 0x331   : > { %v4135_v54 = vpop.f32.mrf.mxu0  ;;  %v4646_v16 = vpop.f32.mrf.mxu1 }
 0x332   : > { %v4195_v23 = vadd.f32 %v4135_v54, %v16282_v50 }
 0x333   : > { %v4137_v58 = vpop.f32.mrf.mxu0  ;;  %v4648_v36 = vpop.f32.mrf.mxu1 }
 0x334   : > { %v16560_v7 = vadd.f32 %v4646_v16, %v4195_v23 }
 0x335   : > { %v4140_v44 = vpop.f32.mrf.mxu0  ;;  %v4651_v0 = vpop.f32.mrf.mxu1 }
 0x336   : > { %v4196_v19 = vadd.f32 %v4140_v44, %v16294_v53 }
 0x337   : > { %v4142_v59 = vpop.f32.mrf.mxu0  ;;  %v4653_v8 = vpop.f32.mrf.mxu1 }
 0x338   : > { %v16563_v61 = vadd.f32 %v4651_v0, %v4196_v19 }
 0x339   : > { %v4143_v9 = vpop.f32.mrf.mxu0  ;;  %v4654_v35 = vpop.f32.mrf.mxu1 }
 0x33a   : > { %v4197_v1 = vadd.f32 %v4143_v9, %v16304_v37 }
 0x33b   : > { %v4145_v11 = vpop.f32.mrf.mxu0  ;;  %v4656_v50 = vpop.f32.mrf.mxu1 }
 0x33c   : > { %v16566_v56 = vadd.f32 %v4654_v35, %v4197_v1 }
 0x33d   : > { %v4148_v51 = vpop.f32.mrf.mxu0  ;;  %v4659_v48 = vpop.f32.mrf.mxu1 }
 0x33e   : > { %v4198_v20 = vadd.f32 %v4148_v51, %v16316_v49 }
 0x33f   : > { %v4150_v34 = vpop.f32.mrf.mxu0  ;;  %v4661_v53 = vpop.f32.mrf.mxu1 }
 0x340   : > { %v16569_v42 = vadd.f32 %v4659_v48, %v4198_v20 }
 0x341   : > { %v4151_v14 = vpop.f32.mrf.mxu0  ;;  %v4662_v21 = vpop.f32.mrf.mxu1 }
 0x342   : > { %v4199_v30 = vadd.f32 %v4151_v14, %v16326_v18 }
 0x343   : > { %v4153_v17 = vpop.f32.mrf.mxu0  ;;  %v4664_v37 = vpop.f32.mrf.mxu1 }
 0x344   : > { %v16572_v41 = vadd.f32 %v4662_v21, %v4199_v30 }
 0x345   : > { %v4156_v38 = vpop.f32.mrf.mxu0  ;;  %v4667_v62 = vpop.f32.mrf.mxu1 }
 0x346   : > { %v4200_v13 = vadd.f32 %v4156_v38, %v16338_v5 }
 0x347   : > { %v4158_v54 = vpop.f32.mrf.mxu0  ;;  %v4669_v49 = vpop.f32.mrf.mxu1 }
 0x348   : > { %v16575_v23 = vadd.f32 %v4667_v62, %v4200_v13 }
 0x349   : > { %v4159_v16 = vpop.f32.mrf.mxu0  ;;  %v4670_v36 = vpop.f32.mrf.mxu1 }
 0x34a   : > { %v4201_v58 = vadd.f32 %v4159_v16, %v16348_v24 }
 0x34b   : > { %v4161_v44 = vpop.f32.mrf.mxu0  ;;  %v4672_v18 = vpop.f32.mrf.mxu1 }
 0x34c   : > { %v16578_v19 = vadd.f32 %v4670_v36, %v4201_v58 }
 0x34d   : > { %v4164_v0 = vpop.f32.mrf.mxu0  ;;  %v4675_v8 = vpop.f32.mrf.mxu1 }
 0x34e   : > { %v4202_v59 = vadd.f32 %v4164_v0, %v16360_v26 }
 0x34f   : > { %v4166_v9 = vpop.f32.mrf.mxu0  ;;  %v4677_v5 = vpop.f32.mrf.mxu1 }
 0x350   : > { %v16581_v1 = vadd.f32 %v4675_v8, %v4202_v59 }
 0x351   : > { %v4167_v35 = vpop.f32.mrf.mxu0  ;;  %v4678_v11 = vpop.f32.mrf.mxu1 }
 0x353   : > { %v4168_v50 = vpop.f32.mrf.mxu0  ;;  %v4679_v51 = vpop.f32.mrf.mxu1 }
 0x355   : > { %v4957_v20 = vpop.f32.mrf.mxu0  ;;  %v5586_v48 = vpop.f32.mrf.mxu1 }
 0x356   : > { %v5091_v24 = vadd.f32 %v4957_v20, %v16379_v45 }
 0x357   : > { %v4959_v34 = vpop.f32.mrf.mxu0  ;;  %v5588_v14 = vpop.f32.mrf.mxu1 }
 0x358   : > { %v5720_v53 = vadd.f32 %v5586_v48, %v5091_v24 }
 0x359   : > { %v4960_v30 = vpop.f32.mrf.mxu0  ;;  %v5589_v26 = vpop.f32.mrf.mxu1 }
 0x35a   : > { %v5092_v21 = vadd.f32 %v4960_v30, %v16389_v57  ;;  %v5787_v62 = vrot.slane %v5720_v53, 1 }
 0x35b   : > { %v4962_v17 = vpop.f32.mrf.mxu0  ;;  %v5591_v38 = vpop.f32.mrf.mxu1 }
 0x35c   : > { %v5721_v37 = vadd.f32 %v5589_v26, %v5092_v21 }
 0x35d   : > { %v4965_v13 = vpop.f32.mrf.mxu0  ;;  %v5594_v16 = vpop.f32.mrf.mxu1 }
 0x35e   : > { %v5788_v54 = vrot.slane %v5721_v37, 1  ;;  %v5093_v49 = vadd.f32 %v4965_v13, %v16401_v15 }
 0x35f   : > { %v4967_v58 = vpop.f32.mrf.mxu0  ;;  %v5596_v44 = vpop.f32.mrf.mxu1 }
 0x360   : > { %v5789_v45 = vsel %vm1869_vm3, %v5787_v62, %v5788_v54  ;;  %v5722_v36 = vadd.f32 %v5594_v16, %v5093_v49 }
 0x361   : > { %v5885_v18 = vmax.f32 %v5720_v53, %v5789_v45  ;;  %v4968_v0 = vpop.f32.mrf.mxu0  ;;  %v5597_v8 = vpop.f32.mrf.mxu1 }
 0x362   : > { %v5790_v59 = vrot.slane %v5722_v36, 1  ;;  %v5094_v57 = vadd.f32 %v4968_v0, %v16411_v60 }
 0x363   : > { %v4970_v9 = vpop.f32.mrf.mxu0  ;;  %v5599_v11 = vpop.f32.mrf.mxu1 }
 0x364   : > { %v5791_v5 = vsel %vm1869_vm3, %v5788_v54, %v5790_v59  ;;  %v5723_v35 = vadd.f32 %v5597_v8, %v5094_v57 }
 0x365   : > { %v5886_v50 = vmax.f32 %v5721_v37, %v5791_v5  ;;  %v4973_v51 = vpop.f32.mrf.mxu0  ;;  %v5602_v24 = vpop.f32.mrf.mxu1 }
 0x366   : > { %v5792_v15 = vrot.slane %v5723_v35, 1  ;;  %v5095_v20 = vadd.f32 %v4973_v51, %v16423_v10 }
 0x367   : > { %v4975_v48 = vpop.f32.mrf.mxu0  ;;  %v16590_v34 = vpack.c.bf16 %v5886_v50, %v5885_v18  ;;  %v5604_v30 = vpop.f32.mrf.mxu1 }
 0x368   : > { %v5793_v53 = vsel %vm1869_vm3, %v5790_v59, %v5792_v15  ;;  %v5724_v14 = vadd.f32 %v5602_v24, %v5095_v20 }
 0x369   : > { %v5887_v60 = vmax.f32 %v5722_v36, %v5793_v53  ;;  %v4976_v21 = vpop.f32.mrf.mxu0  ;;  %v5605_v38 = vpop.f32.mrf.mxu1 }
 0x36a   : > { %v5794_v26 = vrot.slane %v5724_v14, 1  ;;  %v5096_v17 = vadd.f32 %v4976_v21, %v16433_v29 }
 0x36b   : > { %v4978_v13 = vpop.f32.mrf.mxu0  ;;  %v5607_v54 = vpop.f32.mrf.mxu1 }
 0x36c   : > { %v5795_v37 = vsel %vm1869_vm3, %v5792_v15, %v5794_v26  ;;  %v5725_v62 = vadd.f32 %v5605_v38, %v5096_v17 }
 0x36d   : > { %v5888_v10 = vmax.f32 %v5723_v35, %v5795_v37  ;;  %v4981_v49 = vpop.f32.mrf.mxu0  ;;  %v5610_v45 = vpop.f32.mrf.mxu1 }
 0x36e   : > { %v5796_v16 = vrot.slane %v5725_v62, 1  ;;  %v5097_v58 = vadd.f32 %v4981_v49, %v16445_v6 }
 0x36f   : > { %v4983_v44 = vpop.f32.mrf.mxu0  ;;  %v16596_v18 = vpack.c.bf16 %v5888_v10, %v5887_v60  ;;  %v5612_v59 = vpop.f32.mrf.mxu1 }
 0x370   : > { %v5797_v36 = vsel %vm1869_vm3, %v5794_v26, %v5796_v16  ;;  %v5726_v0 = vadd.f32 %v5610_v45, %v5097_v58  ;;  %v13495_v44 = vld [vmem:[%s18512_s11 + $0x4] ss:$12 sps:$4 sm:$0xff]  }
 0x371   : > { %v5889_v29 = vmax.f32 %v5724_v14, %v5797_v36  ;;  %v4984_v57 = vpop.f32.mrf.mxu0  ;;  %v5613_v5 = vpop.f32.mrf.mxu1  ;;  %6141 = vmatprep.mubr.bf16.mxu0 %v13495_v44 }
 0x372   : > { %v5798_v8 = vrot.slane %v5726_v0, 1  ;;  %v5098_v9 = vadd.f32 %v4984_v57, %v16455_v3 }
 0x373   : > { %v4986_v11 = vpop.f32.mrf.mxu0  ;;  %v5615_v51 = vpop.f32.mrf.mxu1 }
 0x374   : > { %v5799_v35 = vsel %vm1869_vm3, %v5796_v16, %v5798_v8  ;;  %v5727_v50 = vadd.f32 %v5613_v5, %v5098_v9  ;;  %v13499_v9 = vld [vmem:[%s18512_s11 + $0x8] ss:$12 sps:$4 sm:$0xff]  }
 0x375   : > { %v5890_v6 = vmax.f32 %v5725_v62, %v5799_v35  ;;  %v4989_v15 = vpop.f32.mrf.mxu0  ;;  %v5618_v48 = vpop.f32.mrf.mxu1  ;;  %12782 = vmatprep.mubr.msk.bf16.mxu1 %vm6080_vm8, %v13499_v9 }
 0x376   : > { %v5800_v20 = vrot.slane %v5727_v50, 1  ;;  %v5099_v24 = vadd.f32 %v4989_v15, %v16467_v32 }
 0x377   : > { %v4991_v53 = vpop.f32.mrf.mxu0  ;;  %v16602_v30 = vpack.c.bf16 %v5890_v6, %v5889_v29  ;;  %v5620_v21 = vpop.f32.mrf.mxu1 }
 0x378   : > { %v5801_v14 = vsel %vm1869_vm3, %v5798_v8, %v5800_v20  ;;  %v5728_v60 = vadd.f32 %v5618_v48, %v5099_v24 }
 0x379   : > { %v5891_v3 = vmax.f32 %v5726_v0, %v5801_v14  ;;  %v4992_v26 = vpop.f32.mrf.mxu0  ;;  %v5621_v13 = vpop.f32.mrf.mxu1 }
 0x37a   : > { %v5802_v17 = vrot.slane %v5728_v60, 1  ;;  %v5100_v38 = vadd.f32 %v4992_v26, %v16477_v39 }
 0x37b   : > { %v4994_v37 = vpop.f32.mrf.mxu0  ;;  %v5623_v10 = vpop.f32.mrf.mxu1 }
 0x37c   : > { %v5803_v62 = vsel %vm1869_vm3, %v5800_v20, %v5802_v17  ;;  %v5729_v54 = vadd.f32 %v5621_v13, %v5100_v38 }
 0x37d   : > { %v5892_v32 = vmax.f32 %v5727_v50, %v5803_v62  ;;  %v4997_v49 = vpop.f32.mrf.mxu0  ;;  %v5626_v45 = vpop.f32.mrf.mxu1 }
 0x37e   : > { %v5804_v16 = vrot.slane %v5729_v54, 1  ;;  %v5101_v58 = vadd.f32 %v4997_v49, %v16489_v46 }
 0x37f   : > { %v4999_v36 = vpop.f32.mrf.mxu0  ;;  %v16611_v0 = vpack.c.bf16 %v5892_v32, %v5891_v3  ;;  %v5628_v29 = vpop.f32.mrf.mxu1 }
 0x380   : > { %v5805_v39 = vsel %vm1869_vm3, %v5802_v17, %v5804_v16  ;;  %v5730_v59 = vadd.f32 %v5626_v45, %v5101_v58 }
 0x381   : > { %v5893_v57 = vmax.f32 %v5728_v60, %v5805_v39  ;;  %v5000_v8 = vpop.f32.mrf.mxu0  ;;  %v5629_v11 = vpop.f32.mrf.mxu1 }
 0x382   : > { %v5806_v46 = vrot.slane %v5730_v59, 1  ;;  %v5102_v5 = vadd.f32 %v5000_v8, %v16498_v28 }
 0x383   : > { %v5002_v35 = vpop.f32.mrf.mxu0  ;;  %v5631_v6 = vpop.f32.mrf.mxu1 }
 0x384   : > { %v5807_v50 = vsel %vm1869_vm3, %v5804_v16, %v5806_v46  ;;  %v5731_v51 = vadd.f32 %v5629_v11, %v5102_v5 }
 0x385   : > { %v5894_v15 = vmax.f32 %v5729_v54, %v5807_v50  ;;  %v5005_v20 = vpop.f32.mrf.mxu0  ;;  %v5634_v53 = vpop.f32.mrf.mxu1 }
 0x386   : > { %v5808_v24 = vrot.slane %v5731_v51, 1  ;;  %v5103_v48 = vadd.f32 %v5005_v20, %v16508_v55 }
 0x387   : > { %v5007_v14 = vpop.f32.mrf.mxu0  ;;  %v16621_v60 = vpack.c.bf16 %v5894_v15, %v5893_v57  ;;  %v5636_v3 = vpop.f32.mrf.mxu1 }
 0x388   : > { %v5809_v28 = vsel %vm1869_vm3, %v5806_v46, %v5808_v24  ;;  %v5732_v21 = vadd.f32 %v5634_v53, %v5103_v48 }
 0x389   : > { %v5895_v26 = vmax.f32 %v5730_v59, %v5809_v28  ;;  %v5008_v17 = vpop.f32.mrf.mxu0  ;;  %v5637_v37 = vpop.f32.mrf.mxu1 }
 0x38a   : > { %v5810_v38 = vrot.slane %v5732_v21, 1  ;;  %v5104_v13 = vadd.f32 %v5008_v17, %v16513_v43 }
 0x38b   : > { %v5010_v62 = vpop.f32.mrf.mxu0  ;;  %v5639_v32 = vpop.f32.mrf.mxu1 }
 0x38c   : > { %v5811_v54 = vsel %vm1869_vm3, %v5808_v24, %v5810_v38  ;;  %v5733_v10 = vadd.f32 %v5637_v37, %v5104_v13 }
 0x38d   : > { %v5896_v55 = vmax.f32 %v5731_v51, %v5811_v54  ;;  %v5013_v49 = vpop.f32.mrf.mxu0  ;;  %v5642_v45 = vpop.f32.mrf.mxu1 }
 0x38e   : > { %v5812_v16 = vrot.slane %v5733_v10, 1  ;;  %v5105_v58 = vadd.f32 %v5013_v49, %v16522_v63 }
 0x38f   : > { %v5015_v44 = vpop.f32.mrf.mxu0  ;;  %v16627_v36 = vpack.c.bf16 %v5896_v55, %v5895_v26  ;;  %v5644_v29 = vpop.f32.mrf.mxu1 }
 0x390   : > { %v5813_v39 = vsel %vm1869_vm3, %v5810_v38, %v5812_v16  ;;  %v5734_v59 = vadd.f32 %v5642_v45, %v5105_v58 }
 0x391   : > { %v5897_v43 = vmax.f32 %v5732_v21, %v5813_v39  ;;  %v5016_v57 = vpop.f32.mrf.mxu0  ;;  %v5645_v46 = vpop.f32.mrf.mxu1 }
 0x392   : > { %v5814_v8 = vrot.slane %v5734_v59, 1  ;;  %v5106_v9 = vadd.f32 %v5016_v57, %v16526_v25 }
 0x393   : > { %v5018_v5 = vpop.f32.mrf.mxu0  ;;  %v5647_v50 = vpop.f32.mrf.mxu1 }
 0x394   : > { %v5815_v11 = vsel %vm1869_vm3, %v5812_v16, %v5814_v8  ;;  %v5735_v35 = vadd.f32 %v5645_v46, %v5106_v9 }
 0x395   : > { %v5898_v63 = vmax.f32 %v5733_v10, %v5815_v11  ;;  %v5021_v51 = vpop.f32.mrf.mxu0  ;;  %v5650_v20 = vpop.f32.mrf.mxu1 }
 0x396   : > { %v5816_v6 = vrot.slane %v5735_v35, 1  ;;  %v5107_v15 = vadd.f32 %v5021_v51, %v16533_v27 }
 0x397   : > { %v5023_v24 = vpop.f32.mrf.mxu0  ;;  %v16633_v48 = vpack.c.bf16 %v5898_v63, %v5897_v43  ;;  %v5652_v28 = vpop.f32.mrf.mxu1 }
 0x398   : > { %v5817_v53 = vsel %vm1869_vm3, %v5814_v8, %v5816_v6  ;;  %v5736_v14 = vadd.f32 %v5650_v20, %v5107_v15 }
 0x399   : > { %v5899_v25 = vmax.f32 %v5734_v59, %v5817_v53  ;;  %v5024_v21 = vpop.f32.mrf.mxu0  ;;  %v5653_v17 = vpop.f32.mrf.mxu1 }
 0x39a   : > { %v5818_v3 = vrot.slane %v5736_v14, 1  ;;  %v5108_v26 = vadd.f32 %v5024_v21, %v16536_v2 }
 0x39b   : > { %v5026_v38 = vpop.f32.mrf.mxu0  ;;  %v5655_v62 = vpop.f32.mrf.mxu1 }
 0x39c   : > { %v5819_v13 = vsel %vm1869_vm3, %v5816_v6, %v5818_v3  ;;  %v5737_v37 = vadd.f32 %v5653_v17, %v5108_v26 }
 0x39d   : > { %v5900_v27 = vmax.f32 %v5735_v35, %v5819_v13  ;;  %v5029_v54 = vpop.f32.mrf.mxu0  ;;  %v5658_v55 = vpop.f32.mrf.mxu1 }
 0x39e   : > { %v5820_v10 = vrot.slane %v5737_v37, 1  ;;  %v5109_v32 = vadd.f32 %v5029_v54, %v16539_v40 }
 0x39f   : > { %v5031_v49 = vpop.f32.mrf.mxu0  ;;  %v16639_v16 = vpack.c.bf16 %v5900_v27, %v5899_v25  ;;  %v5660_v45 = vpop.f32.mrf.mxu1 }
 0x3a0   : > { %v5738_v58 = vadd.f32 %v5658_v55, %v5109_v32  ;;  %v5821_v44 = vsel %vm1869_vm3, %v5818_v3, %v5820_v10 }
 0x3a1   : > { %v5032_v2 = vpop.f32.mrf.mxu0  ;;  %v5901_v39 = vmax.f32 %v5736_v14, %v5821_v44  ;;  %v5661_v43 = vpop.f32.mrf.mxu1 }
 0x3a2   : > { %v5822_v59 = vrot.slane %v5738_v58, 1  ;;  %v5110_v29 = vadd.f32 %v5032_v2, %v16542_v52 }
 0x3a3   : > { %v5034_v57 = vpop.f32.mrf.mxu0  ;;  %v5663_v9 = vpop.f32.mrf.mxu1 }
 0x3a4   : > { %v5739_v8 = vadd.f32 %v5661_v43, %v5110_v29  ;;  %v5823_v46 = vsel %vm1869_vm3, %v5820_v10, %v5822_v59 }
 0x3a5   : > { %v5037_v40 = vpop.f32.mrf.mxu0  ;;  %v5902_v5 = vmax.f32 %v5737_v37, %v5823_v46  ;;  %v5666_v50 = vpop.f32.mrf.mxu1 }
 0x3a6   : > { %v5824_v11 = vrot.slane %v5739_v8, 1  ;;  %v5111_v35 = vadd.f32 %v5037_v40, %v16545_v31 }
 0x3a7   : > { %v5039_v63 = vpop.f32.mrf.mxu0  ;;  %v16645_v51 = vpack.c.bf16 %v5902_v5, %v5901_v39  ;;  %v5668_v15 = vpop.f32.mrf.mxu1 }
 0x3a8   : > { %v5740_v6 = vadd.f32 %v5666_v50, %v5111_v35  ;;  %v5825_v20 = vsel %vm1869_vm3, %v5822_v59, %v5824_v11 }
 0x3a9   : > { %v5040_v52 = vpop.f32.mrf.mxu0  ;;  %v5903_v24 = vmax.f32 %v5738_v58, %v5825_v20  ;;  %v5669_v28 = vpop.f32.mrf.mxu1 }
 0x3aa   : > { %v5826_v53 = vrot.slane %v5740_v6, 1  ;;  %v5112_v14 = vadd.f32 %v5040_v52, %v16548_v22 }
 0x3ab   : > { %v5042_v25 = vpop.f32.mrf.mxu0  ;;  %v5671_v3 = vpop.f32.mrf.mxu1 }
 0x3ac   : > { %v5741_v21 = vadd.f32 %v5669_v28, %v5112_v14  ;;  %v5827_v26 = vsel %vm1869_vm3, %v5824_v11, %v5826_v53 }
 0x3ad   : > { %v5045_v31 = vpop.f32.mrf.mxu0  ;;  %v5904_v17 = vmax.f32 %v5739_v8, %v5827_v26  ;;  %v5674_v37 = vpop.f32.mrf.mxu1 }
 0x3ae   : > { %v5828_v38 = vrot.slane %v5741_v21, 1  ;;  %v5113_v13 = vadd.f32 %v5045_v31, %v16551_v33 }
 0x3af   : > { %v5047_v62 = vpop.f32.mrf.mxu0  ;;  %v16651_v27 = vpack.c.bf16 %v5904_v17, %v5903_v24  ;;  %v5676_v10 = vpop.f32.mrf.mxu1 }
 0x3b0   : > { %v5742_v54 = vadd.f32 %v5674_v37, %v5113_v13  ;;  %v5829_v32 = vsel %vm1869_vm3, %v5826_v53, %v5828_v38 }
 0x3b1   : > { %v5048_v22 = vpop.f32.mrf.mxu0  ;;  %v5905_v55 = vmax.f32 %v5740_v6, %v5829_v32  ;;  %v5677_v45 = vpop.f32.mrf.mxu1 }
 0x3b2   : > { %v5830_v49 = vrot.slane %v5742_v54, 1  ;;  %v5114_v58 = vadd.f32 %v5048_v22, %v16554_v47 }
 0x3b3   : > { %v5050_v44 = vpop.f32.mrf.mxu0  ;;  %v5679_v39 = vpop.f32.mrf.mxu1 }
 0x3b4   : > { %v5743_v2 = vadd.f32 %v5677_v45, %v5114_v58  ;;  %v5831_v59 = vsel %vm1869_vm3, %v5828_v38, %v5830_v49 }
 0x3b5   : > { %v5053_v33 = vpop.f32.mrf.mxu0  ;;  %v5906_v29 = vmax.f32 %v5741_v21, %v5831_v59  ;;  %v5682_v8 = vpop.f32.mrf.mxu1 }
 0x3b6   : > { %v5832_v43 = vrot.slane %v5743_v2, 1  ;;  %v5115_v57 = vadd.f32 %v5053_v33, %v16557_v4 }
 0x3b7   : > { %v5055_v9 = vpop.f32.mrf.mxu0  ;;  %v16657_v46 = vpack.c.bf16 %v5906_v29, %v5905_v55  ;;  %v5684_v5 = vpop.f32.mrf.mxu1 }
 0x3b8   : > { %v5744_v40 = vadd.f32 %v5682_v8, %v5115_v57  ;;  %v5833_v11 = vsel %vm1869_vm3, %v5830_v49, %v5832_v43 }
 0x3b9   : > { %v5056_v47 = vpop.f32.mrf.mxu0  ;;  %v5907_v35 = vmax.f32 %v5742_v54, %v5833_v11  ;;  %v5685_v6 = vpop.f32.mrf.mxu1 }
 0x3ba   : > { %v5834_v50 = vrot.slane %v5744_v40, 1  ;;  %v5116_v63 = vadd.f32 %v5056_v47, %v16560_v7 }
 0x3bb   : > { %v5058_v15 = vpop.f32.mrf.mxu0  ;;  %v5687_v52 = vpop.f32.mrf.mxu1 }
 0x3bc   : > { %v5745_v20 = vadd.f32 %v5685_v6, %v5116_v63  ;;  %v5835_v24 = vsel %vm1869_vm3, %v5832_v43, %v5834_v50 }
 0x3bd   : > { %v5061_v4 = vpop.f32.mrf.mxu0  ;;  %v5908_v53 = vmax.f32 %v5743_v2, %v5835_v24  ;;  %v5690_v25 = vpop.f32.mrf.mxu1 }
 0x3be   : > { %v5836_v14 = vrot.slane %v5745_v20, 1  ;;  %v5117_v28 = vadd.f32 %v5061_v4, %v16563_v61 }
 0x3bf   : > { %v5063_v21 = vpop.f32.mrf.mxu0  ;;  %v16663_v3 = vpack.c.bf16 %v5908_v53, %v5907_v35  ;;  %v5692_v31 = vpop.f32.mrf.mxu1 }
 0x3c0   : > { %v5746_v26 = vadd.f32 %v5690_v25, %v5117_v28  ;;  %v5837_v17 = vsel %vm1869_vm3, %v5834_v50, %v5836_v14 }
 0x3c1   : > { %v5064_v7 = vpop.f32.mrf.mxu0  ;;  %v5909_v38 = vmax.f32 %v5744_v40, %v5837_v17  ;;  %v5693_v62 = vpop.f32.mrf.mxu1 }
 0x3c2   : > { %v5838_v13 = vrot.slane %v5746_v26, 1  ;;  %v5118_v37 = vadd.f32 %v5064_v7, %v16566_v56 }
 0x3c3   : > { %v5066_v54 = vpop.f32.mrf.mxu0  ;;  %v5695_v32 = vpop.f32.mrf.mxu1 }
 0x3c4   : > { %v5747_v10 = vadd.f32 %v5693_v62, %v5118_v37  ;;  %v5839_v22 = vsel %vm1869_vm3, %v5836_v14, %v5838_v13 }
 0x3c5   : > { %v5069_v61 = vpop.f32.mrf.mxu0  ;;  %v5910_v55 = vmax.f32 %v5745_v20, %v5839_v22  ;;  %v5698_v45 = vpop.f32.mrf.mxu1 }
 0x3c6   : > { %v5840_v49 = vrot.slane %v5747_v10, 1  ;;  %v5119_v58 = vadd.f32 %v5069_v61, %v16569_v42 }
 0x3c7   : > { %v5071_v44 = vpop.f32.mrf.mxu0  ;;  %v16669_v2 = vpack.c.bf16 %v5910_v55, %v5909_v38  ;;  %v5700_v59 = vpop.f32.mrf.mxu1 }
 0x3c8   : > { %v5748_v39 = vadd.f32 %v5698_v45, %v5119_v58  ;;  %v5841_v33 = vsel %vm1869_vm3, %v5838_v13, %v5840_v49 }
 0x3c9   : > { %v5072_v56 = vpop.f32.mrf.mxu0  ;;  %v5911_v29 = vmax.f32 %v5746_v26, %v5841_v33  ;;  %v5701_v8 = vpop.f32.mrf.mxu1 }
 0x3ca   : > { %v5842_v43 = vrot.slane %v5748_v39, 1  ;;  %v5120_v57 = vadd.f32 %v5072_v56, %v16572_v41  ;;  %v13500_v56 = vld [vmem:[%s18512_s11 + $0x20] ss:$12 sps:$4 sm:$0xff]  }
 0x3cb   : > { %v5074_v9 = vpop.f32.mrf.mxu0  ;;  %v5703_v5 = vpop.f32.mrf.mxu1 }
 0x3cc   : > { %v5749_v40 = vadd.f32 %v5701_v8, %v5120_v57  ;;  %v5843_v11 = vsel %vm1869_vm3, %v5840_v49, %v5842_v43  ;;  %v13512_v57 = vld [vmem:[%s18512_s11 + $0x68] ss:$12 sps:$4 sm:$0xff]   ;;  %v13514_v8 = vld [vmem:[%s18512_s11 + $0x78] ss:$12 sps:$4 sm:$0xff]   ;;  %v13517_v5 = vld [vmem:[%s18512_s11 + $0x90] ss:$12 sps:$4 sm:$0xff]  }
 0x3cd   : > { %v5077_v42 = vpop.f32.mrf.mxu0  ;;  %v5912_v47 = vmax.f32 %v5747_v10, %v5843_v11  ;;  %v5706_v63 = vpop.f32.mrf.mxu1  ;;  %v13519_v9 = vld [vmem:[%s18512_s11 + $0x94] ss:$12 sps:$4 sm:$0xff]  }
 0x3ce   : > { %v5844_v35 = vrot.slane %v5749_v40, 1  ;;  %v5121_v50 = vadd.f32 %v5077_v42, %v16575_v23 }
 0x3cf   : > { %v5079_v6 = vpop.f32.mrf.mxu0  ;;  %v5931_v15 = vpack.c.bf16 %v5912_v47, %v5911_v29  ;;  %v5708_v52 = vpop.f32.mrf.mxu1  ;;  %v13504_v29 = vld [vmem:[%s18512_s11 + $0x38] ss:$12 sps:$4 sm:$0xff]   ;;  %v13524_v47 = vld [vmem:[#allocation3 + $0x28] sm:$0xff]  }
 0x3d0   : > { %v5750_v20 = vadd.f32 %v5706_v63, %v5121_v50  ;;  %v5845_v24 = vsel %vm1869_vm3, %v5842_v43, %v5844_v35  ;;  %v13505_v43 = vld [vmem:[%s18512_s11 + $0x50] ss:$12 sps:$4 sm:$0xff]   ;;  %v13525_v50 = vld [vmem:[#allocation3 + $0x20] sm:$0xff]  }
 0x3d1   : > { %v5080_v4 = vpop.f32.mrf.mxu0  ;;  %v5913_v41 = vmax.f32 %v5748_v39, %v5845_v24  ;;  %v5709_v28 = vpop.f32.mrf.mxu1  ;;  %v13527_v63 = vld [vmem:[#allocation3 + $0x18] sm:$0xff]   ;;  %v13529_v6 = vld [vmem:[#allocation3 + $0x10] sm:$0xff]   ;;  %v13533_v24 = vld [vmem:[#allocation3] sm:$0xff]  }
 0x3d2   : > { %v5846_v53 = vrot.slane %v5750_v20, 1  ;;  %v5122_v14 = vadd.f32 %v5080_v4, %v16578_v19  ;;  %v13528_v52 = vld [vmem:[#allocation3 + $0x50] sm:$0xff]   ;;  %v13530_v4 = vld [vmem:[#allocation3 + $0x48] sm:$0xff]  }
 0x3d3   : > { %v5082_v25 = vpop.f32.mrf.mxu0  ;;  %v5711_v26 = vpop.f32.mrf.mxu1 }
 0x3d4   : > { %v5751_v21 = vadd.f32 %v5709_v28, %v5122_v14  ;;  %v5847_v31 = vsel %vm1869_vm3, %v5844_v35, %v5846_v53  ;;  %v14133_v35 = vmov 0.0   ;;  %v13535_v14 = vld [vmem:[#allocation3 + $0x30] sm:$0xff]  }
 0x3d5   : > { %v5085_v17 = vpop.f32.mrf.mxu0  ;;  %v5914_v23 = vmax.f32 %v5749_v40, %v5847_v31  ;;  %v5714_v13 = vpop.f32.mrf.mxu1  ;;  %v5963_v40 = vld [vmem:[%s18512_s11 + $0xa8] sm:$0x33] }
 0x3d6   : > { %v5848_v7 = vrot.slane %v5751_v21, 1  ;;  %v5123_v38 = vadd.f32 %v5085_v17, %v16581_v1  ;;  %v11985_v11 = vcombine.high %v5963_v40, %v5963_v40  ;;  %v11984_v42 = vcombine.low %v5963_v40, %v5963_v40 }
 0x3d7   : > { %v5087_v37 = vpop.f32.mrf.mxu0  ;;  %v5932_v62 = vpack.c.bf16 %v5914_v23, %v5913_v41  ;;  %v5716_v10 = vpop.f32.mrf.mxu1  ;;  %v13532_v41 = vld [vmem:[#allocation3 + $0x40] sm:$0xff]  }
 0x3d8   : > { %v5752_v54 = vadd.f32 %v5714_v13, %v5123_v38  ;;  %v5849_v32 = vsel %vm1869_vm3, %v5846_v53, %v5848_v7  ;;  %v13534_v53 = vld [vmem:[#allocation3 + $0x38] sm:$0xff]  }
 0x3d9   : > { %v5088_v22 = vpop.f32.mrf.mxu0  ;;  %v5915_v19 = vmax.f32 %v5750_v20, %v5849_v32  ;;  %v5717_v55 = vpop.f32.mrf.mxu1  ;;  %v13531_v20 = vld [vmem:[#allocation3 + $0x8] sm:$0xff]  }
 0x3da   : > { %v5850_v61 = vrot.slane %v5752_v54, 1 }
 0x3db   : > { %v5089_v49 = vpop.f32.mrf.mxu0  ;;  %v5718_v45 = vpop.f32.mrf.mxu1 }
 0x3dc   : > { %v5917_v58 = vmax.f32 %v5752_v54, %v5850_v61  ;;  %v5851_v44 = vsel %vm1869_vm3, %v5848_v7, %v5850_v61  ;;  %v16801_v45 = vld [vmem:[%s19049_s25] ss:$0 sm:$0xff] }
 0x3dd   : > { %v5916_v39 = vmax.f32 %v5751_v21, %v5851_v44 }
 0x3de   : > { %v5934_v59 = vpack.c.bf16 %v5917_v58, %v5917_v58 }
 0x3df   : > { %v5933_v1 = vpack.c.bf16 %v5916_v39, %v5915_v19 }
 0x3e0   : > { %13244 = vmatprep.subr.msk.bf16.mxu1 %vm6105_vm9, %v5934_v59  ;;  %v6107_v33 = vsel %vm6105_vm9, %v5934_v59, 0 }
 0x3e1   : > { %12535 = vmatprep.subr.bf16.mxu0 %v5933_v1  ;;  %12781 = vmatpush3.bf16.msra.mxu1 %v6107_v33 }
 0x3e2   : > { %12536 = vmatpush3.bf16.msra.mxu0 %v16639_v16  ;;  %v13520_v16 = vld [vmem:[%s18512_s11 + $0x98] ss:$12 sps:$4 sm:$0xff]   ;;  %12798 = vmatprep.subr.bf16.mxu1 %v14133_v35 }
 0x3e3   : > { %12537 = vmatprep.subr.bf16.mxu0 %v5932_v62 }
 0x3e4   : > { %12783 = vmatmul.mubr.msk.bf16.vlgmr.msra.gmra.mxu1 %vm6080_vm8, %v13500_v56  ;;  %v16807_v56 = vld [vmem:[%s19049_s25 + $0x1] ss:$0 sm:$0xff] }
 0x3e5   : > { %12786 = vmatprep.mubr.msk.bf16.mxu1 %vm6080_vm8, %v13504_v29 }
 0x3e6   : > { %12538 = vmatpush3.bf16.msra.mxu0 %v16633_v48  ;;  %v13513_v48 = vld [vmem:[%s18512_s11 + $0x80] ss:$12 sps:$4 sm:$0xff]  }
 0x3e7   : > { %12539 = vmatprep.subr.bf16.mxu0 %v5931_v15  ;;  %v13526_v15 = vld [vmem:[#allocation3 + $0x58] sm:$0xff]  }
 0x3e8   : > { %12799 = vmatpush3.bf16.msra.mxu1 %v13526_v15 }
 0x3e9   : > { %12800 = vmatprep.subr.bf16.mxu1 %v14133_v35 }
 0x3ea   : > { %12540 = vmatpush3.bf16.msra.mxu0 %v16627_v36  ;;  %v13503_v36 = vld [vmem:[%s18512_s11 + $0x34] ss:$12 sps:$4 sm:$0xff]  }
 0x3eb   : > { %12541 = vmatprep.subr.bf16.mxu0 %v16669_v2  ;;  %v13516_v2 = vld [vmem:[%s18512_s11 + $0x7c] ss:$12 sps:$4 sm:$0xff]  }
 0x3ec   : > { %12787 = vmatmul.mubr.msk.bf16.gmra.mxu1 %vm6080_vm8, %v13505_v43 }
 0x3ed   : > { %12790 = vmatprep.mubr.msk.bf16.mxu1 %vm6080_vm8, %v13512_v57  ;;  %12801 = vmatpush3.bf16.msra.mxu1 %v13528_v52 }
 0x3ee   : > { %12542 = vmatpush3.bf16.msra.mxu0 %v16621_v60  ;;  %v13521_v60 = vld [vmem:[%s18512_s11 + $0xb0] ss:$0 sps:$4 sm:$0x33]   ;;  %12802 = vmatprep.subr.bf16.mxu1 %v14133_v35 }
 0x3ef   : > { %12543 = vmatprep.subr.bf16.mxu0 %v16663_v3  ;;  %v13509_v3 = vld [vmem:[%s18512_s11 + $0x60] ss:$12 sps:$4 sm:$0xff]  }
 0x3f1   : > { %12803 = vmatpush3.bf16.msra.mxu1 %v13530_v4 }
 0x3f2   : > { %12544 = vmatpush3.bf16.msra.mxu0 %v16611_v0  ;;  %v13493_v0 = vld [vmem:[%s18512_s11] ss:$12 sps:$4 sm:$0xff]   ;;  %12804 = vmatprep.subr.bf16.mxu1 %v14133_v35 }
 0x3f3   : > { %12545 = vmatprep.subr.bf16.mxu0 %v16657_v46  ;;  %v13511_v46 = vld [vmem:[%s18512_s11 + $0x64] ss:$12 sps:$4 sm:$0xff]  }
 0x3f4   : > { %12791 = vmatmul.mubr.msk.bf16.gmra.mxu1 %vm6080_vm8, %v13513_v48 }
 0x3f5   : > { %12794 = vmatprep.mubr.msk.bf16.mxu1 %vm6080_vm8, %v13520_v16  ;;  %12805 = vmatpush3.bf16.msra.mxu1 %v13532_v41 }
 0x3f6   : > { %12546 = vmatpush3.bf16.msra.mxu0 %v16602_v30  ;;  %v13498_v30 = vld [vmem:[%s18512_s11 + $0x1c] ss:$12 sps:$4 sm:$0xff]   ;;  %12806 = vmatprep.subr.bf16.mxu1 %v14133_v35 }
 0x3f7   : > { %12547 = vmatprep.subr.bf16.mxu0 %v16651_v27  ;;  %v13506_v27 = vld [vmem:[%s18512_s11 + $0x48] ss:$12 sps:$4 sm:$0xff]  }
 0x3f9   : > { %12807 = vmatpush3.bf16.msra.mxu1 %v13534_v53 }
 0x3fa   : > { %12548 = vmatpush3.bf16.msra.mxu0 %v16596_v18  ;;  %v13496_v18 = vld [vmem:[%s18512_s11 + $0x18] ss:$12 sps:$4 sm:$0xff]   ;;  %12808 = vmatprep.subr.bf16.mxu1 %v14133_v35 }
 0x3fb   : > { %12549 = vmatprep.subr.bf16.mxu0 %v16645_v51  ;;  %v13508_v51 = vld [vmem:[%s18512_s11 + $0x4c] ss:$12 sps:$4 sm:$0xff]  }
 0x3fc   : > { %12795 = vmatmul.mubr.msk.bf16.gmra.mxu1 %vm6080_vm8, %v13521_v60 }
 0x3fd   : > { %12810 = vmatprep.mubr.msk.bf16.mxu1 %vm14134_vm10, %v14133_v35  ;;  %12809 = vmatpush3.bf16.msra.mxu1 %v13535_v14  ;;  %v13541_v14 = vld [vmem:[#allocation3 + $0xa0] sm:$0xff]  }
 0x3fe   : > { %12550 = vmatpush3.bf16.msra.mxu0 %v16590_v34  ;;  %v13501_v34 = vld [vmem:[%s18512_s11 + $0x30] ss:$12 sps:$4 sm:$0xff]   ;;  %12878 = vmatprep.subr.bf16.mxu1 %v14133_v35 }
 0x3ff   : > { %12838 = vmatprep.subr.bf16.mxu0 %v14133_v35 }
 0x401   : > { %6142 = vmatmul.mubr.bf16.vlgmr.msra.gmra.mxu0 %v13493_v0 }
 0x402   : > { %6149 = vmatprep.mubr.bf16.mxu0 %v13498_v30  ;;  %12839 = vmatpush3.bf16.msra.mxu0 %v13524_v47  ;;  %v13536_v30 = vld [vmem:[#allocation3 + $0xb8] sm:$0xff]  }
 0x403   : > { %12840 = vmatprep.subr.bf16.mxu0 %v14133_v35 }
 0x406   : > { %12841 = vmatpush3.bf16.msra.mxu0 %v13525_v50  ;;  %v13539_v50 = vld [vmem:[#allocation3 + $0xa8] sm:$0xff]  }
 0x407   : > { %12842 = vmatprep.subr.bf16.mxu0 %v14133_v35 }
 0x409   : > { %6150 = vmatmul.mubr.bf16.gmra.mxu0 %v13496_v18 }
 0x40a   : > { %6157 = vmatprep.mubr.bf16.mxu0 %v13503_v36  ;;  %12843 = vmatpush3.bf16.msra.mxu0 %v13527_v63 }
 0x40b   : > { %12844 = vmatprep.subr.bf16.mxu0 %v14133_v35 }
 0x40e   : > { %12845 = vmatpush3.bf16.msra.mxu0 %v13529_v6 }
 0x40f   : > { %12846 = vmatprep.subr.bf16.mxu0 %v14133_v35 }
 0x411   : > { %6158 = vmatmul.mubr.bf16.gmra.mxu0 %v13501_v34 }
 0x412   : > { %6165 = vmatprep.mubr.bf16.mxu0 %v13508_v51  ;;  %12847 = vmatpush3.bf16.msra.mxu0 %v13531_v20 }
 0x413   : > { %12848 = vmatprep.subr.bf16.mxu0 %v14133_v35 }
 0x416   : > { %12849 = vmatpush3.bf16.msra.mxu0 %v13533_v24 }
 0x417   : > { %12918 = vmatprep.subr.bf16.mxu0 %v14133_v35 }
 0x419   : > { %6166 = vmatmul.mubr.bf16.gmra.mxu0 %v13506_v27 }
 0x41a   : > { %6173 = vmatprep.mubr.bf16.mxu0 %v13511_v46 }
 0x421   : > { %6174 = vmatmul.mubr.bf16.gmra.mxu0 %v13509_v3  ;;  %v13537_v3 = vld [vmem:[#allocation3 + $0xb0] sm:$0xff]  }
 0x422   : > { %6181 = vmatprep.mubr.bf16.mxu0 %v13516_v2 }
 0x429   : > { %6182 = vmatmul.mubr.bf16.gmra.mxu0 %v13514_v8 }
 0x42a   : > { %6189 = vmatprep.mubr.bf16.mxu0 %v13519_v9 }
 0x431   : > { %6190 = vmatmul.mubr.bf16.gmra.mxu0 %v13517_v5 }
 0x432   : > { %6197 = vmatprep.mubr.bf16.mxu0 %v11985_v11 }
 0x439   : > { %6198 = vmatmul.mubr.bf16.gmra.mxu0 %v11984_v42 }
 0x43a   : > { %12850 = vmatprep.mubr.msk.bf16.mxu0 %vm14134_vm10, %v14133_v35 }
 0x4a4   : > { %v12784_v28 = vpop.f32.mrf.mxu1 }
 0x4a6   : > { %v6239_v25 = vpop.f32.mrf.mxu1 }
 0x4a8   : > { %v12785_v21 = vpop.f32.mrf.mxu1 }
 0x4aa   : > { %v6242_v26 = vpop.f32.mrf.mxu1 }
 0x4ac   : > { %v16782_v31 = vpop.f32.mrf.mxu1 }
 0x4ae   : > { %v6255_v17 = vpop.f32.mrf.mxu1 }
 0x4b0   : > { %v16784_v23 = vpop.f32.mrf.mxu1 }
 0x4b2   : > { %v6258_v7 = vpop.f32.mrf.mxu1 }
 0x4b4   : > { %v16786_v38 = vpop.f32.mrf.mxu1 }
 0x4b6   : > { %v16788_v13 = vpop.f32.mrf.mxu1 }
 0x4b8   : > { %v16790_v37 = vpop.f32.mrf.mxu1 }
 0x4ba   : > { %v16792_v62 = vpop.f32.mrf.mxu1 }
 0x4bc   : > { %v16794_v54 = vpop.f32.mrf.mxu1 }
 0x4be   : > { %v16796_v10 = vpop.f32.mrf.mxu1 }
 0x4c0   : > { %v12797_v32 = vpop.f32.mrf.mxu1 }
 0x4c1   : > { %v12551_v22 = vpop.f32.mrf.mxu0  ;;  %v13538_v32 = vld [vmem:[#allocation3 + $0x88] sm:$0xff]  }
 0x4c3   : > { %v12552_v19 = vpop.f32.mrf.mxu0 }
 0x4c4   : > { %v12553_v61 = vadd.f32 %v12552_v19, %v12551_v22 }
 0x4c5   : > { %v12554_v55 = vpop.f32.mrf.mxu0 }
 0x4c6   : > { %v6240_v49 = vadd.f32 %v12553_v61, %v6239_v25 }
 0x4c7   : > { %v12555_v58 = vpop.f32.mrf.mxu0 }
 0x4c8   : > { %v12556_v44 = vadd.f32 %v12555_v58, %v12554_v55  ;;  %v6306_v59 = vmul.f32 %v16801_v45, %v6240_v49 }
 0x4c9   : > { %v12557_v39 = vpop.f32.mrf.mxu0 }
 0x4ca   : > { %v6243_v1 = vadd.f32 %v12556_v44, %v6242_v26  ;;  %v6326_v16 = vadd.f32 %v16807_v56, %v6306_v59 }
 0x4cb   : > { %v12558_v33 = vpop.f32.mrf.mxu0 }
 0x4cc   : > { %v12559_v29 = vadd.f32 %v12558_v33, %v12557_v39  ;;  %v6307_v43 = vmul.f32 %v16801_v45, %v6243_v1  ;;  %v13543_v39 = vld [vmem:[#allocation3 + $0x98] sm:$0xff]   ;;  %v13540_v33 = vld [vmem:[#allocation3 + $0x80] sm:$0xff]  }
 0x4cd   : > { %v12560_v57 = vpop.f32.mrf.mxu0 }
 0x4ce   : > { %v6248_v48 = vadd.f32 %v12784_v28, %v12559_v29  ;;  %v6327_v60 = vadd.f32 %v16807_v56, %v6307_v43 }
 0x4cf   : > { %v12561_v0 = vpop.f32.mrf.mxu0 }
 0x4d0   : > { %v12562_v18 = vadd.f32 %v12561_v0, %v12560_v57  ;;  %v16812_v36 = vpack.c.bf16 %v6327_v60, %v6326_v16  ;;  %v6308_v51 = vmul.f32 %v16801_v45, %v6248_v48  ;;  %v13545_v60 = vld [vmem:[#allocation3 + $0x90] sm:$0xff]  }
 0x4d1   : > { %v12563_v34 = vpop.f32.mrf.mxu0 }
 0x4d2   : > { %v6251_v27 = vadd.f32 %v12785_v21, %v12562_v18  ;;  %12851 = vmatmul.mubr.msk.bf16.vlgmr.msra.gmra.mxu0 %vm6471_vm11, %v16812_v36  ;;  %v6378_v9 = vshll.u32 %v16812_v36, 16  ;;  %v6328_v5 = vadd.f32 %v16807_v56, %v6308_v51  ;;  %v6376_v4 = vshrl.u32 %v16812_v36, 16  ;;  %v13542_v51 = vld [vmem:[#allocation3 + $0x78] sm:$0xff]  }
 0x4d3   : > { %v12564_v46 = vpop.f32.mrf.mxu0  ;;  %12854 = vmatprep.mubr.msk.bf16.mxu0 %vm14134_vm10, %v14133_v35  ;;  %12919 = vmatpush3.bf16.msra.mxu0 %v13536_v30  ;;  %v7136_v28 = vrot.slane %v16812_v36, 2 }
 0x4d4   : > { %v6309_v2 = vmul.f32 %v16801_v45, %v6251_v27  ;;  %v12565_v8 = vadd.f32 %v12564_v46, %v12563_v34  ;;  %12920 = vmatprep.subr.bf16.mxu0 %v14133_v35  ;;  %v6380_v15 = vrot.slane %v6378_v9, 1 }
 0x4d5   : > { %v12566_v40 = vpop.f32.mrf.mxu0 }
 0x4d6   : > { %v6329_v11 = vadd.f32 %v16807_v56, %v6309_v2  ;;  %v6256_v42 = vadd.f32 %v12565_v8, %v6255_v17  ;;  %v6381_v17 = vor.u32 %v6380_v15, %v6376_v4 }
 0x4d7   : > { %v12567_v47 = vpop.f32.mrf.mxu0  ;;  %12921 = vmatpush3.bf16.msra.mxu0 %v13537_v3 }
 0x4d8   : > { %v16824_v63 = vpack.c.bf16 %v6329_v11, %v6328_v5  ;;  %v12568_v6 = vadd.f32 %v12567_v47, %v12566_v40  ;;  %12922 = vmatprep.subr.bf16.mxu0 %v14133_v35  ;;  %v6310_v52 = vmul.f32 %v16801_v45, %v6256_v42  ;;  %v13544_v47 = vld [vmem:[#allocation3 + $0x70] sm:$0xff]  }
 0x4d9   : > { %v12569_v20 = vpop.f32.mrf.mxu0 }
 0x4da   : > { %v6259_v24 = vadd.f32 %v12568_v6, %v6258_v7  ;;  %v6383_v41 = vshll.u32 %v16824_v63, 16  ;;  %12855 = vmatmul.mubr.msk.bf16.gmra.mxu0 %vm6471_vm11, %v16824_v63  ;;  %v7137_v25 = vrot.slane %v16824_v63, 2  ;;  %v6330_v61 = vadd.f32 %v16807_v56, %v6310_v52 }
 0x4db   : > { %v12570_v53 = vpop.f32.mrf.mxu0  ;;  %12858 = vmatprep.mubr.msk.bf16.mxu0 %vm14134_vm10, %v14133_v35  ;;  %12923 = vmatpush3.bf16.msra.mxu0 %v13539_v50  ;;  %v6387_v57 = vshrl.u32 %v16824_v63, 16 }
 0x4dc   : > { %v6311_v21 = vmul.f32 %v16801_v45, %v6259_v24  ;;  %v12571_v26 = vadd.f32 %v12570_v53, %v12569_v20  ;;  %v6385_v7 = vrot.slane %v6383_v41, 1  ;;  %12924 = vmatprep.subr.bf16.mxu0 %v14133_v35  ;;  %v16845_v19 = vsel %vm1366_vm1, %v7136_v28, %v7137_v25 }
 0x4dd   : > { %v12572_v22 = vpop.f32.mrf.mxu0 }
 0x4de   : > { %v6331_v55 = vadd.f32 %v16807_v56, %v6311_v21  ;;  %v6264_v49 = vadd.f32 %v16782_v31, %v12571_v26  ;;  %v6386_v58 = vsel %vm949_vm2, %v6381_v17, %v6385_v7 }
 0x4df   : > { %v12573_v44 = vpop.f32.mrf.mxu0  ;;  %12811 = vmatmul.mubr.msk.bf16.vlgmr.msra.gmra.mxu1 %vm6471_vm11, %v6386_v58  ;;  %12925 = vmatpush3.bf16.msra.mxu0 %v13541_v14  ;;  %v13547_v58 = vld [vmem:[#allocation3 + $0x60] sm:$0xff]  }
 0x4e0   : > { %v16852_v59 = vpack.c.bf16 %v6331_v55, %v6330_v61  ;;  %v12574_v1 = vadd.f32 %v12573_v44, %v12572_v22  ;;  %12814 = vmatprep.mubr.msk.bf16.mxu1 %vm14134_vm10, %v14133_v35  ;;  %12879 = vmatpush3.bf16.msra.mxu1 %v13538_v32  ;;  %v6312_v31 = vmul.f32 %v16801_v45, %v6264_v49 }
 0x4e1   : > { %v12575_v29 = vpop.f32.mrf.mxu0  ;;  %12880 = vmatprep.subr.bf16.mxu1 %v14133_v35  ;;  %12926 = vmatprep.subr.bf16.mxu0 %v14133_v35 }
 0x4e2   : > { %v6267_v43 = vadd.f32 %v16784_v23, %v12574_v1  ;;  %v6391_v48 = vshll.u32 %v16852_v59, 16  ;;  %12859 = vmatmul.mubr.msk.bf16.gmra.mxu0 %vm6471_vm11, %v16852_v59  ;;  %v7139_v0 = vrot.slane %v16852_v59, 2  ;;  %v6389_v23 = vor.u32 %v6387_v57, %v6385_v7 }
 0x4e3   : > { %v12576_v16 = vpop.f32.mrf.mxu0  ;;  %12862 = vmatprep.mubr.msk.bf16.mxu0 %vm14134_vm10, %v14133_v35  ;;  %12927 = vmatpush3.bf16.msra.mxu0 %v13543_v39  ;;  %v6332_v3 = vadd.f32 %v16807_v56, %v6312_v31  ;;  %v6395_v15 = vshrl.u32 %v16852_v59, 16 }
 0x4e4   : > { %v6313_v30 = vmul.f32 %v16801_v45, %v6267_v43  ;;  %v12577_v18 = vadd.f32 %v12576_v16, %v12575_v29  ;;  %v6393_v34 = vrot.slane %v6391_v48, 1  ;;  %12881 = vmatpush3.bf16.msra.mxu1 %v13540_v33  ;;  %12928 = vmatprep.subr.bf16.mxu0 %v14133_v35  ;;  %v16875_v46 = vsel %vm1366_vm1, %v7137_v25, %v7139_v0  ;;  %v13546_v25 = vld [vmem:[#allocation3 + $0x68] sm:$0xff]  }
 0x4e5   : > { %v12578_v27 = vpop.f32.mrf.mxu0  ;;  %12882 = vmatprep.subr.bf16.mxu1 %v14133_v35 }
 0x4e6   : > { %v6333_v2 = vadd.f32 %v16807_v56, %v6313_v30  ;;  %v6272_v8 = vadd.f32 %v12577_v18, %v16788_v13  ;;  %v6394_v40 = vsel %vm949_vm2, %v6389_v23, %v6393_v34  ;;  %v6397_v28 = vor.u32 %v6395_v15, %v6393_v34 }
 0x4e7   : > { %v12579_v5 = vpop.f32.mrf.mxu0  ;;  %12815 = vmatmul.mubr.msk.bf16.gmra.mxu1 %vm6471_vm11, %v6394_v40  ;;  %12929 = vmatpush3.bf16.msra.mxu0 %v13545_v60 }
 0x4e8   : > { %v16882_v11 = vpack.c.bf16 %v6333_v2, %v6332_v3  ;;  %v12580_v42 = vadd.f32 %v12579_v5, %v12578_v27  ;;  %12818 = vmatprep.mubr.msk.bf16.mxu1 %vm14134_vm10, %v14133_v35  ;;  %12883 = vmatpush3.bf16.msra.mxu1 %v13542_v51  ;;  %v6314_v13 = vmul.f32 %v16801_v45, %v6272_v8  ;;  %v6290_v8 = vpop.f32.mrf.mxu1 }
 0x4e9   : > { %v12581_v50 = vpop.f32.mrf.mxu0  ;;  %12884 = vmatprep.subr.bf16.mxu1 %v14133_v35  ;;  %12998 = vmatprep.subr.bf16.mxu0 %v14133_v35 }
 0x4ea   : > { %v6275_v6 = vadd.f32 %v12580_v42, %v16792_v62  ;;  %v6399_v20 = vshll.u32 %v16882_v11, 16  ;;  %12863 = vmatmul.mubr.msk.bf16.gmra.mxu0 %vm6471_vm11, %v16882_v11  ;;  %v7141_v24 = vrot.slane %v16882_v11, 2  ;;  %v6334_v17 = vadd.f32 %v16807_v56, %v6314_v13 }
 0x4eb   : > { %v12582_v52 = vpop.f32.mrf.mxu0  ;;  %12866 = vmatprep.mubr.msk.bf16.mxu0 %vm14134_vm10, %v14133_v35  ;;  %v6403_v1 = vshrl.u32 %v16882_v11, 16 }
 0x4ec   : > { %v6315_v53 = vmul.f32 %v16801_v45, %v6275_v6  ;;  %v12583_v14 = vadd.f32 %v12582_v52, %v12581_v50  ;;  %v6401_v62 = vrot.slane %v6399_v20, 1  ;;  %12885 = vmatpush3.bf16.msra.mxu1 %v13544_v47  ;;  %v16904_v26 = vsel %vm1366_vm1, %v7139_v0, %v7141_v24 }
 0x4ed   : > { %v12584_v21 = vpop.f32.mrf.mxu0  ;;  %12886 = vmatprep.subr.bf16.mxu1 %v14133_v35 }
 0x4ee   : > { %v6335_v7 = vadd.f32 %v16807_v56, %v6315_v53  ;;  %v6280_v32 = vadd.f32 %v16786_v38, %v12583_v14  ;;  %v6402_v22 = vsel %vm949_vm2, %v6397_v28, %v6401_v62  ;;  %v6405_v60 = vor.u32 %v6403_v1, %v6401_v62 }
 0x4ef   : > { %v12585_v61 = vpop.f32.mrf.mxu0  ;;  %12819 = vmatmul.mubr.msk.bf16.gmra.mxu1 %vm6471_vm11, %v6402_v22 }
 0x4f0   : > { %v16911_v55 = vpack.c.bf16 %v6335_v7, %v6334_v17  ;;  %v12586_v49 = vadd.f32 %v12585_v61, %v12584_v21  ;;  %12822 = vmatprep.mubr.msk.bf16.mxu1 %vm14134_vm10, %v14133_v35  ;;  %12887 = vmatpush3.bf16.msra.mxu1 %v13546_v25  ;;  %v6316_v39 = vmul.f32 %v16801_v45, %v6280_v32  ;;  %v6933_v61 = vrot.slane %v6387_v57, 1 }
 0x4f1   : > { %v12587_v44 = vpop.f32.mrf.mxu0  ;;  %12888 = vmatprep.subr.bf16.mxu1 %v14133_v35  ;;  %v6931_v57 = vrot.slane %v6378_v9, 2 }
 0x4f2   : > { %v6283_v38 = vadd.f32 %v16790_v37, %v12586_v49  ;;  %v6407_v33 = vshll.u32 %v16911_v55, 16  ;;  %12867 = vmatmul.mubr.msk.bf16.gmra.mxu0 %vm6471_vm11, %v16911_v55  ;;  %v7143_v31 = vrot.slane %v16911_v55, 2  ;;  %v6336_v18 = vadd.f32 %v16807_v56, %v6316_v39 }
 0x4f3   : > { %v12588_v29 = vpop.f32.mrf.mxu0  ;;  %12870 = vmatprep.mubr.msk.bf16.mxu0 %vm14134_vm10, %v14133_v35  ;;  %v6411_v47 = vshrl.u32 %v16911_v55, 16  ;;  %v6934_v49 = vrot.slane %v6383_v41, 2 }
 0x4f4   : > { %v6317_v43 = vmul.f32 %v16801_v45, %v6283_v38  ;;  %v12589_v16 = vadd.f32 %v12588_v29, %v12587_v44  ;;  %v6409_v37 = vrot.slane %v6407_v33, 1  ;;  %12889 = vmatpush3.bf16.msra.mxu1 %v13547_v58  ;;  %v16932_v30 = vsel %vm1366_vm1, %v7141_v24, %v7143_v31 }
 0x4f5   : > { %v12590_v0 = vpop.f32.mrf.mxu0  ;;  %12958 = vmatprep.subr.bf16.mxu1 %v14133_v35  ;;  %v6935_v29 = vor.u32 %v6934_v49, %v6933_v61  ;;  %v6749_v61 = vrot.slane %v16911_v55, 1 }
 0x4f6   : > { %v6337_v23 = vadd.f32 %v16807_v56, %v6317_v43  ;;  %v6288_v34 = vadd.f32 %v12589_v16, %v16796_v10  ;;  %v6410_v51 = vsel %vm949_vm2, %v6405_v60, %v6409_v37  ;;  %v6413_v24 = vor.u32 %v6411_v47, %v6409_v37 }
 0x4f7   : > { %v12591_v27 = vpop.f32.mrf.mxu0  ;;  %12823 = vmatmul.mubr.msk.bf16.gmra.mxu1 %vm6471_vm11, %v6410_v51  ;;  %v6937_v37 = vrot.slane %v6395_v15, 1 }
 0x4f8   : > { %v16939_v3 = vpack.c.bf16 %v6337_v23, %v6336_v18  ;;  %v12592_v2 = vadd.f32 %v12591_v27, %v12590_v0  ;;  %12826 = vmatprep.mubr.msk.bf16.mxu1 %vm14134_vm10, %v14133_v35  ;;  %v6318_v5 = vmul.f32 %v16801_v45, %v6288_v34  ;;  %v6938_v0 = vrot.slane %v6391_v48, 2 }
 0x4f9   : > { %v12593_v40 = vpop.f32.mrf.mxu0 }
 0x4fa   : > { %v6291_v42 = vadd.f32 %v12592_v2, %v6290_v8  ;;  %v6415_v10 = vshll.u32 %v16939_v3, 16  ;;  %12871 = vmatmul.mubr.msk.bf16.gmra.mxu0 %vm6471_vm11, %v16939_v3  ;;  %v7145_v13 = vrot.slane %v16939_v3, 2  ;;  %v6338_v62 = vadd.f32 %v16807_v56, %v6318_v5 }
 0x4fb   : > { %v12594_v50 = vpop.f32.mrf.mxu0  ;;  %12874 = vmatprep.mubr.msk.bf16.mxu0 %vm14134_vm10, %v14133_v35  ;;  %v6419_v58 = vshrl.u32 %v16939_v3, 16  ;;  %v6939_v27 = vor.u32 %v6938_v0, %v6937_v37  ;;  %v6941_v2 = vrot.slane %v6403_v1, 1  ;;  %v6942_v8 = vrot.slane %v6399_v20, 2  ;;  %v13549_v20 = vld [vmem:[#allocation3 + $0xe0] sm:$0xff]   ;;  %v13563_v37 = vld [vmem:[#allocation5 + $0x8] sm:$0xff]   ;;  %v13564_v0 = vld [vmem:[#allocation5 + $0x60] sm:$0xff]  }
 0x4fc   : > { %v6319_v6 = vmul.f32 %v16801_v45, %v6291_v42  ;;  %v12595_v52 = vadd.f32 %v12594_v50, %v12593_v40  ;;  %v6417_v53 = vrot.slane %v6415_v10, 1  ;;  %v16957_v28 = vsel %vm1366_vm1, %v7143_v31, %v7145_v13  ;;  %v13548_v42 = vld [vmem:[#allocation3 + $0xe8] sm:$0xff]  }
 0x4fd   : > { %v12596_v14 = vpop.f32.mrf.mxu0  ;;  %v6940_v48 = vsel %vm2312_vm4, %v6935_v29, %v6939_v27  ;;  %v6743_v40 = vrot.slane %v16824_v63, 1  ;;  %v6742_v5 = vrot.slane %v16812_v36, 1  ;;  %v6943_v50 = vor.u32 %v6942_v8, %v6941_v2 }
 0x4fe   : > { %v6339_v25 = vadd.f32 %v16807_v56, %v6319_v6  ;;  %v6296_v21 = vadd.f32 %v16794_v54, %v12595_v52  ;;  %v6418_v17 = vsel %vm949_vm2, %v6413_v24, %v6417_v53  ;;  %v6945_v1 = vrot.slane %v6411_v47, 1  ;;  %v13550_v52 = vld [vmem:[#allocation3 + $0xd8] sm:$0xff]  }
 0x4ff   : > { %12827 = vmatmul.mubr.msk.bf16.gmra.mxu1 %vm6471_vm11, %v6418_v17  ;;  %v12597_v7 = vpop.f32.mrf.mxu0  ;;  %v6944_v63 = vsel %vm2312_vm4, %v6939_v27, %v6943_v50  ;;  %v6946_v6 = vrot.slane %v6407_v33, 2  ;;  %v6745_v36 = vrot.slane %v16852_v59, 1  ;;  %v13551_v33 = vld [vmem:[#allocation3 + $0xd0] sm:$0xff]   ;;  %v6949_v47 = vrot.slane %v6419_v58, 1 }
 0x500   : > { %v16964_v32 = vpack.c.bf16 %v6339_v25, %v6338_v62  ;;  %v6320_v22 = vmul.f32 %v16801_v45, %v6296_v21  ;;  %12830 = vmatprep.mubr.msk.bf16.mxu1 %vm14134_vm10, %v14133_v35  ;;  %v6930_v45 = vrot.slane %v6376_v4, 1  ;;  %v6950_v14 = vrot.slane %v6415_v10, 2  ;;  %v13552_v25 = vld [vmem:[#allocation3 + $0xc8] sm:$0xff]   ;;  %v13553_v10 = vld [vmem:[#allocation3 + $0xc0] sm:$0xff]  }
 0x501   : > { %v6947_v24 = vor.u32 %v6946_v6, %v6945_v1  ;;  %v6747_v62 = vrot.slane %v16882_v11, 1 }
 0x502   : > { %v6340_v54 = vadd.f32 %v16807_v56, %v6320_v22  ;;  %v6423_v44 = vshll.u32 %v16964_v32, 16  ;;  %12875 = vmatmul.mubr.msk.bf16.gmra.mxu0 %vm6471_vm11, %v16964_v32  ;;  %v7147_v41 = vrot.slane %v16964_v32, 2  ;;  %v6421_v56 = vor.u32 %v6419_v58, %v6417_v53 }
 0x503   : > { %12930 = vmatprep.mubr.msk.bf16.mxu0 %vm14134_vm10, %v14133_v35  ;;  %v6932_v9 = vor.u32 %v6931_v57, %v6930_v45  ;;  %v6427_v23 = vshrl.u32 %v16964_v32, 16  ;;  %v6746_v53 = vsel %vm1869_vm3, %v6743_v40, %v6745_v36  ;;  %v6948_v59 = vsel %vm2312_vm4, %v6943_v50, %v6947_v24  ;;  %v13568_v50 = vld [vmem:[#allocation5 + $0x48] sm:$0xff]  }
 0x504   : > { %v16985_v39 = vpack.c.bf16 %v6340_v54, %v6340_v54  ;;  %v6425_v38 = vrot.slane %v6423_v44, 1  ;;  %v16992_v31 = vsel %vm1366_vm1, %v7145_v13, %v7147_v41  ;;  %v6744_v13 = vsel %vm1869_vm3, %v6742_v5, %v6743_v40 }
 0x505   : > { %v6936_v60 = vsel %vm2312_vm4, %v6932_v9, %v6935_v29  ;;  %v6951_v21 = vor.u32 %v6950_v14, %v6949_v47  ;;  %v6748_v17 = vsel %vm1869_vm3, %v6745_v36, %v6747_v62  ;;  %v6953_v7 = vrot.slane %v6427_v23, 1  ;;  %v13562_v9 = vld [vmem:[#allocation5 + $0x68] sm:$0xff]   ;;  %v13569_v36 = vld [vmem:[#allocation5 + $0x40] sm:$0xff]  }
 0x506   : > { %v6426_v43 = vsel %vm949_vm2, %v6421_v56, %v6425_v38  ;;  %v6431_v4 = vshll.u32 %v16985_v39, 16  ;;  %v7149_v16 = vrot.slane %v16985_v39, 2  ;;  %v6429_v51 = vor.u32 %v6427_v23, %v6425_v38 }
 0x507   : > { %12831 = vmatmul.mubr.msk.bf16.gmra.mxu1 %vm6471_vm11, %v6426_v43  ;;  %v6952_v11 = vsel %vm2312_vm4, %v6947_v24, %v6951_v21  ;;  %v6954_v22 = vrot.slane %v6423_v44, 2  ;;  %v6957_v54 = vshrl.u32 %v16985_v39, 16  ;;  %v6750_v58 = vsel %vm1869_vm3, %v6747_v62, %v6749_v61 }
 0x508   : > { %12834 = vmatprep.mubr.msk.bf16.mxu1 %vm14134_vm10, %v14133_v35  ;;  %v17006_v18 = vsel %vm1366_vm1, %v7147_v41, %v7149_v16  ;;  %v6433_v34 = vrot.slane %v6431_v4, 1  ;;  %v6960_v45 = vrot.slane %v6431_v4, 2  ;;  %v6751_v57 = vrot.slane %v16939_v3, 1 }
 0x509   : > { %v6955_v49 = vor.u32 %v6954_v22, %v6953_v7  ;;  %v6959_v44 = vrot.slane %v6957_v54, 1  ;;  %v6753_v29 = vrot.slane %v16964_v32, 1  ;;  %v6755_v43 = vrot.slane %v16985_v39, 1  ;;  %v13559_v32 = vld [vmem:[#allocation5 + $0x18] sm:$0xff]   ;;  %v13560_v39 = vld [vmem:[#allocation5 + $0x70] sm:$0xff]  }
 0x50a   : > { %12931 = vmatmul.mubr.msk.bf16.vlgmr.msra.gmra.mxu0 %vm6471_vm11, %v6936_v60  ;;  %v6434_v15 = vsel %vm949_vm2, %v6429_v51, %v6433_v34  ;;  %v6752_v56 = vsel %vm1869_vm3, %v6749_v61, %v6751_v57  ;;  %v13565_v34 = vld [vmem:[#allocation5] sm:$0xff]   ;;  %v13566_v51 = vld [vmem:[#allocation5 + $0x58] sm:$0xff]  }
 0x50b   : > { %12934 = vmatprep.mubr.msk.bf16.mxu0 %vm14134_vm10, %v14133_v35  ;;  %v6956_v55 = vsel %vm2312_vm4, %v6951_v21, %v6955_v49  ;;  %v6961_v41 = vor.u32 %v6960_v45, %v6959_v44  ;;  %v6754_v3 = vsel %vm1869_vm3, %v6751_v57, %v6753_v29  ;;  %v6756_v4 = vsel %vm1869_vm3, %v6753_v29, %v6755_v43 }
 0x50d   : > { %v6962_v38 = vsel %vm2312_vm4, %v6955_v49, %v6961_v41 }
 0x50f   : > { %12835 = vmatmul.mubr.msk.bf16.gmra.mxu1 %vm6471_vm11, %v6434_v15 }
 0x510   : > { %12890 = vmatprep.mubr.msk.bf16.mxu1 %vm14134_vm10, %v14133_v35 }
 0x512   : > { %12935 = vmatmul.mubr.msk.bf16.gmra.mxu0 %vm6471_vm11, %v6940_v48  ;;  %v13567_v48 = vld [vmem:[#allocation5 + $0x50] sm:$0xff]  }
 0x513   : > { %12938 = vmatprep.mubr.msk.bf16.mxu0 %vm14134_vm10, %v14133_v35 }
 0x517   : > { %12891 = vmatmul.mubr.msk.bf16.vlgmr.msra.gmra.mxu1 %vm6471_vm11, %v6744_v13 }
 0x518   : > { %12894 = vmatprep.mubr.msk.bf16.mxu1 %vm14134_vm10, %v14133_v35  ;;  %12959 = vmatpush3.bf16.msra.mxu1 %v13548_v42 }
 0x519   : > { %12960 = vmatprep.subr.bf16.mxu1 %v14133_v35 }
 0x51a   : > { %12939 = vmatmul.mubr.msk.bf16.gmra.mxu0 %vm6471_vm11, %v6944_v63 }
 0x51b   : > { %12942 = vmatprep.mubr.msk.bf16.mxu0 %vm14134_vm10, %v14133_v35 }
 0x51c   : > { %12961 = vmatpush3.bf16.msra.mxu1 %v13549_v20 }
 0x51d   : > { %12962 = vmatprep.subr.bf16.mxu1 %v14133_v35 }
 0x51f   : > { %12895 = vmatmul.mubr.msk.bf16.gmra.mxu1 %vm6471_vm11, %v6746_v53 }
 0x520   : > { %12898 = vmatprep.mubr.msk.bf16.mxu1 %vm14134_vm10, %v14133_v35  ;;  %12963 = vmatpush3.bf16.msra.mxu1 %v13550_v52 }
 0x521   : > { %12964 = vmatprep.subr.bf16.mxu1 %v14133_v35 }
 0x522   : > { %12943 = vmatmul.mubr.msk.bf16.gmra.mxu0 %vm6471_vm11, %v6948_v59 }
 0x523   : > { %12946 = vmatprep.mubr.msk.bf16.mxu0 %vm14134_vm10, %v14133_v35 }
 0x524   : > { %12965 = vmatpush3.bf16.msra.mxu1 %v13551_v33 }
 0x525   : > { %12966 = vmatprep.subr.bf16.mxu1 %v14133_v35 }
 0x527   : > { %12899 = vmatmul.mubr.msk.bf16.gmra.mxu1 %vm6471_vm11, %v6748_v17 }
 0x528   : > { %12902 = vmatprep.mubr.msk.bf16.mxu1 %vm14134_vm10, %v14133_v35  ;;  %12967 = vmatpush3.bf16.msra.mxu1 %v13552_v25 }
 0x529   : > { %12968 = vmatprep.subr.bf16.mxu1 %v14133_v35 }
 0x52a   : > { %12947 = vmatmul.mubr.msk.bf16.gmra.mxu0 %vm6471_vm11, %v6952_v11 }
 0x52b   : > { %12950 = vmatprep.mubr.msk.bf16.mxu0 %vm14134_vm10, %v14133_v35 }
 0x52c   : > { %12969 = vmatpush3.bf16.msra.mxu1 %v13553_v10 }
 0x52d   : > { %13042 = vmatprep.subr.bf16.mxu1 %v14133_v35 }
 0x52f   : > { %12903 = vmatmul.mubr.msk.bf16.gmra.mxu1 %vm6471_vm11, %v6750_v58 }
 0x530   : > { %12906 = vmatprep.mubr.msk.bf16.mxu1 %vm14134_vm10, %v14133_v35 }
 0x532   : > { %12951 = vmatmul.mubr.msk.bf16.gmra.mxu0 %vm6471_vm11, %v6956_v55 }
 0x533   : > { %12954 = vmatprep.mubr.msk.bf16.mxu0 %vm14134_vm10, %v14133_v35 }
 0x537   : > { %12907 = vmatmul.mubr.msk.bf16.gmra.mxu1 %vm6471_vm11, %v6752_v56 }
 0x538   : > { %12910 = vmatprep.mubr.msk.bf16.mxu1 %vm14134_vm10, %v14133_v35 }
 0x53a   : > { %12955 = vmatmul.mubr.msk.bf16.gmra.mxu0 %vm6471_vm11, %v6962_v38 }
 0x53b   : > { %13014 = vmatprep.mubr.msk.bf16.mxu0 %vm14134_vm10, %v14133_v35 }
 0x53f   : > { %12911 = vmatmul.mubr.msk.bf16.gmra.mxu1 %vm6471_vm11, %v6754_v3 }
 0x540   : > { %12914 = vmatprep.mubr.msk.bf16.mxu1 %vm14134_vm10, %v14133_v35 }
 0x547   : > { %12915 = vmatmul.mubr.msk.bf16.gmra.mxu1 %vm6471_vm11, %v6756_v4 }
 0x548   : > { %12970 = vmatprep.mubr.msk.bf16.mxu1 %vm14134_vm10, %v14133_v35 }
 0x54f   : > { %12971 = vmatmul.mubr.msk.bf16.vlgmr.msra.gmra.mxu1 %vm6471_vm11, %v16845_v19  ;;  %v13554_v19 = vld [vmem:[#allocation5 + $0x38] sm:$0xff]  }
 0x550   : > { %12974 = vmatprep.mubr.msk.bf16.mxu1 %vm14134_vm10, %v14133_v35  ;;  %13043 = vmatpush3.bf16.msra.mxu1 %v13554_v19 }
 0x551   : > { %13044 = vmatprep.subr.bf16.mxu1 %v14133_v35 }
 0x557   : > { %12975 = vmatmul.mubr.msk.bf16.gmra.mxu1 %vm6471_vm11, %v16875_v46  ;;  %v13555_v46 = vld [vmem:[#allocation5 + $0x30] sm:$0xff]  }
 0x558   : > { %12978 = vmatprep.mubr.msk.bf16.mxu1 %vm14134_vm10, %v14133_v35  ;;  %13045 = vmatpush3.bf16.msra.mxu1 %v13555_v46 }
 0x559   : > { %13046 = vmatprep.subr.bf16.mxu1 %v14133_v35 }
 0x55f   : > { %12979 = vmatmul.mubr.msk.bf16.gmra.mxu1 %vm6471_vm11, %v16904_v26  ;;  %v13556_v26 = vld [vmem:[#allocation5 + $0x28] sm:$0xff]  }
 0x560   : > { %12982 = vmatprep.mubr.msk.bf16.mxu1 %vm14134_vm10, %v14133_v35  ;;  %13047 = vmatpush3.bf16.msra.mxu1 %v13556_v26 }
 0x561   : > { %13048 = vmatprep.subr.bf16.mxu1 %v14133_v35 }
 0x567   : > { %12983 = vmatmul.mubr.msk.bf16.gmra.mxu1 %vm6471_vm11, %v16932_v30  ;;  %v13557_v30 = vld [vmem:[#allocation5 + $0x20] sm:$0xff]  }
 0x568   : > { %12986 = vmatprep.mubr.msk.bf16.mxu1 %vm14134_vm10, %v14133_v35  ;;  %13049 = vmatpush3.bf16.msra.mxu1 %v13557_v30 }
 0x569   : > { %13050 = vmatprep.subr.bf16.mxu1 %v14133_v35 }
 0x56c   : > { %13051 = vmatpush3.bf16.msra.mxu1 %v13559_v32 }
 0x56d   : > { %13052 = vmatprep.subr.bf16.mxu1 %v14133_v35 }
 0x56f   : > { %12987 = vmatmul.mubr.msk.bf16.gmra.mxu1 %vm6471_vm11, %v16957_v28  ;;  %v13558_v28 = vld [vmem:[#allocation5 + $0x78] sm:$0xff]  }
 0x570   : > { %12990 = vmatprep.mubr.msk.bf16.mxu1 %vm14134_vm10, %v14133_v35  ;;  %12999 = vmatpush3.bf16.msra.mxu0 %v13558_v28 }
 0x571   : > { %13000 = vmatprep.subr.bf16.mxu0 %v14133_v35 }
 0x574   : > { %13001 = vmatpush3.bf16.msra.mxu0 %v13560_v39 }
 0x575   : > { %13002 = vmatprep.subr.bf16.mxu0 %v14133_v35 }
 0x577   : > { %12991 = vmatmul.mubr.msk.bf16.gmra.mxu1 %vm6471_vm11, %v16992_v31  ;;  %v13561_v31 = vld [vmem:[#allocation5 + $0x10] sm:$0xff]  }
 0x578   : > { %12994 = vmatprep.mubr.msk.bf16.mxu1 %vm14134_vm10, %v14133_v35  ;;  %13053 = vmatpush3.bf16.msra.mxu1 %v13561_v31 }
 0x579   : > { %13003 = vmatpush3.bf16.msra.mxu0 %v13562_v9  ;;  %13054 = vmatprep.subr.bf16.mxu1 %v14133_v35 }
 0x57a   : > { %13004 = vmatprep.subr.bf16.mxu0 %v14133_v35 }
 0x57c   : > { %13055 = vmatpush3.bf16.msra.mxu1 %v13563_v37 }
 0x57d   : > { %13005 = vmatpush3.bf16.msra.mxu0 %v13564_v0  ;;  %13056 = vmatprep.subr.bf16.mxu1 %v14133_v35 }
 0x57e   : > { %13006 = vmatprep.subr.bf16.mxu0 %v14133_v35 }
 0x57f   : > { %12995 = vmatmul.mubr.msk.bf16.gmra.mxu1 %vm6471_vm11, %v17006_v18 }
 0x580   : > { %13058 = vmatprep.mubr.msk.bf16.mxu1 %vm14134_vm10, %v14133_v35  ;;  %13057 = vmatpush3.bf16.msra.mxu1 %v13565_v34 }
 0x581   : > { %13007 = vmatpush3.bf16.msra.mxu0 %v13566_v51  ;;  %13130 = vmatprep.subr.bf16.mxu1 %v14133_v35 }
 0x582   : > { %13008 = vmatprep.subr.bf16.mxu0 %v14133_v35 }
 0x585   : > { %13009 = vmatpush3.bf16.msra.mxu0 %v13567_v48 }
 0x586   : > { %13010 = vmatprep.subr.bf16.mxu0 %v14133_v35 }
 0x589   : > { %13011 = vmatpush3.bf16.msra.mxu0 %v13568_v50 }
 0x58a   : > { %13012 = vmatprep.subr.bf16.mxu0 %v14133_v35 }
 0x58d   : > { %13013 = vmatpush3.bf16.msra.mxu0 %v13569_v36 }
 0x58e   : > { %13086 = vmatprep.subr.bf16.mxu0 %v14133_v35 }
 0x592   : > { %v6666_v16 = vpop.f32.mrf.mxu0 }
 0x594   : > { %v12852_v60 = vpop.f32.mrf.mxu0 }
 0x596   : > { %v6669_v18 = vpop.f32.mrf.mxu0 }
 0x598   : > { %v12853_v23 = vpop.f32.mrf.mxu0 }
 0x59a   : > { %v6674_v27 = vpop.f32.mrf.mxu0 }
 0x59c   : > { %v12856_v15 = vpop.f32.mrf.mxu0 }
 0x59e   : > { %v6677_v2 = vpop.f32.mrf.mxu0 }
 0x59f   : > { %v6527_v8 = vpop.f32.mrf.mxu1 }
 0x5a0   : > { %v17142_v40 = vadd.f32 %v6666_v16, %v6527_v8  ;;  %v12857_v5 = vpop.f32.mrf.mxu0 }
 0x5a1   : > { %v12812_v42 = vpop.f32.mrf.mxu1 }
 0x5a2   : > { %v6682_v13 = vpop.f32.mrf.mxu0 }
 0x5a3   : > { %v6530_v20 = vpop.f32.mrf.mxu1 }
 0x5a4   : > { %v17145_v63 = vadd.f32 %v6669_v18, %v6530_v20  ;;  %v12860_v1 = vpop.f32.mrf.mxu0 }
 0x5a5   : > { %v12813_v6 = vpop.f32.mrf.mxu1 }
 0x5a6   : > { %v6685_v52 = vpop.f32.mrf.mxu0 }
 0x5a7   : > { %v6535_v24 = vpop.f32.mrf.mxu1 }
 0x5a8   : > { %v17148_v53 = vadd.f32 %v6674_v27, %v6535_v24  ;;  %v12861_v33 = vpop.f32.mrf.mxu0 }
 0x5a9   : > { %v12816_v59 = vpop.f32.mrf.mxu1 }
 0x5aa   : > { %v6690_v47 = vpop.f32.mrf.mxu0 }
 0x5ab   : > { %v6538_v14 = vpop.f32.mrf.mxu1 }
 0x5ac   : > { %v17151_v62 = vadd.f32 %v6677_v2, %v6538_v14  ;;  %v12864_v25 = vpop.f32.mrf.mxu0 }
 0x5ad   : > { %v12817_v21 = vpop.f32.mrf.mxu1 }
 0x5ae   : > { %v6693_v17 = vpop.f32.mrf.mxu0 }
 0x5af   : > { %v6543_v10 = vpop.f32.mrf.mxu1 }
 0x5b0   : > { %v17153_v11 = vadd.f32 %v6682_v13, %v6543_v10  ;;  %v12865_v7 = vpop.f32.mrf.mxu0 }
 0x5b1   : > { %v12820_v22 = vpop.f32.mrf.mxu1 }
 0x5b2   : > { %v6698_v61 = vpop.f32.mrf.mxu0 }
 0x5b3   : > { %v6546_v49 = vpop.f32.mrf.mxu1 }
 0x5b4   : > { %v17155_v54 = vadd.f32 %v6685_v52, %v6546_v49  ;;  %v12868_v58 = vpop.f32.mrf.mxu0 }
 0x5b5   : > { %v12821_v55 = vpop.f32.mrf.mxu1 }
 0x5b6   : > { %v6701_v44 = vpop.f32.mrf.mxu0 }
 0x5b7   : > { %v6551_v45 = vpop.f32.mrf.mxu1 }
 0x5b8   : > { %v17157_v57 = vadd.f32 %v6690_v47, %v6551_v45  ;;  %v12869_v41 = vpop.f32.mrf.mxu0 }
 0x5b9   : > { %v12824_v56 = vpop.f32.mrf.mxu1 }
 0x5ba   : > { %v6706_v38 = vpop.f32.mrf.mxu0 }
 0x5bb   : > { %v6554_v29 = vpop.f32.mrf.mxu1 }
 0x5bc   : > { %v17159_v3 = vadd.f32 %v6693_v17, %v6554_v29  ;;  %v12872_v43 = vpop.f32.mrf.mxu0 }
 0x5bd   : > { %v12825_v4 = vpop.f32.mrf.mxu1 }
 0x5be   : > { %v6709_v19 = vpop.f32.mrf.mxu0 }
 0x5bf   : > { %v6559_v46 = vpop.f32.mrf.mxu1 }
 0x5c0   : > { %v17161_v26 = vadd.f32 %v6698_v61, %v6559_v46  ;;  %v12873_v30 = vpop.f32.mrf.mxu0 }
 0x5c1   : > { %v12828_v28 = vpop.f32.mrf.mxu1 }
 0x5c2   : > { %v6714_v32 = vpop.f32.mrf.mxu0 }
 0x5c3   : > { %v6562_v39 = vpop.f32.mrf.mxu1 }
 0x5c4   : > { %v17163_v31 = vadd.f32 %v6701_v44, %v6562_v39  ;;  %v12876_v9 = vpop.f32.mrf.mxu0 }
 0x5c5   : > { %v12829_v16 = vpop.f32.mrf.mxu1 }
 0x5c6   : > { %v6717_v60 = vpop.f32.mrf.mxu0 }
 0x5c7   : > { %v6567_v37 = vpop.f32.mrf.mxu1 }
 0x5c8   : > { %v17165_v0 = vadd.f32 %v6706_v38, %v6567_v37  ;;  %v12877_v18 = vpop.f32.mrf.mxu0 }
 0x5c9   : > { %v12832_v23 = vpop.f32.mrf.mxu1 }
 0x5ca   : > { %v7054_v34 = vpop.f32.mrf.mxu0 }
 0x5cb   : > { %v6570_v51 = vpop.f32.mrf.mxu1 }
 0x5cc   : > { %v17167_v27 = vadd.f32 %v6709_v19, %v6570_v51  ;;  %v12932_v15 = vpop.f32.mrf.mxu0 }
 0x5cd   : > { %v12833_v48 = vpop.f32.mrf.mxu1 }
 0x5ce   : > { %v7057_v2 = vpop.f32.mrf.mxu0 }
 0x5cf   : > { %v6575_v8 = vpop.f32.mrf.mxu1 }
 0x5d0   : > { %v17169_v5 = vadd.f32 %v6714_v32, %v6575_v8  ;;  %v12933_v42 = vpop.f32.mrf.mxu0 }
 0x5d1   : > { %v12836_v50 = vpop.f32.mrf.mxu1 }
 0x5d2   : > { %v7062_v13 = vpop.f32.mrf.mxu0 }
 0x5d3   : > { %v6578_v20 = vpop.f32.mrf.mxu1 }
 0x5d4   : > { %v17171_v1 = vadd.f32 %v6717_v60, %v6578_v20  ;;  %v12936_v6 = vpop.f32.mrf.mxu0 }
 0x5d5   : > { %v12837_v36 = vpop.f32.mrf.mxu1 }
 0x5d6   : > { %v7065_v52 = vpop.f32.mrf.mxu0 }
 0x5d7   : > { %v6848_v24 = vpop.f32.mrf.mxu1 }
 0x5d8   : > { %v6903_v33 = vadd.f32 %v6848_v24, %v17142_v40  ;;  %v12937_v59 = vpop.f32.mrf.mxu0 }
 0x5d9   : > { %v12892_v47 = vpop.f32.mrf.mxu1 }
 0x5da   : > { %v7070_v14 = vpop.f32.mrf.mxu0  ;;  %v17174_v25 = vadd.f32 %v7054_v34, %v6903_v33 }
 0x5db   : > { %v6851_v21 = vpop.f32.mrf.mxu1 }
 0x5dc   : > { %v6904_v17 = vadd.f32 %v6851_v21, %v17145_v63  ;;  %v12940_v10 = vpop.f32.mrf.mxu0 }
 0x5dd   : > { %v12893_v7 = vpop.f32.mrf.mxu1 }
 0x5de   : > { %v7073_v22 = vpop.f32.mrf.mxu0  ;;  %v17177_v61 = vadd.f32 %v7057_v2, %v6904_v17 }
 0x5df   : > { %v6856_v49 = vpop.f32.mrf.mxu1 }
 0x5e0   : > { %v6905_v58 = vadd.f32 %v6856_v49, %v17148_v53  ;;  %v12941_v55 = vpop.f32.mrf.mxu0 }
 0x5e1   : > { %v12896_v44 = vpop.f32.mrf.mxu1 }
 0x5e2   : > { %v7078_v45 = vpop.f32.mrf.mxu0  ;;  %v17180_v40 = vadd.f32 %v7062_v13, %v6905_v58 }
 0x5e3   : > { %v6859_v41 = vpop.f32.mrf.mxu1 }
 0x5e4   : > { %v6906_v56 = vadd.f32 %v6859_v41, %v17151_v62  ;;  %v12944_v38 = vpop.f32.mrf.mxu0 }
 0x5e5   : > { %v12897_v29 = vpop.f32.mrf.mxu1 }
 0x5e6   : > { %v7081_v43 = vpop.f32.mrf.mxu0  ;;  %v17183_v63 = vadd.f32 %v7065_v52, %v6906_v56 }
 0x5e7   : > { %v6864_v4 = vpop.f32.mrf.mxu1 }
 0x5e8   : > { %v6907_v19 = vadd.f32 %v6864_v4, %v17153_v11  ;;  %v12945_v46 = vpop.f32.mrf.mxu0 }
 0x5e9   : > { %v12900_v30 = vpop.f32.mrf.mxu1 }
 0x5ea   : > { %v7086_v28 = vpop.f32.mrf.mxu0  ;;  %v17186_v53 = vadd.f32 %v7070_v14, %v6907_v19 }
 0x5eb   : > { %v6867_v32 = vpop.f32.mrf.mxu1 }
 0x5ec   : > { %v6908_v39 = vadd.f32 %v6867_v32, %v17155_v54  ;;  %v12948_v9 = vpop.f32.mrf.mxu0 }
 0x5ed   : > { %v12901_v16 = vpop.f32.mrf.mxu1 }
 0x5ee   : > { %v7089_v60 = vpop.f32.mrf.mxu0  ;;  %v17189_v62 = vadd.f32 %v7073_v22, %v6908_v39  ;;  %v13570_v16 = vld [vmem:[#allocation5 + $0xf8] sm:$0xff]  }
 0x5ef   : > { %v6872_v37 = vpop.f32.mrf.mxu1 }
 0x5f0   : > { %v6909_v18 = vadd.f32 %v6872_v37, %v17157_v57  ;;  %v12949_v23 = vpop.f32.mrf.mxu0 }
 0x5f1   : > { %v12904_v34 = vpop.f32.mrf.mxu1 }
 0x5f2   : > { %v7094_v51 = vpop.f32.mrf.mxu0  ;;  %v17192_v11 = vadd.f32 %v7078_v45, %v6909_v18 }
 0x5f3   : > { %v6875_v15 = vpop.f32.mrf.mxu1 }
 0x5f4   : > { %v6910_v48 = vadd.f32 %v6875_v15, %v17159_v3  ;;  %v12952_v2 = vpop.f32.mrf.mxu0 }
 0x5f5   : > { %v12905_v8 = vpop.f32.mrf.mxu1 }
 0x5f6   : > { %v7097_v42 = vpop.f32.mrf.mxu0  ;;  %v17195_v54 = vadd.f32 %v7081_v43, %v6910_v48 }
 0x5f7   : > { %v6880_v50 = vpop.f32.mrf.mxu1 }
 0x5f8   : > { %v6911_v13 = vadd.f32 %v6880_v50, %v17161_v26  ;;  %v12953_v20 = vpop.f32.mrf.mxu0 }
 0x5f9   : > { %v12908_v6 = vpop.f32.mrf.mxu1 }
 0x5fa   : > { %v7102_v36 = vpop.f32.mrf.mxu0  ;;  %v17198_v57 = vadd.f32 %v7086_v28, %v6911_v13  ;;  %v13572_v13 = vld [vmem:[#allocation5 + $0xe8] sm:$0xff]  }
 0x5fb   : > { %v6883_v52 = vpop.f32.mrf.mxu1 }
 0x5fc   : > { %v6912_v24 = vadd.f32 %v6883_v52, %v17163_v31  ;;  %v12956_v33 = vpop.f32.mrf.mxu0 }
 0x5fd   : > { %v12909_v59 = vpop.f32.mrf.mxu1 }
 0x5fe   : > { %v7105_v47 = vpop.f32.mrf.mxu0  ;;  %v17201_v3 = vadd.f32 %v7089_v60, %v6912_v24 }
 0x5ff   : > { %v6888_v14 = vpop.f32.mrf.mxu1 }
 0x600   : > { %v6913_v21 = vadd.f32 %v6888_v14, %v17165_v0  ;;  %v12957_v17 = vpop.f32.mrf.mxu0 }
 0x601   : > { %v12912_v10 = vpop.f32.mrf.mxu1  ;;  %v13573_v17 = vld [vmem:[#allocation5 + $0xe0] sm:$0xff]  }
 0x602   : > { %v17204_v7 = vadd.f32 %v7094_v51, %v6913_v21  ;;  %v13571_v51 = vld [vmem:[#allocation5 + $0xf0] sm:$0xff]  }
 0x603   : > { %v6891_v26 = vpop.f32.mrf.mxu1 }
 0x604   : > { %v6914_v22 = vadd.f32 %v6891_v26, %v17167_v27  ;;  %v17219_v27 = vld [vmem:[%s19050_s28] ss:$0 sm:$0xff] }
 0x605   : > { %v12913_v49 = vpop.f32.mrf.mxu1 }
 0x606   : > { %v17207_v58 = vadd.f32 %v7097_v42, %v6914_v22 }
 0x607   : > { %v6896_v55 = vpop.f32.mrf.mxu1 }
 0x608   : > { %v6915_v31 = vadd.f32 %v6896_v55, %v17169_v5 }
 0x609   : > { %v12916_v44 = vpop.f32.mrf.mxu1 }
 0x60a   : > { %v17210_v45 = vadd.f32 %v7102_v36, %v6915_v31  ;;  %v13574_v31 = vld [vmem:[#allocation5 + $0xb8] sm:$0xff]  }
 0x60b   : > { %v6899_v41 = vpop.f32.mrf.mxu1 }
 0x60c   : > { %v6916_v56 = vadd.f32 %v6899_v41, %v17171_v1 }
 0x60d   : > { %v12917_v0 = vpop.f32.mrf.mxu1 }
 0x60e   : > { %v17213_v38 = vadd.f32 %v7105_v47, %v6916_v56 }
 0x60f   : > { %v7242_v29 = vpop.f32.mrf.mxu1 }
 0x610   : > { %v7297_v43 = vadd.f32 %v7242_v29, %v17174_v25 }
 0x611   : > { %v12972_v4 = vpop.f32.mrf.mxu1 }
 0x612   : > { %v7317_v5 = vadd.f32 %v17219_v27, %v7297_v43 }
 0x613   : > { %v7245_v19 = vpop.f32.mrf.mxu1 }
 0x614   : > { %v7298_v46 = vadd.f32 %v7245_v19, %v17177_v61  ;;  %v7331_v32 = vmax.f32 %v7317_v5, 0.0 }
 0x615   : > { %v12973_v30 = vpop.f32.mrf.mxu1 }
 0x616   : > { %v7318_v1 = vadd.f32 %v17219_v27, %v7298_v46  ;;  %v13575_v46 = vld [vmem:[#allocation5 + $0xd8] sm:$0xff]  }
 0x617   : > { %v7250_v28 = vpop.f32.mrf.mxu1 }
 0x618   : > { %v7332_v39 = vmax.f32 %v7318_v1, 0.0  ;;  %v7299_v9 = vadd.f32 %v7250_v28, %v17180_v40 }
 0x619   : > { %v12976_v25 = vpop.f32.mrf.mxu1 }
 0x61a   : > { %v7345_v60 = vpack.c.bf16 %v7332_v39, %v7331_v32  ;;  %v7319_v18 = vadd.f32 %v17219_v27, %v7299_v9  ;;  %v13576_v32 = vld [vmem:[#allocation5 + $0xb0] sm:$0xff]  }
 0x61b   : > { %v7253_v37 = vpop.f32.mrf.mxu1 }
 0x61c   : > { %v7300_v23 = vadd.f32 %v7253_v37, %v17183_v63  ;;  %13059 = vmatmul.mubr.bf16.vlgmr.msra.gmra.mxu1 %v7345_v60  ;;  %v7389_v61 = vshll.u32 %v7345_v60, 16  ;;  %v7387_v48 = vshrl.u32 %v7345_v60, 16  ;;  %v7333_v2 = vmax.f32 %v7319_v18, 0.0 }
 0x61d   : > { %v12977_v34 = vpop.f32.mrf.mxu1  ;;  %13062 = vmatprep.mubr.msk.bf16.mxu1 %vm14134_vm10, %v14133_v35  ;;  %13131 = vmatpush3.bf16.msra.mxu1 %v13570_v16  ;;  %v7746_v52 = vrot.slane %v7345_v60, 1  ;;  %v8136_v24 = vrot.slane %v7345_v60, 2 }
 0x61e   : > { %v7320_v15 = vadd.f32 %v17219_v27, %v7300_v23  ;;  %13132 = vmatprep.subr.bf16.mxu1 %v14133_v35  ;;  %v7391_v63 = vrot.slane %v7389_v61, 1  ;;  %v7934_v36 = vrot.slane %v7387_v48, 1  ;;  %v7935_v10 = vrot.slane %v7389_v61, 2  ;;  %v13577_v23 = vld [vmem:[#allocation5 + $0xd0] sm:$0xff]  }
 0x61f   : > { %v7258_v40 = vpop.f32.mrf.mxu1 }
 0x620   : > { %v7334_v8 = vmax.f32 %v7320_v15, 0.0  ;;  %v7301_v42 = vadd.f32 %v7258_v40, %v17186_v53  ;;  %v7392_v21 = vor.u32 %v7391_v63, %v7387_v48  ;;  %v7936_v30 = vor.u32 %v7935_v10, %v7934_v36  ;;  %v13578_v15 = vld [vmem:[#allocation5 + $0xa8] sm:$0xff]  }
 0x621   : > { %v12980_v50 = vpop.f32.mrf.mxu1  ;;  %13133 = vmatpush3.bf16.msra.mxu1 %v13571_v51  ;;  %v13579_v36 = vld [vmem:[#allocation5 + $0xc8] sm:$0xff]  }
 0x622   : > { %v17232_v20 = vpack.c.bf16 %v7334_v8, %v7333_v2  ;;  %13134 = vmatprep.subr.bf16.mxu1 %v14133_v35  ;;  %v7321_v33 = vadd.f32 %v17219_v27, %v7301_v42 }
 0x623   : > { %v7261_v6 = vpop.f32.mrf.mxu1 }
 0x624   : > { %v7302_v59 = vadd.f32 %v7261_v6, %v17189_v62  ;;  %13063 = vmatmul.mubr.bf16.gmra.mxu1 %v17232_v20  ;;  %v7394_v53 = vshll.u32 %v17232_v20, 16  ;;  %v7398_v47 = vshrl.u32 %v17232_v20, 16  ;;  %v7747_v26 = vrot.slane %v17232_v20, 1 }
 0x625   : > { %v12981_v14 = vpop.f32.mrf.mxu1  ;;  %13066 = vmatprep.mubr.msk.bf16.mxu1 %vm14134_vm10, %v14133_v35  ;;  %13135 = vmatpush3.bf16.msra.mxu1 %v13572_v13  ;;  %v8137_v22 = vrot.slane %v17232_v20, 2  ;;  %v7335_v29 = vmax.f32 %v7321_v33, 0.0  ;;  %v13580_v33 = vld [vmem:[#allocation5 + $0xa0] sm:$0xff]  }
 0x626   : > { %v7322_v62 = vadd.f32 %v17219_v27, %v7302_v59  ;;  %v7396_v49 = vrot.slane %v7394_v53, 1  ;;  %v7937_v55 = vrot.slane %v7398_v47, 1  ;;  %13136 = vmatprep.subr.bf16.mxu1 %v14133_v35  ;;  %v7938_v44 = vrot.slane %v7394_v53, 2 }
 0x627   : > { %v7266_v41 = vpop.f32.mrf.mxu1  ;;  %v17247_v56 = vsel %vm1869_vm3, %v7746_v52, %v7747_v26  ;;  %v17250_v0 = vsel %vm1366_vm1, %v8136_v24, %v8137_v22 }
 0x628   : > { %v7336_v43 = vmax.f32 %v7322_v62, 0.0  ;;  %v7303_v4 = vadd.f32 %v7266_v41, %v17192_v11  ;;  %v7397_v19 = vsel %vm949_vm2, %v7392_v21, %v7396_v49  ;;  %v7939_v1 = vor.u32 %v7938_v44, %v7937_v55  ;;  %v13582_v55 = vld [vmem:[#allocation5 + $0x98] sm:$0xff]  }
 0x629   : > { %v12984_v5 = vpop.f32.mrf.mxu1  ;;  %13015 = vmatmul.mubr.bf16.vlgmr.msra.gmra.mxu0 %v7397_v19  ;;  %13137 = vmatpush3.bf16.msra.mxu1 %v13573_v17  ;;  %v7400_v18 = vor.u32 %v7398_v47, %v7396_v49 }
 0x62a   : > { %v17254_v28 = vpack.c.bf16 %v7336_v43, %v7335_v29  ;;  %13018 = vmatprep.mubr.msk.bf16.mxu0 %vm14134_vm10, %v14133_v35  ;;  %13087 = vmatpush3.bf16.msra.mxu0 %v13574_v31  ;;  %v17261_v11 = vsel %vm2312_vm4, %v7936_v30, %v7939_v1  ;;  %v7323_v9 = vadd.f32 %v17219_v27, %v7303_v4 }
 0x62b   : > { %v7269_v39 = vpop.f32.mrf.mxu1  ;;  %13138 = vmatprep.subr.bf16.mxu1 %v14133_v35  ;;  %13088 = vmatprep.subr.bf16.mxu0 %v14133_v35 }
 0x62c   : > { %v7304_v25 = vadd.f32 %v7269_v39, %v17195_v54  ;;  %13067 = vmatmul.mubr.bf16.gmra.mxu1 %v17254_v28  ;;  %v7402_v16 = vshll.u32 %v17254_v28, 16  ;;  %v7406_v60 = vshrl.u32 %v17254_v28, 16  ;;  %v7749_v34 = vrot.slane %v17254_v28, 1 }
 0x62d   : > { %v12985_v37 = vpop.f32.mrf.mxu1  ;;  %13070 = vmatprep.mubr.msk.bf16.mxu1 %vm14134_vm10, %v14133_v35  ;;  %13139 = vmatpush3.bf16.msra.mxu1 %v13575_v46  ;;  %v8139_v61 = vrot.slane %v17254_v28, 2  ;;  %v7337_v50 = vmax.f32 %v7323_v9, 0.0 }
 0x62e   : > { %v7324_v51 = vadd.f32 %v17219_v27, %v7304_v25  ;;  %v7404_v54 = vrot.slane %v7402_v16, 1  ;;  %13089 = vmatpush3.bf16.msra.mxu0 %v13576_v32  ;;  %13140 = vmatprep.subr.bf16.mxu1 %v14133_v35  ;;  %v7941_v40 = vrot.slane %v7406_v60, 1  ;;  %v7942_v48 = vrot.slane %v7402_v16, 2  ;;  %v13583_v32 = vld [vmem:[#allocation5 + $0x90] sm:$0xff]  }
 0x62f   : > { %v7274_v2 = vpop.f32.mrf.mxu1  ;;  %13090 = vmatprep.subr.bf16.mxu0 %v14133_v35  ;;  %v17276_v8 = vsel %vm1869_vm3, %v7747_v26, %v7749_v34  ;;  %v17279_v42 = vsel %vm1366_vm1, %v8137_v22, %v8139_v61  ;;  %v13581_v26 = vld [vmem:[#allocation5 + $0xc0] sm:$0xff]  }
 0x630   : > { %v7338_v63 = vmax.f32 %v7324_v51, 0.0  ;;  %v7305_v13 = vadd.f32 %v7274_v2, %v17198_v57  ;;  %v7405_v20 = vsel %vm949_vm2, %v7400_v18, %v7404_v54  ;;  %v7943_v52 = vor.u32 %v7942_v48, %v7941_v40 }
 0x631   : > { %v12988_v6 = vpop.f32.mrf.mxu1  ;;  %13019 = vmatmul.mubr.bf16.gmra.mxu0 %v7405_v20  ;;  %13141 = vmatpush3.bf16.msra.mxu1 %v13577_v23  ;;  %v7408_v10 = vor.u32 %v7406_v60, %v7404_v54  ;;  %v13584_v54 = vld [vmem:[#allocation5 + $0x88] sm:$0xff]  }
 0x632   : > { %v17283_v24 = vpack.c.bf16 %v7338_v63, %v7337_v50  ;;  %13022 = vmatprep.mubr.msk.bf16.mxu0 %vm14134_vm10, %v14133_v35  ;;  %13091 = vmatpush3.bf16.msra.mxu0 %v13578_v15  ;;  %v17290_v57 = vsel %vm2312_vm4, %v7939_v1, %v7943_v52  ;;  %v7325_v53 = vadd.f32 %v17219_v27, %v7305_v13 }
 0x633   : > { %v7277_v59 = vpop.f32.mrf.mxu1  ;;  %13142 = vmatprep.subr.bf16.mxu1 %v14133_v35  ;;  %13092 = vmatprep.subr.bf16.mxu0 %v14133_v35 }
 0x634   : > { %v7306_v47 = vadd.f32 %v7277_v59, %v17201_v3  ;;  %13071 = vmatmul.mubr.bf16.gmra.mxu1 %v17283_v24  ;;  %v7410_v14 = vshll.u32 %v17283_v24, 16  ;;  %v7414_v21 = vshrl.u32 %v17283_v24, 16  ;;  %v7751_v22 = vrot.slane %v17283_v24, 1 }
 0x635   : > { %v12989_v17 = vpop.f32.mrf.mxu1  ;;  %13074 = vmatprep.mubr.msk.bf16.mxu1 %vm14134_vm10, %v14133_v35  ;;  %13143 = vmatpush3.bf16.msra.mxu1 %v13579_v36  ;;  %v8141_v62 = vrot.slane %v17283_v24, 2  ;;  %v7339_v4 = vmax.f32 %v7325_v53, 0.0  ;;  %v13585_v24 = vld [vmem:[#allocation5 + $0x80] sm:$0xff]  }
 0x636   : > { %v7326_v49 = vadd.f32 %v17219_v27, %v7306_v47  ;;  %v7412_v3 = vrot.slane %v7410_v14, 1  ;;  %13093 = vmatpush3.bf16.msra.mxu0 %v13580_v33  ;;  %13144 = vmatprep.subr.bf16.mxu1 %v14133_v35  ;;  %v7945_v31 = vrot.slane %v7414_v21, 1  ;;  %v7946_v44 = vrot.slane %v7410_v14, 2 }
 0x637   : > { %v7282_v41 = vpop.f32.mrf.mxu1  ;;  %13094 = vmatprep.subr.bf16.mxu0 %v14133_v35  ;;  %v17305_v29 = vsel %vm1869_vm3, %v7749_v34, %v7751_v22  ;;  %v17308_v43 = vsel %vm1366_vm1, %v8139_v61, %v8141_v62 }
 0x638   : > { %v7340_v19 = vmax.f32 %v7326_v49, 0.0  ;;  %v7307_v5 = vadd.f32 %v7282_v41, %v17204_v7  ;;  %v7413_v46 = vsel %vm949_vm2, %v7408_v10, %v7412_v3  ;;  %v7947_v1 = vor.u32 %v7946_v44, %v7945_v31 }
 0x639   : > { %v12992_v30 = vpop.f32.mrf.mxu1  ;;  %13023 = vmatmul.mubr.bf16.gmra.mxu0 %v7413_v46  ;;  %13145 = vmatpush3.bf16.msra.mxu1 %v13581_v26  ;;  %v7416_v18 = vor.u32 %v7414_v21, %v7412_v3 }
 0x63a   : > { %v7349_v28 = vpack.c.bf16 %v7340_v19, %v7339_v4  ;;  %13026 = vmatprep.mubr.msk.bf16.mxu0 %vm14134_vm10, %v14133_v35  ;;  %13095 = vmatpush3.bf16.msra.mxu0 %v13582_v55  ;;  %v17316_v9 = vsel %vm2312_vm4, %v7943_v52, %v7947_v1  ;;  %v7327_v7 = vadd.f32 %v17219_v27, %v7307_v5 }
 0x63b   : > { %v7285_v39 = vpop.f32.mrf.mxu1  ;;  %13096 = vmatprep.subr.bf16.mxu0 %v14133_v35  ;;  %13218 = vmatprep.subr.bf16.mxu1 %v14133_v35 }
 0x63c   : > { %v7308_v25 = vadd.f32 %v7285_v39, %v17207_v58  ;;  %13075 = vmatmul.mubr.bf16.gmra.mxu1 %v7349_v28  ;;  %v7418_v16 = vshll.u32 %v7349_v28, 16  ;;  %v7422_v60 = vshrl.u32 %v7349_v28, 16  ;;  %v7753_v23 = vrot.slane %v7349_v28, 1 }
 0x63d   : > { %v12993_v37 = vpop.f32.mrf.mxu1  ;;  %13078 = vmatprep.mubr.msk.bf16.mxu1 %vm14134_vm10, %v14133_v35  ;;  %v8143_v34 = vrot.slane %v7349_v28, 2  ;;  %v7341_v50 = vmax.f32 %v7327_v7, 0.0 }
 0x63e   : > { %v7328_v61 = vadd.f32 %v17219_v27, %v7308_v25  ;;  %v7420_v51 = vrot.slane %v7418_v16, 1  ;;  %13097 = vmatpush3.bf16.msra.mxu0 %v13583_v32  ;;  %v7949_v15 = vrot.slane %v7422_v60, 1  ;;  %v7950_v40 = vrot.slane %v7418_v16, 2 }
 0x63f   : > { %v7290_v48 = vpop.f32.mrf.mxu1  ;;  %13098 = vmatprep.subr.bf16.mxu0 %v14133_v35  ;;  %v17326_v58 = vsel %vm1869_vm3, %v7751_v22, %v7753_v23  ;;  %v17329_v2 = vsel %vm1366_vm1, %v8141_v62, %v8143_v34 }
 0x640   : > { %v7342_v63 = vmax.f32 %v7328_v61, 0.0  ;;  %v7309_v13 = vadd.f32 %v7290_v48, %v17210_v45  ;;  %v7421_v20 = vsel %vm949_vm2, %v7416_v18, %v7420_v51  ;;  %v7951_v36 = vor.u32 %v7950_v40, %v7949_v15  ;;  %v13592_v61 = vld [vmem:[#allocation5 + $0x108] sm:$0xff]  }
 0x641   : > { %v12996_v6 = vpop.f32.mrf.mxu1  ;;  %13027 = vmatmul.mubr.bf16.gmra.mxu0 %v7421_v20  ;;  %v7424_v17 = vor.u32 %v7422_v60, %v7420_v51 }
 0x642   : > { %v7350_v52 = vpack.c.bf16 %v7342_v63, %v7341_v50  ;;  %13030 = vmatprep.mubr.msk.bf16.mxu0 %vm14134_vm10, %v14133_v35  ;;  %13099 = vmatpush3.bf16.msra.mxu0 %v13584_v54  ;;  %v17337_v59 = vsel %vm2312_vm4, %v7947_v1, %v7951_v36  ;;  %v7329_v53 = vadd.f32 %v17219_v27, %v7309_v13 }
 0x643   : > { %v7293_v33 = vpop.f32.mrf.mxu1  ;;  %13100 = vmatprep.subr.bf16.mxu0 %v14133_v35 }
 0x644   : > { %v7310_v45 = vadd.f32 %v7293_v33, %v17213_v38  ;;  %13079 = vmatmul.mubr.bf16.gmra.mxu1 %v7350_v52  ;;  %v7426_v47 = vshll.u32 %v7350_v52, 16  ;;  %v7430_v14 = vshrl.u32 %v7350_v52, 16  ;;  %v7755_v10 = vrot.slane %v7350_v52, 1 }
 0x645   : > { %v12997_v21 = vpop.f32.mrf.mxu1  ;;  %13082 = vmatprep.mubr.msk.bf16.mxu1 %vm14134_vm10, %v14133_v35  ;;  %v8145_v26 = vrot.slane %v7350_v52, 2  ;;  %v7343_v31 = vmax.f32 %v7329_v53, 0.0 }
 0x646   : > { %v7330_v22 = vadd.f32 %v17219_v27, %v7310_v45  ;;  %v7428_v62 = vrot.slane %v7426_v47, 1  ;;  %13101 = vmatpush3.bf16.msra.mxu0 %v13585_v24  ;;  %v7953_v49 = vrot.slane %v7430_v14, 1  ;;  %v7954_v3 = vrot.slane %v7426_v47, 2 }
 0x647   : > { %13174 = vmatprep.subr.bf16.mxu0 %v14133_v35  ;;  %v17346_v38 = vsel %vm1869_vm3, %v7753_v23, %v7755_v10  ;;  %v17349_v55 = vsel %vm1366_vm1, %v8143_v34, %v8145_v26  ;;  %v13586_v34 = vld [vmem:[#allocation5 + $0x138] sm:$0xff]  }
 0x648   : > { %v7344_v44 = vmax.f32 %v7330_v22, 0.0  ;;  %v7429_v41 = vsel %vm949_vm2, %v7424_v17, %v7428_v62  ;;  %v7955_v4 = vor.u32 %v7954_v3, %v7953_v49  ;;  %v7432_v28 = vor.u32 %v7430_v14, %v7428_v62 }
 0x649   : > { %13031 = vmatmul.mubr.bf16.gmra.mxu0 %v7429_v41 }
 0x64a   : > { %v17352_v19 = vpack.c.bf16 %v7344_v44, %v7343_v31  ;;  %13034 = vmatprep.mubr.msk.bf16.mxu0 %vm14134_vm10, %v14133_v35  ;;  %v7956_v27 = vsel %vm2312_vm4, %v7951_v36, %v7955_v4 }
 0x64c   : > { %13083 = vmatmul.mubr.bf16.gmra.mxu1 %v17352_v19  ;;  %v7434_v5 = vshll.u32 %v17352_v19, 16  ;;  %v7438_v46 = vshrl.u32 %v17352_v19, 16  ;;  %v7757_v30 = vrot.slane %v17352_v19, 1  ;;  %v8147_v1 = vrot.slane %v17352_v19, 2 }
 0x64d   : > { %13146 = vmatprep.mubr.msk.bf16.mxu1 %vm14134_vm10, %v14133_v35 }
 0x64e   : > { %v7436_v32 = vrot.slane %v7434_v5, 1  ;;  %v7957_v39 = vrot.slane %v7438_v46, 1  ;;  %v7958_v7 = vrot.slane %v7434_v5, 2  ;;  %v7758_v25 = vsel %vm1869_vm3, %v7755_v10, %v7757_v30 }
 0x64f   : > { %v17370_v16 = vsel %vm1366_vm1, %v8145_v26, %v8147_v1 }
 0x650   : > { %v7437_v60 = vsel %vm949_vm2, %v7432_v28, %v7436_v32  ;;  %v7959_v37 = vor.u32 %v7958_v7, %v7957_v39  ;;  %v7440_v23 = vor.u32 %v7438_v46, %v7436_v32 }
 0x651   : > { %13035 = vmatmul.mubr.bf16.gmra.mxu0 %v7437_v60 }
 0x652   : > { %13038 = vmatprep.mubr.msk.bf16.mxu0 %vm14134_vm10, %v14133_v35  ;;  %v7960_v18 = vsel %vm2312_vm4, %v7955_v4, %v7959_v37 }
 0x654   : > { %13147 = vmatmul.mubr.bf16.vlgmr.msra.gmra.mxu1 %v17261_v11  ;;  %v13587_v11 = vld [vmem:[#allocation5 + $0x130] sm:$0xff]  }
 0x655   : > { %13150 = vmatprep.mubr.msk.bf16.mxu1 %vm14134_vm10, %v14133_v35 }
 0x659   : > { %13039 = vmatmul.mubr.bf16.gmra.mxu0 %v7440_v23 }
 0x65a   : > { %13102 = vmatprep.mubr.msk.bf16.mxu0 %vm14134_vm10, %v14133_v35 }
 0x65c   : > { %13151 = vmatmul.mubr.bf16.gmra.mxu1 %v17290_v57  ;;  %v13588_v57 = vld [vmem:[#allocation5 + $0x128] sm:$0xff]  }
 0x65d   : > { %13154 = vmatprep.mubr.msk.bf16.mxu1 %vm14134_vm10, %v14133_v35 }
 0x661   : > { %13103 = vmatmul.mubr.bf16.vlgmr.msra.gmra.mxu0 %v17247_v56  ;;  %v13589_v56 = vld [vmem:[#allocation5 + $0x120] sm:$0xff]  }
 0x662   : > { %13106 = vmatprep.mubr.msk.bf16.mxu0 %vm14134_vm10, %v14133_v35  ;;  %13175 = vmatpush3.bf16.msra.mxu0 %v13586_v34 }
 0x663   : > { %13176 = vmatprep.subr.bf16.mxu0 %v14133_v35 }
 0x664   : > { %13155 = vmatmul.mubr.bf16.gmra.mxu1 %v17316_v9  ;;  %v13590_v9 = vld [vmem:[#allocation5 + $0x118] sm:$0xff]  }
 0x665   : > { %13158 = vmatprep.mubr.msk.bf16.mxu1 %vm14134_vm10, %v14133_v35 }
 0x666   : > { %13177 = vmatpush3.bf16.msra.mxu0 %v13587_v11 }
 0x667   : > { %13178 = vmatprep.subr.bf16.mxu0 %v14133_v35 }
 0x669   : > { %13107 = vmatmul.mubr.bf16.gmra.mxu0 %v17276_v8  ;;  %v13591_v8 = vld [vmem:[#allocation5 + $0x110] sm:$0xff]  }
 0x66a   : > { %13110 = vmatprep.mubr.msk.bf16.mxu0 %vm14134_vm10, %v14133_v35  ;;  %13179 = vmatpush3.bf16.msra.mxu0 %v13588_v57 }
 0x66b   : > { %13180 = vmatprep.subr.bf16.mxu0 %v14133_v35 }
 0x66c   : > { %13159 = vmatmul.mubr.bf16.gmra.mxu1 %v17337_v59 }
 0x66d   : > { %13162 = vmatprep.mubr.msk.bf16.mxu1 %vm14134_vm10, %v14133_v35 }
 0x66e   : > { %13181 = vmatpush3.bf16.msra.mxu0 %v13589_v56 }
 0x66f   : > { %13182 = vmatprep.subr.bf16.mxu0 %v14133_v35 }
 0x671   : > { %13111 = vmatmul.mubr.bf16.gmra.mxu0 %v17305_v29  ;;  %v13593_v29 = vld [vmem:[#allocation5 + $0x100] sm:$0xff]  }
 0x672   : > { %13114 = vmatprep.mubr.msk.bf16.mxu0 %vm14134_vm10, %v14133_v35  ;;  %13183 = vmatpush3.bf16.msra.mxu0 %v13590_v9 }
 0x673   : > { %13184 = vmatprep.subr.bf16.mxu0 %v14133_v35 }
 0x674   : > { %13163 = vmatmul.mubr.bf16.gmra.mxu1 %v7956_v27 }
 0x675   : > { %13166 = vmatprep.mubr.msk.bf16.mxu1 %vm14134_vm10, %v14133_v35 }
 0x676   : > { %13185 = vmatpush3.bf16.msra.mxu0 %v13591_v8 }
 0x677   : > { %13186 = vmatprep.subr.bf16.mxu0 %v14133_v35 }
 0x679   : > { %13115 = vmatmul.mubr.bf16.gmra.mxu0 %v17326_v58 }
 0x67a   : > { %13118 = vmatprep.mubr.msk.bf16.mxu0 %vm14134_vm10, %v14133_v35  ;;  %13187 = vmatpush3.bf16.msra.mxu0 %v13592_v61 }
 0x67b   : > { %13188 = vmatprep.subr.bf16.mxu0 %v14133_v35 }
 0x67c   : > { %13167 = vmatmul.mubr.bf16.gmra.mxu1 %v7960_v18 }
 0x67d   : > { %13170 = vmatprep.mubr.msk.bf16.mxu1 %vm14134_vm10, %v14133_v35 }
 0x67e   : > { %13189 = vmatpush3.bf16.msra.mxu0 %v13593_v29 }
 0x681   : > { %13119 = vmatmul.mubr.bf16.gmra.mxu0 %v17346_v38 }
 0x682   : > { %13122 = vmatprep.mubr.msk.bf16.mxu0 %vm14134_vm10, %v14133_v35 }
 0x684   : > { %13171 = vmatmul.mubr.bf16.gmra.mxu1 %v7959_v37 }
 0x685   : > { %13232 = vmatprep.mubr.msk.bf16.mxu1 %vm14134_vm10, %v14133_v35 }
 0x689   : > { %13123 = vmatmul.mubr.bf16.gmra.mxu0 %v7758_v25 }
 0x68a   : > { %13126 = vmatprep.mubr.msk.bf16.mxu0 %vm14134_vm10, %v14133_v35 }
 0x691   : > { %13127 = vmatmul.mubr.bf16.gmra.mxu0 %v7757_v30 }
 0x692   : > { %13190 = vmatprep.mubr.msk.bf16.mxu0 %vm14134_vm10, %v14133_v35 }
 0x699   : > { %13191 = vmatmul.mubr.bf16.vlgmr.msra.gmra.mxu0 %v17250_v0 }
 0x69a   : > { %13194 = vmatprep.mubr.msk.bf16.mxu0 %vm14134_vm10, %v14133_v35 }
 0x6a1   : > { %13195 = vmatmul.mubr.bf16.gmra.mxu0 %v17279_v42 }
 0x6a2   : > { %13198 = vmatprep.mubr.msk.bf16.mxu0 %vm14134_vm10, %v14133_v35 }
 0x6a9   : > { %13199 = vmatmul.mubr.bf16.gmra.mxu0 %v17308_v43 }
 0x6aa   : > { %13202 = vmatprep.mubr.msk.bf16.mxu0 %vm14134_vm10, %v14133_v35 }
 0x6b1   : > { %13203 = vmatmul.mubr.bf16.gmra.mxu0 %v17329_v2 }
 0x6b2   : > { %13206 = vmatprep.mubr.msk.bf16.mxu0 %vm14134_vm10, %v14133_v35 }
 0x6b9   : > { %13207 = vmatmul.mubr.bf16.gmra.mxu0 %v17349_v55 }
 0x6ba   : > { %13210 = vmatprep.mubr.msk.bf16.mxu0 %vm14134_vm10, %v14133_v35 }
 0x6c1   : > { %13211 = vmatmul.mubr.bf16.gmra.mxu0 %v17370_v16 }
 0x6c2   : > { %13214 = vmatprep.mubr.msk.bf16.mxu0 %vm14134_vm10, %v14133_v35 }
 0x6c9   : > { %13215 = vmatmul.mubr.bf16.gmra.mxu0 %v8147_v1 }
 0x6ca   : > { %8682 = vmatprep.mubr.bf16.mxu0 %v18755_v12 }
 0x6dc   : > { %v7667_v0 = vpop.f32.mrf.mxu1 }
 0x6de   : > { %v13060_v42 = vpop.f32.mrf.mxu1 }
 0x6e0   : > { %v7670_v43 = vpop.f32.mrf.mxu1 }
 0x6e2   : > { %v13061_v51 = vpop.f32.mrf.mxu1 }
 0x6e4   : > { %v7675_v54 = vpop.f32.mrf.mxu1 }
 0x6e6   : > { %v13064_v15 = vpop.f32.mrf.mxu1 }
 0x6e8   : > { %v7678_v40 = vpop.f32.mrf.mxu1 }
 0x6e9   : > { %v7530_v48 = vpop.f32.mrf.mxu0 }
 0x6ea   : > { %v17445_v58 = vadd.f32 %v7667_v0, %v7530_v48  ;;  %v13065_v2 = vpop.f32.mrf.mxu1 }
 0x6eb   : > { %v13016_v50 = vpop.f32.mrf.mxu0 }
 0x6ec   : > { %v7683_v63 = vpop.f32.mrf.mxu1 }
 0x6ed   : > { %v7533_v13 = vpop.f32.mrf.mxu0 }
 0x6ee   : > { %v17447_v20 = vadd.f32 %v7670_v43, %v7533_v13  ;;  %v13068_v6 = vpop.f32.mrf.mxu1 }
 0x6ef   : > { %v13017_v36 = vpop.f32.mrf.mxu0 }
 0x6f0   : > { %v7686_v52 = vpop.f32.mrf.mxu1 }
 0x6f1   : > { %v7538_v24 = vpop.f32.mrf.mxu0 }
 0x6f2   : > { %v17449_v33 = vadd.f32 %v7675_v54, %v7538_v24  ;;  %v13069_v59 = vpop.f32.mrf.mxu1 }
 0x6f3   : > { %v13020_v53 = vpop.f32.mrf.mxu0 }
 0x6f4   : > { %v7691_v45 = vpop.f32.mrf.mxu1 }
 0x6f5   : > { %v7541_v47 = vpop.f32.mrf.mxu0 }
 0x6f6   : > { %v17451_v14 = vadd.f32 %v7678_v40, %v7541_v47  ;;  %v13072_v21 = vpop.f32.mrf.mxu1 }
 0x6f7   : > { %v13021_v17 = vpop.f32.mrf.mxu0 }
 0x6f8   : > { %v7694_v10 = vpop.f32.mrf.mxu1 }
 0x6f9   : > { %v7546_v26 = vpop.f32.mrf.mxu0 }
 0x6fa   : > { %v17453_v22 = vadd.f32 %v7683_v63, %v7546_v26  ;;  %v13073_v62 = vpop.f32.mrf.mxu1 }
 0x6fb   : > { %v13024_v49 = vpop.f32.mrf.mxu0 }
 0x6fc   : > { %v7699_v3 = vpop.f32.mrf.mxu1 }
 0x6fd   : > { %v7549_v38 = vpop.f32.mrf.mxu0 }
 0x6fe   : > { %v17455_v55 = vadd.f32 %v7686_v52, %v7549_v38  ;;  %v13076_v31 = vpop.f32.mrf.mxu1 }
 0x6ff   : > { %v13025_v44 = vpop.f32.mrf.mxu0 }
 0x700   : > { %v7702_v41 = vpop.f32.mrf.mxu1 }
 0x701   : > { %v7554_v4 = vpop.f32.mrf.mxu0 }
 0x702   : > { %v17457_v19 = vadd.f32 %v7691_v45, %v7554_v4  ;;  %v13077_v27 = vpop.f32.mrf.mxu1 }
 0x703   : > { %v13028_v5 = vpop.f32.mrf.mxu0 }
 0x704   : > { %v7707_v46 = vpop.f32.mrf.mxu1 }
 0x705   : > { %v7557_v30 = vpop.f32.mrf.mxu0 }
 0x706   : > { %v17459_v1 = vadd.f32 %v7694_v10, %v7557_v30  ;;  %v13080_v28 = vpop.f32.mrf.mxu1 }
 0x707   : > { %v13029_v32 = vpop.f32.mrf.mxu0 }
 0x708   : > { %v7710_v39 = vpop.f32.mrf.mxu1 }
 0x709   : > { %v7562_v7 = vpop.f32.mrf.mxu0 }
 0x70a   : > { %v17461_v25 = vadd.f32 %v7699_v3, %v7562_v7  ;;  %v13081_v16 = vpop.f32.mrf.mxu1 }
 0x70b   : > { %v13032_v60 = vpop.f32.mrf.mxu0 }
 0x70c   : > { %v7715_v37 = vpop.f32.mrf.mxu1 }
 0x70d   : > { %v7565_v18 = vpop.f32.mrf.mxu0 }
 0x70e   : > { %v17463_v23 = vadd.f32 %v7702_v41, %v7565_v18  ;;  %v13084_v34 = vpop.f32.mrf.mxu1 }
 0x70f   : > { %v13033_v11 = vpop.f32.mrf.mxu0 }
 0x710   : > { %v7718_v57 = vpop.f32.mrf.mxu1 }
 0x711   : > { %v7570_v56 = vpop.f32.mrf.mxu0 }
 0x712   : > { %v17465_v9 = vadd.f32 %v7707_v46, %v7570_v56  ;;  %v13085_v8 = vpop.f32.mrf.mxu1 }
 0x713   : > { %v13036_v61 = vpop.f32.mrf.mxu0 }
 0x714   : > { %v8050_v29 = vpop.f32.mrf.mxu1 }
 0x715   : > { %v7573_v0 = vpop.f32.mrf.mxu0 }
 0x716   : > { %v17467_v42 = vadd.f32 %v7710_v39, %v7573_v0  ;;  %v13148_v43 = vpop.f32.mrf.mxu1 }
 0x717   : > { %v13037_v51 = vpop.f32.mrf.mxu0 }
 0x718   : > { %v8053_v54 = vpop.f32.mrf.mxu1 }
 0x719   : > { %v7578_v15 = vpop.f32.mrf.mxu0 }
 0x71a   : > { %v17469_v40 = vadd.f32 %v7715_v37, %v7578_v15  ;;  %v13149_v48 = vpop.f32.mrf.mxu1 }
 0x71b   : > { %v13040_v2 = vpop.f32.mrf.mxu0 }
 0x71c   : > { %v8058_v50 = vpop.f32.mrf.mxu1 }
 0x71d   : > { %v7581_v63 = vpop.f32.mrf.mxu0 }
 0x71e   : > { %v17471_v13 = vadd.f32 %v7718_v57, %v7581_v63  ;;  %v13152_v6 = vpop.f32.mrf.mxu1 }
 0x71f   : > { %v13041_v36 = vpop.f32.mrf.mxu0 }
 0x720   : > { %v8061_v52 = vpop.f32.mrf.mxu1 }
 0x721   : > { %v7848_v24 = vpop.f32.mrf.mxu0 }
 0x722   : > { %v7903_v59 = vadd.f32 %v7848_v24, %v17445_v58  ;;  %v13153_v53 = vpop.f32.mrf.mxu1 }
 0x723   : > { %v13104_v45 = vpop.f32.mrf.mxu0 }
 0x724   : > { %v8066_v47 = vpop.f32.mrf.mxu1  ;;  %v17474_v21 = vadd.f32 %v8050_v29, %v7903_v59 }
 0x725   : > { %v7851_v17 = vpop.f32.mrf.mxu0 }
 0x726   : > { %v7904_v10 = vadd.f32 %v7851_v17, %v17447_v20  ;;  %v13156_v26 = vpop.f32.mrf.mxu1 }
 0x727   : > { %v13105_v62 = vpop.f32.mrf.mxu0 }
 0x728   : > { %v8069_v49 = vpop.f32.mrf.mxu1  ;;  %v17477_v3 = vadd.f32 %v8053_v54, %v7904_v10  ;;  %v13605_v10 = vld [vmem:[%s18508_s7 + $0xe4] ss:$8 sps:$4 sm:$0xff]  }
 0x729   : > { %v7856_v38 = vpop.f32.mrf.mxu0 }
 0x72a   : > { %v7905_v31 = vadd.f32 %v7856_v38, %v17449_v33  ;;  %v13157_v44 = vpop.f32.mrf.mxu1 }
 0x72b   : > { %v13108_v41 = vpop.f32.mrf.mxu0 }
 0x72c   : > { %v8074_v4 = vpop.f32.mrf.mxu1  ;;  %v17480_v58 = vadd.f32 %v8058_v50, %v7905_v31  ;;  %v13611_v31 = vld [vmem:[%s18508_s7 + $0xd4] ss:$8 sps:$4 sm:$0xff]  }
 0x72d   : > { %v7859_v27 = vpop.f32.mrf.mxu0 }
 0x72e   : > { %v7906_v5 = vadd.f32 %v7859_v27, %v17451_v14  ;;  %v13160_v46 = vpop.f32.mrf.mxu1 }
 0x72f   : > { %v13109_v30 = vpop.f32.mrf.mxu0 }
 0x730   : > { %v8077_v28 = vpop.f32.mrf.mxu1  ;;  %v17483_v20 = vadd.f32 %v8061_v52, %v7906_v5  ;;  %v13617_v5 = vld [vmem:[%s18508_s7 + $0xc4] ss:$8 sps:$4 sm:$0xff]  }
 0x731   : > { %v7864_v32 = vpop.f32.mrf.mxu0 }
 0x732   : > { %v7907_v39 = vadd.f32 %v7864_v32, %v17453_v22  ;;  %v13161_v7 = vpop.f32.mrf.mxu1 }
 0x733   : > { %v13112_v16 = vpop.f32.mrf.mxu0 }
 0x734   : > { %v8082_v60 = vpop.f32.mrf.mxu1  ;;  %v17486_v33 = vadd.f32 %v8066_v47, %v7907_v39  ;;  %v13597_v47 = vld [vmem:[%s18508_s7 + $0xf0] ss:$8 sps:$4 sm:$0xff]  }
 0x735   : > { %v7867_v37 = vpop.f32.mrf.mxu0 }
 0x736   : > { %v7908_v18 = vadd.f32 %v7867_v37, %v17455_v55  ;;  %v13164_v34 = vpop.f32.mrf.mxu1 }
 0x737   : > { %v13113_v11 = vpop.f32.mrf.mxu0 }
 0x738   : > { %v8085_v57 = vpop.f32.mrf.mxu1  ;;  %v17489_v14 = vadd.f32 %v8069_v49, %v7908_v18  ;;  %v13603_v49 = vld [vmem:[%s18508_s7 + $0xe0] ss:$8 sps:$4 sm:$0xff]  }
 0x739   : > { %v7872_v56 = vpop.f32.mrf.mxu0 }
 0x73a   : > { %v7909_v8 = vadd.f32 %v7872_v56, %v17457_v19  ;;  %v13165_v61 = vpop.f32.mrf.mxu1 }
 0x73b   : > { %v13116_v29 = vpop.f32.mrf.mxu0 }
 0x73c   : > { %v8090_v0 = vpop.f32.mrf.mxu1  ;;  %v17492_v22 = vadd.f32 %v8074_v4, %v7909_v8 }
 0x73d   : > { %v7875_v43 = vpop.f32.mrf.mxu0 }
 0x73e   : > { %v7910_v51 = vadd.f32 %v7875_v43, %v17459_v1  ;;  %v13168_v54 = vpop.f32.mrf.mxu1 }
 0x73f   : > { %v13117_v15 = vpop.f32.mrf.mxu0 }
 0x740   : > { %v8093_v48 = vpop.f32.mrf.mxu1  ;;  %v17495_v55 = vadd.f32 %v8077_v28, %v7910_v51 }
 0x741   : > { %v7880_v2 = vpop.f32.mrf.mxu0 }
 0x742   : > { %v7911_v50 = vadd.f32 %v7880_v2, %v17461_v25  ;;  %v13169_v63 = vpop.f32.mrf.mxu1  ;;  %v13599_v25 = vld [vmem:[%s18508_s7 + $0xf4] ss:$8 sps:$4 sm:$0xff]  }
 0x743   : > { %v13120_v6 = vpop.f32.mrf.mxu0  ;;  %8650 = vmatprep.subr.bf16.mxu0 %v13599_v25 }
 0x744   : > { %v8098_v36 = vpop.f32.mrf.mxu1  ;;  %v17498_v19 = vadd.f32 %v8082_v60, %v7911_v50  ;;  %8651 = vmatpush1.bf16.msra.mxu0 %v13597_v47 }
 0x745   : > { %v7883_v52 = vpop.f32.mrf.mxu0  ;;  %8652 = vmatprep.subr.bf16.mxu0 %v13605_v10 }
 0x746   : > { %v7912_v24 = vadd.f32 %v7883_v52, %v17463_v23  ;;  %v13172_v59 = vpop.f32.mrf.mxu1 }
 0x747   : > { %v13121_v53 = vpop.f32.mrf.mxu0 }
 0x748   : > { %v8101_v45 = vpop.f32.mrf.mxu1  ;;  %v17501_v1 = vadd.f32 %v8085_v57, %v7912_v24  ;;  %8653 = vmatpush1.bf16.msra.mxu0 %v13603_v49 }
 0x749   : > { %v7888_v17 = vpop.f32.mrf.mxu0  ;;  %8654 = vmatprep.subr.bf16.mxu0 %v13611_v31 }
 0x74a   : > { %v7913_v23 = vadd.f32 %v7888_v17, %v17465_v9  ;;  %v13173_v26 = vpop.f32.mrf.mxu1  ;;  %v13609_v9 = vld [vmem:[%s18508_s7 + $0xd0] ss:$8 sps:$4 sm:$0xff]  }
 0x74b   : > { %v13124_v62 = vpop.f32.mrf.mxu0 }
 0x74c   : > { %v17516_v38 = vadd.f32 %v8090_v0, %v7913_v23  ;;  %8655 = vmatpush1.bf16.msra.mxu0 %v13609_v9 }
 0x74d   : > { %v7891_v44 = vpop.f32.mrf.mxu0  ;;  %8656 = vmatprep.subr.bf16.mxu0 %v13617_v5 }
 0x74e   : > { %v7914_v41 = vadd.f32 %v7891_v44, %v17467_v42  ;;  %v13615_v42 = vld [vmem:[%s18508_s7 + $0xc0] ss:$8 sps:$4 sm:$0xff]  }
 0x74f   : > { %v13125_v4 = vpop.f32.mrf.mxu0 }
 0x750   : > { %v17525_v27 = vadd.f32 %v8093_v48, %v7914_v41  ;;  %8657 = vmatpush1.bf16.msra.mxu0 %v13615_v42 }
 0x751   : > { %v7896_v46 = vpop.f32.mrf.mxu0 }
 0x752   : > { %v7915_v30 = vadd.f32 %v7896_v46, %v17469_v40  ;;  %v17542_v40 = vld [vmem:[%s19051_s23] ss:$0 sm:$0xff] }
 0x753   : > { %v13128_v28 = vpop.f32.mrf.mxu0 }
 0x754   : > { %v17534_v32 = vadd.f32 %v8098_v36, %v7915_v30 }
 0x755   : > { %v7899_v39 = vpop.f32.mrf.mxu0 }
 0x756   : > { %v7916_v7 = vadd.f32 %v7899_v39, %v17471_v13 }
 0x757   : > { %v13129_v16 = vpop.f32.mrf.mxu0 }
 0x758   : > { %v17537_v60 = vadd.f32 %v8101_v45, %v7916_v7 }
 0x759   : > { %v8238_v37 = vpop.f32.mrf.mxu0 }
 0x75a   : > { %v8293_v18 = vadd.f32 %v8238_v37, %v17474_v21 }
 0x75b   : > { %v13192_v34 = vpop.f32.mrf.mxu0 }
 0x75c   : > { %v8313_v11 = vadd.f32 %v17542_v40, %v8293_v18 }
 0x75d   : > { %v8241_v57 = vpop.f32.mrf.mxu0 }
 0x75e   : > { %v8294_v56 = vadd.f32 %v8241_v57, %v17477_v3  ;;  %v8327_v13 = vmax.f32 %v8313_v11, 0.0 }
 0x75f   : > { %v13193_v8 = vpop.f32.mrf.mxu0 }
 0x760   : > { %v8314_v61 = vadd.f32 %v17542_v40, %v8294_v56  ;;  %v8355_v54 = vrot.slane %v8327_v13, 1 }
 0x761   : > { %v8246_v29 = vpop.f32.mrf.mxu0 }
 0x762   : > { %v8328_v0 = vmax.f32 %v8314_v61, 0.0  ;;  %v8295_v43 = vadd.f32 %v8246_v29, %v17480_v58 }
 0x763   : > { %v13196_v51 = vpop.f32.mrf.mxu0 }
 0x764   : > { %v8356_v15 = vrot.slane %v8328_v0, 1  ;;  %v8315_v48 = vadd.f32 %v17542_v40, %v8295_v43 }
 0x765   : > { %v8249_v21 = vpop.f32.mrf.mxu0 }
 0x766   : > { %v8357_v2 = vsel %vm1869_vm3, %v8355_v54, %v8356_v15  ;;  %v8329_v50 = vmax.f32 %v8315_v48, 0.0  ;;  %v8296_v63 = vadd.f32 %v8249_v21, %v17483_v20 }
 0x767   : > { %v13197_v3 = vpop.f32.mrf.mxu0  ;;  %v17552_v6 = vmax.f32 %v8327_v13, %v8357_v2 }
 0x768   : > { %v8358_v36 = vrot.slane %v8329_v50, 1  ;;  %v8316_v52 = vadd.f32 %v17542_v40, %v8296_v63 }
 0x769   : > { %v8254_v24 = vpop.f32.mrf.mxu0 }
 0x76a   : > { %v8359_v58 = vsel %vm1869_vm3, %v8356_v15, %v8358_v36  ;;  %v8330_v59 = vmax.f32 %v8316_v52, 0.0  ;;  %v8297_v53 = vadd.f32 %v8254_v24, %v17486_v33 }
 0x76b   : > { %v13200_v45 = vpop.f32.mrf.mxu0  ;;  %v17557_v47 = vmax.f32 %v8328_v0, %v8359_v58 }
 0x76c   : > { %v8360_v25 = vrot.slane %v8330_v59, 1  ;;  %v8317_v17 = vadd.f32 %v17542_v40, %v8297_v53 }
 0x76d   : > { %v8257_v10 = vpop.f32.mrf.mxu0  ;;  %v8410_v20 = vpack.c.bf16 %v17557_v47, %v17552_v6  ;;  %v13606_v6 = vld [vmem:[%s18508_s7 + $0x60] ss:$8 sps:$4 sm:$0xff]   ;;  %v13614_v47 = vld [vmem:[%s18508_s7 + $0x54] ss:$8 sps:$4 sm:$0xff]  }
 0x76e   : > { %v8361_v23 = vsel %vm1869_vm3, %v8358_v36, %v8360_v25  ;;  %v8331_v26 = vmax.f32 %v8317_v17, 0.0  ;;  %v8298_v62 = vadd.f32 %v8257_v10, %v17489_v14 }
 0x76f   : > { %v13201_v49 = vpop.f32.mrf.mxu0  ;;  %v17564_v31 = vmax.f32 %v8329_v50, %v8361_v23 }
 0x770   : > { %v8362_v44 = vrot.slane %v8331_v26, 1  ;;  %v8318_v33 = vadd.f32 %v17542_v40, %v8298_v62 }
 0x771   : > { %v8262_v41 = vpop.f32.mrf.mxu0 }
 0x772   : > { %v8363_v4 = vsel %vm1869_vm3, %v8360_v25, %v8362_v44  ;;  %v8332_v9 = vmax.f32 %v8318_v33, 0.0  ;;  %v8299_v5 = vadd.f32 %v8262_v41, %v17492_v22 }
 0x773   : > { %v13204_v46 = vpop.f32.mrf.mxu0  ;;  %v17569_v30 = vmax.f32 %v8330_v59, %v8363_v4 }
 0x774   : > { %v8364_v28 = vrot.slane %v8332_v9, 1  ;;  %v8319_v42 = vadd.f32 %v17542_v40, %v8299_v5 }
 0x775   : > { %v8265_v39 = vpop.f32.mrf.mxu0  ;;  %v8411_v14 = vpack.c.bf16 %v17569_v30, %v17564_v31  ;;  %v13600_v31 = vld [vmem:[%s18508_s7 + $0x70] ss:$8 sps:$4 sm:$0xff]   ;;  %v13608_v30 = vld [vmem:[%s18508_s7 + $0x64] ss:$8 sps:$4 sm:$0xff]  }
 0x776   : > { %v8365_v7 = vsel %vm1869_vm3, %v8362_v44, %v8364_v28  ;;  %v8333_v16 = vmax.f32 %v8319_v42, 0.0  ;;  %v8300_v37 = vadd.f32 %v8265_v39, %v17495_v55 }
 0x777   : > { %v13205_v18 = vpop.f32.mrf.mxu0  ;;  %v17576_v34 = vmax.f32 %v8331_v26, %v8365_v7 }
 0x778   : > { %v8366_v11 = vrot.slane %v8333_v16, 1  ;;  %v8320_v22 = vadd.f32 %v17542_v40, %v8300_v37 }
 0x779   : > { %v8270_v57 = vpop.f32.mrf.mxu0 }
 0x77a   : > { %v8367_v56 = vsel %vm1869_vm3, %v8364_v28, %v8366_v11  ;;  %v8334_v8 = vmax.f32 %v8320_v22, 0.0  ;;  %v8301_v13 = vadd.f32 %v8270_v57, %v17498_v19 }
 0x77b   : > { %v13208_v61 = vpop.f32.mrf.mxu0  ;;  %v17581_v29 = vmax.f32 %v8332_v9, %v8367_v56  ;;  %v14135_v56 = vmov 65535  }
 0x77c   : > { %v8368_v0 = vrot.slane %v8334_v8, 1  ;;  %v8321_v43 = vadd.f32 %v17542_v40, %v8301_v13 }
 0x77d   : > { %v8273_v51 = vpop.f32.mrf.mxu0  ;;  %v8412_v55 = vpack.c.bf16 %v17581_v29, %v17576_v34 }
 0x77e   : > { %v8369_v54 = vsel %vm1869_vm3, %v8366_v11, %v8368_v0  ;;  %v8335_v15 = vmax.f32 %v8321_v43, 0.0  ;;  %v8302_v48 = vadd.f32 %v8273_v51, %v17501_v1 }
 0x77f   : > { %v13209_v21 = vpop.f32.mrf.mxu0  ;;  %v8402_v2 = vmax.f32 %v8333_v16, %v8369_v54  ;;  %v13594_v54 = vld [vmem:[%s18513_s12] sm:$0xff]  }
 0x780   : > { %v8370_v50 = vrot.slane %v8335_v15, 1  ;;  %v8322_v19 = vadd.f32 %v17542_v40, %v8302_v48  ;;  %v13618_v48 = vld [vmem:[%s18508_s7 + $0x40] ss:$8 sps:$4 sm:$0xff]   ;;  %v13624_v21 = vld [vmem:[%s18508_s7 + $0x30] ss:$8 sps:$4 sm:$0xff]  }
 0x781   : > { %v8278_v63 = vpop.f32.mrf.mxu0 }
 0x782   : > { %v8371_v3 = vsel %vm1869_vm3, %v8368_v0, %v8370_v50  ;;  %v8336_v36 = vmax.f32 %v8322_v19, 0.0  ;;  %v8303_v52 = vadd.f32 %v8278_v63, %v17516_v38  ;;  %v13638_v19 = vld [vmem:[%s18508_s7 + $0x14] ss:$8 sps:$4 sm:$0xff]   ;;  %v13636_v63 = vld [vmem:[%s18508_s7 + $0x10] ss:$8 sps:$4 sm:$0xff]  }
 0x783   : > { %v13212_v24 = vpop.f32.mrf.mxu0  ;;  %v8403_v58 = vmax.f32 %v8334_v8, %v8371_v3  ;;  %v8446_v8 = vsel %vm3787_vm6, 4294967295, %v14135_v56  ;;  %v13644_v3 = vld [vmem:[%s18508_s7 + $0x4] ss:$8 sps:$4 sm:$0xff]  }
 0x784   : > { %v8372_v59 = vrot.slane %v8336_v36, 1  ;;  %v8323_v53 = vadd.f32 %v17542_v40, %v8303_v52  ;;  %v13623_v52 = vld [vmem:[%s18508_s7 + $0xb4] ss:$8 sps:$4 sm:$0xff]   ;;  %v13642_v24 = vld [vmem:[%s18508_s7] ss:$8 sps:$4 sm:$0xff]  }
 0x785   : > { %v8281_v45 = vpop.f32.mrf.mxu0  ;;  %v8413_v25 = vpack.c.bf16 %v8403_v58, %v8402_v2  ;;  %v13632_v2 = vld [vmem:[%s18508_s7 + $0x24] ss:$8 sps:$4 sm:$0xff]   ;;  %8658 = vmatprep.subr.bf16.mxu0 %v13623_v52  ;;  %v13650_v58 = vld [vmem:[%s18508_s7 + $0x1f4] ss:$8 sps:$4 sm:$0xff]  }
 0x786   : > { %v8373_v1 = vsel %vm1869_vm3, %v8370_v50, %v8372_v59  ;;  %v8337_v17 = vmax.f32 %v8323_v53, 0.0  ;;  %v8304_v10 = vadd.f32 %v8281_v45, %v17525_v27  ;;  %v13630_v50 = vld [vmem:[%s18508_s7 + $0x20] ss:$8 sps:$4 sm:$0xff]   ;;  %v13635_v45 = vld [vmem:[%s18508_s7 + $0x94] ss:$8 sps:$4 sm:$0xff]  }
 0x787   : > { %v13213_v23 = vpop.f32.mrf.mxu0  ;;  %v8404_v26 = vmax.f32 %v8335_v15, %v8373_v1  ;;  %v13620_v15 = vld [vmem:[%s18508_s7 + $0x44] ss:$8 sps:$4 sm:$0xff]   ;;  %v13627_v53 = vld [vmem:[%s18508_s7 + $0xa0] ss:$8 sps:$4 sm:$0xff]  }
 0x788   : > { %v8374_v62 = vrot.slane %v8337_v17, 1  ;;  %v8324_v49 = vadd.f32 %v17542_v40, %v8304_v10  ;;  %v13641_v1 = vld [vmem:[%s18508_s7 + $0x84] ss:$8 sps:$4 sm:$0xff]   ;;  %v13647_v10 = vld [vmem:[%s18508_s7 + $0x174] ss:$8 sps:$4 sm:$0xff]  }
 0x789   : > { %v8286_v44 = vpop.f32.mrf.mxu0 }
 0x78a   : > { %v8375_v38 = vsel %vm1869_vm3, %v8372_v59, %v8374_v62  ;;  %v8338_v33 = vmax.f32 %v8324_v49, 0.0  ;;  %v8305_v41 = vadd.f32 %v8286_v44, %v17534_v32  ;;  %v13629_v59 = vld [vmem:[%s18508_s7 + $0xa4] ss:$8 sps:$4 sm:$0xff]   ;;  %v13648_v49 = vld [vmem:[%s18508_s7 + $0x1f0] ss:$8 sps:$4 sm:$0xff]  }
 0x78b   : > { %v13216_v4 = vpop.f32.mrf.mxu0  ;;  %v8405_v9 = vmax.f32 %v8336_v36, %v8375_v38  ;;  %v13621_v36 = vld [vmem:[%s18508_s7 + $0xb0] ss:$8 sps:$4 sm:$0xff]   ;;  %v13656_v38 = vld [vmem:[%s18508_s7 + $0x1e4] ss:$8 sps:$4 sm:$0xff]  }
 0x78c   : > { %v8376_v5 = vrot.slane %v8338_v33, 1  ;;  %v8325_v46 = vadd.f32 %v17542_v40, %v8305_v41  ;;  %8659 = vmatpush1.bf16.msra.mxu0 %v13621_v36  ;;  %v13654_v4 = vld [vmem:[%s18508_s7 + $0x1e0] ss:$8 sps:$4 sm:$0xff]  }
 0x78d   : > { %v8289_v28 = vpop.f32.mrf.mxu0  ;;  %v8414_v42 = vpack.c.bf16 %v8405_v9, %v8404_v26  ;;  %8660 = vmatprep.subr.bf16.mxu0 %v13629_v59 }
 0x78e   : > { %v8377_v27 = vsel %vm1869_vm3, %v8374_v62, %v8376_v5  ;;  %v8339_v39 = vmax.f32 %v8325_v46, 0.0  ;;  %v8306_v7 = vadd.f32 %v8289_v28, %v17537_v60  ;;  %v8447_v60 = vsel %vm1366_vm1, %v8446_v8, 0  ;;  %v13653_v8 = vld [vmem:[%s18508_s7 + $0x164] ss:$8 sps:$4 sm:$0xff]  }
 0x78f   : > { %v13217_v16 = vpop.f32.mrf.mxu0  ;;  %v8406_v37 = vmax.f32 %v8337_v17, %v8377_v27  ;;  %v13639_v17 = vld [vmem:[%s18508_s7 + $0x80] ss:$8 sps:$4 sm:$0xff]  }
 0x790   : > { %v8378_v18 = vrot.slane %v8339_v39, 1  ;;  %v8326_v34 = vadd.f32 %v17542_v40, %v8306_v7  ;;  %v13602_v40 = vld [vmem:[%s18508_s7 + $0x74] ss:$8 sps:$4 sm:$0xff]   ;;  %8661 = vmatpush1.bf16.msra.mxu0 %v13627_v53  ;;  %v13668_v7 = vld [vmem:[%s18508_s7 + $0x1c4] ss:$8 sps:$4 sm:$0xff]  }
 0x791   : > { %8662 = vmatprep.subr.bf16.mxu0 %v13635_v45  ;;  %v13677_v53 = vld [vmem:[%s18508_s7 + $0x124] ss:$8 sps:$4 sm:$0xff]  }
 0x792   : > { %v8379_v11 = vsel %vm1869_vm3, %v8376_v5, %v8378_v18  ;;  %v8340_v32 = vmax.f32 %v8326_v34, 0.0  ;;  %v13662_v5 = vld [vmem:[%s18508_s7 + $0x1d4] ss:$8 sps:$4 sm:$0xff]  }
 0x793   : > { %v8407_v22 = vmax.f32 %v8338_v33, %v8379_v11  ;;  %v13666_v11 = vld [vmem:[%s18508_s7 + $0x1c0] ss:$8 sps:$4 sm:$0xff]  }
 0x794   : > { %v8380_v57 = vrot.slane %v8340_v32, 1 }
 0x795   : > { %v8415_v13 = vpack.c.bf16 %v8407_v22, %v8406_v37 }
 0x796   : > { %v8381_v61 = vsel %vm1869_vm3, %v8378_v18, %v8380_v57  ;;  %v8409_v29 = vmax.f32 %v8340_v32, %v8380_v57  ;;  %v13645_v57 = vld [vmem:[%s18508_s7 + $0x170] ss:$8 sps:$4 sm:$0xff]  }
 0x797   : > { %v8408_v0 = vmax.f32 %v8339_v39, %v8381_v61 }
 0x799   : > { %v8416_v43 = vpack.c.bf16 %v8409_v29, %v8408_v0 }
 0x79b   : > { %v8449_v51 = vand.u32 %v8447_v60, %v8416_v43  ;;  %v13672_v60 = vld [vmem:[%s18508_s7 + $0x1b0] ss:$8 sps:$4 sm:$0xff]  }
 0x79d   : > { %13219 = vmatpush3.bf16.msra.mxu1 %v8449_v51  ;;  %v13651_v51 = vld [vmem:[%s18508_s7 + $0x160] ss:$8 sps:$4 sm:$0xff]  }
 0x79e   : > { %13220 = vmatprep.subr.bf16.mxu1 %v14133_v35 }
 0x7a1   : > { %13221 = vmatpush3.bf16.msra.mxu1 %v8415_v13  ;;  %v13674_v13 = vld [vmem:[%s18508_s7 + $0x1b4] ss:$8 sps:$4 sm:$0xff]  }
 0x7a2   : > { %13222 = vmatprep.subr.bf16.mxu1 %v14133_v35 }
 0x7a5   : > { %13223 = vmatpush3.bf16.msra.mxu1 %v8414_v42  ;;  %v13660_v42 = vld [vmem:[%s18508_s7 + $0x1d0] ss:$8 sps:$4 sm:$0xff]  }
 0x7a6   : > { %13224 = vmatprep.subr.bf16.mxu1 %v14133_v35 }
 0x7a9   : > { %13225 = vmatpush3.bf16.msra.mxu1 %v8413_v25  ;;  %v13633_v25 = vld [vmem:[%s18508_s7 + $0x90] ss:$8 sps:$4 sm:$0xff]  }
 0x7aa   : > { %13226 = vmatprep.subr.bf16.mxu1 %v14133_v35  ;;  %8663 = vmatpush1.bf16.msra.mxu0 %v13633_v25  ;;  %v13695_v25 = vld [vmem:[%s18510_s9 + $0x74] ss:$8 sps:$4 sm:$0xff]  }
 0x7ab   : > { %8664 = vmatprep.subr.bf16.mxu0 %v13641_v1 }
 0x7ad   : > { %13227 = vmatpush3.bf16.msra.mxu1 %v8412_v55  ;;  %v13596_v55 = vld [vmem:[%s18513_s12 + $0x10] ss:$0 sps:$4 sm:$0xff]  }
 0x7ae   : > { %13228 = vmatprep.subr.bf16.mxu1 %v14133_v35  ;;  %8665 = vmatpush1.bf16.msra.mxu0 %v13639_v17  ;;  %v13693_v17 = vld [vmem:[%s18510_s9 + $0x70] ss:$8 sps:$4 sm:$0xff]  }
 0x7af   : > { %8960 = vmatprep.subr.bf16.mxu0 %v13647_v10  ;;  %v13675_v10 = vld [vmem:[%s18508_s7 + $0x120] ss:$8 sps:$4 sm:$0xff]  }
 0x7b1   : > { %13229 = vmatpush3.bf16.msra.mxu1 %v8411_v14  ;;  %v13612_v14 = vld [vmem:[%s18508_s7 + $0x50] ss:$8 sps:$4 sm:$0xff]  }
 0x7b2   : > { %13230 = vmatprep.subr.bf16.mxu1 %v14133_v35 }
 0x7b5   : > { %13231 = vmatpush3.bf16.msra.mxu1 %v8410_v20  ;;  %v13595_v20 = vld [vmem:[%s18513_s12 + $0x8] sm:$0xff]  }
 0x7b6   : > { %8791 = vmatprep.subr.bf16.mxu1 %v13602_v40  ;;  %v13680_v40 = vld [vmem:[%s18508_s7 + $0x1a4] ss:$8 sps:$4 sm:$0xff]  }
 0x7b8   : > { %13233 = vmatmul.mubr.msk.bf16.vlgmr.msra.gmra.mxu1 %vm8435_vm12, %v13594_v54  ;;  %v13659_v54 = vld [vmem:[%s18508_s7 + $0x154] ss:$8 sps:$4 sm:$0xff]  }
 0x7b9   : > { %13236 = vmatprep.mubr.msk.bf16.mxu1 %vm14134_vm10, %v14133_v35  ;;  %8792 = vmatpush1.bf16.msra.mxu1 %v13600_v31 }
 0x7ba   : > { %8793 = vmatprep.subr.bf16.mxu1 %v13608_v30 }
 0x7bd   : > { %8794 = vmatpush1.bf16.msra.mxu1 %v13606_v6 }
 0x7be   : > { %8795 = vmatprep.subr.bf16.mxu1 %v13614_v47  ;;  %v13678_v47 = vld [vmem:[%s18508_s7 + $0x1a0] ss:$8 sps:$4 sm:$0xff]  }
 0x7c0   : > { %13237 = vmatmul.mubr.msk.bf16.gmra.mxu1 %vm8435_vm12, %v13595_v20  ;;  %v13657_v20 = vld [vmem:[%s18508_s7 + $0x150] ss:$8 sps:$4 sm:$0xff]  }
 0x7c1   : > { %13240 = vmatprep.mubr.msk.bf16.mxu1 %vm14134_vm10, %v14133_v35  ;;  %8796 = vmatpush1.bf16.msra.mxu1 %v13612_v14  ;;  %v13626_v35 = vld [vmem:[%s18508_s7 + $0x34] ss:$8 sps:$4 sm:$0xff]  }
 0x7c2   : > { %8797 = vmatprep.subr.bf16.mxu1 %v13620_v15  ;;  %v13686_v15 = vld [vmem:[%s18508_s7 + $0x194] ss:$8 sps:$4 sm:$0xff]  }
 0x7c5   : > { %8798 = vmatpush1.bf16.msra.mxu1 %v13618_v48 }
 0x7c6   : > { %8799 = vmatprep.subr.bf16.mxu1 %v13626_v35  ;;  %v13684_v35 = vld [vmem:[%s18508_s7 + $0x190] ss:$8 sps:$4 sm:$0xff]  }
 0x7c8   : > { %13241 = vmatmul.mubr.msk.bf16.gmra.mxu1 %vm8435_vm12, %v13596_v55  ;;  %v13665_v55 = vld [vmem:[%s18508_s7 + $0x144] ss:$8 sps:$4 sm:$0xff]  }
 0x7c9   : > { %8823 = vmatprep.mubr.bf16.mxu1 %v18755_v12  ;;  %8800 = vmatpush1.bf16.msra.mxu1 %v13624_v21  ;;  %v13663_v21 = vld [vmem:[%s18508_s7 + $0x140] ss:$8 sps:$4 sm:$0xff]  }
 0x7ca   : > { %8801 = vmatprep.subr.bf16.mxu1 %v13632_v2  ;;  %v13692_v2 = vld [vmem:[%s18508_s7 + $0x184] ss:$8 sps:$4 sm:$0xff]  }
 0x7cd   : > { %8802 = vmatpush1.bf16.msra.mxu1 %v13630_v50 }
 0x7ce   : > { %8803 = vmatprep.subr.bf16.mxu1 %v13638_v19 }
 0x7d1   : > { %8804 = vmatpush1.bf16.msra.mxu1 %v13636_v63  ;;  %v13671_v63 = vld [vmem:[%s18508_s7 + $0x134] ss:$8 sps:$4 sm:$0xff]  }
 0x7d2   : > { %8805 = vmatprep.subr.bf16.mxu1 %v13644_v3 }
 0x7d5   : > { %8806 = vmatpush1.bf16.msra.mxu1 %v13642_v24  ;;  %v13690_v24 = vld [vmem:[%s18508_s7 + $0x180] ss:$8 sps:$4 sm:$0xff]  }
 0x7d6   : > { %9142 = vmatprep.subr.bf16.mxu1 %v13650_v58  ;;  %v13669_v58 = vld [vmem:[%s18508_s7 + $0x130] ss:$8 sps:$4 sm:$0xff]  }
 0x878   : > { %v8485_v23 = vpop.f32.mrf.mxu1 }
 0x87a   : > { %v13234_v26 = vpop.f32.mrf.mxu1 }
 0x87b   : > { %v13683_v26 = vld [vmem:[%s18508_s7 + $0x114] ss:$8 sps:$4 sm:$0xff]  }
 0x87c   : > { %v8488_v62 = vpop.f32.mrf.mxu1 }
 0x87d   : > { %v17715_v44 = vpack.c.bf16 %v8488_v62, %v8485_v23  ;;  %v13698_v23 = vld [vmem:[%s18510_s9 + $0x64] ss:$8 sps:$4 sm:$0xff]  }
 0x87e   : > { %v13235_v33 = vpop.f32.mrf.mxu1 }
 0x87f   : > { %8824 = vmatmul.mubr.bf16.vlgmr.msra.gmra.mxu1 %v17715_v44  ;;  %v8547_v9 = vshll.u32 %v17715_v44, 16  ;;  %v8545_v37 = vshrl.u32 %v17715_v44, 16  ;;  %v13696_v33 = vld [vmem:[%s18510_s9 + $0x60] ss:$8 sps:$4 sm:$0xff]  }
 0x880   : > { %v8493_v41 = vpop.f32.mrf.mxu1  ;;  %9143 = vmatpush1.bf16.msra.mxu1 %v13648_v49  ;;  %8833 = vmatprep.mubr.bf16.mxu1 %v18755_v12 }
 0x881   : > { %9144 = vmatprep.subr.bf16.mxu1 %v13656_v38  ;;  %v8549_v27 = vrot.slane %v8547_v9, 1  ;;  %v9048_v3 = vrot.slane %v8545_v37, 1  ;;  %v9049_v36 = vrot.slane %v8547_v9, 2  ;;  %v13689_v9 = vld [vmem:[%s18508_s7 + $0x104] ss:$8 sps:$4 sm:$0xff]  }
 0x882   : > { %v13238_v46 = vpop.f32.mrf.mxu1 }
 0x883   : > { %v8550_v32 = vor.u32 %v8549_v27, %v8545_v37  ;;  %v9050_v1 = vor.u32 %v9049_v36, %v9048_v3  ;;  %v13699_v46 = vld [vmem:[%s18510_s9 + $0x50] ss:$8 sps:$4 sm:$0xff]   ;;  %v13702_v37 = vld [vmem:[%s18510_s9 + $0x40] ss:$8 sps:$4 sm:$0xff]   ;;  %v13752_v3 = vld [vmem:[%s18510_s9 + $0xc4] ss:$8 sps:$4 sm:$0xff]  }
 0x884   : > { %v8496_v28 = vpop.f32.mrf.mxu1  ;;  %9145 = vmatpush1.bf16.msra.mxu1 %v13654_v4  ;;  %v13701_v4 = vld [vmem:[%s18510_s9 + $0x54] ss:$8 sps:$4 sm:$0xff]   ;;  %v13753_v36 = vld [vmem:[%s18510_s9 + $0x1f0] ss:$8 sps:$4 sm:$0xff]  }
 0x885   : > { %v17734_v39 = vpack.c.bf16 %v8496_v28, %v8493_v41  ;;  %9146 = vmatprep.subr.bf16.mxu1 %v13662_v5  ;;  %v13681_v41 = vld [vmem:[%s18508_s7 + $0x110] ss:$8 sps:$4 sm:$0xff]   ;;  %v13687_v28 = vld [vmem:[%s18508_s7 + $0x100] ss:$8 sps:$4 sm:$0xff]  }
 0x886   : > { %v13239_v16 = vpop.f32.mrf.mxu1 }
 0x887   : > { %v8552_v18 = vshll.u32 %v17734_v39, 16  ;;  %8834 = vmatmul.mubr.bf16.gmra.mxu1 %v17734_v39  ;;  %v8556_v30 = vshrl.u32 %v17734_v39, 16  ;;  %v8873_v16 = vrot.slane %v17734_v39, 1  ;;  %v13710_v39 = vld [vmem:[%s18510_s9 + $0x34] ss:$8 sps:$4 sm:$0xff]  }
 0x888   : > { %v8501_v34 = vpop.f32.mrf.mxu1  ;;  %9147 = vmatpush1.bf16.msra.mxu1 %v13660_v42  ;;  %8843 = vmatprep.mubr.bf16.mxu1 %v18755_v12  ;;  %v13704_v42 = vld [vmem:[%s18510_s9 + $0x44] ss:$8 sps:$4 sm:$0xff]  }
 0x889   : > { %v8554_v22 = vrot.slane %v8552_v18, 1  ;;  %v17749_v56 = vpack.c.bf16 %v8501_v34, %v8501_v34  ;;  %9148 = vmatprep.subr.bf16.mxu1 %v13668_v7  ;;  %v9051_v50 = vrot.slane %v8556_v30, 1  ;;  %v9052_v19 = vrot.slane %v8552_v18, 2  ;;  %v13707_v7 = vld [vmem:[%s18510_s9 + $0x174] ss:$8 sps:$4 sm:$0xff]  }
 0x88a   : > { %v13242_v61 = vpop.f32.mrf.mxu1  ;;  %v8872_v18 = vrot.slane %v17715_v44, 1  ;;  %v13705_v34 = vld [vmem:[%s18510_s9 + $0x170] ss:$8 sps:$4 sm:$0xff]  }
 0x88b   : > { %v8555_v29 = vsel %vm949_vm2, %v8550_v32, %v8554_v22  ;;  %v8560_v0 = vshll.u32 %v17749_v56, 16  ;;  %v8558_v14 = vor.u32 %v8556_v30, %v8554_v22  ;;  %v8564_v52 = vshrl.u32 %v17749_v56, 16  ;;  %v13708_v44 = vld [vmem:[%s18510_s9 + $0x30] ss:$8 sps:$4 sm:$0xff]   ;;  %v13711_v22 = vld [vmem:[%s18510_s9 + $0x160] ss:$8 sps:$4 sm:$0xff]  }
 0x88c   : > { %8683 = vmatmul.mubr.bf16.vlgmr.msra.gmra.mxu0 %v8555_v29  ;;  %9149 = vmatpush1.bf16.msra.mxu1 %v13666_v11  ;;  %v8504_v43 = vpop.f32.mrf.mxu1  ;;  %v9053_v59 = vor.u32 %v9052_v19, %v9051_v50  ;;  %v13713_v11 = vld [vmem:[%s18510_s9 + $0x164] ss:$8 sps:$4 sm:$0xff]   ;;  %v8874_v32 = vsel %vm1869_vm3, %v8872_v18, %v8873_v16  ;;  %v13714_v61 = vld [vmem:[%s18510_s9 + $0x20] ss:$8 sps:$4 sm:$0xff]   ;;  %v13717_v29 = vld [vmem:[%s18510_s9 + $0x150] ss:$8 sps:$4 sm:$0xff]  }
 0x88d   : > { %8961 = vmatpush1.bf16.msra.mxu0 %v13645_v57  ;;  %8692 = vmatprep.mubr.bf16.mxu0 %v18755_v12  ;;  %v8562_v6 = vrot.slane %v8560_v0, 1  ;;  %v9055_v49 = vrot.slane %v8564_v52, 1  ;;  %v9056_v38 = vrot.slane %v8560_v0, 2  ;;  %v13716_v57 = vld [vmem:[%s18510_s9 + $0x24] ss:$8 sps:$4 sm:$0xff]  }
 0x88e   : > { %8962 = vmatprep.subr.bf16.mxu0 %v13653_v8  ;;  %9150 = vmatprep.subr.bf16.mxu1 %v13674_v13  ;;  %v13243_v31 = vpop.f32.mrf.mxu1  ;;  %v9054_v62 = vsel %vm2312_vm4, %v9050_v1, %v9053_v59  ;;  %v13719_v8 = vld [vmem:[%s18510_s9 + $0x154] ss:$8 sps:$4 sm:$0xff]   ;;  %v8875_v13 = vrot.slane %v17749_v56, 1  ;;  %v13723_v43 = vld [vmem:[%s18510_s9 + $0x140] ss:$8 sps:$4 sm:$0xff]  }
 0x88f   : > { %8844 = vmatmul.mubr.bf16.gmra.mxu1 %v17749_v56  ;;  %v8563_v48 = vsel %vm949_vm2, %v8558_v14, %v8562_v6  ;;  %v8566_v45 = vor.u32 %v8564_v52, %v8562_v6  ;;  %v9057_v5 = vor.u32 %v9056_v38, %v9055_v49  ;;  %v13720_v56 = vld [vmem:[%s18510_s9 + $0x10] ss:$8 sps:$4 sm:$0xff]   ;;  %v13731_v30 = vld [vmem:[%s18510_s9 + $0x134] ss:$8 sps:$4 sm:$0xff]   ;;  %v13737_v14 = vld [vmem:[%s18510_s9 + $0x124] ss:$8 sps:$4 sm:$0xff]  }
 0x890   : > { %9151 = vmatpush1.bf16.msra.mxu1 %v13672_v60  ;;  %9174 = vmatprep.mubr.bf16.mxu1 %v18755_v12  ;;  %v8876_v0 = vsel %vm1869_vm3, %v8873_v16, %v8875_v13  ;;  %v13722_v60 = vld [vmem:[%s18510_s9 + $0x14] ss:$8 sps:$4 sm:$0xff]   ;;  %v13729_v31 = vld [vmem:[%s18510_s9 + $0x130] ss:$8 sps:$4 sm:$0xff]   ;;  %v13747_v50 = vld [vmem:[%s18510_s9 + $0x100] ss:$8 sps:$4 sm:$0xff]  }
 0x891   : > { %8963 = vmatpush1.bf16.msra.mxu0 %v13651_v51  ;;  %9152 = vmatprep.subr.bf16.mxu1 %v13680_v40  ;;  %v9058_v27 = vsel %vm2312_vm4, %v9053_v59, %v9057_v5  ;;  %v13725_v51 = vld [vmem:[%s18510_s9 + $0x144] ss:$8 sps:$4 sm:$0xff]   ;;  %v13726_v40 = vld [vmem:[%s18510_s9] ss:$8 sps:$4 sm:$0xff]   ;;  %v13732_v6 = vld [vmem:[%s18510_s9 + $0xf0] ss:$8 sps:$4 sm:$0xff]  }
 0x892   : > { %8964 = vmatprep.subr.bf16.mxu0 %v13659_v54  ;;  %v13728_v54 = vld [vmem:[%s18510_s9 + $0x4] ss:$8 sps:$4 sm:$0xff]   ;;  %v13755_v52 = vld [vmem:[%s18510_s9 + $0x1f4] ss:$8 sps:$4 sm:$0xff]   ;;  %v13774_v38 = vld [vmem:[%s18510_s9 + $0x80] ss:$8 sps:$4 sm:$0xff]  }
 0x893   : > { %v13749_v19 = vld [vmem:[%s18510_s9 + $0x104] ss:$8 sps:$4 sm:$0xff]   ;;  %v13767_v1 = vld [vmem:[%s18510_s9 + $0x1d4] ss:$8 sps:$4 sm:$0xff]  }
 0x894   : > { %8693 = vmatmul.mubr.bf16.gmra.mxu0 %v8563_v48  ;;  %9153 = vmatpush1.bf16.msra.mxu1 %v13678_v47  ;;  %v13734_v47 = vld [vmem:[%s18510_s9 + $0xf4] ss:$8 sps:$4 sm:$0xff]   ;;  %v13741_v48 = vld [vmem:[%s18510_s9 + $0x110] ss:$8 sps:$4 sm:$0xff]   ;;  %v13761_v59 = vld [vmem:[%s18510_s9 + $0x1e4] ss:$8 sps:$4 sm:$0xff]  }
 0x895   : > { %8965 = vmatpush1.bf16.msra.mxu0 %v13657_v20  ;;  %8702 = vmatprep.mubr.bf16.mxu0 %v18755_v12  ;;  %v13735_v20 = vld [vmem:[%s18510_s9 + $0x120] ss:$8 sps:$4 sm:$0xff]   ;;  %v13776_v49 = vld [vmem:[%s18510_s9 + $0x84] ss:$8 sps:$4 sm:$0xff]  }
 0x896   : > { %8966 = vmatprep.subr.bf16.mxu0 %v13665_v55  ;;  %9154 = vmatprep.subr.bf16.mxu1 %v13686_v15  ;;  %v13738_v55 = vld [vmem:[%s18510_s9 + $0xe0] ss:$8 sps:$4 sm:$0xff]   ;;  %v13740_v15 = vld [vmem:[%s18510_s9 + $0xe4] ss:$8 sps:$4 sm:$0xff]  }
 0x898   : > { %9155 = vmatpush1.bf16.msra.mxu1 %v13684_v35  ;;  %v13743_v35 = vld [vmem:[%s18510_s9 + $0x114] ss:$8 sps:$4 sm:$0xff]  }
 0x899   : > { %8967 = vmatpush1.bf16.msra.mxu0 %v13663_v21  ;;  %9156 = vmatprep.subr.bf16.mxu1 %v13692_v2  ;;  %v13744_v21 = vld [vmem:[%s18510_s9 + $0xd0] ss:$8 sps:$4 sm:$0xff]   ;;  %v13746_v2 = vld [vmem:[%s18510_s9 + $0xd4] ss:$8 sps:$4 sm:$0xff]  }
 0x89a   : > { %8968 = vmatprep.subr.bf16.mxu0 %v13671_v63  ;;  %v13750_v63 = vld [vmem:[%s18510_s9 + $0xc0] ss:$8 sps:$4 sm:$0xff]  }
 0x89c   : > { %8703 = vmatmul.mubr.bf16.gmra.mxu0 %v8566_v45  ;;  %9157 = vmatpush1.bf16.msra.mxu1 %v13690_v24  ;;  %v13758_v24 = vld [vmem:[%s18510_s9 + $0xb4] ss:$8 sps:$4 sm:$0xff]   ;;  %v13764_v45 = vld [vmem:[%s18510_s9 + $0xa4] ss:$8 sps:$4 sm:$0xff]  }
 0x89d   : > { %8969 = vmatpush1.bf16.msra.mxu0 %v13669_v58  ;;  %8992 = vmatprep.mubr.bf16.mxu0 %v18755_v12  ;;  %v13756_v58 = vld [vmem:[%s18510_s9 + $0xb0] ss:$8 sps:$4 sm:$0xff]  }
 0x89e   : > { %8970 = vmatprep.subr.bf16.mxu0 %v13677_v53  ;;  %9749 = vmatprep.subr.bf16.mxu1 %v13695_v25  ;;  %v13759_v53 = vld [vmem:[%s18510_s9 + $0x1e0] ss:$8 sps:$4 sm:$0xff]  }
 0x89f   : > { %9175 = vmatmul.mubr.bf16.vlgmr.msra.gmra.mxu1 %v9054_v62  ;;  %v13762_v25 = vld [vmem:[%s18510_s9 + $0xa0] ss:$8 sps:$4 sm:$0xff]  }
 0x8a0   : > { %9184 = vmatprep.mubr.bf16.mxu1 %v18755_v12  ;;  %9750 = vmatpush1.bf16.msra.mxu1 %v13693_v17  ;;  %v13765_v17 = vld [vmem:[%s18510_s9 + $0x1d0] ss:$8 sps:$4 sm:$0xff]   ;;  %v13771_v62 = vld [vmem:[%s18510_s9 + $0x1c0] ss:$8 sps:$4 sm:$0xff]  }
 0x8a1   : > { %8971 = vmatpush1.bf16.msra.mxu0 %v13675_v10  ;;  %9751 = vmatprep.subr.bf16.mxu1 %v13698_v23  ;;  %v13770_v10 = vld [vmem:[%s18510_s9 + $0x94] ss:$8 sps:$4 sm:$0xff]   ;;  %v13768_v23 = vld [vmem:[%s18510_s9 + $0x90] ss:$8 sps:$4 sm:$0xff]  }
 0x8a2   : > { %8972 = vmatprep.subr.bf16.mxu0 %v13683_v26  ;;  %v13773_v26 = vld [vmem:[%s18510_s9 + $0x1c4] ss:$8 sps:$4 sm:$0xff]  }
 0x8a4   : > { %9752 = vmatpush1.bf16.msra.mxu1 %v13696_v33  ;;  %v13779_v33 = vld [vmem:[%s18510_s9 + $0x1b4] ss:$8 sps:$4 sm:$0xff]  }
 0x8a5   : > { %8973 = vmatpush1.bf16.msra.mxu0 %v13681_v41  ;;  %9753 = vmatprep.subr.bf16.mxu1 %v13701_v4  ;;  %v13777_v41 = vld [vmem:[%s18510_s9 + $0x1b0] ss:$8 sps:$4 sm:$0xff]   ;;  %v13782_v4 = vld [vmem:[%s18510_s9 + $0x374] ss:$8 sps:$4 sm:$0xff]  }
 0x8a6   : > { %8974 = vmatprep.subr.bf16.mxu0 %v13689_v9  ;;  %v13785_v9 = vld [vmem:[%s18510_s9 + $0x1a4] ss:$8 sps:$4 sm:$0xff]  }
 0x8a7   : > { %9185 = vmatmul.mubr.bf16.gmra.mxu1 %v9058_v27  ;;  %v13797_v27 = vld [vmem:[%s18510_s9 + $0x184] ss:$8 sps:$4 sm:$0xff]  }
 0x8a8   : > { %9194 = vmatprep.mubr.bf16.mxu1 %v18755_v12  ;;  %9754 = vmatpush1.bf16.msra.mxu1 %v13699_v46  ;;  %v13791_v46 = vld [vmem:[%s18510_s9 + $0x194] ss:$8 sps:$4 sm:$0xff]  }
 0x8a9   : > { %8975 = vmatpush1.bf16.msra.mxu0 %v13687_v28  ;;  %9755 = vmatprep.subr.bf16.mxu1 %v13704_v42  ;;  %v13789_v28 = vld [vmem:[%s18510_s9 + $0x190] ss:$8 sps:$4 sm:$0xff]   ;;  %v13795_v42 = vld [vmem:[%s18510_s9 + $0x180] ss:$8 sps:$4 sm:$0xff]  }
 0x8aa   : > { %9528 = vmatprep.subr.bf16.mxu0 %v13707_v7  ;;  %v13803_v7 = vld [vmem:[%s18510_s9 + $0x274] ss:$8 sps:$4 sm:$0xff]  }
 0x8ac   : > { %8993 = vmatmul.mubr.bf16.vlgmr.msra.gmra.mxu0 %v8874_v32  ;;  %9756 = vmatpush1.bf16.msra.mxu1 %v13702_v37 }
 0x8ad   : > { %9002 = vmatprep.mubr.bf16.mxu0 %v18755_v12  ;;  %9529 = vmatpush1.bf16.msra.mxu0 %v13705_v34 }
 0x8ae   : > { %9757 = vmatprep.subr.bf16.mxu1 %v13710_v39  ;;  %9530 = vmatprep.subr.bf16.mxu0 %v13713_v11 }
 0x8af   : > { %9195 = vmatmul.mubr.bf16.gmra.mxu1 %v9057_v5  ;;  %v13783_v5 = vld [vmem:[%s18510_s9 + $0x1a0] ss:$8 sps:$4 sm:$0xff]  }
 0x8b0   : > { %9758 = vmatpush1.bf16.msra.mxu1 %v13708_v44 }
 0x8b1   : > { %9531 = vmatpush1.bf16.msra.mxu0 %v13711_v22  ;;  %9759 = vmatprep.subr.bf16.mxu1 %v13716_v57 }
 0x8b2   : > { %9532 = vmatprep.subr.bf16.mxu0 %v13719_v8 }
 0x8b4   : > { %9003 = vmatmul.mubr.bf16.gmra.mxu0 %v8876_v0  ;;  %9760 = vmatpush1.bf16.msra.mxu1 %v13714_v61 }
 0x8b5   : > { %9012 = vmatprep.mubr.bf16.mxu0 %v18755_v12  ;;  %9533 = vmatpush1.bf16.msra.mxu0 %v13717_v29 }
 0x8b6   : > { %9761 = vmatprep.subr.bf16.mxu1 %v13722_v60  ;;  %9534 = vmatprep.subr.bf16.mxu0 %v13725_v51 }
 0x8b8   : > { %9762 = vmatpush1.bf16.msra.mxu1 %v13720_v56 }
 0x8b9   : > { %9535 = vmatpush1.bf16.msra.mxu0 %v13723_v43  ;;  %9763 = vmatprep.subr.bf16.mxu1 %v13728_v54 }
 0x8ba   : > { %9536 = vmatprep.subr.bf16.mxu0 %v13731_v30 }
 0x8bc   : > { %9013 = vmatmul.mubr.bf16.gmra.mxu0 %v8875_v13  ;;  %9764 = vmatpush1.bf16.msra.mxu1 %v13726_v40 }
 0x8bd   : > { %9537 = vmatpush1.bf16.msra.mxu0 %v13729_v31  ;;  %9765 = vmatprep.subr.bf16.mxu1 %v13734_v47 }
 0x8be   : > { %9538 = vmatprep.subr.bf16.mxu0 %v13737_v14 }
 0x8c0   : > { %9766 = vmatpush2.bf16.msra.mxu1 %v13732_v6 }
 0x8c1   : > { %9539 = vmatpush1.bf16.msra.mxu0 %v13735_v20  ;;  %9767 = vmatprep.subr.bf16.mxu1 %v13740_v15  ;;  %v9214_v15 = vlaneseq }
 0x8c2   : > { %9540 = vmatprep.subr.bf16.mxu0 %v13743_v35 }
 0x8c4   : > { %9768 = vmatpush2.bf16.msra.mxu1 %v13738_v55 }
 0x8c5   : > { %9541 = vmatpush1.bf16.msra.mxu0 %v13741_v48  ;;  %9769 = vmatprep.subr.bf16.mxu1 %v13746_v2 }
 0x8c6   : > { %9542 = vmatprep.subr.bf16.mxu0 %v13749_v19 }
 0x8c8   : > { %9770 = vmatpush2.bf16.msra.mxu1 %v13744_v21  ;;  %v9215_v21 = vshrl.u32 %v9214_v15, 7 }
 0x8c9   : > { %9543 = vmatpush1.bf16.msra.mxu0 %v13747_v50  ;;  %9771 = vmatprep.subr.bf16.mxu1 %v13752_v3 }
 0x8ca   : > { %9544 = vmatprep.subr.bf16.mxu0 %v13755_v52  ;;  %v18050_v3 = vsub.s32 1, %v9215_v21 }
 0x8cc   : > { %9772 = vmatpush2.bf16.msra.mxu1 %v13750_v63 }
 0x8cd   : > { %9545 = vmatpush2.bf16.msra.mxu0 %v13753_v36  ;;  %9773 = vmatprep.subr.bf16.mxu1 %v13758_v24 }
 0x8ce   : > { %9546 = vmatprep.subr.bf16.mxu0 %v13761_v59 }
 0x8d0   : > { %9774 = vmatpush2.bf16.msra.mxu1 %v13756_v58  ;;  %v18052_v58 = vsub.s32 0, %v9215_v21 }
 0x8d1   : > { %9547 = vmatpush2.bf16.msra.mxu0 %v13759_v53  ;;  %9775 = vmatprep.subr.bf16.mxu1 %v13764_v45  ;;  %v8510_v45 = vld [vmem:[%s18509_s8] sm:$0x3] }
 0x8d2   : > { %9548 = vmatprep.subr.bf16.mxu0 %v13767_v1 }
 0x8d4   : > { %9776 = vmatpush2.bf16.msra.mxu1 %v13762_v25 }
 0x8d5   : > { %9549 = vmatpush2.bf16.msra.mxu0 %v13765_v17  ;;  %9777 = vmatprep.subr.bf16.mxu1 %v13770_v10 }
 0x8d6   : > { %9550 = vmatprep.subr.bf16.mxu0 %v13773_v26  ;;  %v18058_v26 = vrot.slane %v8510_v45, %v18050_v3 }
 0x8d8   : > { %9778 = vmatpush2.bf16.msra.mxu1 %v13768_v23 }
 0x8d9   : > { %9551 = vmatpush2.bf16.msra.mxu0 %v13771_v62  ;;  %9779 = vmatprep.subr.bf16.mxu1 %v13776_v49 }
 0x8da   : > { %9552 = vmatprep.subr.bf16.mxu0 %v13779_v33 }
 0x8dc   : > { %9780 = vmatpush2.bf16.msra.mxu1 %v13774_v38  ;;  %v9217_v38 = vrot.slane %v8510_v45, %v18052_v58 }
 0x8dd   : > { %9553 = vmatpush2.bf16.msra.mxu0 %v13777_v41  ;;  %10317 = vmatprep.subr.bf16.mxu1 %v13782_v4 }
 0x8de   : > { %9554 = vmatprep.subr.bf16.mxu0 %v13785_v9 }
 0x8e1   : > { %9555 = vmatpush2.bf16.msra.mxu0 %v13783_v5 }
 0x8e2   : > { %9556 = vmatprep.subr.bf16.mxu0 %v13791_v46 }
 0x8e5   : > { %9557 = vmatpush2.bf16.msra.mxu0 %v13789_v28 }
 0x8e6   : > { %9558 = vmatprep.subr.bf16.mxu0 %v13797_v27 }
 0x8e9   : > { %9559 = vmatpush2.bf16.msra.mxu0 %v13795_v42 }
 0x8ea   : > { %10025 = vmatprep.subr.bf16.mxu0 %v13803_v7 }
 0x93f   : > { %v8825_v16 = vpop.f32.mrf.mxu1 }
 0x941   : > { %v8827_v37 = vpop.f32.mrf.mxu1 }
 0x943   : > { %v8829_v18 = vpop.f32.mrf.mxu1 }
 0x945   : > { %v8831_v34 = vpop.f32.mrf.mxu1 }
 0x947   : > { %v8835_v39 = vpop.f32.mrf.mxu1 }
 0x949   : > { %v8837_v11 = vpop.f32.mrf.mxu1 }
 0x94b   : > { %v8839_v32 = vpop.f32.mrf.mxu1 }
 0x94c   : > { %v8684_v44 = vpop.f32.mrf.mxu0 }
 0x94d   : > { %v18042_v22 = vpop.f32.mrf.mxu1  ;;  %v8826_v50 = vadd.f32 %v8825_v16, %v8684_v44 }
 0x94e   : > { %v8686_v57 = vpop.f32.mrf.mxu0 }
 0x94f   : > { %v18044_v8 = vpop.f32.mrf.mxu1  ;;  %v8828_v63 = vadd.f32 %v8827_v37, %v8686_v57 }
 0x950   : > { %v8688_v13 = vpop.f32.mrf.mxu0 }
 0x951   : > { %v18046_v61 = vpop.f32.mrf.mxu1  ;;  %v8830_v59 = vadd.f32 %v8829_v18, %v8688_v13 }
 0x952   : > { %v8690_v29 = vpop.f32.mrf.mxu0 }
 0x953   : > { %v8849_v0 = vpop.f32.mrf.mxu1  ;;  %v8832_v17 = vadd.f32 %v8831_v34, %v8690_v29 }
 0x954   : > { %v8694_v56 = vpop.f32.mrf.mxu0 }
 0x955   : > { %v8850_v60 = vpop.f32.mrf.mxu1  ;;  %v8836_v41 = vadd.f32 %v8835_v39, %v8694_v56 }
 0x956   : > { %v8696_v43 = vpop.f32.mrf.mxu0 }
 0x957   : > { %v8838_v46 = vadd.f32 %v8837_v11, %v8696_v43 }
 0x958   : > { %v8698_v51 = vpop.f32.mrf.mxu0 }
 0x959   : > { %v8840_v44 = vadd.f32 %v8839_v32, %v8698_v51  ;;  %v13780_v32 = vld [vmem:[%s18510_s9 + $0x370] ss:$8 sps:$4 sm:$0xff]  }
 0x95a   : > { %v8700_v40 = vpop.f32.mrf.mxu0 }
 0x95b   : > { %v8842_v11 = vadd.f32 %v18042_v22, %v8700_v40  ;;  %v13788_v22 = vld [vmem:[%s18510_s9 + $0x364] ss:$8 sps:$4 sm:$0xff]  }
 0x95c   : > { %v8704_v54 = vpop.f32.mrf.mxu0 }
 0x95e   : > { %v18048_v31 = vpop.f32.mrf.mxu0 }
 0x95f   : > { %v9176_v30 = vpop.f32.mrf.mxu1 }
 0x960   : > { %v8708_v6 = vpop.f32.mrf.mxu0 }
 0x961   : > { %v9178_v47 = vpop.f32.mrf.mxu1 }
 0x962   : > { %v8709_v20 = vpop.f32.mrf.mxu0 }
 0x963   : > { %v9180_v14 = vpop.f32.mrf.mxu1  ;;  %v8846_v20 = vadd.f32 %v18044_v8, %v8704_v54 }
 0x965   : > { %v9182_v55 = vpop.f32.mrf.mxu1 }
 0x967   : > { %v9186_v48 = vpop.f32.mrf.mxu1 }
 0x969   : > { %v9188_v35 = vpop.f32.mrf.mxu1 }
 0x96b   : > { %v9190_v2 = vpop.f32.mrf.mxu1 }
 0x96c   : > { %v8994_v19 = vpop.f32.mrf.mxu0 }
 0x96d   : > { %v9192_v36 = vpop.f32.mrf.mxu1  ;;  %v9021_v52 = vadd.f32 %v8994_v19, %v8826_v50 }
 0x96e   : > { %v8996_v24 = vpop.f32.mrf.mxu0 }
 0x96f   : > { %v9022_v53 = vadd.f32 %v8996_v24, %v8828_v63  ;;  %v9196_v25 = vpop.f32.mrf.mxu1  ;;  %v9203_v49 = vadd.f32 %v9176_v30, %v9021_v52 }
 0x970   : > { %v8998_v1 = vpop.f32.mrf.mxu0 }
 0x971   : > { %v9023_v10 = vadd.f32 %v8998_v1, %v8830_v59  ;;  %v9204_v23 = vadd.f32 %v9178_v47, %v9022_v53  ;;  %v9198_v62 = vpop.f32.mrf.mxu1  ;;  %v9224_v18 = vadd.f32 %v9217_v38, %v9203_v49 }
 0x972   : > { %v9000_v33 = vpop.f32.mrf.mxu0 }
 0x973   : > { %v9024_v4 = vadd.f32 %v9000_v33, %v8832_v17  ;;  %v9205_v9 = vadd.f32 %v9180_v14, %v9023_v10  ;;  %v9200_v5 = vpop.f32.mrf.mxu1  ;;  %v9225_v42 = vadd.f32 %v18058_v26, %v9204_v23  ;;  %v9234_v43 = vmax.f32 %v9224_v18, 0.0  ;;  %v13792_v33 = vld [vmem:[%s18510_s9 + $0x350] ss:$8 sps:$4 sm:$0xff]  }
 0x974   : > { %v9004_v28 = vpop.f32.mrf.mxu0 }
 0x975   : > { %v9226_v27 = vadd.f32 %v9217_v38, %v9205_v9  ;;  %v9025_v7 = vadd.f32 %v9004_v28, %v8836_v41  ;;  %v9206_v16 = vadd.f32 %v9182_v55, %v9024_v4  ;;  %v9201_v37 = vpop.f32.mrf.mxu1  ;;  %v9235_v56 = vmax.f32 %v9225_v42, 0.0 }
 0x976   : > { %v9006_v34 = vpop.f32.mrf.mxu0 }
 0x977   : > { %v9227_v57 = vadd.f32 %v18058_v26, %v9206_v16  ;;  %v9026_v13 = vadd.f32 %v9006_v34, %v8838_v46  ;;  %v9236_v29 = vmax.f32 %v9226_v27, 0.0  ;;  %v9207_v0 = vadd.f32 %v9186_v48, %v9025_v7  ;;  %v13798_v16 = vld [vmem:[%s18510_s9 + $0x340] ss:$8 sps:$4 sm:$0xff]  }
 0x978   : > { %v9008_v39 = vpop.f32.mrf.mxu0 }
 0x979   : > { %v9237_v60 = vmax.f32 %v9227_v57, 0.0  ;;  %v9027_v30 = vadd.f32 %v9008_v39, %v8840_v44  ;;  %v9208_v6 = vadd.f32 %v9188_v35, %v9026_v13  ;;  %v18070_v51 = vpack.c.bf16 %v9236_v29, %v9234_v43  ;;  %v13806_v13 = vld [vmem:[%s18510_s9 + $0x334] ss:$8 sps:$4 sm:$0xff]   ;;  %v13809_v43 = vld [vmem:[%s18510_s9 + $0x264] ss:$8 sps:$4 sm:$0xff]  }
 0x97a   : > { %v9010_v47 = vpop.f32.mrf.mxu0  ;;  %v9228_v55 = vadd.f32 %v9217_v38, %v9207_v0  ;;  %v8848_v35 = vadd.f32 %v18046_v61, %v18048_v31  ;;  %v13794_v31 = vld [vmem:[%s18510_s9 + $0x354] ss:$8 sps:$4 sm:$0xff]   ;;  %v13801_v0 = vld [vmem:[%s18510_s9 + $0x270] ss:$8 sps:$4 sm:$0xff]  }
 0x97b   : > { %v18065_v14 = vpack.c.bf16 %v9237_v60, %v9235_v56  ;;  %v9028_v15 = vadd.f32 %v9010_v47, %v8842_v11  ;;  %v9209_v48 = vadd.f32 %v9190_v2, %v9027_v30  ;;  %v9229_v54 = vadd.f32 %v18058_v26, %v9208_v6  ;;  %v13786_v2 = vld [vmem:[%s18510_s9 + $0x360] ss:$8 sps:$4 sm:$0xff]  }
 0x97c   : > { %v9014_v40 = vpop.f32.mrf.mxu0  ;;  %v9238_v24 = vmax.f32 %v9228_v55, 0.0  ;;  %v9319_v45 = vshll.u32 %v18070_v51, 16  ;;  %v9317_v7 = vshrl.u32 %v18070_v51, 16  ;;  %v9849_v60 = vrot.slane %v18070_v51, 1  ;;  %v13804_v55 = vld [vmem:[%s18510_s9 + $0x330] ss:$8 sps:$4 sm:$0xff]  }
 0x97d   : > { %9781 = vmatprep.mubr.bf16.mxu1 %v18065_v14  ;;  %v9029_v8 = vadd.f32 %v9014_v40, %v8846_v20  ;;  %v9230_v21 = vadd.f32 %v9217_v38, %v9209_v48  ;;  %v9210_v50 = vadd.f32 %v9192_v36, %v9028_v15  ;;  %v9331_v36 = vshll.u32 %v18065_v14, 16  ;;  %v13812_v40 = vld [vmem:[%s18510_s9 + $0x324] ss:$8 sps:$4 sm:$0xff]  }
 0x97e   : > { %9782 = vmatmul.mubr.bf16.vlgmr.msra.gmra.mxu1 %v18070_v51  ;;  %v9016_v19 = vpop.f32.mrf.mxu0  ;;  %v9239_v10 = vmax.f32 %v9229_v54, 0.0  ;;  %v9321_v46 = vrot.slane %v9319_v45, 1  ;;  %v9329_v42 = vshrl.u32 %v18065_v14, 16  ;;  %v13876_v51 = vld [vmem:[%s18510_s9 + $0x2a0] ss:$8 sps:$4 sm:$0xff]  }
 0x97f   : > { %10318 = vmatpush1.bf16.msra.mxu1 %v13780_v32  ;;  %v9030_v63 = vadd.f32 %v9016_v19, %v8848_v35  ;;  %v9211_v52 = vadd.f32 %v9196_v25, %v9029_v8  ;;  %v9240_v59 = vmax.f32 %v9230_v21, 0.0  ;;  %v9231_v61 = vadd.f32 %v18058_v26, %v9210_v50  ;;  %v13807_v8 = vld [vmem:[%s18510_s9 + $0x260] ss:$8 sps:$4 sm:$0xff]   ;;  %v13815_v50 = vld [vmem:[%s18510_s9 + $0x254] ss:$8 sps:$4 sm:$0xff]  }
 0x980   : > { %10319 = vmatprep.subr.bf16.mxu1 %v13788_v22  ;;  %v9018_v53 = vpop.f32.mrf.mxu0  ;;  %v9322_v39 = vor.u32 %v9321_v46, %v9317_v7  ;;  %v10136_v6 = vrot.slane %v9329_v42, 1  ;;  %v10137_v47 = vrot.slane %v9331_v36, 2 }
 0x981   : > { %v9232_v1 = vadd.f32 %v9217_v38, %v9211_v52  ;;  %v9212_v17 = vadd.f32 %v9198_v62, %v9030_v63  ;;  %v18089_v23 = vpack.c.bf16 %v9240_v59, %v9238_v24  ;;  %v9241_v25 = vmax.f32 %v9231_v61, 0.0  ;;  %v13800_v62 = vld [vmem:[%s18510_s9 + $0x344] ss:$8 sps:$4 sm:$0xff]   ;;  %v13818_v59 = vld [vmem:[%s18510_s9 + $0x314] ss:$8 sps:$4 sm:$0xff]  }
 0x982   : > { %v9019_v49 = vpop.f32.mrf.mxu0  ;;  %v9333_v38 = vrot.slane %v9331_v36, 1  ;;  %v10138_v19 = vor.u32 %v10137_v47, %v10136_v6  ;;  %v13851_v6 = vld [vmem:[%s18510_s9 + $0x2f4] ss:$8 sps:$4 sm:$0xff]   ;;  %v13846_v47 = vld [vmem:[%s18510_s9 + $0x3c0] ss:$8 sps:$4 sm:$0xff]  }
 0x983   : > { %10320 = vmatpush1.bf16.msra.mxu1 %v13786_v2  ;;  %v9242_v41 = vmax.f32 %v9232_v1, 0.0  ;;  %v9233_v4 = vadd.f32 %v18058_v26, %v9212_v17  ;;  %v9324_v9 = vshll.u32 %v18089_v23, 16  ;;  %v18096_v5 = vpack.c.bf16 %v9241_v25, %v9239_v10  ;;  %v13810_v2 = vld [vmem:[%s18510_s9 + $0x320] ss:$8 sps:$4 sm:$0xff]   ;;  %v13821_v17 = vld [vmem:[%s18510_s9 + $0x244] ss:$8 sps:$4 sm:$0xff]  }
 0x984   : > { %10321 = vmatprep.subr.bf16.mxu1 %v13794_v31  ;;  %v9334_v44 = vor.u32 %v9333_v38, %v9329_v42  ;;  %v9850_v30 = vrot.slane %v18089_v23, 1  ;;  %v9340_v63 = vshrl.u32 %v18089_v23, 16  ;;  %v13813_v31 = vld [vmem:[%s18510_s9 + $0x250] ss:$8 sps:$4 sm:$0xff]   ;;  %v13830_v38 = vld [vmem:[%s18510_s9 + $0x3f4] ss:$8 sps:$4 sm:$0xff]  }
 0x985   : > { %v9243_v28 = vmax.f32 %v9233_v4, 0.0  ;;  %v9336_v27 = vshll.u32 %v18096_v5, 16  ;;  %v9348_v26 = vshrl.u32 %v18096_v5, 16  ;;  %9791 = vmatprep.mubr.bf16.mxu1 %v18096_v5  ;;  %v9326_v37 = vrot.slane %v9324_v9, 1  ;;  %v13816_v10 = vld [vmem:[%s18510_s9 + $0x310] ss:$8 sps:$4 sm:$0xff]  }
 0x986   : > { %v18113_v18 = vpack.c.bf16 %v9242_v41, %v9242_v41  ;;  %9792 = vmatmul.mubr.bf16.gmra.mxu1 %v18089_v23  ;;  %v18151_v21 = vsel %vm1869_vm3, %v9849_v60, %v9850_v30  ;;  %v13819_v41 = vld [vmem:[%s18510_s9 + $0x240] ss:$8 sps:$4 sm:$0xff]   ;;  %v13827_v4 = vld [vmem:[%s18510_s9 + $0x234] ss:$8 sps:$4 sm:$0xff]   ;;  %v13825_v42 = vld [vmem:[%s18510_s9 + $0x230] ss:$8 sps:$4 sm:$0xff]  }
 0x987   : > { %10322 = vmatpush1.bf16.msra.mxu1 %v13792_v33  ;;  %v18115_v34 = vpack.c.bf16 %v9243_v28, %v9243_v28  ;;  %v9338_v57 = vrot.slane %v9336_v27, 1  ;;  %v10139_v29 = vrot.slane %v9348_v26, 1  ;;  %v10140_v20 = vrot.slane %v9336_v27, 2  ;;  %v13824_v33 = vld [vmem:[%s18510_s9 + $0x304] ss:$8 sps:$4 sm:$0xff]  }
 0x988   : > { %10323 = vmatprep.subr.bf16.mxu1 %v13800_v62  ;;  %v9327_v32 = vsel %vm949_vm2, %v9322_v39, %v9326_v37  ;;  %v9344_v22 = vshll.u32 %v18113_v18, 16  ;;  %v9855_v24 = vrot.slane %v18113_v18, 1  ;;  %v9342_v36 = vor.u32 %v9340_v63, %v9326_v37  ;;  %v13822_v62 = vld [vmem:[%s18510_s9 + $0x300] ss:$8 sps:$4 sm:$0xff]   ;;  %v13833_v27 = vld [vmem:[%s18510_s9 + $0x224] ss:$8 sps:$4 sm:$0xff]  }
 0x989   : > { %v9352_v56 = vshll.u32 %v18115_v34, 16  ;;  %9801 = vmatprep.mubr.bf16.mxu1 %v18115_v34  ;;  %v9339_v11 = vsel %vm949_vm2, %v9334_v44, %v9338_v57  ;;  %v9350_v15 = vor.u32 %v9348_v26, %v9338_v57  ;;  %v18144_v35 = vor.u32 %v10140_v20, %v10139_v29  ;;  %v13828_v37 = vld [vmem:[%s18510_s9 + $0x3f0] ss:$8 sps:$4 sm:$0xff]   ;;  %v13836_v44 = vld [vmem:[%s18510_s9 + $0x3e4] ss:$8 sps:$4 sm:$0xff]  }
 0x98a   : > { %9560 = vmatprep.mubr.bf16.mxu0 %v9339_v11  ;;  %v9346_v52 = vrot.slane %v9344_v22, 1  ;;  %v9359_v53 = vshrl.u32 %v18115_v34, 16  ;;  %v18178_v1 = vsel %vm1869_vm3, %v9850_v30, %v9855_v24  ;;  %v9356_v46 = vshrl.u32 %v18113_v18, 16  ;;  %v13834_v29 = vld [vmem:[%s18510_s9 + $0x3e0] ss:$8 sps:$4 sm:$0xff]  }
 0x98b   : > { %10324 = vmatpush1.bf16.msra.mxu1 %v13798_v16  ;;  %v9354_v48 = vrot.slane %v9352_v56, 1  ;;  %9561 = vmatmul.mubr.bf16.vlgmr.msra.gmra.mxu0 %v9327_v32  ;;  %v10142_v61 = vsel %vm2312_vm4, %v10138_v19, %v18144_v35  ;;  %v9853_v28 = vrot.slane %v18096_v5, 1  ;;  %v9852_v16 = vrot.slane %v18065_v14, 1  ;;  %v13831_v14 = vld [vmem:[%s18510_s9 + $0x220] ss:$8 sps:$4 sm:$0xff]  }
 0x98c   : > { %10325 = vmatprep.subr.bf16.mxu1 %v13806_v13  ;;  %10026 = vmatpush1.bf16.msra.mxu0 %v13801_v0  ;;  %v9347_v25 = vsel %vm949_vm2, %v9342_v36, %v9346_v52  ;;  %v9358_v26 = vor.u32 %v9356_v46, %v9346_v52  ;;  %v13839_v13 = vld [vmem:[%s18510_s9 + $0x214] ss:$8 sps:$4 sm:$0xff]   ;;  %v13837_v39 = vld [vmem:[%s18510_s9 + $0x210] ss:$8 sps:$4 sm:$0xff]   ;;  %v13845_v60 = vld [vmem:[%s18510_s9 + $0x204] ss:$8 sps:$4 sm:$0xff]  }
 0x98d   : > { %v9355_v54 = vsel %vm949_vm2, %v9350_v15, %v9354_v48  ;;  %10027 = vmatprep.subr.bf16.mxu0 %v13809_v43  ;;  %v9361_v49 = vor.u32 %v9359_v53, %v9354_v48  ;;  %v9854_v57 = vsel %vm1869_vm3, %v9852_v16, %v9853_v28  ;;  %v13842_v0 = vld [vmem:[%s18510_s9 + $0x3d4] ss:$8 sps:$4 sm:$0xff]   ;;  %v13840_v30 = vld [vmem:[%s18510_s9 + $0x3d0] ss:$8 sps:$4 sm:$0xff]   ;;  %v13848_v11 = vld [vmem:[%s18510_s9 + $0x3c4] ss:$8 sps:$4 sm:$0xff]  }
 0x98e   : > { %9570 = vmatprep.mubr.bf16.mxu0 %v9355_v54  ;;  %9802 = vmatmul.mubr.bf16.gmra.mxu1 %v18113_v18  ;;  %v13843_v43 = vld [vmem:[%s18510_s9 + $0x200] ss:$8 sps:$4 sm:$0xff]   ;;  %v13854_v20 = vld [vmem:[%s18510_s9 + $0x3b4] ss:$8 sps:$4 sm:$0xff]   ;;  %v13849_v32 = vld [vmem:[%s18510_s9 + $0x2f0] ss:$8 sps:$4 sm:$0xff]  }
 0x98f   : > { %10326 = vmatpush1.bf16.msra.mxu1 %v13804_v55  ;;  %10349 = vmatprep.mubr.bf16.mxu1 %v10142_v61  ;;  %v13857_v55 = vld [vmem:[%s18510_s9 + $0x2e4] ss:$8 sps:$4 sm:$0xff]   ;;  %v13852_v15 = vld [vmem:[%s18510_s9 + $0x3b0] ss:$8 sps:$4 sm:$0xff]   ;;  %v13858_v54 = vld [vmem:[%s18510_s9 + $0x3a0] ss:$8 sps:$4 sm:$0xff]  }
 0x990   : > { %10327 = vmatprep.subr.bf16.mxu1 %v13812_v40  ;;  %10028 = vmatpush1.bf16.msra.mxu0 %v13807_v8  ;;  %v13860_v48 = vld [vmem:[%s18510_s9 + $0x3a4] ss:$8 sps:$4 sm:$0xff]   ;;  %v13855_v40 = vld [vmem:[%s18510_s9 + $0x2e0] ss:$8 sps:$4 sm:$0xff]   ;;  %v13863_v8 = vld [vmem:[%s18510_s9 + $0x2d4] ss:$8 sps:$4 sm:$0xff]  }
 0x991   : > { %10029 = vmatprep.subr.bf16.mxu0 %v13815_v50  ;;  %v13866_v50 = vld [vmem:[%s18510_s9 + $0x394] ss:$8 sps:$4 sm:$0xff]   ;;  %v13861_v19 = vld [vmem:[%s18510_s9 + $0x2d0] ss:$8 sps:$4 sm:$0xff]   ;;  %v10132_v61 = vrot.slane %v9340_v63, 1  ;;  %v10133_v36 = vrot.slane %v9324_v9, 2 }
 0x992   : > { %v13864_v52 = vld [vmem:[%s18510_s9 + $0x390] ss:$8 sps:$4 sm:$0xff]   ;;  %v13870_v63 = vld [vmem:[%s18510_s9 + $0x380] ss:$8 sps:$4 sm:$0xff]   ;;  %v10129_v23 = vrot.slane %v9317_v7, 1  ;;  %v10130_v9 = vrot.slane %v9319_v45, 2 }
 0x993   : > { %10328 = vmatpush1.bf16.msra.mxu1 %v13810_v2  ;;  %9571 = vmatmul.mubr.bf16.gmra.mxu0 %v9347_v25  ;;  %v13869_v2 = vld [vmem:[%s18510_s9 + $0x2c4] ss:$8 sps:$4 sm:$0xff]   ;;  %v10148_v25 = vrot.slane %v9352_v56, 2  ;;  %v10143_v45 = vrot.slane %v9356_v46, 1  ;;  %v13903_v18 = vld [vmem:[#allocation7 + $0x40] ss:$8 sps:$4 sm:$0xff]  }
 0x994   : > { %10329 = vmatprep.subr.bf16.mxu1 %v13818_v59  ;;  %10030 = vmatpush1.bf16.msra.mxu0 %v13813_v31  ;;  %v13872_v59 = vld [vmem:[%s18510_s9 + $0x384] ss:$8 sps:$4 sm:$0xff]   ;;  %v13867_v31 = vld [vmem:[%s18510_s9 + $0x2c0] ss:$8 sps:$4 sm:$0xff]  }
 0x995   : > { %9580 = vmatprep.mubr.bf16.mxu0 %v9361_v49  ;;  %10031 = vmatprep.subr.bf16.mxu0 %v13821_v17  ;;  %v10147_v17 = vrot.slane %v9359_v53, 1  ;;  %v13873_v53 = vld [vmem:[%s18510_s9 + $0x2b0] ss:$8 sps:$4 sm:$0xff]   ;;  %v10134_v49 = vor.u32 %v10133_v36, %v10132_v61  ;;  %v13878_v56 = vld [vmem:[%s18510_s9 + $0x2a4] ss:$8 sps:$4 sm:$0xff]  }
 0x997   : > { %10330 = vmatpush1.bf16.msra.mxu1 %v13816_v10  ;;  %v13875_v10 = vld [vmem:[%s18510_s9 + $0x2b4] ss:$8 sps:$4 sm:$0xff]  }
 0x998   : > { %10331 = vmatprep.subr.bf16.mxu1 %v13824_v33  ;;  %10032 = vmatpush1.bf16.msra.mxu0 %v13819_v41  ;;  %v10149_v33 = vor.u32 %v10148_v25, %v10147_v17  ;;  %v10131_v41 = vor.u32 %v10130_v9, %v10129_v23  ;;  %v13927_v25 = vld [vmem:[#allocation7] ss:$8 sps:$4 sm:$0xff]   ;;  %v13935_v9 = vld [vmem:[#allocation7 + $0xf4] ss:$8 sps:$4 sm:$0xff]  }
 0x999   : > { %10033 = vmatprep.subr.bf16.mxu0 %v13827_v4  ;;  %v10144_v4 = vrot.slane %v9344_v22, 2  ;;  %v13884_v22 = vld [vmem:[%s18510_s9 + $0x284] ss:$8 sps:$4 sm:$0xff]  }
 0x99a   : > { %v10135_v7 = vsel %vm2312_vm4, %v10131_v41, %v10134_v49 }
 0x99b   : > { %10332 = vmatpush1.bf16.msra.mxu1 %v13822_v62  ;;  %9581 = vmatmul.mubr.bf16.gmra.mxu0 %v9358_v26  ;;  %v10150_v62 = vsel %vm2312_vm4, %v18144_v35, %v10149_v33  ;;  %v13882_v35 = vld [vmem:[%s18510_s9 + $0x280] ss:$8 sps:$4 sm:$0xff]   ;;  %v9857_v26 = vrot.slane %v18115_v34, 1 }
 0x99c   : > { %10333 = vmatprep.subr.bf16.mxu1 %v13830_v38  ;;  %10034 = vmatpush1.bf16.msra.mxu0 %v13825_v42  ;;  %v13881_v38 = vld [vmem:[%s18510_s9 + $0x294] ss:$8 sps:$4 sm:$0xff]   ;;  %v13879_v42 = vld [vmem:[%s18510_s9 + $0x290] ss:$8 sps:$4 sm:$0xff]  }
 0x99d   : > { %10057 = vmatprep.mubr.bf16.mxu0 %v9854_v57  ;;  %10035 = vmatprep.subr.bf16.mxu0 %v13833_v27  ;;  %v10145_v27 = vor.u32 %v10144_v4, %v10143_v45  ;;  %v9858_v16 = vsel %vm1869_vm3, %v9853_v28, %v9857_v26  ;;  %v13893_v34 = vld [vmem:[#allocation7 + $0x64] ss:$8 sps:$4 sm:$0xff]   ;;  %v13899_v28 = vld [vmem:[#allocation7 + $0x54] ss:$8 sps:$4 sm:$0xff]   ;;  %v13939_v45 = vld [vmem:[#allocation7 + $0xe0] ss:$8 sps:$4 sm:$0xff]  }
 0x99f   : > { %10334 = vmatpush2.bf16.msra.mxu1 %v13828_v37  ;;  %v10146_v46 = vsel %vm2312_vm4, %v10134_v49, %v10145_v27  ;;  %v13885_v37 = vld [vmem:[#allocation7 + $0x70] ss:$8 sps:$4 sm:$0xff]  }
 0x9a0   : > { %10335 = vmatprep.subr.bf16.mxu1 %v13836_v44  ;;  %10036 = vmatpush1.bf16.msra.mxu0 %v13831_v14  ;;  %v13887_v44 = vld [vmem:[#allocation7 + $0x74] ss:$8 sps:$4 sm:$0xff]  }
 0x9a1   : > { %10037 = vmatprep.subr.bf16.mxu0 %v13839_v13  ;;  %v13897_v13 = vld [vmem:[#allocation7 + $0x50] ss:$8 sps:$4 sm:$0xff]  }
 0x9a3   : > { %10336 = vmatpush2.bf16.msra.mxu1 %v13834_v29  ;;  %v13905_v29 = vld [vmem:[#allocation7 + $0x44] ss:$8 sps:$4 sm:$0xff]  }
 0x9a4   : > { %10337 = vmatprep.subr.bf16.mxu1 %v13842_v0  ;;  %10038 = vmatpush1.bf16.msra.mxu0 %v13837_v39  ;;  %v13911_v0 = vld [vmem:[#allocation7 + $0x34] ss:$8 sps:$4 sm:$0xff]  }
 0x9a5   : > { %10039 = vmatprep.subr.bf16.mxu0 %v13845_v60  ;;  %v13909_v60 = vld [vmem:[#allocation7 + $0x30] ss:$8 sps:$4 sm:$0xff]  }
 0x9a7   : > { %10338 = vmatpush2.bf16.msra.mxu1 %v13840_v30 }
 0x9a8   : > { %10339 = vmatprep.subr.bf16.mxu1 %v13848_v11  ;;  %10040 = vmatpush1.bf16.msra.mxu0 %v13843_v43 }
 0x9a9   : > { %10041 = vmatprep.subr.bf16.mxu0 %v13851_v6  ;;  %v13917_v6 = vld [vmem:[#allocation7 + $0x24] ss:$8 sps:$4 sm:$0xff]  }
 0x9ab   : > { %10340 = vmatpush2.bf16.msra.mxu1 %v13846_v47 }
 0x9ac   : > { %10341 = vmatprep.subr.bf16.mxu1 %v13854_v20  ;;  %10042 = vmatpush2.bf16.msra.mxu0 %v13849_v32 }
 0x9ad   : > { %10043 = vmatprep.subr.bf16.mxu0 %v13857_v55  ;;  %v13915_v55 = vld [vmem:[#allocation7 + $0x20] ss:$8 sps:$4 sm:$0xff]  }
 0x9af   : > { %10342 = vmatpush2.bf16.msra.mxu1 %v13852_v15 }
 0x9b0   : > { %10343 = vmatprep.subr.bf16.mxu1 %v13860_v48  ;;  %10044 = vmatpush2.bf16.msra.mxu0 %v13855_v40 }
 0x9b1   : > { %10045 = vmatprep.subr.bf16.mxu0 %v13863_v8  ;;  %v13923_v8 = vld [vmem:[#allocation7 + $0x14] ss:$8 sps:$4 sm:$0xff]  }
 0x9b3   : > { %10344 = vmatpush2.bf16.msra.mxu1 %v13858_v54 }
 0x9b4   : > { %10345 = vmatprep.subr.bf16.mxu1 %v13866_v50  ;;  %10046 = vmatpush2.bf16.msra.mxu0 %v13861_v19 }
 0x9b5   : > { %10047 = vmatprep.subr.bf16.mxu0 %v13869_v2  ;;  %v13921_v2 = vld [vmem:[#allocation7 + $0x10] ss:$8 sps:$4 sm:$0xff]  }
 0x9b7   : > { %10346 = vmatpush2.bf16.msra.mxu1 %v13864_v52 }
 0x9b8   : > { %10347 = vmatprep.subr.bf16.mxu1 %v13872_v59  ;;  %10048 = vmatpush2.bf16.msra.mxu0 %v13867_v31  ;;  %v13929_v31 = vld [vmem:[#allocation7 + $0x4] ss:$8 sps:$4 sm:$0xff]  }
 0x9b9   : > { %10049 = vmatprep.subr.bf16.mxu0 %v13875_v10 }
 0x9bb   : > { %10348 = vmatpush2.bf16.msra.mxu1 %v13870_v63 }
 0x9bc   : > { %10050 = vmatpush2.bf16.msra.mxu0 %v13873_v53  ;;  %10723 = vmatprep.subr.bf16.mxu1 %v13887_v44  ;;  %v13969_v44 = vld [vmem:[#allocation7 + $0x90] ss:$8 sps:$4 sm:$0xff]  }
 0x9bd   : > { %10051 = vmatprep.subr.bf16.mxu0 %v13878_v56  ;;  %v13933_v56 = vld [vmem:[#allocation7 + $0xf0] ss:$8 sps:$4 sm:$0xff]  }
 0x9be   : > { %10350 = vmatmul.mubr.bf16.vlgmr.msra.gmra.mxu1 %v10135_v7  ;;  %v13941_v7 = vld [vmem:[#allocation7 + $0xe4] ss:$8 sps:$4 sm:$0xff]  }
 0x9bf   : > { %10359 = vmatprep.mubr.bf16.mxu1 %v10150_v62  ;;  %10724 = vmatpush1.bf16.msra.mxu1 %v13885_v37  ;;  %v13947_v62 = vld [vmem:[#allocation7 + $0xd4] ss:$8 sps:$4 sm:$0xff]  }
 0x9c0   : > { %10052 = vmatpush2.bf16.msra.mxu0 %v13876_v51  ;;  %10725 = vmatprep.subr.bf16.mxu1 %v13893_v34  ;;  %v13971_v37 = vld [vmem:[#allocation7 + $0x94] ss:$8 sps:$4 sm:$0xff]  }
 0x9c1   : > { %10053 = vmatprep.subr.bf16.mxu0 %v13881_v38 }
 0x9c4   : > { %10054 = vmatpush2.bf16.msra.mxu0 %v13879_v42  ;;  %v13945_v42 = vld [vmem:[#allocation7 + $0xd0] ss:$8 sps:$4 sm:$0xff]  }
 0x9c5   : > { %10055 = vmatprep.subr.bf16.mxu0 %v13884_v22  ;;  %v13951_v22 = vld [vmem:[#allocation7 + $0xc0] ss:$8 sps:$4 sm:$0xff]  }
 0x9c6   : > { %10360 = vmatmul.mubr.bf16.gmra.mxu1 %v10146_v46  ;;  %v13959_v46 = vld [vmem:[#allocation7 + $0xb4] ss:$8 sps:$4 sm:$0xff]  }
 0x9c7   : > { %10369 = vmatprep.mubr.bf16.mxu1 %v10149_v33 }
 0x9c8   : > { %10056 = vmatpush2.bf16.msra.mxu0 %v13882_v35  ;;  %v13957_v35 = vld [vmem:[#allocation7 + $0xb0] ss:$8 sps:$4 sm:$0xff]  }
 0x9cb   : > { %10058 = vmatmul.mubr.bf16.vlgmr.msra.gmra.mxu0 %v18151_v21  ;;  %v13891_v21 = vld [vmem:[#allocation7 + $0x60] ss:$8 sps:$4 sm:$0xff]  }
 0x9cc   : > { %10067 = vmatprep.mubr.bf16.mxu0 %v9858_v16  ;;  %10726 = vmatpush1.bf16.msra.mxu1 %v13891_v21  ;;  %v13963_v16 = vld [vmem:[#allocation7 + $0xa0] ss:$8 sps:$4 sm:$0xff]  }
 0x9cd   : > { %10727 = vmatprep.subr.bf16.mxu1 %v13899_v28 }
 0x9ce   : > { %10370 = vmatmul.mubr.bf16.gmra.mxu1 %v10145_v27  ;;  %v13953_v27 = vld [vmem:[#allocation7 + $0xc4] ss:$8 sps:$4 sm:$0xff]  }
 0x9d0   : > { %10728 = vmatpush1.bf16.msra.mxu1 %v13897_v13 }
 0x9d1   : > { %10729 = vmatprep.subr.bf16.mxu1 %v13905_v29 }
 0x9d3   : > { %10068 = vmatmul.mubr.bf16.gmra.mxu0 %v18178_v1 }
 0x9d4   : > { %10077 = vmatprep.mubr.bf16.mxu0 %v9857_v26  ;;  %10730 = vmatpush1.bf16.msra.mxu1 %v13903_v18  ;;  %v13965_v26 = vld [vmem:[#allocation7 + $0xa4] ss:$8 sps:$4 sm:$0xff]  }
 0x9d5   : > { %10731 = vmatprep.subr.bf16.mxu1 %v13911_v0 }
 0x9d8   : > { %10732 = vmatpush1.bf16.msra.mxu1 %v13909_v60 }
 0x9d9   : > { %10733 = vmatprep.subr.bf16.mxu1 %v13917_v6 }
 0x9db   : > { %10078 = vmatmul.mubr.bf16.gmra.mxu0 %v9855_v24 }
 0x9dc   : > { %10519 = vmatprep.mubr.bf16.mxu0 %v18755_v12  ;;  %10734 = vmatpush1.bf16.msra.mxu1 %v13915_v55 }
 0x9dd   : > { %10735 = vmatprep.subr.bf16.mxu1 %v13923_v8 }
 0x9e0   : > { %10736 = vmatpush1.bf16.msra.mxu1 %v13921_v2 }
 0x9e1   : > { %10737 = vmatprep.subr.bf16.mxu1 %v13929_v31 }
 0x9e4   : > { %10738 = vmatpush1.bf16.msra.mxu1 %v13927_v25 }
 0x9e5   : > { %10739 = vmatprep.subr.bf16.mxu1 %v13935_v9 }
 0x9e8   : > { %10740 = vmatpush2.bf16.msra.mxu1 %v13933_v56 }
 0x9e9   : > { %10741 = vmatprep.subr.bf16.mxu1 %v13941_v7 }
 0x9ec   : > { %10742 = vmatpush2.bf16.msra.mxu1 %v13939_v45 }
 0x9ed   : > { %10743 = vmatprep.subr.bf16.mxu1 %v13947_v62 }
 0x9f0   : > { %10744 = vmatpush2.bf16.msra.mxu1 %v13945_v42 }
 0x9f1   : > { %10745 = vmatprep.subr.bf16.mxu1 %v13953_v27 }
 0x9f4   : > { %10746 = vmatpush2.bf16.msra.mxu1 %v13951_v22 }
 0x9f5   : > { %10747 = vmatprep.subr.bf16.mxu1 %v13959_v46 }
 0x9f8   : > { %10748 = vmatpush2.bf16.msra.mxu1 %v13957_v35 }
 0x9f9   : > { %10749 = vmatprep.subr.bf16.mxu1 %v13965_v26 }
 0x9fc   : > { %10750 = vmatpush2.bf16.msra.mxu1 %v13963_v16 }
 0x9fd   : > { %10751 = vmatprep.subr.bf16.mxu1 %v13971_v37 }
 0xa00   : > { %10752 = vmatpush2.bf16.msra.mxu1 %v13969_v44 }
 0xa3e   : > { %v9783_v57 = vpop.f32.mrf.mxu1 }
 0xa40   : > { %v9785_v5 = vpop.f32.mrf.mxu1 }
 0xa42   : > { %v9787_v14 = vpop.f32.mrf.mxu1 }
 0xa44   : > { %v9789_v1 = vpop.f32.mrf.mxu1 }
 0xa46   : > { %v9793_v24 = vpop.f32.mrf.mxu1 }
 0xa48   : > { %v9795_v39 = vpop.f32.mrf.mxu1 }
 0xa4a   : > { %v9797_v11 = vpop.f32.mrf.mxu1 }
 0xa4b   : > { %v9562_v30 = vpop.f32.mrf.mxu0 }
 0xa4c   : > { %v18355_v43 = vadd.f32 %v9783_v57, %v9562_v30  ;;  %v9799_v20 = vpop.f32.mrf.mxu1 }
 0xa4d   : > { %v9564_v47 = vpop.f32.mrf.mxu0 }
 0xa4e   : > { %v18357_v32 = vadd.f32 %v9785_v5, %v9564_v47  ;;  %v9803_v48 = vpop.f32.mrf.mxu1 }
 0xa4f   : > { %v9566_v15 = vpop.f32.mrf.mxu0 }
 0xa50   : > { %v18359_v40 = vadd.f32 %v9787_v14, %v9566_v15  ;;  %v18361_v50 = vpop.f32.mrf.mxu1 }
 0xa51   : > { %v9568_v54 = vpop.f32.mrf.mxu0 }
 0xa52   : > { %v18363_v19 = vadd.f32 %v9789_v1, %v9568_v54  ;;  %v9807_v59 = vpop.f32.mrf.mxu1  ;;  %v9250_v1 = vld [vmem:[%s18511_s10] sm:$0x3] }
 0xa53   : > { %v9572_v52 = vpop.f32.mrf.mxu0  ;;  %v18382_v0 = vrot.slane %v9250_v1, %v18052_v58  ;;  %v18386_v6 = vrot.slane %v9250_v1, %v18050_v3 }
 0xa54   : > { %v18365_v61 = vadd.f32 %v9793_v24, %v9572_v52  ;;  %v9808_v17 = vpop.f32.mrf.mxu1 }
 0xa55   : > { %v9574_v36 = vpop.f32.mrf.mxu0 }
 0xa56   : > { %v18367_v10 = vadd.f32 %v9795_v39, %v9574_v36 }
 0xa57   : > { %v9576_v63 = vpop.f32.mrf.mxu0 }
 0xa58   : > { %v18369_v23 = vadd.f32 %v9797_v11, %v9576_v63 }
 0xa59   : > { %v9578_v53 = vpop.f32.mrf.mxu0 }
 0xa5a   : > { %v18371_v49 = vadd.f32 %v9799_v20, %v9578_v53 }
 0xa5b   : > { %v9582_v33 = vpop.f32.mrf.mxu0 }
 0xa5c   : > { %v18373_v41 = vadd.f32 %v9803_v48, %v9582_v33 }
 0xa5d   : > { %v18375_v51 = vpop.f32.mrf.mxu0 }
 0xa5f   : > { %v9586_v4 = vpop.f32.mrf.mxu0 }
 0xa61   : > { %v9587_v38 = vpop.f32.mrf.mxu0 }
 0xa7e   : > { %v10351_v34 = vpop.f32.mrf.mxu1 }
 0xa80   : > { %v10353_v57 = vpop.f32.mrf.mxu1 }
 0xa82   : > { %v10355_v21 = vpop.f32.mrf.mxu1 }
 0xa84   : > { %v10357_v5 = vpop.f32.mrf.mxu1 }
 0xa86   : > { %v10361_v28 = vpop.f32.mrf.mxu1 }
 0xa88   : > { %v10363_v14 = vpop.f32.mrf.mxu1 }
 0xa8a   : > { %v10365_v13 = vpop.f32.mrf.mxu1 }
 0xa8b   : > { %v10059_v29 = vpop.f32.mrf.mxu0 }
 0xa8c   : > { %v10367_v18 = vpop.f32.mrf.mxu1  ;;  %v10086_v24 = vadd.f32 %v10059_v29, %v18355_v43 }
 0xa8d   : > { %v10061_v39 = vpop.f32.mrf.mxu0 }
 0xa8e   : > { %v10371_v60 = vpop.f32.mrf.mxu1  ;;  %v10378_v30 = vadd.f32 %v10351_v34, %v10086_v24  ;;  %v10087_v11 = vadd.f32 %v10061_v39, %v18357_v32 }
 0xa8f   : > { %v10063_v47 = vpop.f32.mrf.mxu0 }
 0xa90   : > { %v10373_v20 = vpop.f32.mrf.mxu1  ;;  %v10379_v55 = vadd.f32 %v10353_v57, %v10087_v11  ;;  %v10088_v15 = vadd.f32 %v10063_v47, %v18359_v40  ;;  %v10399_v48 = vadd.f32 %v18382_v0, %v10378_v30 }
 0xa91   : > { %v10065_v8 = vpop.f32.mrf.mxu0 }
 0xa92   : > { %v10375_v43 = vpop.f32.mrf.mxu1  ;;  %v10380_v54 = vadd.f32 %v10355_v21, %v10088_v15  ;;  %v10089_v2 = vadd.f32 %v10065_v8, %v18363_v19  ;;  %v10400_v52 = vadd.f32 %v18386_v6, %v10379_v55  ;;  %v10409_v17 = vmax.f32 %v10399_v48, 0.0 }
 0xa93   : > { %v10069_v59 = vpop.f32.mrf.mxu0  ;;  %v9806_v21 = vadd.f32 %v18361_v50, %v18375_v51 }
 0xa94   : > { %v10376_v31 = vpop.f32.mrf.mxu1  ;;  %v10401_v32 = vadd.f32 %v18382_v0, %v10380_v54  ;;  %v10381_v36 = vadd.f32 %v10357_v5, %v10089_v2  ;;  %v10090_v25 = vadd.f32 %v10069_v59, %v18365_v61  ;;  %v10410_v56 = vmax.f32 %v10400_v52, 0.0 }
 0xa95   : > { %v10071_v63 = vpop.f32.mrf.mxu0  ;;  %v10429_v38 = vrot.slane %v10409_v17, 1 }
 0xa96   : > { %v10411_v9 = vmax.f32 %v10401_v32, 0.0  ;;  %v10402_v40 = vadd.f32 %v18386_v6, %v10381_v36  ;;  %v10091_v53 = vadd.f32 %v10071_v63, %v18367_v10  ;;  %v10382_v33 = vadd.f32 %v10361_v28, %v10090_v25 }
 0xa97   : > { %v10073_v7 = vpop.f32.mrf.mxu0  ;;  %v10432_v26 = vrot.slane %v10410_v56, 1 }
 0xa98   : > { %v10430_v19 = vrot.slane %v10411_v9, 1  ;;  %v10412_v45 = vmax.f32 %v10402_v40, 0.0  ;;  %v10383_v4 = vadd.f32 %v10363_v14, %v10091_v53  ;;  %v10092_v62 = vadd.f32 %v10073_v7, %v18369_v23 }
 0xa99   : > { %v10403_v42 = vadd.f32 %v18382_v0, %v10382_v33  ;;  %v10075_v27 = vpop.f32.mrf.mxu0 }
 0xa9a   : > { %v10433_v22 = vrot.slane %v10412_v45, 1  ;;  %v10404_v61 = vadd.f32 %v18386_v6, %v10383_v4  ;;  %v10384_v46 = vadd.f32 %v10365_v13, %v10092_v62  ;;  %v10093_v35 = vadd.f32 %v10075_v27, %v18371_v49  ;;  %v13888_v27 = vld [vmem:[#allocation7 + $0x170] ss:$8 sps:$4 sm:$0xff]  }
 0xa9b   : > { %v10413_v10 = vmax.f32 %v10403_v42, 0.0  ;;  %v10079_v16 = vpop.f32.mrf.mxu0  ;;  %v10431_v37 = vsel %vm1869_vm3, %v10429_v38, %v10430_v19  ;;  %v13890_v38 = vld [vmem:[#allocation7 + $0x174] ss:$8 sps:$4 sm:$0xff]   ;;  %v10473_v42 = vld [vmem:[%s18514_s13] sm:$0xf] }
 0xa9c   : > { %v10414_v44 = vmax.f32 %v10404_v61, 0.0  ;;  %v10405_v34 = vadd.f32 %v18382_v0, %v10384_v46  ;;  %v10385_v57 = vadd.f32 %v10367_v18, %v10093_v35  ;;  %v10094_v23 = vadd.f32 %v10079_v16, %v18373_v41  ;;  %v13902_v61 = vld [vmem:[#allocation7 + $0x154] ss:$8 sps:$4 sm:$0xff]   ;;  %v13900_v46 = vld [vmem:[#allocation7 + $0x150] ss:$8 sps:$4 sm:$0xff]  }
 0xa9d   : > { %v10435_v5 = vrot.slane %v10413_v10, 1  ;;  %v10081_v28 = vpop.f32.mrf.mxu0  ;;  %v10434_v14 = vsel %vm1869_vm3, %v10432_v26, %v10433_v22  ;;  %v10457_v13 = vmax.f32 %v10409_v17, %v10431_v37  ;;  %v13908_v35 = vld [vmem:[#allocation7 + $0x144] ss:$8 sps:$4 sm:$0xff]   ;;  %v13906_v26 = vld [vmem:[#allocation7 + $0x140] ss:$8 sps:$4 sm:$0xff]  }
 0xa9e   : > { %v10437_v49 = vrot.slane %v10414_v44, 1  ;;  %v10415_v1 = vmax.f32 %v10405_v34, 0.0  ;;  %v10406_v29 = vadd.f32 %v18386_v6, %v10385_v57  ;;  %v10386_v24 = vadd.f32 %v10371_v60, %v10094_v23  ;;  %v13912_v16 = vld [vmem:[#allocation7 + $0x130] ss:$8 sps:$4 sm:$0xff]   ;;  %v13920_v37 = vld [vmem:[#allocation7 + $0x124] ss:$8 sps:$4 sm:$0xff]  }
 0xa9f   : > { %v10095_v39 = vadd.f32 %v10081_v28, %v9806_v21  ;;  %v10083_v30 = vpop.f32.mrf.mxu0  ;;  %v10458_v11 = vmax.f32 %v10410_v56, %v10434_v14  ;;  %v10436_v18 = vsel %vm1869_vm3, %v10430_v19, %v10435_v5  ;;  %v10480_v19 = vsel %vm10478_vm13, 65535, %v18755_v12  ;;  %v13894_v12 = vld [vmem:[#allocation7 + $0x160] ss:$8 sps:$4 sm:$0xff]   ;;  %v13926_v34 = vld [vmem:[#allocation7 + $0x114] ss:$8 sps:$4 sm:$0xff]  }
 0xaa0   : > { %v10439_v47 = vrot.slane %v10415_v1, 1  ;;  %v10416_v41 = vmax.f32 %v10406_v29, 0.0  ;;  %v10407_v55 = vadd.f32 %v18382_v0, %v10386_v24  ;;  %v10438_v50 = vsel %vm1869_vm3, %v10433_v22, %v10437_v49  ;;  %v13896_v22 = vld [vmem:[#allocation7 + $0x164] ss:$8 sps:$4 sm:$0xff]   ;;  %v13924_v57 = vld [vmem:[#allocation7 + $0x110] ss:$8 sps:$4 sm:$0xff]  }
 0xaa1   : > { %v10387_v51 = vadd.f32 %v10373_v20, %v10095_v39  ;;  %v10084_v15 = vpop.f32.mrf.mxu0  ;;  %v10460_v48 = vmax.f32 %v10412_v45, %v10438_v50  ;;  %v10459_v8 = vmax.f32 %v10411_v9, %v10436_v18  ;;  %v13932_v23 = vld [vmem:[#allocation7 + $0x104] ss:$8 sps:$4 sm:$0xff]   ;;  %v13930_v21 = vld [vmem:[#allocation7 + $0x100] ss:$8 sps:$4 sm:$0xff]   ;;  %v13936_v28 = vld [vmem:[#allocation7 + $0x1f0] ss:$8 sps:$4 sm:$0xff]  }
 0xaa2   : > { %v10441_v43 = vrot.slane %v10416_v41, 1  ;;  %v10417_v54 = vmax.f32 %v10407_v55, 0.0  ;;  %v10440_v2 = vsel %vm1869_vm3, %v10435_v5, %v10439_v47  ;;  %v13938_v5 = vld [vmem:[#allocation7 + $0x1f4] ss:$8 sps:$4 sm:$0xff]   ;;  %v13944_v14 = vld [vmem:[#allocation7 + $0x1e4] ss:$8 sps:$4 sm:$0xff]  }
 0xaa3   : > { %v10408_v60 = vadd.f32 %v18386_v6, %v10387_v51  ;;  %v10461_v52 = vmax.f32 %v10413_v10, %v10440_v2  ;;  %v10468_v59 = vpack.c.bf16 %v10460_v48, %v10458_v11  ;;  %v10467_v31 = vpack.c.bf16 %v10459_v8, %v10457_v13  ;;  %v13914_v10 = vld [vmem:[#allocation7 + $0x134] ss:$8 sps:$4 sm:$0xff]   ;;  %v13942_v13 = vld [vmem:[#allocation7 + $0x1e0] ss:$8 sps:$4 sm:$0xff]   ;;  %v13956_v29 = vld [vmem:[#allocation7 + $0x1c4] ss:$8 sps:$4 sm:$0xff]  }
 0xaa4   : > { %v10443_v32 = vrot.slane %v10417_v54, 1  ;;  %v10442_v36 = vsel %vm1869_vm3, %v10437_v49, %v10441_v43  ;;  %v13950_v49 = vld [vmem:[#allocation7 + $0x1d4] ss:$8 sps:$4 sm:$0xff]   ;;  %v13954_v24 = vld [vmem:[#allocation7 + $0x1c0] ss:$8 sps:$4 sm:$0xff]  }
 0xaa5   : > { %v10418_v17 = vmax.f32 %v10408_v60, 0.0  ;;  %v10462_v0 = vmax.f32 %v10414_v44, %v10442_v36  ;;  %v13918_v44 = vld [vmem:[#allocation7 + $0x120] ss:$8 sps:$4 sm:$0xff]   ;;  %v13962_v39 = vld [vmem:[#allocation7 + $0x1b4] ss:$8 sps:$4 sm:$0xff]  }
 0xaa6   : > { %v10465_v25 = vmax.f32 %v10417_v54, %v10443_v32  ;;  %v10444_v20 = vsel %vm1869_vm3, %v10439_v47, %v10443_v32  ;;  %v13960_v30 = vld [vmem:[#allocation7 + $0x1b0] ss:$8 sps:$4 sm:$0xff]   ;;  %v13968_v11 = vld [vmem:[#allocation7 + $0x1a4] ss:$8 sps:$4 sm:$0xff]   ;;  %v13966_v18 = vld [vmem:[#allocation7 + $0x1a0] ss:$8 sps:$4 sm:$0xff]  }
 0xaa7   : > { %v10445_v63 = vrot.slane %v10418_v17, 1  ;;  %v10463_v40 = vmax.f32 %v10415_v1, %v10444_v20  ;;  %v13948_v1 = vld [vmem:[#allocation7 + $0x1d0] ss:$8 sps:$4 sm:$0xff]   ;;  %v13975_v55 = vld [vmem:[#allocation7 + $0x80] ss:$8 sps:$4 sm:$0xff]  }
 0xaa8   : > { %v10471_v33 = vpack.c.bf16 %v10465_v25, %v10465_v25  ;;  %v13972_v47 = vld [vmem:[#allocation7 + $0x190] ss:$8 sps:$4 sm:$0xff]   ;;  %v13977_v50 = vld [vmem:[#allocation7 + $0x84] ss:$8 sps:$4 sm:$0xff]   ;;  %v13978_v51 = vld [vmem:[#allocation7 + $0x180] ss:$8 sps:$4 sm:$0xff]  }
 0xaa9   : > { %v10466_v9 = vmax.f32 %v10418_v17, %v10445_v63  ;;  %v10446_v53 = vsel %vm1869_vm3, %v10441_v43, %v10445_v63  ;;  %v10469_v56 = vpack.c.bf16 %v10463_v40, %v10461_v52  ;;  %v13980_v15 = vld [vmem:[#allocation7 + $0x184] ss:$8 sps:$4 sm:$0xff]   ;;  %10753 = vmatprep.subr.bf16.mxu1 %v13977_v50  ;;  %v13986_v25 = vld [vmem:[%s18518_s17 + $0x28] sm:$0xff]  }
 0xaaa   : > { %v10464_v6 = vmax.f32 %v10416_v41, %v10446_v53  ;;  %v10482_v62 = vand.u32 %v10480_v19, %v10471_v33  ;;  %v13974_v41 = vld [vmem:[#allocation7 + $0x194] ss:$8 sps:$4 sm:$0xff]   ;;  %10754 = vmatpush2.bf16.msra.mxu1 %v13975_v55  ;;  %v13981_v48 = vld [vmem:[%s18518_s17 + $0x78] sm:$0xff]  }
 0xaab   : > { %v10472_v7 = vpack.c.bf16 %v10466_v9, %v10466_v9  ;;  %12758 = vmatprep.subr.bf16.mxu1 %v13981_v48  ;;  %v13982_v60 = vld [vmem:[%s18518_s17 + $0x38] sm:$0xff]   ;;  %v13984_v17 = vld [vmem:[%s18518_s17 + $0x30] sm:$0xff]   ;;  %v13987_v20 = vld [vmem:[%s18518_s17 + $0x60] sm:$0xff]  }
 0xaac   : > { %v10470_v45 = vpack.c.bf16 %v10464_v6, %v10462_v0  ;;  %v13985_v0 = vld [vmem:[%s18518_s17 + $0x68] sm:$0xff]   ;;  %v13988_v63 = vld [vmem:[%s18518_s17 + $0x20] sm:$0xff]   ;;  %v13989_v40 = vld [vmem:[%s18518_s17 + $0x58] sm:$0xff]  }
 0xaad   : > { %v10485_v4 = vand.u32 %v10480_v19, %v10472_v7  ;;  %v13990_v9 = vld [vmem:[%s18518_s17 + $0x18] sm:$0xff]   ;;  %v13991_v53 = vld [vmem:[%s18518_s17 + $0x50] sm:$0xff]   ;;  %v13993_v33 = vld [vmem:[%s18518_s17 + $0x48] sm:$0xff]  }
 0xaae   : > { %v13994_v6 = vld [vmem:[%s18518_s17 + $0x8] sm:$0xff]   ;;  %v13995_v7 = vld [vmem:[%s18518_s17 + $0x40] sm:$0xff]  }
 0xaaf   : > { %10497 = vmatprep.subr.bf16.mxu0 %v10485_v4  ;;  %v13996_v19 = vld [vmem:[%s18518_s17] sm:$0xff]  }
 0xab0   : > { %10498 = vmatpush1.bf16.msra.mxu0 %v10482_v62  ;;  %v12531_v48 = vld [vmem:[%s18521_s20] ss:$0 sm:$0xff] }
 0xab1   : > { %10499 = vmatprep.subr.bf16.mxu0 %v10470_v45  ;;  %v10530_v45 = vld [vmem:[%s18516_s15] sm:$0x3] }
 0xab2   : > { %v10768_v4 = vrot.slane %v10530_v45, %v18052_v58  ;;  %v10772_v62 = vrot.slane %v10530_v45, %v18050_v3 }
 0xab4   : > { %10500 = vmatpush1.bf16.msra.mxu0 %v10469_v56  ;;  %v13992_v56 = vld [vmem:[%s18518_s17 + $0x10] sm:$0xff]  }
 0xab5   : > { %10501 = vmatprep.subr.bf16.mxu0 %v10468_v59  ;;  %v13983_v59 = vld [vmem:[%s18518_s17 + $0x70] sm:$0xff]  }
 0xab8   : > { %10502 = vmatpush1.bf16.msra.mxu0 %v10467_v31 }
 0xab9   : > { %10976 = vmatprep.subr.bf16.mxu0 %v13890_v38 }
 0xabb   : > { %12446 = vmatmul.mubr.msk.bf16.vlgmr.msra.gmra.mxu0 %vm10474_vm14, %v10473_v42  ;;  %v11021_v42 = vld [vmem:[%s18517_s16] ss:$2 sm:$0x3] }
 0xabc   : > { %10977 = vmatpush1.bf16.msra.mxu0 %v13888_v27 }
 0xabd   : > { %10978 = vmatprep.subr.bf16.mxu0 %v13896_v22 }
 0xac0   : > { %10979 = vmatpush1.bf16.msra.mxu0 %v13894_v12 }
 0xac1   : > { %10980 = vmatprep.subr.bf16.mxu0 %v13902_v61 }
 0xac4   : > { %10981 = vmatpush1.bf16.msra.mxu0 %v13900_v46 }
 0xac5   : > { %10982 = vmatprep.subr.bf16.mxu0 %v13908_v35  ;;  %v11026_v35 = vrot.slane %v11021_v42, %v18052_v58 }
 0xac8   : > { %10983 = vmatpush1.bf16.msra.mxu0 %v13906_v26  ;;  %v12511_v26 = vld [vmem:[%s18517_s16 + $0x1] ss:$2 sm:$0x3] }
 0xac9   : > { %10984 = vmatprep.subr.bf16.mxu0 %v13914_v10 }
 0xacc   : > { %10985 = vmatpush1.bf16.msra.mxu0 %v13912_v16 }
 0xacd   : > { %10986 = vmatprep.subr.bf16.mxu0 %v13920_v37 }
 0xad0   : > { %10987 = vmatpush1.bf16.msra.mxu0 %v13918_v44 }
 0xad1   : > { %10988 = vmatprep.subr.bf16.mxu0 %v13926_v34  ;;  %v11030_v34 = vrot.slane %v11021_v42, %v18050_v3 }
 0xad4   : > { %10989 = vmatpush1.bf16.msra.mxu0 %v13924_v57  ;;  %v11041_v57 = vrot.slane %v12511_v26, %v18052_v58 }
 0xad5   : > { %10990 = vmatprep.subr.bf16.mxu0 %v13932_v23 }
 0xad8   : > { %10991 = vmatpush1.bf16.msra.mxu0 %v13930_v21 }
 0xad9   : > { %10992 = vmatprep.subr.bf16.mxu0 %v13938_v5 }
 0xadc   : > { %10993 = vmatpush2.bf16.msra.mxu0 %v13936_v28 }
 0xadd   : > { %10994 = vmatprep.subr.bf16.mxu0 %v13944_v14  ;;  %v11045_v14 = vrot.slane %v12511_v26, %v18050_v3  ;;  %v12529_v3 = vld [vmem:[%s18520_s19] ss:$0 sm:$0xff] }
 0xae0   : > { %10995 = vmatpush2.bf16.msra.mxu0 %v13942_v13 }
 0xae1   : > { %10996 = vmatprep.subr.bf16.mxu0 %v13950_v49 }
 0xae4   : > { %10997 = vmatpush2.bf16.msra.mxu0 %v13948_v1 }
 0xae5   : > { %10998 = vmatprep.subr.bf16.mxu0 %v13956_v29 }
 0xae8   : > { %10999 = vmatpush2.bf16.msra.mxu0 %v13954_v24 }
 0xae9   : > { %11000 = vmatprep.subr.bf16.mxu0 %v13962_v39 }
 0xaec   : > { %11001 = vmatpush2.bf16.msra.mxu0 %v13960_v30 }
 0xaed   : > { %11002 = vmatprep.subr.bf16.mxu0 %v13968_v11  ;;  %v12512_v11 = vld [vmem:[%s18519_s18] ss:$0 sm:$0xff] }
 0xaf0   : > { %11003 = vmatpush2.bf16.msra.mxu0 %v13966_v18 }
 0xaf1   : > { %11004 = vmatprep.subr.bf16.mxu0 %v13974_v41 }
 0xaf4   : > { %11005 = vmatpush2.bf16.msra.mxu0 %v13972_v47 }
 0xaf5   : > { %11006 = vmatprep.subr.bf16.mxu0 %v13980_v15 }
 0xaf8   : > { %11007 = vmatpush2.bf16.msra.mxu0 %v13978_v51  ;;  %v12530_v51 = vld [vmem:[%s18520_s19 + $0x1] ss:$0 sm:$0xff] }
 0xb7b   : > { %v10521_v8 = vpop.f32.mrf.mxu0 }
 0xb7c   : > { %v10528_v43 = vpack.c.bf16 %v10521_v8, %v10521_v8 }
 0xb7d   : > { %v10523_v54 = vpop.f32.mrf.mxu0 }
 0xb7e   : > { %v10529_v2 = vpack.c.bf16 %v10523_v54, %v10523_v54  ;;  %v10812_v32 = vrot.slane %v10528_v43, 2 }
 0xb7f   : > { %v10525_v52 = vpop.f32.mrf.mxu0 }
 0xb80   : > { %v10813_v31 = vrot.slane %v10529_v2, 2  ;;  %10755 = vmatprep.mubr.bf16.mxu1 %v10529_v2  ;;  %v12532_v2 = vld [vmem:[#allocation2] ss:$0 sm:$0xff] }
 0xb81   : > { %10756 = vmatmul.mubr.bf16.vlgmr.msra.gmra.mxu1 %v10528_v43  ;;  %v10526_v36 = vpop.f32.mrf.mxu0 }
 0xb82   : > { %11008 = vmatprep.mubr.bf16.mxu0 %v10813_v31  ;;  %12759 = vmatpush3.bf16.msra.mxu1 %v13982_v60 }
 0xb83   : > { %11009 = vmatmul.mubr.bf16.vlgmr.msra.gmra.mxu0 %v10812_v32  ;;  %12760 = vmatprep.subr.bf16.mxu1 %v13983_v59 }
 0xb86   : > { %12761 = vmatpush3.bf16.msra.mxu1 %v13984_v17 }
 0xb87   : > { %12762 = vmatprep.subr.bf16.mxu1 %v13985_v0 }
 0xb8a   : > { %12763 = vmatpush3.bf16.msra.mxu1 %v13986_v25 }
 0xb8b   : > { %12764 = vmatprep.subr.bf16.mxu1 %v13987_v20 }
 0xb8e   : > { %12765 = vmatpush3.bf16.msra.mxu1 %v13988_v63 }
 0xb8f   : > { %12766 = vmatprep.subr.bf16.mxu1 %v13989_v40 }
 0xb92   : > { %12767 = vmatpush3.bf16.msra.mxu1 %v13990_v9 }
 0xb93   : > { %12768 = vmatprep.subr.bf16.mxu1 %v13991_v53 }
 0xb96   : > { %12769 = vmatpush3.bf16.msra.mxu1 %v13992_v56 }
 0xb97   : > { %12770 = vmatprep.subr.bf16.mxu1 %v13993_v33 }
 0xb9a   : > { %12771 = vmatpush3.bf16.msra.mxu1 %v13994_v6 }
 0xb9b   : > { %12772 = vmatprep.subr.bf16.mxu1 %v13995_v7 }
 0xb9e   : > { %12773 = vmatpush3.bf16.msra.mxu1 %v13996_v19 }
 0xc41   : > { %v10757_v38 = vpop.f32.mrf.mxu1 }
 0xc42   : > { %v10775_v27 = vadd.f32 %v10768_v4, %v10757_v38 }
 0xc43   : > { %v10759_v22 = vpop.f32.mrf.mxu1  ;;  %v11010_v12 = vpop.f32.mrf.mxu0 }
 0xc44   : > { %v10776_v61 = vadd.f32 %v10772_v62, %v10759_v22  ;;  %v11017_v46 = vadd.f32 %v11010_v12, %v10775_v27 }
 0xc45   : > { %v11012_v10 = vpop.f32.mrf.mxu0  ;;  %v10761_v16 = vpop.f32.mrf.mxu1 }
 0xc46   : > { %v11019_v37 = vmax.f32 %v11017_v46, 0.0  ;;  %v11018_v44 = vadd.f32 %v11012_v10, %v10776_v61 }
 0xc47   : > { %v10762_v23 = vpop.f32.mrf.mxu1  ;;  %v11014_v21 = vpop.f32.mrf.mxu0 }
 0xc48   : > { %v11033_v5 = vmul.f32 %v11026_v35, %v11019_v37  ;;  %v11020_v28 = vmax.f32 %v11018_v44, 0.0 }
 0xc49   : > { %v11015_v13 = vpop.f32.mrf.mxu0 }
 0xc4a   : > { %v11034_v49 = vmul.f32 %v11030_v34, %v11020_v28  ;;  %v11048_v1 = vadd.f32 %v11041_v57, %v11033_v5 }
 0xc4c   : > { %v11049_v29 = vadd.f32 %v11045_v14, %v11034_v49  ;;  %v11050_v39 = vpack.c.bf16 %v11048_v1, %v11048_v1 }
 0xc4e   : > { %v11051_v24 = vpack.c.bf16 %v11049_v29, %v11049_v29 }
 0xc50   : > { %11219 = vmatprep.mubr.bf16.mxu1 %v11051_v24 }
 0xc51   : > { %11220 = vmatmul.mubr.bf16.vlgmr.msra.gmra.mxu1 %v11050_v39 }
 0xd11   : > { %v12774_v30 = vpop.f32.mrf.mxu1 }
 0xd13   : > { %v12775_v58 = vpop.f32.mrf.mxu1 }
 0xd14   : > { %v12776_v18 = vadd.f32 %v12775_v58, %v12774_v30 }
 0xd15   : > { %v12777_v47 = vpop.f32.mrf.mxu1 }
 0xd16   : > { %v11222_v41 = vadd.f32 %v12776_v18, %v12512_v11 }
 0xd17   : > { %v12778_v55 = vpop.f32.mrf.mxu1 }
 0xd18   : > { %v11227_v50 = vmax.f32 %v11222_v41, 0.0 }
 0xd1a   : > { %v11233_v15 = vmul.f32 %v12529_v3, %v11227_v50 }
 0xd1c   : > { %v11239_v8 = vadd.f32 %v12530_v51, %v11233_v15 }
 0xd1e   : > { %v11247_v43 = vmul.f32 %v12531_v48, %v11239_v8 }
 0xd20   : > { %v11249_v54 = vsel %vm11248_vm15, %v11247_v43, 0.0 }
 0xd21   : > { %11250 = vadd.xlane.f32.xlu0 %v11249_v54 }
 0xdaa   : > { %v11251_v60 = vpop.xlane.xlu0 %11250 }
 0xdab   : > { %v11259_v52 = vadd.f32 %v12532_v2, %v11251_v60 }
 0xdad   : > { %11261 = vst.msk [vmem:[%s727_s26] sm:$0xf] %vm11260_vm0, %v11259_v52 }
 0xdae PF: > { %s36_s29 = sadd.s32 1, %s14123_s29  }
 0xdaf   : > { %p33_p3 = scmp.ge.s32.totalorder %s36_s29, 4  }
 0xdb1   :  { %35 = sbr.rel (!%p33_p3) target bundleno = 10 (0xa), region = 176 }
 0xdb6   :  { %11281 = vsyncpa [#allocation4], 1 }
 0xdb7   :  { %11283 = vsyncpa [#allocation4 + $0x1], 1 }
 0xdb8   :  { %11284 = vsyncpa [#allocation6], 1 }

</bundles_post_ra>
